<compile_context>
chip_gen: v7x
topology: tpu7x:2x2x1
jax: 0.10.0
libtpu: 0.0.40
codegen_flags: <defaults>
</compile_context>

<pallas_src>
import jax
import jax.numpy as jnp
import numpy as np
from jax.experimental import pallas as pl
from jax.experimental.pallas import tpu as pltpu

K = 5          # conv kernel size
PAD = K // 2   # SAME padding


def _extractor_kernel(x_ref, w1_ref, b1_ref, w2_ref, b2_ref, o_ref,
                      pad1, im2col1, scr1a, scr1b,
                      pad2, im2col2, scr2a, scr2b):
    """Fused: conv5x5+ReLU+pool2 -> conv5x5+ReLU+pool2 for one batch element.

    x_ref   : (1, H, W, Cin)            unpadded NHWC input tile
    w1_ref  : (25*Cin, C1)   b1_ref: (1, C1)
    w2_ref  : (25*C1,  C2)   b2_ref: (1, C2)
    o_ref   : (1, H//4, (W//4)*C2)      lane-dense pooled output
    pad1    : (H+4, W+4, Cin)           zero-halo padded stage-1 input
    im2col1 : (H*W, 25*Cin)             stage-1 im2col LHS
    scr1a   : (H, W, C1)                stage-1 conv+ReLU result
    scr1b   : (H//2, W, C1)             stage-1 after H-pooling
    pad2    : (H//2+4, W//2+4, C1)      zero-halo padded stage-2 input
    im2col2 : ((H//2)*(W//2), 25*C1)    stage-2 im2col LHS
    scr2a   : (H//2, W//2, C2)          stage-2 conv+ReLU result
    scr2b   : (H//4, W//2, C2)          stage-2 after H-pooling
    """
    H1, W1, C1 = scr1a.shape
    C0 = x_ref.shape[3]
    H2, W2, C2 = scr2a.shape
    H3, W3 = H2 // 2, W2 // 2

    # ---------------- stage 1: conv5x5(Cin->C1) + ReLU + maxpool2 ----------
    # in-kernel SAME padding (zero halo, interior overwritten)
    pad1[...] = jnp.zeros_like(pad1)
    pad1[PAD:PAD + H1, PAD:PAD + W1, :] = x_ref[0]

    # im2col: 25 shifted windows packed on the lane dim -> ONE MXU matmul
    for kh in range(K):
        for kw in range(K):
            off = (kh * K + kw) * C0
            im2col1[:, off:off + C0] = (
                pad1[kh:kh + H1, kw:kw + W1, :].reshape(H1 * W1, C0))
    y1 = jnp.dot(im2col1[...], w1_ref[...], preferred_element_type=jnp.float32)
    y1 = jnp.maximum(y1 + b1_ref[...], 0.0)                 # bias + ReLU (VPU)
    scr1a[...] = y1.reshape(H1, W1, C1)

    # 2x2 max-pool: H (stride-2 leading dim), then W (stride-2 sublane dim)
    scr1b[...] = jnp.maximum(scr1a[pl.ds(0, H2, 2), :, :],
                             scr1a[pl.ds(1, H2, 2), :, :])
    p1 = jnp.maximum(scr1b[:, pl.ds(0, W2, 2), :],
                     scr1b[:, pl.ds(1, W2, 2), :])           # (H2, W2, C1)

    # ---------------- stage 2: conv5x5(C1->C2) + ReLU + maxpool2 -----------
    pad2[...] = jnp.zeros_like(pad2)
    pad2[PAD:PAD + H2, PAD:PAD + W2, :] = p1                 # stays in VMEM

    for kh in range(K):
        for kw in range(K):
            off = (kh * K + kw) * C1
            im2col2[:, off:off + C1] = (
                pad2[kh:kh + H2, kw:kw + W2, :].reshape(H2 * W2, C1))
    y2 = jnp.dot(im2col2[...], w2_ref[...], preferred_element_type=jnp.float32)
    y2 = jnp.maximum(y2 + b2_ref[...], 0.0)
    scr2a[...] = y2.reshape(H2, W2, C2)

    scr2b[...] = jnp.maximum(scr2a[pl.ds(0, H3, 2), :, :],
                             scr2a[pl.ds(1, H3, 2), :, :])   # (H3, W2, C2)

    # W-pool + lane-dense store: output row h = [w=0 | w=1 | ... ] * C2 lanes
    for w in range(W3):
        col = jnp.maximum(scr2b[:, 2 * w, :], scr2b[:, 2 * w + 1, :])  # (H3, C2)
        o_ref[0, :, w * C2:(w + 1) * C2] = col.astype(o_ref.dtype)


def extractor_forward(x_nchw, params):
    """Pallas version of Extractor.forward for source='mnist' (mnist/mnistm branch).

    x_nchw: (N, 3, H, W) float32 -> (N, 48, H//4, W//4) float32 (NCHW, like PyTorch).
    """
    x = jnp.transpose(x_nchw, (0, 2, 3, 1)).astype(jnp.float32)   # NCHW -> NHWC
    N, H, W, C0 = x.shape
    C1 = params["w1"].shape[-1]            # 32
    C2 = params["w2"].shape[-1]            # 48
    H2, W2 = H // 2, W // 2
    H3, W3 = H // 4, W // 4

    # weights reshaped to im2col form: row = kh*5*Cin + kw*Cin + cin
    w1r = params["w1"].astype(jnp.float32).reshape(K * K * C0, C1)
    w2r = params["w2"].astype(jnp.float32).reshape(K * K * C1, C2)
    b1 = params["b1"].astype(jnp.float32).reshape(1, C1)
    b2 = params["b2"].astype(jnp.float32).reshape(1, C2)

    out = pl.pallas_call(
        _extractor_kernel,
        out_shape=jax.ShapeDtypeStruct((N, H3, W3 * C2), jnp.float32),
        grid_spec=pltpu.PrefetchScalarGridSpec(
            num_scalar_prefetch=0,
            grid=(N,),
            in_specs=[
                pl.BlockSpec((1, H, W, C0), lambda n: (n, 0, 0, 0)),
                pl.BlockSpec((K * K * C0, C1), lambda n: (0, 0)),
                pl.BlockSpec((1, C1), lambda n: (0, 0)),
                pl.BlockSpec((K * K * C1, C2), lambda n: (0, 0)),
                pl.BlockSpec((1, C2), lambda n: (0, 0)),
            ],
            out_specs=pl.BlockSpec((1, H3, W3 * C2), lambda n: (n, 0, 0)),
            scratch_shapes=[
                pltpu.VMEM((H + 2 * PAD, W + 2 * PAD, C0), jnp.float32),     # pad1
                pltpu.VMEM((H * W, K * K * C0), jnp.float32),                # im2col1
                pltpu.VMEM((H, W, C1), jnp.float32),                         # scr1a
                pltpu.VMEM((H2, W, C1), jnp.float32),                        # scr1b
                pltpu.VMEM((H2 + 2 * PAD, W2 + 2 * PAD, C1), jnp.float32),   # pad2
                pltpu.VMEM((H2 * W2, K * K * C1), jnp.float32),              # im2col2
                pltpu.VMEM((H2, W2, C2), jnp.float32),                       # scr2a
                pltpu.VMEM((H3, W2, C2), jnp.float32),                       # scr2b
            ],
        ),
        compiler_params=pltpu.CompilerParams(
            dimension_semantics=("parallel",)),   # batch axis -> 2 TCs on v7x
    )(x, w1r, b1, w2r, b2)

    out = out.reshape(N, H3, W3, C2)           # lane-dense -> NHWC (contiguous)
    return jnp.transpose(out, (0, 3, 1, 2))    # NHWC -> NCHW
    # TODO(synk): usps_extractor / svhn_extractor branches (incl. BatchNorm2d,
    # Dropout2d) and conv1x1 are not exercised by this source/target config.


def init_params(key):
    """Deterministic init, PyTorch-default-style uniform(-1/sqrt(fan_in), 1/sqrt(fan_in))."""
    k1, k2, k3, k4 = jax.random.split(key, 4)

    def conv_init(kw, kb, cin, cout):
        bound = 1.0 / np.sqrt(cin * K * K)
        w = jax.random.uniform(kw, (K, K, cin, cout), jnp.float32, -bound, bound)
        b = jax.random.uniform(kb, (cout,), jnp.float32, -bound, bound)
        return w, b

    w1, b1 = conv_init(k1, k2, 3, 32)
    w2, b2 = conv_init(k3, k4, 32, 48)
    return {"w1": w1, "b1": b1, "w2": w2, "b2": b2}


def _reference_forward(x_nchw, params):
    """Pure-JAX reference (lax conv + reduce_window) for correctness check."""

    def block(x, w, b):
        y = jax.lax.conv_general_dilated(
            x, w, window_strides=(1, 1), padding=((2, 2), (2, 2)),
            dimension_numbers=("NHWC", "HWIO", "NHWC"),
        )
        y = jax.nn.relu(y + b)
        return jax.lax.reduce_window(
            y, -jnp.inf, jax.lax.max,
            window_dimensions=(1, 2, 2, 1), window_strides=(1, 2, 2, 1),
            padding="VALID",
        )

    x = jnp.transpose(x_nchw, (0, 2, 3, 1))
    x = block(x, params["w1"], params["b1"])
    x = block(x, params["w2"], params["b2"])
    return jnp.transpose(x, (0, 3, 1, 2))


if __name__ == "__main__":
    key = jax.random.PRNGKey(0)
    kx, kp = jax.random.split(key)

    # Extractor(source='mnist', target='mnistm') -> uses self.extractor branch.
    N, C, H, W = 2, 3, 16, 16
    x = jax.random.normal(kx, (N, C, H, W), jnp.float32)
    params = init_params(kp)

    out = jax.block_until_ready(extractor_forward(x, params))
    assert out.shape == (N, 48, H // 4, W // 4), out.shape

    ref = jax.block_until_ready(_reference_forward(x, params))
    np.testing.assert_allclose(np.asarray(out), np.asarray(ref), rtol=1e-3, atol=2e-3)

    print("KERNEL_OK")
</pallas_src>

<mosaic_0001>
module attributes {stable_mosaic.version = 11 : i64} {
  func.func @_extractor_kernel(%arg0: i32, %arg1: memref<1x16x16x3xf32, #tpu.memory_space<vmem>>, %arg2: memref<75x32xf32, #tpu.memory_space<vmem>>, %arg3: memref<1x32xf32, #tpu.memory_space<vmem>>, %arg4: memref<800x48xf32, #tpu.memory_space<vmem>>, %arg5: memref<1x48xf32, #tpu.memory_space<vmem>>, %arg6: memref<1x4x192xf32, #tpu.memory_space<vmem>>, %arg7: memref<20x20x3xf32, #tpu.memory_space<vmem>>, %arg8: memref<256x75xf32, #tpu.memory_space<vmem>>, %arg9: memref<16x16x32xf32, #tpu.memory_space<vmem>>, %arg10: memref<8x16x32xf32, #tpu.memory_space<vmem>>, %arg11: memref<12x12x32xf32, #tpu.memory_space<vmem>>, %arg12: memref<64x800xf32, #tpu.memory_space<vmem>>, %arg13: memref<8x8x48xf32, #tpu.memory_space<vmem>>, %arg14: memref<4x8x48xf32, #tpu.memory_space<vmem>>) attributes {dimension_semantics = [#tpu.dimension_semantics<parallel>], iteration_bounds = array<i64: 2>, scalar_prefetch = 0 : i64, scratch_operands = 8 : i64, tpu.core_type = #tpu.core_type<tc>, window_params = [{transform_indices = @transform_0, window_bounds = array<i64: 1, 16, 16, 3>}, {pipeline_mode = #tpu.pipeline_mode<synchronous>, transform_indices = @transform_1, window_bounds = array<i64: 75, 32>}, {pipeline_mode = #tpu.pipeline_mode<synchronous>, transform_indices = @transform_2, window_bounds = array<i64: 1, 32>}, {pipeline_mode = #tpu.pipeline_mode<synchronous>, transform_indices = @transform_3, window_bounds = array<i64: 800, 48>}, {pipeline_mode = #tpu.pipeline_mode<synchronous>, transform_indices = @transform_4, window_bounds = array<i64: 1, 48>}, {transform_indices = @transform_5, window_bounds = array<i64: 1, 4, 192>}]} {
    %cst = arith.constant 0.000000e+00 : f32
    %0 = vector.broadcast %cst : f32 to vector<20x20x3xf32>
    %c0 = arith.constant 0 : index
    %c0_0 = arith.constant 0 : index
    %c0_1 = arith.constant 0 : index
    %1 = vector.load %arg7[%c0, %c0_0, %c0_1] : memref<20x20x3xf32, #tpu.memory_space<vmem>>, vector<20x20x3xf32>
    tpu.vector_store %arg7[%c0, %c0_0, %c0_1], %0 {strides = array<i32>} : memref<20x20x3xf32, #tpu.memory_space<vmem>>, vector<20x20x3xf32>,
    %c0_2 = arith.constant 0 : index
    %c0_3 = arith.constant 0 : index
    %c0_4 = arith.constant 0 : index
    %c0_5 = arith.constant 0 : index
    %2 = vector.load %arg1[%c0_2, %c0_3, %c0_4, %c0_5] : memref<1x16x16x3xf32, #tpu.memory_space<vmem>>, vector<1x16x16x3xf32>
    %3 = vector.shape_cast %2 : vector<1x16x16x3xf32> to vector<16x16x3xf32>
    %c2 = arith.constant 2 : index
    %c2_6 = arith.constant 2 : index
    %c0_7 = arith.constant 0 : index
    %4 = vector.load %arg7[%c2, %c2_6, %c0_7] : memref<20x20x3xf32, #tpu.memory_space<vmem>>, vector<16x16x3xf32>
    tpu.vector_store %arg7[%c2, %c2_6, %c0_7], %3 {strides = array<i32>} : memref<20x20x3xf32, #tpu.memory_space<vmem>>, vector<16x16x3xf32>,
    %c0_8 = arith.constant 0 : index
    %c0_9 = arith.constant 0 : index
    %c0_10 = arith.constant 0 : index
    %5 = vector.load %arg7[%c0_8, %c0_9, %c0_10] : memref<20x20x3xf32, #tpu.memory_space<vmem>>, vector<16x16x3xf32>
    %6 = vector.shape_cast %5 : vector<16x16x3xf32> to vector<256x3xf32>
    %c0_11 = arith.constant 0 : index
    %c0_12 = arith.constant 0 : index
    %7 = vector.load %arg8[%c0_11, %c0_12] : memref<256x75xf32, #tpu.memory_space<vmem>>, vector<256x3xf32>
    tpu.vector_store %arg8[%c0_11, %c0_12], %6 {strides = array<i32>} : memref<256x75xf32, #tpu.memory_space<vmem>>, vector<256x3xf32>,
    %c0_13 = arith.constant 0 : index
    %c1 = arith.constant 1 : index
    %c0_14 = arith.constant 0 : index
    %8 = vector.load %arg7[%c0_13, %c1, %c0_14] : memref<20x20x3xf32, #tpu.memory_space<vmem>>, vector<16x16x3xf32>
    %9 = vector.shape_cast %8 : vector<16x16x3xf32> to vector<256x3xf32>
    %c0_15 = arith.constant 0 : index
    %c3 = arith.constant 3 : index
    %10 = vector.load %arg8[%c0_15, %c3] : memref<256x75xf32, #tpu.memory_space<vmem>>, vector<256x3xf32>
    tpu.vector_store %arg8[%c0_15, %c3], %9 {strides = array<i32>} : memref<256x75xf32, #tpu.memory_space<vmem>>, vector<256x3xf32>,
    %c0_16 = arith.constant 0 : index
    %c2_17 = arith.constant 2 : index
    %c0_18 = arith.constant 0 : index
    %11 = vector.load %arg7[%c0_16, %c2_17, %c0_18] : memref<20x20x3xf32, #tpu.memory_space<vmem>>, vector<16x16x3xf32>
    %12 = vector.shape_cast %11 : vector<16x16x3xf32> to vector<256x3xf32>
    %c0_19 = arith.constant 0 : index
    %c6 = arith.constant 6 : index
    %13 = vector.load %arg8[%c0_19, %c6] : memref<256x75xf32, #tpu.memory_space<vmem>>, vector<256x3xf32>
    tpu.vector_store %arg8[%c0_19, %c6], %12 {strides = array<i32>} : memref<256x75xf32, #tpu.memory_space<vmem>>, vector<256x3xf32>,
    %c0_20 = arith.constant 0 : index
    %c3_21 = arith.constant 3 : index
    %c0_22 = arith.constant 0 : index
    %14 = vector.load %arg7[%c0_20, %c3_21, %c0_22] : memref<20x20x3xf32, #tpu.memory_space<vmem>>, vector<16x16x3xf32>
    %15 = vector.shape_cast %14 : vector<16x16x3xf32> to vector<256x3xf32>
    %c0_23 = arith.constant 0 : index
    %c9 = arith.constant 9 : index
    %16 = vector.load %arg8[%c0_23, %c9] : memref<256x75xf32, #tpu.memory_space<vmem>>, vector<256x3xf32>
    tpu.vector_store %arg8[%c0_23, %c9], %15 {strides = array<i32>} : memref<256x75xf32, #tpu.memory_space<vmem>>, vector<256x3xf32>,
    %c0_24 = arith.constant 0 : index
    %c4 = arith.constant 4 : index
    %c0_25 = arith.constant 0 : index
    %17 = vector.load %arg7[%c0_24, %c4, %c0_25] : memref<20x20x3xf32, #tpu.memory_space<vmem>>, vector<16x16x3xf32>
    %18 = vector.shape_cast %17 : vector<16x16x3xf32> to vector<256x3xf32>
    %c0_26 = arith.constant 0 : index
    %c12 = arith.constant 12 : index
    %19 = vector.load %arg8[%c0_26, %c12] : memref<256x75xf32, #tpu.memory_space<vmem>>, vector<256x3xf32>
    tpu.vector_store %arg8[%c0_26, %c12], %18 {strides = array<i32>} : memref<256x75xf32, #tpu.memory_space<vmem>>, vector<256x3xf32>,
    %c1_27 = arith.constant 1 : index
    %c0_28 = arith.constant 0 : index
    %c0_29 = arith.constant 0 : index
    %20 = vector.load %arg7[%c1_27, %c0_28, %c0_29] : memref<20x20x3xf32, #tpu.memory_space<vmem>>, vector<16x16x3xf32>
    %21 = vector.shape_cast %20 : vector<16x16x3xf32> to vector<256x3xf32>
    %c0_30 = arith.constant 0 : index
    %c15 = arith.constant 15 : index
    %22 = vector.load %arg8[%c0_30, %c15] : memref<256x75xf32, #tpu.memory_space<vmem>>, vector<256x3xf32>
    tpu.vector_store %arg8[%c0_30, %c15], %21 {strides = array<i32>} : memref<256x75xf32, #tpu.memory_space<vmem>>, vector<256x3xf32>,
    %c1_31 = arith.constant 1 : index
    %c1_32 = arith.constant 1 : index
    %c0_33 = arith.constant 0 : index
    %23 = vector.load %arg7[%c1_31, %c1_32, %c0_33] : memref<20x20x3xf32, #tpu.memory_space<vmem>>, vector<16x16x3xf32>
    %24 = vector.shape_cast %23 : vector<16x16x3xf32> to vector<256x3xf32>
    %c0_34 = arith.constant 0 : index
    %c18 = arith.constant 18 : index
    %25 = vector.load %arg8[%c0_34, %c18] : memref<256x75xf32, #tpu.memory_space<vmem>>, vector<256x3xf32>
    tpu.vector_store %arg8[%c0_34, %c18], %24 {strides = array<i32>} : memref<256x75xf32, #tpu.memory_space<vmem>>, vector<256x3xf32>,
    %c1_35 = arith.constant 1 : index
    %c2_36 = arith.constant 2 : index
    %c0_37 = arith.constant 0 : index
    %26 = vector.load %arg7[%c1_35, %c2_36, %c0_37] : memref<20x20x3xf32, #tpu.memory_space<vmem>>, vector<16x16x3xf32>
    %27 = vector.shape_cast %26 : vector<16x16x3xf32> to vector<256x3xf32>
    %c0_38 = arith.constant 0 : index
    %c21 = arith.constant 21 : index
    %28 = vector.load %arg8[%c0_38, %c21] : memref<256x75xf32, #tpu.memory_space<vmem>>, vector<256x3xf32>
    tpu.vector_store %arg8[%c0_38, %c21], %27 {strides = array<i32>} : memref<256x75xf32, #tpu.memory_space<vmem>>, vector<256x3xf32>,
    %c1_39 = arith.constant 1 : index
    %c3_40 = arith.constant 3 : index
    %c0_41 = arith.constant 0 : index
    %29 = vector.load %arg7[%c1_39, %c3_40, %c0_41] : memref<20x20x3xf32, #tpu.memory_space<vmem>>, vector<16x16x3xf32>
    %30 = vector.shape_cast %29 : vector<16x16x3xf32> to vector<256x3xf32>
    %c0_42 = arith.constant 0 : index
    %c24 = arith.constant 24 : index
    %31 = vector.load %arg8[%c0_42, %c24] : memref<256x75xf32, #tpu.memory_space<vmem>>, vector<256x3xf32>
    tpu.vector_store %arg8[%c0_42, %c24], %30 {strides = array<i32>} : memref<256x75xf32, #tpu.memory_space<vmem>>, vector<256x3xf32>,
    %c1_43 = arith.constant 1 : index
    %c4_44 = arith.constant 4 : index
    %c0_45 = arith.constant 0 : index
    %32 = vector.load %arg7[%c1_43, %c4_44, %c0_45] : memref<20x20x3xf32, #tpu.memory_space<vmem>>, vector<16x16x3xf32>
    %33 = vector.shape_cast %32 : vector<16x16x3xf32> to vector<256x3xf32>
    %c0_46 = arith.constant 0 : index
    %c27 = arith.constant 27 : index
    %34 = vector.load %arg8[%c0_46, %c27] : memref<256x75xf32, #tpu.memory_space<vmem>>, vector<256x3xf32>
    tpu.vector_store %arg8[%c0_46, %c27], %33 {strides = array<i32>} : memref<256x75xf32, #tpu.memory_space<vmem>>, vector<256x3xf32>,
    %c2_47 = arith.constant 2 : index
    %c0_48 = arith.constant 0 : index
    %c0_49 = arith.constant 0 : index
    %35 = vector.load %arg7[%c2_47, %c0_48, %c0_49] : memref<20x20x3xf32, #tpu.memory_space<vmem>>, vector<16x16x3xf32>
    %36 = vector.shape_cast %35 : vector<16x16x3xf32> to vector<256x3xf32>
    %c0_50 = arith.constant 0 : index
    %c30 = arith.constant 30 : index
    %37 = vector.load %arg8[%c0_50, %c30] : memref<256x75xf32, #tpu.memory_space<vmem>>, vector<256x3xf32>
    tpu.vector_store %arg8[%c0_50, %c30], %36 {strides = array<i32>} : memref<256x75xf32, #tpu.memory_space<vmem>>, vector<256x3xf32>,
    %c2_51 = arith.constant 2 : index
    %c1_52 = arith.constant 1 : index
    %c0_53 = arith.constant 0 : index
    %38 = vector.load %arg7[%c2_51, %c1_52, %c0_53] : memref<20x20x3xf32, #tpu.memory_space<vmem>>, vector<16x16x3xf32>
    %39 = vector.shape_cast %38 : vector<16x16x3xf32> to vector<256x3xf32>
    %c0_54 = arith.constant 0 : index
    %c33 = arith.constant 33 : index
    %40 = vector.load %arg8[%c0_54, %c33] : memref<256x75xf32, #tpu.memory_space<vmem>>, vector<256x3xf32>
    tpu.vector_store %arg8[%c0_54, %c33], %39 {strides = array<i32>} : memref<256x75xf32, #tpu.memory_space<vmem>>, vector<256x3xf32>,
    %c2_55 = arith.constant 2 : index
    %c2_56 = arith.constant 2 : index
    %c0_57 = arith.constant 0 : index
    %41 = vector.load %arg7[%c2_55, %c2_56, %c0_57] : memref<20x20x3xf32, #tpu.memory_space<vmem>>, vector<16x16x3xf32>
    %42 = vector.shape_cast %41 : vector<16x16x3xf32> to vector<256x3xf32>
    %c0_58 = arith.constant 0 : index
    %c36 = arith.constant 36 : index
    %43 = vector.load %arg8[%c0_58, %c36] : memref<256x75xf32, #tpu.memory_space<vmem>>, vector<256x3xf32>
    tpu.vector_store %arg8[%c0_58, %c36], %42 {strides = array<i32>} : memref<256x75xf32, #tpu.memory_space<vmem>>, vector<256x3xf32>,
    %c2_59 = arith.constant 2 : index
    %c3_60 = arith.constant 3 : index
    %c0_61 = arith.constant 0 : index
    %44 = vector.load %arg7[%c2_59, %c3_60, %c0_61] : memref<20x20x3xf32, #tpu.memory_space<vmem>>, vector<16x16x3xf32>
    %45 = vector.shape_cast %44 : vector<16x16x3xf32> to vector<256x3xf32>
    %c0_62 = arith.constant 0 : index
    %c39 = arith.constant 39 : index
    %46 = vector.load %arg8[%c0_62, %c39] : memref<256x75xf32, #tpu.memory_space<vmem>>, vector<256x3xf32>
    tpu.vector_store %arg8[%c0_62, %c39], %45 {strides = array<i32>} : memref<256x75xf32, #tpu.memory_space<vmem>>, vector<256x3xf32>,
    %c2_63 = arith.constant 2 : index
    %c4_64 = arith.constant 4 : index
    %c0_65 = arith.constant 0 : index
    %47 = vector.load %arg7[%c2_63, %c4_64, %c0_65] : memref<20x20x3xf32, #tpu.memory_space<vmem>>, vector<16x16x3xf32>
    %48 = vector.shape_cast %47 : vector<16x16x3xf32> to vector<256x3xf32>
    %c0_66 = arith.constant 0 : index
    %c42 = arith.constant 42 : index
    %49 = vector.load %arg8[%c0_66, %c42] : memref<256x75xf32, #tpu.memory_space<vmem>>, vector<256x3xf32>
    tpu.vector_store %arg8[%c0_66, %c42], %48 {strides = array<i32>} : memref<256x75xf32, #tpu.memory_space<vmem>>, vector<256x3xf32>,
    %c3_67 = arith.constant 3 : index
    %c0_68 = arith.constant 0 : index
    %c0_69 = arith.constant 0 : index
    %50 = vector.load %arg7[%c3_67, %c0_68, %c0_69] : memref<20x20x3xf32, #tpu.memory_space<vmem>>, vector<16x16x3xf32>
    %51 = vector.shape_cast %50 : vector<16x16x3xf32> to vector<256x3xf32>
    %c0_70 = arith.constant 0 : index
    %c45 = arith.constant 45 : index
    %52 = vector.load %arg8[%c0_70, %c45] : memref<256x75xf32, #tpu.memory_space<vmem>>, vector<256x3xf32>
    tpu.vector_store %arg8[%c0_70, %c45], %51 {strides = array<i32>} : memref<256x75xf32, #tpu.memory_space<vmem>>, vector<256x3xf32>,
    %c3_71 = arith.constant 3 : index
    %c1_72 = arith.constant 1 : index
    %c0_73 = arith.constant 0 : index
    %53 = vector.load %arg7[%c3_71, %c1_72, %c0_73] : memref<20x20x3xf32, #tpu.memory_space<vmem>>, vector<16x16x3xf32>
    %54 = vector.shape_cast %53 : vector<16x16x3xf32> to vector<256x3xf32>
    %c0_74 = arith.constant 0 : index
    %c48 = arith.constant 48 : index
    %55 = vector.load %arg8[%c0_74, %c48] : memref<256x75xf32, #tpu.memory_space<vmem>>, vector<256x3xf32>
    tpu.vector_store %arg8[%c0_74, %c48], %54 {strides = array<i32>} : memref<256x75xf32, #tpu.memory_space<vmem>>, vector<256x3xf32>,
    %c3_75 = arith.constant 3 : index
    %c2_76 = arith.constant 2 : index
    %c0_77 = arith.constant 0 : index
    %56 = vector.load %arg7[%c3_75, %c2_76, %c0_77] : memref<20x20x3xf32, #tpu.memory_space<vmem>>, vector<16x16x3xf32>
    %57 = vector.shape_cast %56 : vector<16x16x3xf32> to vector<256x3xf32>
    %c0_78 = arith.constant 0 : index
    %c51 = arith.constant 51 : index
    %58 = vector.load %arg8[%c0_78, %c51] : memref<256x75xf32, #tpu.memory_space<vmem>>, vector<256x3xf32>
    tpu.vector_store %arg8[%c0_78, %c51], %57 {strides = array<i32>} : memref<256x75xf32, #tpu.memory_space<vmem>>, vector<256x3xf32>,
    %c3_79 = arith.constant 3 : index
    %c3_80 = arith.constant 3 : index
    %c0_81 = arith.constant 0 : index
    %59 = vector.load %arg7[%c3_79, %c3_80, %c0_81] : memref<20x20x3xf32, #tpu.memory_space<vmem>>, vector<16x16x3xf32>
    %60 = vector.shape_cast %59 : vector<16x16x3xf32> to vector<256x3xf32>
    %c0_82 = arith.constant 0 : index
    %c54 = arith.constant 54 : index
    %61 = vector.load %arg8[%c0_82, %c54] : memref<256x75xf32, #tpu.memory_space<vmem>>, vector<256x3xf32>
    tpu.vector_store %arg8[%c0_82, %c54], %60 {strides = array<i32>} : memref<256x75xf32, #tpu.memory_space<vmem>>, vector<256x3xf32>,
    %c3_83 = arith.constant 3 : index
    %c4_84 = arith.constant 4 : index
    %c0_85 = arith.constant 0 : index
    %62 = vector.load %arg7[%c3_83, %c4_84, %c0_85] : memref<20x20x3xf32, #tpu.memory_space<vmem>>, vector<16x16x3xf32>
    %63 = vector.shape_cast %62 : vector<16x16x3xf32> to vector<256x3xf32>
    %c0_86 = arith.constant 0 : index
    %c57 = arith.constant 57 : index
    %64 = vector.load %arg8[%c0_86, %c57] : memref<256x75xf32, #tpu.memory_space<vmem>>, vector<256x3xf32>
    tpu.vector_store %arg8[%c0_86, %c57], %63 {strides = array<i32>} : memref<256x75xf32, #tpu.memory_space<vmem>>, vector<256x3xf32>,
    %c4_87 = arith.constant 4 : index
    %c0_88 = arith.constant 0 : index
    %c0_89 = arith.constant 0 : index
    %65 = vector.load %arg7[%c4_87, %c0_88, %c0_89] : memref<20x20x3xf32, #tpu.memory_space<vmem>>, vector<16x16x3xf32>
    %66 = vector.shape_cast %65 : vector<16x16x3xf32> to vector<256x3xf32>
    %c0_90 = arith.constant 0 : index
    %c60 = arith.constant 60 : index
    %67 = vector.load %arg8[%c0_90, %c60] : memref<256x75xf32, #tpu.memory_space<vmem>>, vector<256x3xf32>
    tpu.vector_store %arg8[%c0_90, %c60], %66 {strides = array<i32>} : memref<256x75xf32, #tpu.memory_space<vmem>>, vector<256x3xf32>,
    %c4_91 = arith.constant 4 : index
    %c1_92 = arith.constant 1 : index
    %c0_93 = arith.constant 0 : index
    %68 = vector.load %arg7[%c4_91, %c1_92, %c0_93] : memref<20x20x3xf32, #tpu.memory_space<vmem>>, vector<16x16x3xf32>
    %69 = vector.shape_cast %68 : vector<16x16x3xf32> to vector<256x3xf32>
    %c0_94 = arith.constant 0 : index
    %c63 = arith.constant 63 : index
    %70 = vector.load %arg8[%c0_94, %c63] : memref<256x75xf32, #tpu.memory_space<vmem>>, vector<256x3xf32>
    tpu.vector_store %arg8[%c0_94, %c63], %69 {strides = array<i32>} : memref<256x75xf32, #tpu.memory_space<vmem>>, vector<256x3xf32>,
    %c4_95 = arith.constant 4 : index
    %c2_96 = arith.constant 2 : index
    %c0_97 = arith.constant 0 : index
    %71 = vector.load %arg7[%c4_95, %c2_96, %c0_97] : memref<20x20x3xf32, #tpu.memory_space<vmem>>, vector<16x16x3xf32>
    %72 = vector.shape_cast %71 : vector<16x16x3xf32> to vector<256x3xf32>
    %c0_98 = arith.constant 0 : index
    %c66 = arith.constant 66 : index
    %73 = vector.load %arg8[%c0_98, %c66] : memref<256x75xf32, #tpu.memory_space<vmem>>, vector<256x3xf32>
    tpu.vector_store %arg8[%c0_98, %c66], %72 {strides = array<i32>} : memref<256x75xf32, #tpu.memory_space<vmem>>, vector<256x3xf32>,
    %c4_99 = arith.constant 4 : index
    %c3_100 = arith.constant 3 : index
    %c0_101 = arith.constant 0 : index
    %74 = vector.load %arg7[%c4_99, %c3_100, %c0_101] : memref<20x20x3xf32, #tpu.memory_space<vmem>>, vector<16x16x3xf32>
    %75 = vector.shape_cast %74 : vector<16x16x3xf32> to vector<256x3xf32>
    %c0_102 = arith.constant 0 : index
    %c69 = arith.constant 69 : index
    %76 = vector.load %arg8[%c0_102, %c69] : memref<256x75xf32, #tpu.memory_space<vmem>>, vector<256x3xf32>
    tpu.vector_store %arg8[%c0_102, %c69], %75 {strides = array<i32>} : memref<256x75xf32, #tpu.memory_space<vmem>>, vector<256x3xf32>,
    %c4_103 = arith.constant 4 : index
    %c4_104 = arith.constant 4 : index
    %c0_105 = arith.constant 0 : index
    %77 = vector.load %arg7[%c4_103, %c4_104, %c0_105] : memref<20x20x3xf32, #tpu.memory_space<vmem>>, vector<16x16x3xf32>
    %78 = vector.shape_cast %77 : vector<16x16x3xf32> to vector<256x3xf32>
    %c0_106 = arith.constant 0 : index
    %c72 = arith.constant 72 : index
    %79 = vector.load %arg8[%c0_106, %c72] : memref<256x75xf32, #tpu.memory_space<vmem>>, vector<256x3xf32>
    tpu.vector_store %arg8[%c0_106, %c72], %78 {strides = array<i32>} : memref<256x75xf32, #tpu.memory_space<vmem>>, vector<256x3xf32>,
    %c0_107 = arith.constant 0 : index
    %c0_108 = arith.constant 0 : index
    %80 = vector.load %arg8[%c0_107, %c0_108] : memref<256x75xf32, #tpu.memory_space<vmem>>, vector<256x75xf32>
    %c0_109 = arith.constant 0 : index
    %c0_110 = arith.constant 0 : index
    %81 = vector.load %arg2[%c0_109, %c0_110] : memref<75x32xf32, #tpu.memory_space<vmem>>, vector<75x32xf32>
    %cst_111 = arith.constant dense<0.000000e+00> : vector<256x32xf32>
    %82 = tpu.matmul %80, %81, %cst_111 {dimension_numbers = #tpu.dot_dimension_numbers<[1], [0], [0], [1], [0, 0, 1, 1], [], []>} : vector<256x75xf32>, vector<75x32xf32>, vector<256x32xf32> -> vector<256x32xf32>
    %c0_112 = arith.constant 0 : index
    %c0_113 = arith.constant 0 : index
    %83 = vector.load %arg3[%c0_112, %c0_113] : memref<1x32xf32, #tpu.memory_space<vmem>>, vector<1x32xf32>
    %84 = vector.broadcast %83 : vector<1x32xf32> to vector<256x32xf32>
    %85 = arith.addf %82, %84 : vector<256x32xf32>
    %cst_114 = arith.constant 0.000000e+00 : f32
    %86 = vector.broadcast %cst_114 : f32 to vector<256x32xf32>
    %87 = arith.maximumf %85, %86 : vector<256x32xf32>
    %88 = vector.shape_cast %87 : vector<256x32xf32> to vector<16x16x32xf32>
    %c0_115 = arith.constant 0 : index
    %c0_116 = arith.constant 0 : index
    %c0_117 = arith.constant 0 : index
    %89 = vector.load %arg9[%c0_115, %c0_116, %c0_117] : memref<16x16x32xf32, #tpu.memory_space<vmem>>, vector<16x16x32xf32>
    tpu.vector_store %arg9[%c0_115, %c0_116, %c0_117], %88 {strides = array<i32>} : memref<16x16x32xf32, #tpu.memory_space<vmem>>, vector<16x16x32xf32>,
    %c0_118 = arith.constant 0 : index
    %c0_119 = arith.constant 0 : index
    %c0_120 = arith.constant 0 : index
    %90 = tpu.strided_load %arg9[%c0_118, %c0_119, %c0_120] {strides = array<i32: 2, 1, 1>} : memref<16x16x32xf32, #tpu.memory_space<vmem>>, vector<8x16x32xf32>
    %c1_121 = arith.constant 1 : index
    %c0_122 = arith.constant 0 : index
    %c0_123 = arith.constant 0 : index
    %91 = tpu.strided_load %arg9[%c1_121, %c0_122, %c0_123] {strides = array<i32: 2, 1, 1>} : memref<16x16x32xf32, #tpu.memory_space<vmem>>, vector<8x16x32xf32>
    %92 = arith.maximumf %90, %91 : vector<8x16x32xf32>
    %c0_124 = arith.constant 0 : index
    %c0_125 = arith.constant 0 : index
    %c0_126 = arith.constant 0 : index
    %93 = vector.load %arg10[%c0_124, %c0_125, %c0_126] : memref<8x16x32xf32, #tpu.memory_space<vmem>>, vector<8x16x32xf32>
    tpu.vector_store %arg10[%c0_124, %c0_125, %c0_126], %92 {strides = array<i32>} : memref<8x16x32xf32, #tpu.memory_space<vmem>>, vector<8x16x32xf32>,
    %c0_127 = arith.constant 0 : index
    %c0_128 = arith.constant 0 : index
    %c0_129 = arith.constant 0 : index
    %94 = tpu.strided_load %arg10[%c0_127, %c0_128, %c0_129] {strides = array<i32: 1, 2, 1>} : memref<8x16x32xf32, #tpu.memory_space<vmem>>, vector<8x8x32xf32>
    %c0_130 = arith.constant 0 : index
    %c1_131 = arith.constant 1 : index
    %c0_132 = arith.constant 0 : index
    %95 = tpu.strided_load %arg10[%c0_130, %c1_131, %c0_132] {strides = array<i32: 1, 2, 1>} : memref<8x16x32xf32, #tpu.memory_space<vmem>>, vector<8x8x32xf32>
    %96 = arith.maximumf %94, %95 : vector<8x8x32xf32>
    %cst_133 = arith.constant 0.000000e+00 : f32
    %97 = vector.broadcast %cst_133 : f32 to vector<12x12x32xf32>
    %c0_134 = arith.constant 0 : index
    %c0_135 = arith.constant 0 : index
    %c0_136 = arith.constant 0 : index
    %98 = vector.load %arg11[%c0_134, %c0_135, %c0_136] : memref<12x12x32xf32, #tpu.memory_space<vmem>>, vector<12x12x32xf32>
    tpu.vector_store %arg11[%c0_134, %c0_135, %c0_136], %97 {strides = array<i32>} : memref<12x12x32xf32, #tpu.memory_space<vmem>>, vector<12x12x32xf32>,
    %c2_137 = arith.constant 2 : index
    %c2_138 = arith.constant 2 : index
    %c0_139 = arith.constant 0 : index
    %99 = vector.load %arg11[%c2_137, %c2_138, %c0_139] : memref<12x12x32xf32, #tpu.memory_space<vmem>>, vector<8x8x32xf32>
    tpu.vector_store %arg11[%c2_137, %c2_138, %c0_139], %96 {strides = array<i32>} : memref<12x12x32xf32, #tpu.memory_space<vmem>>, vector<8x8x32xf32>,
    %c0_140 = arith.constant 0 : index
    %c0_141 = arith.constant 0 : index
    %c0_142 = arith.constant 0 : index
    %100 = vector.load %arg11[%c0_140, %c0_141, %c0_142] : memref<12x12x32xf32, #tpu.memory_space<vmem>>, vector<8x8x32xf32>
    %101 = vector.shape_cast %100 : vector<8x8x32xf32> to vector<64x32xf32>
    %c0_143 = arith.constant 0 : index
    %c0_144 = arith.constant 0 : index
    %102 = vector.load %arg12[%c0_143, %c0_144] : memref<64x800xf32, #tpu.memory_space<vmem>>, vector<64x32xf32>
    tpu.vector_store %arg12[%c0_143, %c0_144], %101 {strides = array<i32>} : memref<64x800xf32, #tpu.memory_space<vmem>>, vector<64x32xf32>,
    %c0_145 = arith.constant 0 : index
    %c1_146 = arith.constant 1 : index
    %c0_147 = arith.constant 0 : index
    %103 = vector.load %arg11[%c0_145, %c1_146, %c0_147] : memref<12x12x32xf32, #tpu.memory_space<vmem>>, vector<8x8x32xf32>
    %104 = vector.shape_cast %103 : vector<8x8x32xf32> to vector<64x32xf32>
    %c0_148 = arith.constant 0 : index
    %c32 = arith.constant 32 : index
    %105 = vector.load %arg12[%c0_148, %c32] : memref<64x800xf32, #tpu.memory_space<vmem>>, vector<64x32xf32>
    tpu.vector_store %arg12[%c0_148, %c32], %104 {strides = array<i32>} : memref<64x800xf32, #tpu.memory_space<vmem>>, vector<64x32xf32>,
    %c0_149 = arith.constant 0 : index
    %c2_150 = arith.constant 2 : index
    %c0_151 = arith.constant 0 : index
    %106 = vector.load %arg11[%c0_149, %c2_150, %c0_151] : memref<12x12x32xf32, #tpu.memory_space<vmem>>, vector<8x8x32xf32>
    %107 = vector.shape_cast %106 : vector<8x8x32xf32> to vector<64x32xf32>
    %c0_152 = arith.constant 0 : index
    %c64 = arith.constant 64 : index
    %108 = vector.load %arg12[%c0_152, %c64] : memref<64x800xf32, #tpu.memory_space<vmem>>, vector<64x32xf32>
    tpu.vector_store %arg12[%c0_152, %c64], %107 {strides = array<i32>} : memref<64x800xf32, #tpu.memory_space<vmem>>, vector<64x32xf32>,
    %c0_153 = arith.constant 0 : index
    %c3_154 = arith.constant 3 : index
    %c0_155 = arith.constant 0 : index
    %109 = vector.load %arg11[%c0_153, %c3_154, %c0_155] : memref<12x12x32xf32, #tpu.memory_space<vmem>>, vector<8x8x32xf32>
    %110 = vector.shape_cast %109 : vector<8x8x32xf32> to vector<64x32xf32>
    %c0_156 = arith.constant 0 : index
    %c96 = arith.constant 96 : index
    %111 = vector.load %arg12[%c0_156, %c96] : memref<64x800xf32, #tpu.memory_space<vmem>>, vector<64x32xf32>
    tpu.vector_store %arg12[%c0_156, %c96], %110 {strides = array<i32>} : memref<64x800xf32, #tpu.memory_space<vmem>>, vector<64x32xf32>,
    %c0_157 = arith.constant 0 : index
    %c4_158 = arith.constant 4 : index
    %c0_159 = arith.constant 0 : index
    %112 = vector.load %arg11[%c0_157, %c4_158, %c0_159] : memref<12x12x32xf32, #tpu.memory_space<vmem>>, vector<8x8x32xf32>
    %113 = vector.shape_cast %112 : vector<8x8x32xf32> to vector<64x32xf32>
    %c0_160 = arith.constant 0 : index
    %c128 = arith.constant 128 : index
    %114 = vector.load %arg12[%c0_160, %c128] : memref<64x800xf32, #tpu.memory_space<vmem>>, vector<64x32xf32>
    tpu.vector_store %arg12[%c0_160, %c128], %113 {strides = array<i32>} : memref<64x800xf32, #tpu.memory_space<vmem>>, vector<64x32xf32>,
    %c1_161 = arith.constant 1 : index
    %c0_162 = arith.constant 0 : index
    %c0_163 = arith.constant 0 : index
    %115 = vector.load %arg11[%c1_161, %c0_162, %c0_163] : memref<12x12x32xf32, #tpu.memory_space<vmem>>, vector<8x8x32xf32>
    %116 = vector.shape_cast %115 : vector<8x8x32xf32> to vector<64x32xf32>
    %c0_164 = arith.constant 0 : index
    %c160 = arith.constant 160 : index
    %117 = vector.load %arg12[%c0_164, %c160] : memref<64x800xf32, #tpu.memory_space<vmem>>, vector<64x32xf32>
    tpu.vector_store %arg12[%c0_164, %c160], %116 {strides = array<i32>} : memref<64x800xf32, #tpu.memory_space<vmem>>, vector<64x32xf32>,
    %c1_165 = arith.constant 1 : index
    %c1_166 = arith.constant 1 : index
    %c0_167 = arith.constant 0 : index
    %118 = vector.load %arg11[%c1_165, %c1_166, %c0_167] : memref<12x12x32xf32, #tpu.memory_space<vmem>>, vector<8x8x32xf32>
    %119 = vector.shape_cast %118 : vector<8x8x32xf32> to vector<64x32xf32>
    %c0_168 = arith.constant 0 : index
    %c192 = arith.constant 192 : index
    %120 = vector.load %arg12[%c0_168, %c192] : memref<64x800xf32, #tpu.memory_space<vmem>>, vector<64x32xf32>
    tpu.vector_store %arg12[%c0_168, %c192], %119 {strides = array<i32>} : memref<64x800xf32, #tpu.memory_space<vmem>>, vector<64x32xf32>,
    %c1_169 = arith.constant 1 : index
    %c2_170 = arith.constant 2 : index
    %c0_171 = arith.constant 0 : index
    %121 = vector.load %arg11[%c1_169, %c2_170, %c0_171] : memref<12x12x32xf32, #tpu.memory_space<vmem>>, vector<8x8x32xf32>
    %122 = vector.shape_cast %121 : vector<8x8x32xf32> to vector<64x32xf32>
    %c0_172 = arith.constant 0 : index
    %c224 = arith.constant 224 : index
    %123 = vector.load %arg12[%c0_172, %c224] : memref<64x800xf32, #tpu.memory_space<vmem>>, vector<64x32xf32>
    tpu.vector_store %arg12[%c0_172, %c224], %122 {strides = array<i32>} : memref<64x800xf32, #tpu.memory_space<vmem>>, vector<64x32xf32>,
    %c1_173 = arith.constant 1 : index
    %c3_174 = arith.constant 3 : index
    %c0_175 = arith.constant 0 : index
    %124 = vector.load %arg11[%c1_173, %c3_174, %c0_175] : memref<12x12x32xf32, #tpu.memory_space<vmem>>, vector<8x8x32xf32>
    %125 = vector.shape_cast %124 : vector<8x8x32xf32> to vector<64x32xf32>
    %c0_176 = arith.constant 0 : index
    %c256 = arith.constant 256 : index
    %126 = vector.load %arg12[%c0_176, %c256] : memref<64x800xf32, #tpu.memory_space<vmem>>, vector<64x32xf32>
    tpu.vector_store %arg12[%c0_176, %c256], %125 {strides = array<i32>} : memref<64x800xf32, #tpu.memory_space<vmem>>, vector<64x32xf32>,
    %c1_177 = arith.constant 1 : index
    %c4_178 = arith.constant 4 : index
    %c0_179 = arith.constant 0 : index
    %127 = vector.load %arg11[%c1_177, %c4_178, %c0_179] : memref<12x12x32xf32, #tpu.memory_space<vmem>>, vector<8x8x32xf32>
    %128 = vector.shape_cast %127 : vector<8x8x32xf32> to vector<64x32xf32>
    %c0_180 = arith.constant 0 : index
    %c288 = arith.constant 288 : index
    %129 = vector.load %arg12[%c0_180, %c288] : memref<64x800xf32, #tpu.memory_space<vmem>>, vector<64x32xf32>
    tpu.vector_store %arg12[%c0_180, %c288], %128 {strides = array<i32>} : memref<64x800xf32, #tpu.memory_space<vmem>>, vector<64x32xf32>,
    %c2_181 = arith.constant 2 : index
    %c0_182 = arith.constant 0 : index
    %c0_183 = arith.constant 0 : index
    %130 = vector.load %arg11[%c2_181, %c0_182, %c0_183] : memref<12x12x32xf32, #tpu.memory_space<vmem>>, vector<8x8x32xf32>
    %131 = vector.shape_cast %130 : vector<8x8x32xf32> to vector<64x32xf32>
    %c0_184 = arith.constant 0 : index
    %c320 = arith.constant 320 : index
    %132 = vector.load %arg12[%c0_184, %c320] : memref<64x800xf32, #tpu.memory_space<vmem>>, vector<64x32xf32>
    tpu.vector_store %arg12[%c0_184, %c320], %131 {strides = array<i32>} : memref<64x800xf32, #tpu.memory_space<vmem>>, vector<64x32xf32>,
    %c2_185 = arith.constant 2 : index
    %c1_186 = arith.constant 1 : index
    %c0_187 = arith.constant 0 : index
    %133 = vector.load %arg11[%c2_185, %c1_186, %c0_187] : memref<12x12x32xf32, #tpu.memory_space<vmem>>, vector<8x8x32xf32>
    %134 = vector.shape_cast %133 : vector<8x8x32xf32> to vector<64x32xf32>
    %c0_188 = arith.constant 0 : index
    %c352 = arith.constant 352 : index
    %135 = vector.load %arg12[%c0_188, %c352] : memref<64x800xf32, #tpu.memory_space<vmem>>, vector<64x32xf32>
    tpu.vector_store %arg12[%c0_188, %c352], %134 {strides = array<i32>} : memref<64x800xf32, #tpu.memory_space<vmem>>, vector<64x32xf32>,
    %c2_189 = arith.constant 2 : index
    %c2_190 = arith.constant 2 : index
    %c0_191 = arith.constant 0 : index
    %136 = vector.load %arg11[%c2_189, %c2_190, %c0_191] : memref<12x12x32xf32, #tpu.memory_space<vmem>>, vector<8x8x32xf32>
    %137 = vector.shape_cast %136 : vector<8x8x32xf32> to vector<64x32xf32>
    %c0_192 = arith.constant 0 : index
    %c384 = arith.constant 384 : index
    %138 = vector.load %arg12[%c0_192, %c384] : memref<64x800xf32, #tpu.memory_space<vmem>>, vector<64x32xf32>
    tpu.vector_store %arg12[%c0_192, %c384], %137 {strides = array<i32>} : memref<64x800xf32, #tpu.memory_space<vmem>>, vector<64x32xf32>,
    %c2_193 = arith.constant 2 : index
    %c3_194 = arith.constant 3 : index
    %c0_195 = arith.constant 0 : index
    %139 = vector.load %arg11[%c2_193, %c3_194, %c0_195] : memref<12x12x32xf32, #tpu.memory_space<vmem>>, vector<8x8x32xf32>
    %140 = vector.shape_cast %139 : vector<8x8x32xf32> to vector<64x32xf32>
    %c0_196 = arith.constant 0 : index
    %c416 = arith.constant 416 : index
    %141 = vector.load %arg12[%c0_196, %c416] : memref<64x800xf32, #tpu.memory_space<vmem>>, vector<64x32xf32>
    tpu.vector_store %arg12[%c0_196, %c416], %140 {strides = array<i32>} : memref<64x800xf32, #tpu.memory_space<vmem>>, vector<64x32xf32>,
    %c2_197 = arith.constant 2 : index
    %c4_198 = arith.constant 4 : index
    %c0_199 = arith.constant 0 : index
    %142 = vector.load %arg11[%c2_197, %c4_198, %c0_199] : memref<12x12x32xf32, #tpu.memory_space<vmem>>, vector<8x8x32xf32>
    %143 = vector.shape_cast %142 : vector<8x8x32xf32> to vector<64x32xf32>
    %c0_200 = arith.constant 0 : index
    %c448 = arith.constant 448 : index
    %144 = vector.load %arg12[%c0_200, %c448] : memref<64x800xf32, #tpu.memory_space<vmem>>, vector<64x32xf32>
    tpu.vector_store %arg12[%c0_200, %c448], %143 {strides = array<i32>} : memref<64x800xf32, #tpu.memory_space<vmem>>, vector<64x32xf32>,
    %c3_201 = arith.constant 3 : index
    %c0_202 = arith.constant 0 : index
    %c0_203 = arith.constant 0 : index
    %145 = vector.load %arg11[%c3_201, %c0_202, %c0_203] : memref<12x12x32xf32, #tpu.memory_space<vmem>>, vector<8x8x32xf32>
    %146 = vector.shape_cast %145 : vector<8x8x32xf32> to vector<64x32xf32>
    %c0_204 = arith.constant 0 : index
    %c480 = arith.constant 480 : index
    %147 = vector.load %arg12[%c0_204, %c480] : memref<64x800xf32, #tpu.memory_space<vmem>>, vector<64x32xf32>
    tpu.vector_store %arg12[%c0_204, %c480], %146 {strides = array<i32>} : memref<64x800xf32, #tpu.memory_space<vmem>>, vector<64x32xf32>,
    %c3_205 = arith.constant 3 : index
    %c1_206 = arith.constant 1 : index
    %c0_207 = arith.constant 0 : index
    %148 = vector.load %arg11[%c3_205, %c1_206, %c0_207] : memref<12x12x32xf32, #tpu.memory_space<vmem>>, vector<8x8x32xf32>
    %149 = vector.shape_cast %148 : vector<8x8x32xf32> to vector<64x32xf32>
    %c0_208 = arith.constant 0 : index
    %c512 = arith.constant 512 : index
    %150 = vector.load %arg12[%c0_208, %c512] : memref<64x800xf32, #tpu.memory_space<vmem>>, vector<64x32xf32>
    tpu.vector_store %arg12[%c0_208, %c512], %149 {strides = array<i32>} : memref<64x800xf32, #tpu.memory_space<vmem>>, vector<64x32xf32>,
    %c3_209 = arith.constant 3 : index
    %c2_210 = arith.constant 2 : index
    %c0_211 = arith.constant 0 : index
    %151 = vector.load %arg11[%c3_209, %c2_210, %c0_211] : memref<12x12x32xf32, #tpu.memory_space<vmem>>, vector<8x8x32xf32>
    %152 = vector.shape_cast %151 : vector<8x8x32xf32> to vector<64x32xf32>
    %c0_212 = arith.constant 0 : index
    %c544 = arith.constant 544 : index
    %153 = vector.load %arg12[%c0_212, %c544] : memref<64x800xf32, #tpu.memory_space<vmem>>, vector<64x32xf32>
    tpu.vector_store %arg12[%c0_212, %c544], %152 {strides = array<i32>} : memref<64x800xf32, #tpu.memory_space<vmem>>, vector<64x32xf32>,
    %c3_213 = arith.constant 3 : index
    %c3_214 = arith.constant 3 : index
    %c0_215 = arith.constant 0 : index
    %154 = vector.load %arg11[%c3_213, %c3_214, %c0_215] : memref<12x12x32xf32, #tpu.memory_space<vmem>>, vector<8x8x32xf32>
    %155 = vector.shape_cast %154 : vector<8x8x32xf32> to vector<64x32xf32>
    %c0_216 = arith.constant 0 : index
    %c576 = arith.constant 576 : index
    %156 = vector.load %arg12[%c0_216, %c576] : memref<64x800xf32, #tpu.memory_space<vmem>>, vector<64x32xf32>
    tpu.vector_store %arg12[%c0_216, %c576], %155 {strides = array<i32>} : memref<64x800xf32, #tpu.memory_space<vmem>>, vector<64x32xf32>,
    %c3_217 = arith.constant 3 : index
    %c4_218 = arith.constant 4 : index
    %c0_219 = arith.constant 0 : index
    %157 = vector.load %arg11[%c3_217, %c4_218, %c0_219] : memref<12x12x32xf32, #tpu.memory_space<vmem>>, vector<8x8x32xf32>
    %158 = vector.shape_cast %157 : vector<8x8x32xf32> to vector<64x32xf32>
    %c0_220 = arith.constant 0 : index
    %c608 = arith.constant 608 : index
    %159 = vector.load %arg12[%c0_220, %c608] : memref<64x800xf32, #tpu.memory_space<vmem>>, vector<64x32xf32>
    tpu.vector_store %arg12[%c0_220, %c608], %158 {strides = array<i32>} : memref<64x800xf32, #tpu.memory_space<vmem>>, vector<64x32xf32>,
    %c4_221 = arith.constant 4 : index
    %c0_222 = arith.constant 0 : index
    %c0_223 = arith.constant 0 : index
    %160 = vector.load %arg11[%c4_221, %c0_222, %c0_223] : memref<12x12x32xf32, #tpu.memory_space<vmem>>, vector<8x8x32xf32>
    %161 = vector.shape_cast %160 : vector<8x8x32xf32> to vector<64x32xf32>
    %c0_224 = arith.constant 0 : index
    %c640 = arith.constant 640 : index
    %162 = vector.load %arg12[%c0_224, %c640] : memref<64x800xf32, #tpu.memory_space<vmem>>, vector<64x32xf32>
    tpu.vector_store %arg12[%c0_224, %c640], %161 {strides = array<i32>} : memref<64x800xf32, #tpu.memory_space<vmem>>, vector<64x32xf32>,
    %c4_225 = arith.constant 4 : index
    %c1_226 = arith.constant 1 : index
    %c0_227 = arith.constant 0 : index
    %163 = vector.load %arg11[%c4_225, %c1_226, %c0_227] : memref<12x12x32xf32, #tpu.memory_space<vmem>>, vector<8x8x32xf32>
    %164 = vector.shape_cast %163 : vector<8x8x32xf32> to vector<64x32xf32>
    %c0_228 = arith.constant 0 : index
    %c672 = arith.constant 672 : index
    %165 = vector.load %arg12[%c0_228, %c672] : memref<64x800xf32, #tpu.memory_space<vmem>>, vector<64x32xf32>
    tpu.vector_store %arg12[%c0_228, %c672], %164 {strides = array<i32>} : memref<64x800xf32, #tpu.memory_space<vmem>>, vector<64x32xf32>,
    %c4_229 = arith.constant 4 : index
    %c2_230 = arith.constant 2 : index
    %c0_231 = arith.constant 0 : index
    %166 = vector.load %arg11[%c4_229, %c2_230, %c0_231] : memref<12x12x32xf32, #tpu.memory_space<vmem>>, vector<8x8x32xf32>
    %167 = vector.shape_cast %166 : vector<8x8x32xf32> to vector<64x32xf32>
    %c0_232 = arith.constant 0 : index
    %c704 = arith.constant 704 : index
    %168 = vector.load %arg12[%c0_232, %c704] : memref<64x800xf32, #tpu.memory_space<vmem>>, vector<64x32xf32>
    tpu.vector_store %arg12[%c0_232, %c704], %167 {strides = array<i32>} : memref<64x800xf32, #tpu.memory_space<vmem>>, vector<64x32xf32>,
    %c4_233 = arith.constant 4 : index
    %c3_234 = arith.constant 3 : index
    %c0_235 = arith.constant 0 : index
    %169 = vector.load %arg11[%c4_233, %c3_234, %c0_235] : memref<12x12x32xf32, #tpu.memory_space<vmem>>, vector<8x8x32xf32>
    %170 = vector.shape_cast %169 : vector<8x8x32xf32> to vector<64x32xf32>
    %c0_236 = arith.constant 0 : index
    %c736 = arith.constant 736 : index
    %171 = vector.load %arg12[%c0_236, %c736] : memref<64x800xf32, #tpu.memory_space<vmem>>, vector<64x32xf32>
    tpu.vector_store %arg12[%c0_236, %c736], %170 {strides = array<i32>} : memref<64x800xf32, #tpu.memory_space<vmem>>, vector<64x32xf32>,
    %c4_237 = arith.constant 4 : index
    %c4_238 = arith.constant 4 : index
    %c0_239 = arith.constant 0 : index
    %172 = vector.load %arg11[%c4_237, %c4_238, %c0_239] : memref<12x12x32xf32, #tpu.memory_space<vmem>>, vector<8x8x32xf32>
    %173 = vector.shape_cast %172 : vector<8x8x32xf32> to vector<64x32xf32>
    %c0_240 = arith.constant 0 : index
    %c768 = arith.constant 768 : index
    %174 = vector.load %arg12[%c0_240, %c768] : memref<64x800xf32, #tpu.memory_space<vmem>>, vector<64x32xf32>
    tpu.vector_store %arg12[%c0_240, %c768], %173 {strides = array<i32>} : memref<64x800xf32, #tpu.memory_space<vmem>>, vector<64x32xf32>,
    %c0_241 = arith.constant 0 : index
    %c0_242 = arith.constant 0 : index
    %175 = vector.load %arg12[%c0_241, %c0_242] : memref<64x800xf32, #tpu.memory_space<vmem>>, vector<64x800xf32>
    %c0_243 = arith.constant 0 : index
    %c0_244 = arith.constant 0 : index
    %176 = vector.load %arg4[%c0_243, %c0_244] : memref<800x48xf32, #tpu.memory_space<vmem>>, vector<800x48xf32>
    %cst_245 = arith.constant dense<0.000000e+00> : vector<64x48xf32>
    %177 = tpu.matmul %175, %176, %cst_245 {dimension_numbers = #tpu.dot_dimension_numbers<[1], [0], [0], [1], [0, 0, 1, 1], [], []>} : vector<64x800xf32>, vector<800x48xf32>, vector<64x48xf32> -> vector<64x48xf32>
    %c0_246 = arith.constant 0 : index
    %c0_247 = arith.constant 0 : index
    %178 = vector.load %arg5[%c0_246, %c0_247] : memref<1x48xf32, #tpu.memory_space<vmem>>, vector<1x48xf32>
    %179 = vector.broadcast %178 : vector<1x48xf32> to vector<64x48xf32>
    %180 = arith.addf %177, %179 : vector<64x48xf32>
    %cst_248 = arith.constant 0.000000e+00 : f32
    %181 = vector.broadcast %cst_248 : f32 to vector<64x48xf32>
    %182 = arith.maximumf %180, %181 : vector<64x48xf32>
    %183 = vector.shape_cast %182 : vector<64x48xf32> to vector<8x8x48xf32>
    %c0_249 = arith.constant 0 : index
    %c0_250 = arith.constant 0 : index
    %c0_251 = arith.constant 0 : index
    %184 = vector.load %arg13[%c0_249, %c0_250, %c0_251] : memref<8x8x48xf32, #tpu.memory_space<vmem>>, vector<8x8x48xf32>
    tpu.vector_store %arg13[%c0_249, %c0_250, %c0_251], %183 {strides = array<i32>} : memref<8x8x48xf32, #tpu.memory_space<vmem>>, vector<8x8x48xf32>,
    %c0_252 = arith.constant 0 : index
    %c0_253 = arith.constant 0 : index
    %c0_254 = arith.constant 0 : index
    %185 = tpu.strided_load %arg13[%c0_252, %c0_253, %c0_254] {strides = array<i32: 2, 1, 1>} : memref<8x8x48xf32, #tpu.memory_space<vmem>>, vector<4x8x48xf32>
    %c1_255 = arith.constant 1 : index
    %c0_256 = arith.constant 0 : index
    %c0_257 = arith.constant 0 : index
    %186 = tpu.strided_load %arg13[%c1_255, %c0_256, %c0_257] {strides = array<i32: 2, 1, 1>} : memref<8x8x48xf32, #tpu.memory_space<vmem>>, vector<4x8x48xf32>
    %187 = arith.maximumf %185, %186 : vector<4x8x48xf32>
    %c0_258 = arith.constant 0 : index
    %c0_259 = arith.constant 0 : index
    %c0_260 = arith.constant 0 : index
    %188 = vector.load %arg14[%c0_258, %c0_259, %c0_260] : memref<4x8x48xf32, #tpu.memory_space<vmem>>, vector<4x8x48xf32>
    tpu.vector_store %arg14[%c0_258, %c0_259, %c0_260], %187 {strides = array<i32>} : memref<4x8x48xf32, #tpu.memory_space<vmem>>, vector<4x8x48xf32>,
    %c0_261 = arith.constant 0 : index
    %c0_262 = arith.constant 0 : index
    %c0_263 = arith.constant 0 : index
    %189 = vector.load %arg14[%c0_261, %c0_262, %c0_263] : memref<4x8x48xf32, #tpu.memory_space<vmem>>, vector<4x1x48xf32>
    %190 = vector.shape_cast %189 : vector<4x1x48xf32> to vector<4x48xf32>
    %c0_264 = arith.constant 0 : index
    %c1_265 = arith.constant 1 : index
    %c0_266 = arith.constant 0 : index
    %191 = vector.load %arg14[%c0_264, %c1_265, %c0_266] : memref<4x8x48xf32, #tpu.memory_space<vmem>>, vector<4x1x48xf32>
    %192 = vector.shape_cast %191 : vector<4x1x48xf32> to vector<4x48xf32>
    %193 = arith.maximumf %190, %192 : vector<4x48xf32>
    %c0_267 = arith.constant 0 : index
    %c0_268 = arith.constant 0 : index
    %c0_269 = arith.constant 0 : index
    %194 = vector.load %arg6[%c0_267, %c0_268, %c0_269] : memref<1x4x192xf32, #tpu.memory_space<vmem>>, vector<1x4x48xf32>
    %195 = vector.shape_cast %194 : vector<1x4x48xf32> to vector<4x48xf32>
    %196 = vector.shape_cast %193 : vector<4x48xf32> to vector<1x4x48xf32>
    tpu.vector_store %arg6[%c0_267, %c0_268, %c0_269], %196 {strides = array<i32>} : memref<1x4x192xf32, #tpu.memory_space<vmem>>, vector<1x4x48xf32>,
    %c0_270 = arith.constant 0 : index
    %c2_271 = arith.constant 2 : index
    %c0_272 = arith.constant 0 : index
    %197 = vector.load %arg14[%c0_270, %c2_271, %c0_272] : memref<4x8x48xf32, #tpu.memory_space<vmem>>, vector<4x1x48xf32>
    %198 = vector.shape_cast %197 : vector<4x1x48xf32> to vector<4x48xf32>
    %c0_273 = arith.constant 0 : index
    %c3_274 = arith.constant 3 : index
    %c0_275 = arith.constant 0 : index
    %199 = vector.load %arg14[%c0_273, %c3_274, %c0_275] : memref<4x8x48xf32, #tpu.memory_space<vmem>>, vector<4x1x48xf32>
    %200 = vector.shape_cast %199 : vector<4x1x48xf32> to vector<4x48xf32>
    %201 = arith.maximumf %198, %200 : vector<4x48xf32>
    %c0_276 = arith.constant 0 : index
    %c0_277 = arith.constant 0 : index
    %c48_278 = arith.constant 48 : index
    %202 = vector.load %arg6[%c0_276, %c0_277, %c48_278] : memref<1x4x192xf32, #tpu.memory_space<vmem>>, vector<1x4x48xf32>
    %203 = vector.shape_cast %202 : vector<1x4x48xf32> to vector<4x48xf32>
    %204 = vector.shape_cast %201 : vector<4x48xf32> to vector<1x4x48xf32>
    tpu.vector_store %arg6[%c0_276, %c0_277, %c48_278], %204 {strides = array<i32>} : memref<1x4x192xf32, #tpu.memory_space<vmem>>, vector<1x4x48xf32>,
    %c0_279 = arith.constant 0 : index
    %c4_280 = arith.constant 4 : index
    %c0_281 = arith.constant 0 : index
    %205 = vector.load %arg14[%c0_279, %c4_280, %c0_281] : memref<4x8x48xf32, #tpu.memory_space<vmem>>, vector<4x1x48xf32>
    %206 = vector.shape_cast %205 : vector<4x1x48xf32> to vector<4x48xf32>
    %c0_282 = arith.constant 0 : index
    %c5 = arith.constant 5 : index
    %c0_283 = arith.constant 0 : index
    %207 = vector.load %arg14[%c0_282, %c5, %c0_283] : memref<4x8x48xf32, #tpu.memory_space<vmem>>, vector<4x1x48xf32>
    %208 = vector.shape_cast %207 : vector<4x1x48xf32> to vector<4x48xf32>
    %209 = arith.maximumf %206, %208 : vector<4x48xf32>
    %c0_284 = arith.constant 0 : index
    %c0_285 = arith.constant 0 : index
    %c96_286 = arith.constant 96 : index
    %210 = vector.load %arg6[%c0_284, %c0_285, %c96_286] : memref<1x4x192xf32, #tpu.memory_space<vmem>>, vector<1x4x48xf32>
    %211 = vector.shape_cast %210 : vector<1x4x48xf32> to vector<4x48xf32>
    %212 = vector.shape_cast %209 : vector<4x48xf32> to vector<1x4x48xf32>
    tpu.vector_store %arg6[%c0_284, %c0_285, %c96_286], %212 {strides = array<i32>} : memref<1x4x192xf32, #tpu.memory_space<vmem>>, vector<1x4x48xf32>,
    %c0_287 = arith.constant 0 : index
    %c6_288 = arith.constant 6 : index
    %c0_289 = arith.constant 0 : index
    %213 = vector.load %arg14[%c0_287, %c6_288, %c0_289] : memref<4x8x48xf32, #tpu.memory_space<vmem>>, vector<4x1x48xf32>
    %214 = vector.shape_cast %213 : vector<4x1x48xf32> to vector<4x48xf32>
    %c0_290 = arith.constant 0 : index
    %c7 = arith.constant 7 : index
    %c0_291 = arith.constant 0 : index
    %215 = vector.load %arg14[%c0_290, %c7, %c0_291] : memref<4x8x48xf32, #tpu.memory_space<vmem>>, vector<4x1x48xf32>
    %216 = vector.shape_cast %215 : vector<4x1x48xf32> to vector<4x48xf32>
    %217 = arith.maximumf %214, %216 : vector<4x48xf32>
    %c0_292 = arith.constant 0 : index
    %c0_293 = arith.constant 0 : index
    %c144 = arith.constant 144 : index
    %218 = vector.load %arg6[%c0_292, %c0_293, %c144] : memref<1x4x192xf32, #tpu.memory_space<vmem>>, vector<1x4x48xf32>
    %219 = vector.shape_cast %218 : vector<1x4x48xf32> to vector<4x48xf32>
    %220 = vector.shape_cast %217 : vector<4x48xf32> to vector<1x4x48xf32>
    tpu.vector_store %arg6[%c0_292, %c0_293, %c144], %220 {strides = array<i32>} : memref<1x4x192xf32, #tpu.memory_space<vmem>>, vector<1x4x48xf32>,
    return
  }
  func.func @transform_0(%arg0: i32) -> (i32, i32, i32, i32) {
    %c0_i32 = arith.constant 0 : i32
    %c0_i32_0 = arith.constant 0 : i32
    %c0_i32_1 = arith.constant 0 : i32
    %c0_i32_2 = arith.constant 0 : i32
    return %arg0, %c0_i32, %c0_i32_0, %c0_i32_1 : i32, i32, i32, i32
  }
  func.func @transform_1(%arg0: i32) -> (i32, i32) {
    %c0_i32 = arith.constant 0 : i32
    %c0_i32_0 = arith.constant 0 : i32
    %c0_i32_1 = arith.constant 0 : i32
    return %c0_i32, %c0_i32_0 : i32, i32
  }
  func.func @transform_2(%arg0: i32) -> (i32, i32) {
    %c0_i32 = arith.constant 0 : i32
    %c0_i32_0 = arith.constant 0 : i32
    %c0_i32_1 = arith.constant 0 : i32
    return %c0_i32, %c0_i32_0 : i32, i32
  }
  func.func @transform_3(%arg0: i32) -> (i32, i32) {
    %c0_i32 = arith.constant 0 : i32
    %c0_i32_0 = arith.constant 0 : i32
    %c0_i32_1 = arith.constant 0 : i32
    return %c0_i32, %c0_i32_0 : i32, i32
  }
  func.func @transform_4(%arg0: i32) -> (i32, i32) {
    %c0_i32 = arith.constant 0 : i32
    %c0_i32_0 = arith.constant 0 : i32
    %c0_i32_1 = arith.constant 0 : i32
    return %c0_i32, %c0_i32_0 : i32, i32
  }
  func.func @transform_5(%arg0: i32) -> (i32, i32, i32) {
    %c0_i32 = arith.constant 0 : i32
    %c0_i32_0 = arith.constant 0 : i32
    %c0_i32_1 = arith.constant 0 : i32
    return %arg0, %c0_i32, %c0_i32_0 : i32, i32, i32
  }
}

</mosaic_0001>

<bundles_post_ra>
// kernel: tpu_custom_call.1
= control target key start
LH: loop header
LB: loop body
LE: loop exit
PB: predicated region body
PF: predicated region fallthrough
CT: control target
= control target key end

     0   :  { %10 = vsyncpa [#allocation11], 0  ;;  %s11432_s0 = inlined_call_operand.vmem [shape: f32[2,16,16,3], index: 0, kind: input, shape index: {}]   ;;  %s11433_s1 = inlined_call_operand.vmem [shape: f32[75,32], index: 1, kind: input, shape index: {}]   ;;  %s11434_s2 = inlined_call_operand.vmem [shape: f32[1,32], index: 2, kind: input, shape index: {}]   ;;  %s11435_s3 = inlined_call_operand.vmem [shape: f32[800,48], index: 3, kind: input, shape index: {}]   ;;  %s11436_s4 = inlined_call_operand.vmem [shape: f32[1,48], index: 4, kind: input, shape index: {}]   ;;  %s11437_s5 = inlined_call_operand.hbm [shape: f32[2,4,192], index: 5, kind: output, shape index: {}]  }
   0x1   :  { %12 = vsyncpa [#allocation11 + $0x1], 0  ;;  %s8145_s18 = smov 0   ;;  %s8147_s19 = smov 0  }
   0x2   :  { %s8149_s20 = smov 0   ;;  %s8151_s21 = smov 0  }
   0x3 LB: > { %s8166_s22 = sadd.s32 4294967295, %s8082_s21   ;;  %s7453_s23 = sadd.s32 4294967294, %s8082_s21   ;;  %s8082_s21 = sphi %s8151_s21, %s11443_s21   ;;  %s8078_s20 = sphi %s8149_s20, %s11442_s20   ;;  %s8074_s19 = sphi %s8147_s19, %s11441_s19   ;;  %s8070_s18 = sphi %s8145_s18, %s11440_s18  }
   0x4   : > { %s8170_s24 = sadd.s32 1, %s8082_s21   ;;  %s135_s25 = sadd.s32 1, %s8078_s20 }
   0x5   : > { %s132_s26 = ssub.s32 %s8082_s21, %s8170_s24  ;;  %p145_p0 = scmp.ne.s32.totalorder %s8078_s20, %s8074_s19 }
   0x6   : > { %p133_p1 = scmp.eq.s32.totalorder %s132_s26, 0  ;;  %p146_p2 = scmp.eq.s32.totalorder %s8166_s22, 1 }
   0x7   : > { %p151_p3 = scmp.ne.s32.totalorder %s8074_s19, %s8070_s18  ;;  %p152_p4 = scmp.eq.s32.totalorder %s7453_s23, 1 }
   0x8   : > { %s8181_s27 = scalar_select %p133_p1, %s8078_s20, %s135_s25  }
   0x9   : > { %p8183_p5 = por %p146_p2, %p145_p0  ;;  %p8187_p6 = por %p152_p4, %p151_p3 }
   0xa   : > { %p7456_p7 = scmp.ge.s32.totalorder %s8082_s21, 1  ;;  %p190_p8 = scmp.lt.s32.totalorder %s8082_s21, 3 }
   0xc   : > { %p191_p9 = pnand %p7456_p7, %p190_p8 }
   0xd   : > { %vm223_vm0 = vcmask (!%p191_p9), 23552   ;;  %vm226_vm1 = vcmask (!%p191_p9), 19456   ;;  %p218_p10 = scmp.lt.s32.totalorder (!%p191_p9), %s8166_s22, 1  ;;  %v8084_v0 = vmov (!%p191_p9), 0.0   ;;  %s8085_s10 = smov (!%p191_p9), 3   ;;  %vm574_vm2 = vcmask (!%p191_p9), 48152  }
   0xe   : > { %194 = sbr.rel (%p191_p9) target bundleno = 2586 (0xa1a), region = 40  ;;  %228 = vst.msk [vmem:[#allocation2 + $0x18] sm:$0xff] (!%p191_p9), %vm223_vm0, %v8084_v0  ;;  %229 = vst.msk [vmem:[#allocation2 + $0x20] sm:$0xff] (!%p191_p9), %vm223_vm0, %v8084_v0  ;;  %s8086_s11 = smov (!%p191_p9), 6   ;;  %vm767_vm3 = vcmask (!%p191_p9), 72752   ;;  %vm960_vm4 = vcmask (!%p191_p9), 97352  }
   0xf   : > { %224 = vst.msk [vmem:[#allocation2] sm:$0xff] (!%p191_p9), %vm223_vm0, %v8084_v0  ;;  %225 = vst.msk [vmem:[#allocation2 + $0x8] sm:$0xff] (!%p191_p9), %vm223_vm0, %v8084_v0  ;;  %s8087_s12 = smov (!%p191_p9), 9   ;;  %s8088_s13 = smov (!%p191_p9), 12   ;;  %vm1153_vm5 = vcmask (!%p191_p9), 121952   ;;  %vm1347_vm6 = vcmask (!%p191_p9), 146552  }
  0x10   : > { %231 = vst.msk [vmem:[#allocation2 + $0x30] sm:$0xff] (!%p191_p9), %vm223_vm0, %v8084_v0  ;;  %232 = vst.msk [vmem:[#allocation2 + $0x38] sm:$0xff] (!%p191_p9), %vm223_vm0, %v8084_v0  ;;  %s8089_s14 = smov (!%p191_p9), 15   ;;  %s8090_s15 = smov (!%p191_p9), 18   ;;  %vm1540_vm7 = vcmask (!%p191_p9), 171152   ;;  %vm1733_vm8 = vcmask (!%p191_p9), 195752  }
  0x11   : > { %234 = vst.msk [vmem:[#allocation2 + $0x48] sm:$0xff] (!%p191_p9), %vm223_vm0, %v8084_v0  ;;  %235 = vst.msk [vmem:[#allocation2 + $0x50] sm:$0xff] (!%p191_p9), %vm223_vm0, %v8084_v0  ;;  %s8091_s16 = smov (!%p191_p9), 21   ;;  %s8092_s17 = smov (!%p191_p9), 24   ;;  %vm1926_vm9 = vcmask (!%p191_p9), 220352   ;;  %vm2119_vm10 = vcmask (!%p191_p9), 244952  }
  0x12   : > { %237 = vst.msk [vmem:[#allocation2 + $0x60] sm:$0xff] (!%p191_p9), %vm223_vm0, %v8084_v0  ;;  %238 = vst.msk [vmem:[#allocation2 + $0x68] sm:$0xff] (!%p191_p9), %vm223_vm0, %v8084_v0  ;;  %s8093_s23 = smov (!%p191_p9), 27   ;;  %s8094_s25 = smov (!%p191_p9), 30   ;;  %vm2312_vm11 = vcmask (!%p191_p9), 269552   ;;  %vm2505_vm12 = vcmask (!%p191_p9), 294152  }
  0x13   : > { %240 = vst.msk [vmem:[#allocation2 + $0x78] sm:$0xff] (!%p191_p9), %vm223_vm0, %v8084_v0  ;;  %241 = vst.msk [vmem:[#allocation2 + $0x80] sm:$0xff] (!%p191_p9), %vm223_vm0, %v8084_v0  ;;  %s8095_s26 = smov (!%p191_p9), 33   ;;  %vm2698_vm13 = vcmask (!%p191_p9), 318752   ;;  %s8098_s7 = smov (!%p191_p9), 42   ;;  %vm2891_vm14 = vcmask (!%p191_p9), 343352  }
  0x14   : > { %243 = vst.msk [vmem:[#allocation2 + $0x90] sm:$0xff] (!%p191_p9), %vm223_vm0, %v8084_v0  ;;  %244 = vst.msk [vmem:[#allocation2 + $0x98] sm:$0xff] (!%p191_p9), %vm223_vm0, %v8084_v0  ;;  %s8099_s8 = smov (!%p191_p9), 45   ;;  %vm3084_vm15 = vcmask (!%p191_p9), 367952  }
  0x15   : > { %246 = vst.msk [vmem:[#allocation2 + $0xa8] sm:$0xff] %vm223_vm0, %v8084_v0  ;;  %247 = vst.msk [vmem:[#allocation2 + $0xb0] sm:$0xff] %vm223_vm0, %v8084_v0  ;;  %s219_s30 = scalar_select %p218_p10, %s8166_s22, 1  ;;  %v416_v7 = vld [vmem:[#allocation2 + $0x19] sm:$0xff] }
  0x16   : > { %249 = vst.msk [vmem:[#allocation2 + $0xc0] sm:$0xff] %vm223_vm0, %v8084_v0  ;;  %250 = vst.msk [vmem:[#allocation2 + $0xc8] sm:$0xff] %vm223_vm0, %v8084_v0  ;;  %v414_v8 = vld [vmem:[#allocation2 + $0x1] sm:$0xff]  ;;  %482 = vrot.lane.b32.xlu1 %v416_v7, %s8085_s10  ;;  %v8392_v45 = vld [vmem:[#allocation2 + $0x18] sm:$0xff] }
  0x17   : > { %252 = vst.msk [vmem:[#allocation2 + $0xd8] sm:$0xff] %vm223_vm0, %v8084_v0  ;;  %253 = vst.msk [vmem:[#allocation2 + $0xe0] sm:$0xff] %vm223_vm0, %v8084_v0  ;;  %s7508_s6 = sshll.u32 %s219_s30, 8  ;;  %478 = vrot.lane.b32.xlu0 %v414_v8, %s8085_s10  ;;  %v350_v46 = vld [vmem:[#allocation2] sm:$0xff]  ;;  %v351_v48 = vld [vmem:[#allocation2 + $0x8] sm:$0xff]  ;;  %s8096_s30 = smov 36  }
  0x18   : > { %255 = vst.msk [vmem:[#allocation2 + $0xf0] sm:$0xff] %vm223_vm0, %v8084_v0  ;;  %256 = vst.msk [vmem:[#allocation2 + $0xf8] sm:$0xff] %vm223_vm0, %v8084_v0  ;;  %s8320_s9 = scalar_lea.vmem %s11432_s0, %s7508_s6  ;;  %v8397_v47 = vld [vmem:[#allocation2 + $0x20] sm:$0xff]  ;;  %s8097_s6 = smov 39  }
  0x19   : > { %258 = vst.msk [vmem:[#allocation2 + $0x108] sm:$0xff] %vm223_vm0, %v8084_v0  ;;  %259 = vst.msk [vmem:[#allocation2 + $0x110] sm:$0xff] %vm223_vm0, %v8084_v0  ;;  %v285_v1 = vld [vmem:[%s8320_s9] sm:$0xff]  ;;  %v286_v2 = vld [vmem:[%s8320_s9 + $0x8] sm:$0xff] }
  0x1a   : > { %261 = vst.msk [vmem:[#allocation2 + $0x120] sm:$0xff] %vm223_vm0, %v8084_v0  ;;  %262 = vst.msk [vmem:[#allocation2 + $0x128] sm:$0xff] %vm223_vm0, %v8084_v0  ;;  %v287_v3 = vld [vmem:[%s8320_s9 + $0x10] sm:$0xff]  ;;  %v288_v4 = vld [vmem:[%s8320_s9 + $0x18] sm:$0xff] }
  0x1b   : > { %264 = vst.msk [vmem:[#allocation2 + $0x138] sm:$0xff] %vm223_vm0, %v8084_v0  ;;  %265 = vst.msk [vmem:[#allocation2 + $0x140] sm:$0xff] %vm223_vm0, %v8084_v0  ;;  %v289_v5 = vld [vmem:[%s8320_s9 + $0x20] sm:$0xff]  ;;  %v290_v6 = vld [vmem:[%s8320_s9 + $0x28] sm:$0xff] }
  0x1c   : > { %267 = vst.msk [vmem:[#allocation2 + $0x150] sm:$0xff] %vm223_vm0, %v8084_v0  ;;  %268 = vst.msk [vmem:[#allocation2 + $0x158] sm:$0xff] %vm223_vm0, %v8084_v0  ;;  %v291_v11 = vld [vmem:[%s8320_s9 + $0x30] sm:$0xff]  ;;  %v292_v12 = vld [vmem:[%s8320_s9 + $0x38] sm:$0xff] }
  0x1d   : > { %270 = vst.msk [vmem:[#allocation2 + $0x168] sm:$0xff] %vm223_vm0, %v8084_v0  ;;  %271 = vst.msk [vmem:[#allocation2 + $0x170] sm:$0xff] %vm223_vm0, %v8084_v0  ;;  %v293_v13 = vld [vmem:[%s8320_s9 + $0x40] sm:$0xff]  ;;  %v294_v14 = vld [vmem:[%s8320_s9 + $0x48] sm:$0xff] }
  0x1e   : > { %273 = vst.msk [vmem:[#allocation2 + $0x180] sm:$0xff] %vm223_vm0, %v8084_v0  ;;  %274 = vst.msk [vmem:[#allocation2 + $0x188] sm:$0xff] %vm223_vm0, %v8084_v0  ;;  %v295_v15 = vld [vmem:[%s8320_s9 + $0x50] sm:$0xff]  ;;  %v296_v16 = vld [vmem:[%s8320_s9 + $0x58] sm:$0xff] }
  0x1f   : > { %276 = vst.msk [vmem:[#allocation2 + $0x198] sm:$0xff] %vm223_vm0, %v8084_v0  ;;  %277 = vst.msk [vmem:[#allocation2 + $0x1a0] sm:$0xff] %vm223_vm0, %v8084_v0  ;;  %v297_v17 = vld [vmem:[%s8320_s9 + $0x60] sm:$0xff]  ;;  %v298_v18 = vld [vmem:[%s8320_s9 + $0x68] sm:$0xff] }
  0x20   : > { %279 = vst.msk [vmem:[#allocation2 + $0x1b0] sm:$0xff] %vm223_vm0, %v8084_v0  ;;  %280 = vst.msk [vmem:[#allocation2 + $0x1b8] sm:$0xff] %vm223_vm0, %v8084_v0  ;;  %v299_v19 = vld [vmem:[%s8320_s9 + $0x70] sm:$0xff]  ;;  %v300_v20 = vld [vmem:[%s8320_s9 + $0x78] sm:$0xff] }
  0x21   : > { %282 = vst.msk [vmem:[#allocation2 + $0x1c8] sm:$0xff] %vm223_vm0, %v8084_v0  ;;  %283 = vst.msk [vmem:[#allocation2 + $0x1d0] sm:$0xff] %vm223_vm0, %v8084_v0  ;;  %v301_v21 = vld [vmem:[%s8320_s9 + $0x80] sm:$0xff]  ;;  %v302_v22 = vld [vmem:[%s8320_s9 + $0x88] sm:$0xff] }
  0x22   : > { %230 = vst.msk [vmem:[#allocation2 + $0x28] sm:$0xf] %vm226_vm1, %v8084_v0  ;;  %227 = vst.msk [vmem:[#allocation2 + $0x10] sm:$0xf] %vm226_vm1, %v8084_v0  ;;  %v303_v23 = vld [vmem:[%s8320_s9 + $0x90] sm:$0xff]  ;;  %v304_v26 = vld [vmem:[%s8320_s9 + $0x98] sm:$0xff] }
  0x23   : > { %233 = vst.msk [vmem:[#allocation2 + $0x40] sm:$0xf] %vm226_vm1, %v8084_v0  ;;  %236 = vst.msk [vmem:[#allocation2 + $0x58] sm:$0xf] %vm226_vm1, %v8084_v0  ;;  %v305_v27 = vld [vmem:[%s8320_s9 + $0xa0] sm:$0xff]  ;;  %v306_v28 = vld [vmem:[%s8320_s9 + $0xa8] sm:$0xff] }
  0x24   : > { %239 = vst.msk [vmem:[#allocation2 + $0x70] sm:$0xf] %vm226_vm1, %v8084_v0  ;;  %242 = vst.msk [vmem:[#allocation2 + $0x88] sm:$0xf] %vm226_vm1, %v8084_v0  ;;  %v307_v29 = vld [vmem:[%s8320_s9 + $0xb0] sm:$0xff]  ;;  %v308_v34 = vld [vmem:[%s8320_s9 + $0xb8] sm:$0xff] }
  0x25   : > { %245 = vst.msk [vmem:[#allocation2 + $0xa0] sm:$0xf] %vm226_vm1, %v8084_v0  ;;  %248 = vst.msk [vmem:[#allocation2 + $0xb8] sm:$0xf] %vm226_vm1, %v8084_v0  ;;  %v309_v35 = vld [vmem:[%s8320_s9 + $0xc0] sm:$0xff]  ;;  %v310_v36 = vld [vmem:[%s8320_s9 + $0xc8] sm:$0xff] }
  0x26   : > { %251 = vst.msk [vmem:[#allocation2 + $0xd0] sm:$0xf] %vm226_vm1, %v8084_v0  ;;  %254 = vst.msk [vmem:[#allocation2 + $0xe8] sm:$0xf] %vm226_vm1, %v8084_v0  ;;  %v311_v37 = vld [vmem:[%s8320_s9 + $0xd0] sm:$0xff]  ;;  %v312_v38 = vld [vmem:[%s8320_s9 + $0xd8] sm:$0xff] }
  0x27   : > { %257 = vst.msk [vmem:[#allocation2 + $0x100] sm:$0xf] %vm226_vm1, %v8084_v0  ;;  %260 = vst.msk [vmem:[#allocation2 + $0x118] sm:$0xf] %vm226_vm1, %v8084_v0 }
  0x28   : > { %263 = vst.msk [vmem:[#allocation2 + $0x130] sm:$0xf] %vm226_vm1, %v8084_v0  ;;  %266 = vst.msk [vmem:[#allocation2 + $0x148] sm:$0xf] %vm226_vm1, %v8084_v0 }
  0x29   : > { %269 = vst.msk [vmem:[#allocation2 + $0x160] sm:$0xf] %vm226_vm1, %v8084_v0  ;;  %272 = vst.msk [vmem:[#allocation2 + $0x178] sm:$0xf] %vm226_vm1, %v8084_v0  ;;  %v417_v9 = vld [vmem:[#allocation2 + $0x21] sm:$0xff]  ;;  %v415_v10 = vld [vmem:[#allocation2 + $0x9] sm:$0xff] }
  0x2a   : > { %275 = vst.msk [vmem:[#allocation2 + $0x190] sm:$0xf] %vm226_vm1, %v8084_v0  ;;  %278 = vst.msk [vmem:[#allocation2 + $0x1a8] sm:$0xf] %vm226_vm1, %v8084_v0  ;;  %484 = vrot.lane.b32.xlu1 %v417_v9, %s8085_s10  ;;  %480 = vrot.lane.b32.xlu0 %v415_v10, %s8085_s10 }
  0x2b   : > { %281 = vst.msk [vmem:[#allocation2 + $0x1c0] sm:$0xf] %vm226_vm1, %v8084_v0  ;;  %284 = vst.msk [vmem:[#allocation2 + $0x1d8] sm:$0xf] %vm226_vm1, %v8084_v0  ;;  %vm5195_vm1 = vcmask 1042432  }
  0x2c   : > { %318 = vst.msk [vmem:[#allocation2 + $0x32] sm:$0xff] %vm223_vm0, %v285_v1  ;;  %319 = vst.msk [vmem:[#allocation2 + $0x3a] sm:$0xff] %vm223_vm0, %v286_v2 }
  0x2d   : > { %320 = vst.msk [vmem:[#allocation2 + $0x4a] sm:$0xff] %vm223_vm0, %v287_v3  ;;  %321 = vst.msk [vmem:[#allocation2 + $0x52] sm:$0xff] %vm223_vm0, %v288_v4 }
  0x2e   : > { %322 = vst.msk [vmem:[#allocation2 + $0x62] sm:$0xff] %vm223_vm0, %v289_v5  ;;  %323 = vst.msk [vmem:[#allocation2 + $0x6a] sm:$0xff] %vm223_vm0, %v290_v6 }
  0x2f   : > { %324 = vst.msk [vmem:[#allocation2 + $0x7a] sm:$0xff] %vm223_vm0, %v291_v11  ;;  %325 = vst.msk [vmem:[#allocation2 + $0x82] sm:$0xff] %vm223_vm0, %v292_v12 }
  0x30   : > { %326 = vst.msk [vmem:[#allocation2 + $0x92] sm:$0xff] %vm223_vm0, %v293_v13  ;;  %327 = vst.msk [vmem:[#allocation2 + $0x9a] sm:$0xff] %vm223_vm0, %v294_v14 }
  0x31   : > { %328 = vst.msk [vmem:[#allocation2 + $0xaa] sm:$0xff] %vm223_vm0, %v295_v15  ;;  %329 = vst.msk [vmem:[#allocation2 + $0xb2] sm:$0xff] %vm223_vm0, %v296_v16 }
  0x32   : > { %330 = vst.msk [vmem:[#allocation2 + $0xc2] sm:$0xff] %vm223_vm0, %v297_v17  ;;  %331 = vst.msk [vmem:[#allocation2 + $0xca] sm:$0xff] %vm223_vm0, %v298_v18 }
  0x33   : > { %332 = vst.msk [vmem:[#allocation2 + $0xda] sm:$0xff] %vm223_vm0, %v299_v19  ;;  %333 = vst.msk [vmem:[#allocation2 + $0xe2] sm:$0xff] %vm223_vm0, %v300_v20  ;;  %v419_v24 = vld [vmem:[#allocation2 + $0x39] sm:$0xff]  ;;  %v418_v25 = vld [vmem:[#allocation2 + $0x31] sm:$0xff] }
  0x34   : > { %334 = vst.msk [vmem:[#allocation2 + $0xf2] sm:$0xff] %vm223_vm0, %v301_v21  ;;  %335 = vst.msk [vmem:[#allocation2 + $0xfa] sm:$0xff] %vm223_vm0, %v302_v22  ;;  %488 = vrot.lane.b32.xlu1 %v419_v24, %s8085_s10  ;;  %486 = vrot.lane.b32.xlu0 %v418_v25, %s8085_s10  ;;  %v421_v30 = vld [vmem:[#allocation2 + $0x51] sm:$0xff]  ;;  %v420_v31 = vld [vmem:[#allocation2 + $0x49] sm:$0xff] }
  0x35   : > { %336 = vst.msk [vmem:[#allocation2 + $0x10a] sm:$0xff] %vm223_vm0, %v303_v23  ;;  %337 = vst.msk [vmem:[#allocation2 + $0x112] sm:$0xff] %vm223_vm0, %v304_v26  ;;  %v423_v32 = vld [vmem:[#allocation2 + $0x69] sm:$0xff]  ;;  %v422_v33 = vld [vmem:[#allocation2 + $0x61] sm:$0xff] }
  0x36   : > { %338 = vst.msk [vmem:[#allocation2 + $0x122] sm:$0xff] %vm223_vm0, %v305_v27  ;;  %339 = vst.msk [vmem:[#allocation2 + $0x12a] sm:$0xff] %vm223_vm0, %v306_v28  ;;  %v425_v39 = vld [vmem:[#allocation2 + $0x81] sm:$0xff]  ;;  %v424_v40 = vld [vmem:[#allocation2 + $0x79] sm:$0xff] }
  0x37   : > { %340 = vst.msk [vmem:[#allocation2 + $0x13a] sm:$0xff] %vm223_vm0, %v307_v29  ;;  %341 = vst.msk [vmem:[#allocation2 + $0x142] sm:$0xff] %vm223_vm0, %v308_v34  ;;  %v427_v41 = vld [vmem:[#allocation2 + $0x99] sm:$0xff]  ;;  %v426_v42 = vld [vmem:[#allocation2 + $0x91] sm:$0xff] }
  0x38   : > { %492 = vrot.lane.b32.xlu1 %v421_v30, %s8085_s10  ;;  %490 = vrot.lane.b32.xlu0 %v420_v31, %s8085_s10  ;;  %342 = vst.msk [vmem:[#allocation2 + $0x152] sm:$0xff] %vm223_vm0, %v309_v35  ;;  %343 = vst.msk [vmem:[#allocation2 + $0x15a] sm:$0xff] %vm223_vm0, %v310_v36  ;;  %v429_v43 = vld [vmem:[#allocation2 + $0xb1] sm:$0xff]  ;;  %v428_v44 = vld [vmem:[#allocation2 + $0xa9] sm:$0xff] }
  0x39   : > { %344 = vst.msk [vmem:[#allocation2 + $0x16a] sm:$0xff] %vm223_vm0, %v311_v37  ;;  %345 = vst.msk [vmem:[#allocation2 + $0x172] sm:$0xff] %vm223_vm0, %v312_v38  ;;  %v8404_v49 = vld [vmem:[#allocation2 + $0x38] sm:$0xff]  ;;  %v8406_v50 = vld [vmem:[#allocation2 + $0x30] sm:$0xff] }
  0x3a   : > { %384 = vst.msk [vmem:[#allocation3 + $0x10] sm:$0xff] %vm223_vm0, %v8392_v45  ;;  %382 = vst.msk [vmem:[#allocation3] sm:$0xff] %vm223_vm0, %v350_v46  ;;  %v431_v51 = vld [vmem:[#allocation2 + $0xc9] sm:$0xff]  ;;  %v430_v52 = vld [vmem:[#allocation2 + $0xc1] sm:$0xff] }
  0x3b   : > { %385 = vst.msk [vmem:[#allocation3 + $0x18] sm:$0xff] %vm223_vm0, %v8397_v47  ;;  %383 = vst.msk [vmem:[#allocation3 + $0x8] sm:$0xff] %vm223_vm0, %v351_v48  ;;  %v8412_v53 = vld [vmem:[#allocation2 + $0x50] sm:$0xff]  ;;  %v8416_v54 = vld [vmem:[#allocation2 + $0x48] sm:$0xff] }
  0x3c   : > { %496 = vrot.lane.b32.xlu1 %v423_v32, %s8085_s10  ;;  %494 = vrot.lane.b32.xlu0 %v422_v33, %s8085_s10  ;;  %387 = vst.msk [vmem:[#allocation3 + $0x28] sm:$0xff] %vm223_vm0, %v8404_v49  ;;  %386 = vst.msk [vmem:[#allocation3 + $0x20] sm:$0xff] %vm223_vm0, %v8406_v50  ;;  %v8420_v55 = vld [vmem:[#allocation2 + $0x68] sm:$0xff]  ;;  %v8422_v56 = vld [vmem:[#allocation2 + $0x60] sm:$0xff] }
  0x3d   : > { %389 = vst.msk [vmem:[#allocation3 + $0x38] sm:$0xff] %vm223_vm0, %v8412_v53  ;;  %388 = vst.msk [vmem:[#allocation3 + $0x30] sm:$0xff] %vm223_vm0, %v8416_v54  ;;  %v8430_v57 = vld [vmem:[#allocation2 + $0x80] sm:$0xff]  ;;  %v8432_v58 = vld [vmem:[#allocation2 + $0x78] sm:$0xff] }
  0x3e   : > { %391 = vst.msk [vmem:[#allocation3 + $0x48] sm:$0xff] %vm223_vm0, %v8420_v55  ;;  %390 = vst.msk [vmem:[#allocation3 + $0x40] sm:$0xff] %vm223_vm0, %v8422_v56  ;;  %v433_v59 = vld [vmem:[#allocation2 + $0xe1] sm:$0xff]  ;;  %v432_v60 = vld [vmem:[#allocation2 + $0xd9] sm:$0xff] }
  0x3f   : > { %393 = vst.msk [vmem:[#allocation3 + $0x58] sm:$0xff] %vm223_vm0, %v8430_v57  ;;  %392 = vst.msk [vmem:[#allocation3 + $0x50] sm:$0xff] %vm223_vm0, %v8432_v58  ;;  %v8438_v61 = vld [vmem:[#allocation2 + $0x98] sm:$0xff]  ;;  %v8442_v62 = vld [vmem:[#allocation2 + $0x90] sm:$0xff] }
  0x40   : > { %500 = vrot.lane.b32.xlu1 %v425_v39, %s8085_s10  ;;  %498 = vrot.lane.b32.xlu0 %v424_v40, %s8085_s10  ;;  %395 = vst.msk [vmem:[#allocation3 + $0x68] sm:$0xff] %vm223_vm0, %v8438_v61  ;;  %394 = vst.msk [vmem:[#allocation3 + $0x60] sm:$0xff] %vm223_vm0, %v8442_v62  ;;  %v8446_v63 = vld [vmem:[#allocation2 + $0xb0] sm:$0xff]  ;;  %v8448_v1 = vld [vmem:[#allocation2 + $0xa8] sm:$0xff] }
  0x41   : > { %397 = vst.msk [vmem:[#allocation3 + $0x78] sm:$0xff] %vm223_vm0, %v8446_v63  ;;  %396 = vst.msk [vmem:[#allocation3 + $0x70] sm:$0xff] %vm223_vm0, %v8448_v1  ;;  %v8456_v2 = vld [vmem:[#allocation2 + $0xc8] sm:$0xff]  ;;  %v8458_v3 = vld [vmem:[#allocation2 + $0xc0] sm:$0xff] }
  0x42   : > { %v435_v4 = vld [vmem:[#allocation2 + $0xf9] sm:$0xff]  ;;  %v434_v5 = vld [vmem:[#allocation2 + $0xf1] sm:$0xff]  ;;  %399 = vst.msk [vmem:[#allocation3 + $0x88] sm:$0xff] %vm223_vm0, %v8456_v2  ;;  %398 = vst.msk [vmem:[#allocation3 + $0x80] sm:$0xff] %vm223_vm0, %v8458_v3 }
  0x43   : > { %v8464_v6 = vld [vmem:[#allocation2 + $0xe0] sm:$0xff]  ;;  %v8468_v7 = vld [vmem:[#allocation2 + $0xd8] sm:$0xff]  ;;  %v8474_v9 = vld [vmem:[#allocation2 + $0xf0] sm:$0xff] }
  0x44   : > { %504 = vrot.lane.b32.xlu1 %v427_v41, %s8085_s10  ;;  %502 = vrot.lane.b32.xlu0 %v426_v42, %s8085_s10  ;;  %401 = vst.msk [vmem:[#allocation3 + $0x98] sm:$0xff] %vm223_vm0, %v8464_v6  ;;  %400 = vst.msk [vmem:[#allocation3 + $0x90] sm:$0xff] %vm223_vm0, %v8468_v7  ;;  %v8472_v8 = vld [vmem:[#allocation2 + $0xf8] sm:$0xff]  ;;  %v8482_v10 = vld [vmem:[#allocation2 + $0x110] sm:$0xff] }
  0x45   : > { %403 = vst.msk [vmem:[#allocation3 + $0xa8] sm:$0xff] %vm223_vm0, %v8472_v8  ;;  %402 = vst.msk [vmem:[#allocation3 + $0xa0] sm:$0xff] %vm223_vm0, %v8474_v9  ;;  %v8484_v11 = vld [vmem:[#allocation2 + $0x108] sm:$0xff]  ;;  %v437_v12 = vld [vmem:[#allocation2 + $0x111] sm:$0xff] }
  0x46   : > { %v436_v13 = vld [vmem:[#allocation2 + $0x109] sm:$0xff]  ;;  %405 = vst.msk [vmem:[#allocation3 + $0xb8] sm:$0xff] %vm223_vm0, %v8482_v10  ;;  %404 = vst.msk [vmem:[#allocation3 + $0xb0] sm:$0xff] %vm223_vm0, %v8484_v11  ;;  %v8494_v15 = vld [vmem:[#allocation2 + $0x120] sm:$0xff] }
  0x47   : > { %v8490_v14 = vld [vmem:[#allocation2 + $0x128] sm:$0xff]  ;;  %406 = vst.msk [vmem:[#allocation3 + $0xc0] sm:$0xff] %vm223_vm0, %v8494_v15  ;;  %v8498_v16 = vld [vmem:[#allocation2 + $0x140] sm:$0xff]  ;;  %v8500_v17 = vld [vmem:[#allocation2 + $0x138] sm:$0xff] }
  0x48   : > { %508 = vrot.lane.b32.xlu1 %v429_v43, %s8085_s10  ;;  %506 = vrot.lane.b32.xlu0 %v428_v44, %s8085_s10  ;;  %407 = vst.msk [vmem:[#allocation3 + $0xc8] sm:$0xff] %vm223_vm0, %v8490_v14  ;;  %409 = vst.msk [vmem:[#allocation3 + $0xd8] sm:$0xff] %vm223_vm0, %v8498_v16  ;;  %v8508_v18 = vld [vmem:[#allocation2 + $0x158] sm:$0xff]  ;;  %v8510_v19 = vld [vmem:[#allocation2 + $0x150] sm:$0xff] }
  0x49   : > { %408 = vst.msk [vmem:[#allocation3 + $0xd0] sm:$0xff] %vm223_vm0, %v8500_v17  ;;  %v439_v20 = vld [vmem:[#allocation2 + $0x129] sm:$0xff]  ;;  %v438_v21 = vld [vmem:[#allocation2 + $0x121] sm:$0xff]  ;;  %411 = vst.msk [vmem:[#allocation3 + $0xe8] sm:$0xff] %vm223_vm0, %v8508_v18 }
  0x4a   : > { %410 = vst.msk [vmem:[#allocation3 + $0xe0] sm:$0xff] %vm223_vm0, %v8510_v19  ;;  %v8516_v22 = vld [vmem:[#allocation2 + $0x170] sm:$0xff]  ;;  %v8520_v23 = vld [vmem:[#allocation2 + $0x168] sm:$0xff]  ;;  %v440_v25 = vld [vmem:[#allocation2 + $0x139] sm:$0xff] }
  0x4b   : > { %413 = vst.msk [vmem:[#allocation3 + $0xf8] sm:$0xff] %vm223_vm0, %v8516_v22  ;;  %412 = vst.msk [vmem:[#allocation3 + $0xf0] sm:$0xff] %vm223_vm0, %v8520_v23  ;;  %v441_v24 = vld [vmem:[#allocation2 + $0x141] sm:$0xff]  ;;  %v443_v26 = vld [vmem:[#allocation2 + $0x159] sm:$0xff] }
  0x4c   : > { %512 = vrot.lane.b32.xlu1 %v431_v51, %s8085_s10  ;;  %510 = vrot.lane.b32.xlu0 %v430_v52, %s8085_s10  ;;  %v442_v27 = vld [vmem:[#allocation2 + $0x151] sm:$0xff]  ;;  %v444_v29 = vld [vmem:[#allocation2 + $0x169] sm:$0xff]  ;;  %v609_v33 = vld [vmem:[#allocation2 + $0x1a] sm:$0xff] }
  0x4d   : > { %v445_v28 = vld [vmem:[#allocation2 + $0x171] sm:$0xff]  ;;  %v607_v31 = vld [vmem:[#allocation2 + $0x2] sm:$0xff]  ;;  %v612_v34 = vld [vmem:[#allocation2 + $0x3a] sm:$0xff] }
  0x4e   : > { %v608_v30 = vld [vmem:[#allocation2 + $0xa] sm:$0xff]  ;;  %v610_v32 = vld [vmem:[#allocation2 + $0x22] sm:$0xff]  ;;  %v611_v35 = vld [vmem:[#allocation2 + $0x32] sm:$0xff] }
  0x4f   : > { %v614_v36 = vld [vmem:[#allocation2 + $0x52] sm:$0xff]  ;;  %v613_v37 = vld [vmem:[#allocation2 + $0x4a] sm:$0xff]  ;;  %v615_v39 = vld [vmem:[#allocation2 + $0x62] sm:$0xff] }
  0x50   : > { %516 = vrot.lane.b32.xlu1 %v433_v59, %s8085_s10  ;;  %514 = vrot.lane.b32.xlu0 %v432_v60, %s8085_s10  ;;  %v616_v38 = vld [vmem:[#allocation2 + $0x6a] sm:$0xff]  ;;  %v618_v40 = vld [vmem:[#allocation2 + $0x82] sm:$0xff]  ;;  %v617_v41 = vld [vmem:[#allocation2 + $0x7a] sm:$0xff] }
  0x51   : > { %v620_v42 = vld [vmem:[#allocation2 + $0x9a] sm:$0xff]  ;;  %v619_v43 = vld [vmem:[#allocation2 + $0x92] sm:$0xff]  ;;  %v621_v46 = vld [vmem:[#allocation2 + $0xaa] sm:$0xff] }
  0x52   : > { %v622_v44 = vld [vmem:[#allocation2 + $0xb2] sm:$0xff]  ;;  %v624_v48 = vld [vmem:[#allocation2 + $0xca] sm:$0xff]  ;;  %v623_v51 = vld [vmem:[#allocation2 + $0xc2] sm:$0xff] }
  0x53   : > { %v626_v52 = vld [vmem:[#allocation2 + $0xe2] sm:$0xff]  ;;  %v625_v59 = vld [vmem:[#allocation2 + $0xda] sm:$0xff] }
  0x54   : > { %520 = vrot.lane.b32.xlu1 %v435_v4, %s8085_s10  ;;  %518 = vrot.lane.b32.xlu0 %v434_v5, %s8085_s10  ;;  %v628_v60 = vld [vmem:[#allocation2 + $0xfa] sm:$0xff]  ;;  %v627_v4 = vld [vmem:[#allocation2 + $0xf2] sm:$0xff] }
  0x55   : > { %v630_v5 = vld [vmem:[#allocation2 + $0x112] sm:$0xff] }
  0x58   : > { %524 = vrot.lane.b32.xlu1 %v437_v12, %s8085_s10  ;;  %522 = vrot.lane.b32.xlu0 %v436_v13, %s8085_s10  ;;  %v629_v12 = vld [vmem:[#allocation2 + $0x10a] sm:$0xff] }
  0x59   : > { %v632_v13 = vld [vmem:[#allocation2 + $0x12a] sm:$0xff] }
  0x5c   : > { %528 = vrot.lane.b32.xlu1 %v439_v20, %s8085_s10  ;;  %526 = vrot.lane.b32.xlu0 %v438_v21, %s8085_s10  ;;  %v631_v20 = vld [vmem:[#allocation2 + $0x122] sm:$0xff] }
  0x5d   : > { %v634_v21 = vld [vmem:[#allocation2 + $0x142] sm:$0xff] }
  0x60   : > { %532 = vrot.lane.b32.xlu1 %v441_v24, %s8085_s10  ;;  %530 = vrot.lane.b32.xlu0 %v440_v25, %s8085_s10  ;;  %v633_v24 = vld [vmem:[#allocation2 + $0x13a] sm:$0xff] }
  0x64   : > { %536 = vrot.lane.b32.xlu1 %v443_v26, %s8085_s10  ;;  %534 = vrot.lane.b32.xlu0 %v442_v27, %s8085_s10  ;;  %v636_v27 = vld [vmem:[#allocation2 + $0x15a] sm:$0xff] }
  0x68   : > { %540 = vrot.lane.b32.xlu1 %v445_v28, %s8085_s10  ;;  %538 = vrot.lane.b32.xlu0 %v444_v29, %s8085_s10  ;;  %v635_v28 = vld [vmem:[#allocation2 + $0x152] sm:$0xff]  ;;  %s8101_s10 = smov 51  }
  0x6c   : > { %673 = vrot.lane.b32.xlu1 %v608_v30, %s8086_s11  ;;  %671 = vrot.lane.b32.xlu0 %v607_v31, %s8086_s11  ;;  %v638_v31 = vld [vmem:[#allocation2 + $0x172] sm:$0xff] }
  0x70   : > { %677 = vrot.lane.b32.xlu1 %v610_v32, %s8086_s11  ;;  %675 = vrot.lane.b32.xlu0 %v609_v33, %s8086_s11  ;;  %v637_v32 = vld [vmem:[#allocation2 + $0x16a] sm:$0xff] }
  0x74   : > { %681 = vrot.lane.b32.xlu1 %v612_v34, %s8086_s11  ;;  %679 = vrot.lane.b32.xlu0 %v611_v35, %s8086_s11  ;;  %v801_v35 = vld [vmem:[#allocation2 + $0xb] sm:$0xff] }
  0x78   : > { %685 = vrot.lane.b32.xlu1 %v614_v36, %s8086_s11  ;;  %683 = vrot.lane.b32.xlu0 %v613_v37, %s8086_s11  ;;  %v800_v36 = vld [vmem:[#allocation2 + $0x3] sm:$0xff] }
  0x7c   : > { %689 = vrot.lane.b32.xlu1 %v616_v38, %s8086_s11  ;;  %687 = vrot.lane.b32.xlu0 %v615_v39, %s8086_s11  ;;  %v803_v39 = vld [vmem:[#allocation2 + $0x23] sm:$0xff] }
  0x80   : > { %693 = vrot.lane.b32.xlu1 %v618_v40, %s8086_s11  ;;  %691 = vrot.lane.b32.xlu0 %v617_v41, %s8086_s11  ;;  %v802_v40 = vld [vmem:[#allocation2 + $0x1b] sm:$0xff] }
  0x84   : > { %697 = vrot.lane.b32.xlu1 %v620_v42, %s8086_s11  ;;  %695 = vrot.lane.b32.xlu0 %v619_v43, %s8086_s11  ;;  %v805_v43 = vld [vmem:[#allocation2 + $0x3b] sm:$0xff] }
  0x88   : > { %701 = vrot.lane.b32.xlu1 %v622_v44, %s8086_s11  ;;  %699 = vrot.lane.b32.xlu0 %v621_v46, %s8086_s11  ;;  %v483_v25 = vpop.permute.xlu1 %482  ;;  %v804_v44 = vld [vmem:[#allocation2 + $0x33] sm:$0xff] }
  0x89   : > { %v479_v26 = vpop.permute.xlu0 %478  ;;  %577 = vst.msk [vmem:[#allocation3 + $0x10] sm:$0xff] %vm574_vm2, %v483_v25 }
  0x8a   : > { %575 = vst.msk [vmem:[#allocation3] sm:$0xff] %vm574_vm2, %v479_v26  ;;  %v813_v26 = vld [vmem:[#allocation2 + $0x9b] sm:$0xff] }
  0x8c   : > { %705 = vrot.lane.b32.xlu1 %v624_v48, %s8086_s11  ;;  %703 = vrot.lane.b32.xlu0 %v623_v51, %s8086_s11  ;;  %v807_v51 = vld [vmem:[#allocation2 + $0x53] sm:$0xff] }
  0x90   : > { %709 = vrot.lane.b32.xlu1 %v626_v52, %s8086_s11  ;;  %707 = vrot.lane.b32.xlu0 %v625_v59, %s8086_s11  ;;  %v806_v52 = vld [vmem:[#allocation2 + $0x4b] sm:$0xff] }
  0x94   : > { %713 = vrot.lane.b32.xlu1 %v628_v60, %s8086_s11  ;;  %711 = vrot.lane.b32.xlu0 %v627_v4, %s8086_s11  ;;  %v809_v4 = vld [vmem:[#allocation2 + $0x6b] sm:$0xff] }
  0x98   : > { %717 = vrot.lane.b32.xlu1 %v630_v5, %s8086_s11  ;;  %715 = vrot.lane.b32.xlu0 %v629_v12, %s8086_s11  ;;  %v808_v5 = vld [vmem:[#allocation2 + $0x63] sm:$0xff] }
  0x9c   : > { %721 = vrot.lane.b32.xlu1 %v632_v13, %s8086_s11  ;;  %719 = vrot.lane.b32.xlu0 %v631_v20, %s8086_s11  ;;  %v485_v29 = vpop.permute.xlu1 %484  ;;  %v481_v30 = vpop.permute.xlu0 %480  ;;  %v811_v20 = vld [vmem:[#allocation2 + $0x83] sm:$0xff] }
  0x9d   : > { %578 = vst.msk [vmem:[#allocation3 + $0x18] sm:$0xff] %vm574_vm2, %v485_v29  ;;  %576 = vst.msk [vmem:[#allocation3 + $0x8] sm:$0xff] %vm574_vm2, %v481_v30  ;;  %v815_v30 = vld [vmem:[#allocation2 + $0xb3] sm:$0xff] }
  0xa0   : > { %725 = vrot.lane.b32.xlu1 %v634_v21, %s8086_s11  ;;  %723 = vrot.lane.b32.xlu0 %v633_v24, %s8086_s11  ;;  %v810_v21 = vld [vmem:[#allocation2 + $0x7b] sm:$0xff] }
  0xa4   : > { %729 = vrot.lane.b32.xlu1 %v636_v27, %s8086_s11  ;;  %727 = vrot.lane.b32.xlu0 %v635_v28, %s8086_s11  ;;  %v812_v27 = vld [vmem:[#allocation2 + $0x93] sm:$0xff] }
  0xa6   : > { %v489_v33 = vpop.permute.xlu1 %488  ;;  %v487_v34 = vpop.permute.xlu0 %486 }
  0xa7   : > { %580 = vst.msk [vmem:[#allocation3 + $0x28] sm:$0xff] %vm574_vm2, %v489_v33  ;;  %579 = vst.msk [vmem:[#allocation3 + $0x20] sm:$0xff] %vm574_vm2, %v487_v34  ;;  %v817_v34 = vld [vmem:[#allocation2 + $0xcb] sm:$0xff] }
  0xa8   : > { %733 = vrot.lane.b32.xlu1 %v638_v31, %s8086_s11  ;;  %731 = vrot.lane.b32.xlu0 %v637_v32, %s8086_s11  ;;  %v814_v31 = vld [vmem:[#allocation2 + $0xab] sm:$0xff]  ;;  %s8102_s11 = smov 54  }
  0xaa   : > { %v493_v37 = vpop.permute.xlu1 %492  ;;  %v491_v38 = vpop.permute.xlu0 %490 }
  0xab   : > { %582 = vst.msk [vmem:[#allocation3 + $0x38] sm:$0xff] %vm574_vm2, %v493_v37  ;;  %581 = vst.msk [vmem:[#allocation3 + $0x30] sm:$0xff] %vm574_vm2, %v491_v38  ;;  %v819_v38 = vld [vmem:[#allocation2 + $0xe3] sm:$0xff] }
  0xac   : > { %866 = vrot.lane.b32.xlu1 %v801_v35, %s8087_s12  ;;  %864 = vrot.lane.b32.xlu0 %v800_v36, %s8087_s12  ;;  %v816_v35 = vld [vmem:[#allocation2 + $0xc3] sm:$0xff] }
  0xae   : > { %v497_v41 = vpop.permute.xlu1 %496  ;;  %v495_v42 = vpop.permute.xlu0 %494 }
  0xaf   : > { %584 = vst.msk [vmem:[#allocation3 + $0x48] sm:$0xff] %vm574_vm2, %v497_v41  ;;  %583 = vst.msk [vmem:[#allocation3 + $0x40] sm:$0xff] %vm574_vm2, %v495_v42  ;;  %v821_v42 = vld [vmem:[#allocation2 + $0xfb] sm:$0xff] }
  0xb0   : > { %870 = vrot.lane.b32.xlu1 %v803_v39, %s8087_s12  ;;  %868 = vrot.lane.b32.xlu0 %v802_v40, %s8087_s12  ;;  %v818_v39 = vld [vmem:[#allocation2 + $0xdb] sm:$0xff] }
  0xb2   : > { %v501_v46 = vpop.permute.xlu1 %500  ;;  %v499_v48 = vpop.permute.xlu0 %498 }
  0xb3   : > { %586 = vst.msk [vmem:[#allocation3 + $0x58] sm:$0xff] %vm574_vm2, %v501_v46  ;;  %585 = vst.msk [vmem:[#allocation3 + $0x50] sm:$0xff] %vm574_vm2, %v499_v48  ;;  %v823_v48 = vld [vmem:[#allocation2 + $0x113] sm:$0xff] }
  0xb4   : > { %874 = vrot.lane.b32.xlu1 %v805_v43, %s8087_s12  ;;  %872 = vrot.lane.b32.xlu0 %v804_v44, %s8087_s12  ;;  %v820_v43 = vld [vmem:[#allocation2 + $0xf3] sm:$0xff] }
  0xb6   : > { %v505_v59 = vpop.permute.xlu1 %504  ;;  %v503_v60 = vpop.permute.xlu0 %502 }
  0xb7   : > { %588 = vst.msk [vmem:[#allocation3 + $0x68] sm:$0xff] %vm574_vm2, %v505_v59  ;;  %587 = vst.msk [vmem:[#allocation3 + $0x60] sm:$0xff] %vm574_vm2, %v503_v60  ;;  %v825_v60 = vld [vmem:[#allocation2 + $0x12b] sm:$0xff] }
  0xb8   : > { %878 = vrot.lane.b32.xlu1 %v807_v51, %s8087_s12  ;;  %876 = vrot.lane.b32.xlu0 %v806_v52, %s8087_s12  ;;  %v822_v51 = vld [vmem:[#allocation2 + $0x10b] sm:$0xff] }
  0xba   : > { %v509_v12 = vpop.permute.xlu1 %508  ;;  %v507_v13 = vpop.permute.xlu0 %506 }
  0xbb   : > { %590 = vst.msk [vmem:[#allocation3 + $0x78] sm:$0xff] %vm574_vm2, %v509_v12  ;;  %589 = vst.msk [vmem:[#allocation3 + $0x70] sm:$0xff] %vm574_vm2, %v507_v13  ;;  %v827_v13 = vld [vmem:[#allocation2 + $0x143] sm:$0xff] }
  0xbc   : > { %882 = vrot.lane.b32.xlu1 %v809_v4, %s8087_s12  ;;  %880 = vrot.lane.b32.xlu0 %v808_v5, %s8087_s12  ;;  %v824_v4 = vld [vmem:[#allocation2 + $0x123] sm:$0xff] }
  0xbe   : > { %v513_v24 = vpop.permute.xlu1 %512  ;;  %v511_v25 = vpop.permute.xlu0 %510 }
  0xbf   : > { %592 = vst.msk [vmem:[#allocation3 + $0x88] sm:$0xff] %vm574_vm2, %v513_v24  ;;  %591 = vst.msk [vmem:[#allocation3 + $0x80] sm:$0xff] %vm574_vm2, %v511_v25  ;;  %v313_v25 = vld [vmem:[%s8320_s9 + $0xe0] sm:$0xff] }
  0xc0   : > { %886 = vrot.lane.b32.xlu1 %v811_v20, %s8087_s12  ;;  %884 = vrot.lane.b32.xlu0 %v810_v21, %s8087_s12  ;;  %v826_v20 = vld [vmem:[#allocation2 + $0x13b] sm:$0xff]  ;;  %346 = vst.msk [vmem:[#allocation2 + $0x182] sm:$0xff] %vm223_vm0, %v313_v25 }
  0xc2   : > { %v517_v28 = vpop.permute.xlu1 %516  ;;  %v515_v29 = vpop.permute.xlu0 %514 }
  0xc3   : > { %594 = vst.msk [vmem:[#allocation3 + $0x98] sm:$0xff] %vm574_vm2, %v517_v28  ;;  %593 = vst.msk [vmem:[#allocation3 + $0x90] sm:$0xff] %vm574_vm2, %v515_v29  ;;  %v828_v28 = vld [vmem:[#allocation2 + $0x153] sm:$0xff] }
  0xc4   : > { %890 = vrot.lane.b32.xlu1 %v813_v26, %s8087_s12  ;;  %888 = vrot.lane.b32.xlu0 %v812_v27, %s8087_s12  ;;  %v314_v26 = vld [vmem:[%s8320_s9 + $0xe8] sm:$0xff]  ;;  %v829_v27 = vld [vmem:[#allocation2 + $0x15b] sm:$0xff] }
  0xc5   : > { %347 = vst.msk [vmem:[#allocation2 + $0x18a] sm:$0xff] %vm223_vm0, %v314_v26  ;;  %v1006_v26 = vld [vmem:[#allocation2 + $0x9c] sm:$0xff] }
  0xc6   : > { %v521_v32 = vpop.permute.xlu1 %520  ;;  %v519_v33 = vpop.permute.xlu0 %518 }
  0xc7   : > { %596 = vst.msk [vmem:[#allocation3 + $0xa8] sm:$0xff] %vm574_vm2, %v521_v32  ;;  %595 = vst.msk [vmem:[#allocation3 + $0xa0] sm:$0xff] %vm574_vm2, %v519_v33  ;;  %v830_v32 = vld [vmem:[#allocation2 + $0x16b] sm:$0xff] }
  0xc8   : > { %894 = vrot.lane.b32.xlu1 %v815_v30, %s8087_s12  ;;  %892 = vrot.lane.b32.xlu0 %v814_v31, %s8087_s12  ;;  %v831_v31 = vld [vmem:[#allocation2 + $0x173] sm:$0xff] }
  0xca   : > { %v525_v36 = vpop.permute.xlu1 %524  ;;  %v523_v37 = vpop.permute.xlu0 %522 }
  0xcb   : > { %598 = vst.msk [vmem:[#allocation3 + $0xb8] sm:$0xff] %vm574_vm2, %v525_v36  ;;  %597 = vst.msk [vmem:[#allocation3 + $0xb0] sm:$0xff] %vm574_vm2, %v523_v37  ;;  %v993_v36 = vld [vmem:[#allocation2 + $0x4] sm:$0xff] }
  0xcc   : > { %898 = vrot.lane.b32.xlu1 %v817_v34, %s8087_s12  ;;  %896 = vrot.lane.b32.xlu0 %v816_v35, %s8087_s12  ;;  %v994_v35 = vld [vmem:[#allocation2 + $0xc] sm:$0xff] }
  0xce   : > { %v529_v40 = vpop.permute.xlu1 %528  ;;  %v527_v41 = vpop.permute.xlu0 %526 }
  0xcf   : > { %600 = vst.msk [vmem:[#allocation3 + $0xc8] sm:$0xff] %vm574_vm2, %v529_v40  ;;  %599 = vst.msk [vmem:[#allocation3 + $0xc0] sm:$0xff] %vm574_vm2, %v527_v41  ;;  %v995_v40 = vld [vmem:[#allocation2 + $0x1c] sm:$0xff] }
  0xd0   : > { %902 = vrot.lane.b32.xlu1 %v819_v38, %s8087_s12  ;;  %900 = vrot.lane.b32.xlu0 %v818_v39, %s8087_s12  ;;  %v996_v39 = vld [vmem:[#allocation2 + $0x24] sm:$0xff] }
  0xd2   : > { %v533_v44 = vpop.permute.xlu1 %532  ;;  %v531_v46 = vpop.permute.xlu0 %530 }
  0xd3   : > { %602 = vst.msk [vmem:[#allocation3 + $0xd8] sm:$0xff] %vm574_vm2, %v533_v44  ;;  %601 = vst.msk [vmem:[#allocation3 + $0xd0] sm:$0xff] %vm574_vm2, %v531_v46  ;;  %v997_v44 = vld [vmem:[#allocation2 + $0x34] sm:$0xff] }
  0xd4   : > { %906 = vrot.lane.b32.xlu1 %v821_v42, %s8087_s12  ;;  %904 = vrot.lane.b32.xlu0 %v820_v43, %s8087_s12  ;;  %v998_v43 = vld [vmem:[#allocation2 + $0x3c] sm:$0xff] }
  0xd6   : > { %v537_v52 = vpop.permute.xlu1 %536  ;;  %v535_v59 = vpop.permute.xlu0 %534 }
  0xd7   : > { %604 = vst.msk [vmem:[#allocation3 + $0xe8] sm:$0xff] %vm574_vm2, %v537_v52  ;;  %603 = vst.msk [vmem:[#allocation3 + $0xe0] sm:$0xff] %vm574_vm2, %v535_v59  ;;  %v999_v52 = vld [vmem:[#allocation2 + $0x4c] sm:$0xff] }
  0xd8   : > { %910 = vrot.lane.b32.xlu1 %v823_v48, %s8087_s12  ;;  %908 = vrot.lane.b32.xlu0 %v822_v51, %s8087_s12  ;;  %v1000_v51 = vld [vmem:[#allocation2 + $0x54] sm:$0xff] }
  0xda   : > { %v541_v5 = vpop.permute.xlu1 %540  ;;  %v539_v12 = vpop.permute.xlu0 %538 }
  0xdb   : > { %606 = vst.msk [vmem:[#allocation3 + $0xf8] sm:$0xff] %vm574_vm2, %v541_v5  ;;  %605 = vst.msk [vmem:[#allocation3 + $0xf0] sm:$0xff] %vm574_vm2, %v539_v12  ;;  %v1001_v5 = vld [vmem:[#allocation2 + $0x64] sm:$0xff]  ;;  %vm8108_vm2 = vmmov 1  }
  0xdc   : > { %914 = vrot.lane.b32.xlu1 %v825_v60, %s8087_s12  ;;  %912 = vrot.lane.b32.xlu0 %v824_v4, %s8087_s12  ;;  %v1002_v4 = vld [vmem:[#allocation2 + $0x6c] sm:$0xff] }
  0xde   : > { %v674_v21 = vpop.permute.xlu1 %673  ;;  %v672_v24 = vpop.permute.xlu0 %671 }
  0xdf   : > { %769 = vst.msk [vmem:[#allocation3 + $0x8] sm:$0xff] %vm767_vm3, %v674_v21  ;;  %768 = vst.msk [vmem:[#allocation3] sm:$0xff] %vm767_vm3, %v672_v24  ;;  %v1003_v21 = vld [vmem:[#allocation2 + $0x7c] sm:$0xff] }
  0xe0   : > { %918 = vrot.lane.b32.xlu1 %v827_v13, %s8087_s12  ;;  %916 = vrot.lane.b32.xlu0 %v826_v20, %s8087_s12  ;;  %v1004_v20 = vld [vmem:[#allocation2 + $0x84] sm:$0xff] }
  0xe2   : > { %v678_v29 = vpop.permute.xlu1 %677  ;;  %v676_v30 = vpop.permute.xlu0 %675 }
  0xe3   : > { %771 = vst.msk [vmem:[#allocation3 + $0x18] sm:$0xff] %vm767_vm3, %v678_v29  ;;  %770 = vst.msk [vmem:[#allocation3 + $0x10] sm:$0xff] %vm767_vm3, %v676_v30  ;;  %v1008_v30 = vld [vmem:[#allocation2 + $0xb4] sm:$0xff] }
  0xe4   : > { %922 = vrot.lane.b32.xlu1 %v829_v27, %s8087_s12  ;;  %920 = vrot.lane.b32.xlu0 %v828_v28, %s8087_s12  ;;  %v1005_v27 = vld [vmem:[#allocation2 + $0x94] sm:$0xff] }
  0xe6   : > { %v682_v33 = vpop.permute.xlu1 %681  ;;  %v680_v34 = vpop.permute.xlu0 %679 }
  0xe7   : > { %773 = vst.msk [vmem:[#allocation3 + $0x28] sm:$0xff] %vm767_vm3, %v682_v33  ;;  %772 = vst.msk [vmem:[#allocation3 + $0x20] sm:$0xff] %vm767_vm3, %v680_v34  ;;  %v1010_v34 = vld [vmem:[#allocation2 + $0xcc] sm:$0xff] }
  0xe8   : > { %926 = vrot.lane.b32.xlu1 %v831_v31, %s8087_s12  ;;  %924 = vrot.lane.b32.xlu0 %v830_v32, %s8087_s12  ;;  %v1007_v31 = vld [vmem:[#allocation2 + $0xac] sm:$0xff]  ;;  %s8103_s12 = smov 57  }
  0xea   : > { %v686_v37 = vpop.permute.xlu1 %685  ;;  %v684_v38 = vpop.permute.xlu0 %683 }
  0xeb   : > { %775 = vst.msk [vmem:[#allocation3 + $0x38] sm:$0xff] %vm767_vm3, %v686_v37  ;;  %774 = vst.msk [vmem:[#allocation3 + $0x30] sm:$0xff] %vm767_vm3, %v684_v38  ;;  %v1012_v38 = vld [vmem:[#allocation2 + $0xe4] sm:$0xff] }
  0xec   : > { %1059 = vrot.lane.b32.xlu1 %v994_v35, %s8088_s13  ;;  %1057 = vrot.lane.b32.xlu0 %v993_v36, %s8088_s13  ;;  %v1009_v35 = vld [vmem:[#allocation2 + $0xc4] sm:$0xff] }
  0xee   : > { %v690_v41 = vpop.permute.xlu1 %689  ;;  %v688_v42 = vpop.permute.xlu0 %687 }
  0xef   : > { %777 = vst.msk [vmem:[#allocation3 + $0x48] sm:$0xff] %vm767_vm3, %v690_v41  ;;  %776 = vst.msk [vmem:[#allocation3 + $0x40] sm:$0xff] %vm767_vm3, %v688_v42  ;;  %v1014_v42 = vld [vmem:[#allocation2 + $0xfc] sm:$0xff] }
  0xf0   : > { %1063 = vrot.lane.b32.xlu1 %v996_v39, %s8088_s13  ;;  %1061 = vrot.lane.b32.xlu0 %v995_v40, %s8088_s13  ;;  %v1011_v39 = vld [vmem:[#allocation2 + $0xdc] sm:$0xff] }
  0xf2   : > { %v694_v46 = vpop.permute.xlu1 %693  ;;  %v692_v48 = vpop.permute.xlu0 %691 }
  0xf3   : > { %779 = vst.msk [vmem:[#allocation3 + $0x58] sm:$0xff] %vm767_vm3, %v694_v46  ;;  %778 = vst.msk [vmem:[#allocation3 + $0x50] sm:$0xff] %vm767_vm3, %v692_v48  ;;  %v1016_v48 = vld [vmem:[#allocation2 + $0x114] sm:$0xff] }
  0xf4   : > { %1067 = vrot.lane.b32.xlu1 %v998_v43, %s8088_s13  ;;  %1065 = vrot.lane.b32.xlu0 %v997_v44, %s8088_s13  ;;  %v1013_v43 = vld [vmem:[#allocation2 + $0xf4] sm:$0xff] }
  0xf6   : > { %v698_v59 = vpop.permute.xlu1 %697  ;;  %v696_v60 = vpop.permute.xlu0 %695 }
  0xf7   : > { %781 = vst.msk [vmem:[#allocation3 + $0x68] sm:$0xff] %vm767_vm3, %v698_v59  ;;  %780 = vst.msk [vmem:[#allocation3 + $0x60] sm:$0xff] %vm767_vm3, %v696_v60  ;;  %v1018_v60 = vld [vmem:[#allocation2 + $0x12c] sm:$0xff] }
  0xf8   : > { %1071 = vrot.lane.b32.xlu1 %v1000_v51, %s8088_s13  ;;  %1069 = vrot.lane.b32.xlu0 %v999_v52, %s8088_s13  ;;  %v1015_v51 = vld [vmem:[#allocation2 + $0x10c] sm:$0xff] }
  0xfa   : > { %v702_v12 = vpop.permute.xlu1 %701  ;;  %v700_v13 = vpop.permute.xlu0 %699 }
  0xfb   : > { %783 = vst.msk [vmem:[#allocation3 + $0x78] sm:$0xff] %vm767_vm3, %v702_v12  ;;  %782 = vst.msk [vmem:[#allocation3 + $0x70] sm:$0xff] %vm767_vm3, %v700_v13  ;;  %v1020_v13 = vld [vmem:[#allocation2 + $0x144] sm:$0xff] }
  0xfc   : > { %1075 = vrot.lane.b32.xlu1 %v1002_v4, %s8088_s13  ;;  %1073 = vrot.lane.b32.xlu0 %v1001_v5, %s8088_s13  ;;  %v1017_v4 = vld [vmem:[#allocation2 + $0x124] sm:$0xff] }
  0xfe   : > { %v706_v24 = vpop.permute.xlu1 %705  ;;  %v704_v25 = vpop.permute.xlu0 %703 }
  0xff   : > { %785 = vst.msk [vmem:[#allocation3 + $0x88] sm:$0xff] %vm767_vm3, %v706_v24  ;;  %784 = vst.msk [vmem:[#allocation3 + $0x80] sm:$0xff] %vm767_vm3, %v704_v25  ;;  %v1022_v25 = vld [vmem:[#allocation2 + $0x15c] sm:$0xff] }
 0x100   : > { %1079 = vrot.lane.b32.xlu1 %v1004_v20, %s8088_s13  ;;  %1077 = vrot.lane.b32.xlu0 %v1003_v21, %s8088_s13  ;;  %v1019_v20 = vld [vmem:[#allocation2 + $0x13c] sm:$0xff] }
 0x102   : > { %v710_v28 = vpop.permute.xlu1 %709  ;;  %v708_v29 = vpop.permute.xlu0 %707 }
 0x103   : > { %787 = vst.msk [vmem:[#allocation3 + $0x98] sm:$0xff] %vm767_vm3, %v710_v28  ;;  %786 = vst.msk [vmem:[#allocation3 + $0x90] sm:$0xff] %vm767_vm3, %v708_v29  ;;  %v1024_v29 = vld [vmem:[#allocation2 + $0x174] sm:$0xff] }
 0x104   : > { %1083 = vrot.lane.b32.xlu1 %v1006_v26, %s8088_s13  ;;  %1081 = vrot.lane.b32.xlu0 %v1005_v27, %s8088_s13  ;;  %v1021_v26 = vld [vmem:[#allocation2 + $0x154] sm:$0xff] }
 0x106   : > { %v714_v32 = vpop.permute.xlu1 %713  ;;  %v712_v33 = vpop.permute.xlu0 %711 }
 0x107   : > { %789 = vst.msk [vmem:[#allocation3 + $0xa8] sm:$0xff] %vm767_vm3, %v714_v32  ;;  %788 = vst.msk [vmem:[#allocation3 + $0xa0] sm:$0xff] %vm767_vm3, %v712_v33 }
 0x108   : > { %1087 = vrot.lane.b32.xlu1 %v1008_v30, %s8088_s13  ;;  %1085 = vrot.lane.b32.xlu0 %v1007_v31, %s8088_s13  ;;  %v1023_v30 = vld [vmem:[#allocation2 + $0x16c] sm:$0xff] }
 0x10a   : > { %v718_v36 = vpop.permute.xlu1 %717  ;;  %v716_v37 = vpop.permute.xlu0 %715 }
 0x10b   : > { %791 = vst.msk [vmem:[#allocation3 + $0xb8] sm:$0xff] %vm767_vm3, %v718_v36  ;;  %790 = vst.msk [vmem:[#allocation3 + $0xb0] sm:$0xff] %vm767_vm3, %v716_v37 }
 0x10c   : > { %1091 = vrot.lane.b32.xlu1 %v1010_v34, %s8088_s13  ;;  %1089 = vrot.lane.b32.xlu0 %v1009_v35, %s8088_s13 }
 0x10e   : > { %v722_v40 = vpop.permute.xlu1 %721  ;;  %v720_v41 = vpop.permute.xlu0 %719 }
 0x10f   : > { %793 = vst.msk [vmem:[#allocation3 + $0xc8] sm:$0xff] %vm767_vm3, %v722_v40  ;;  %792 = vst.msk [vmem:[#allocation3 + $0xc0] sm:$0xff] %vm767_vm3, %v720_v41 }
 0x110   : > { %1095 = vrot.lane.b32.xlu1 %v1012_v38, %s8088_s13  ;;  %1093 = vrot.lane.b32.xlu0 %v1011_v39, %s8088_s13 }
 0x112   : > { %v726_v44 = vpop.permute.xlu1 %725  ;;  %v724_v46 = vpop.permute.xlu0 %723 }
 0x113   : > { %795 = vst.msk [vmem:[#allocation3 + $0xd8] sm:$0xff] %vm767_vm3, %v726_v44  ;;  %794 = vst.msk [vmem:[#allocation3 + $0xd0] sm:$0xff] %vm767_vm3, %v724_v46  ;;  %v1385_v46 = vld [vmem:[#allocation2 + $0x51] sm:$0xff] }
 0x114   : > { %1099 = vrot.lane.b32.xlu1 %v1014_v42, %s8088_s13  ;;  %1097 = vrot.lane.b32.xlu0 %v1013_v43, %s8088_s13 }
 0x116   : > { %v730_v52 = vpop.permute.xlu1 %729  ;;  %v728_v59 = vpop.permute.xlu0 %727 }
 0x117   : > { %797 = vst.msk [vmem:[#allocation3 + $0xe8] sm:$0xff] %vm767_vm3, %v730_v52  ;;  %796 = vst.msk [vmem:[#allocation3 + $0xe0] sm:$0xff] %vm767_vm3, %v728_v59  ;;  %v1387_v59 = vld [vmem:[#allocation2 + $0x69] sm:$0xff] }
 0x118   : > { %1103 = vrot.lane.b32.xlu1 %v1016_v48, %s8088_s13  ;;  %1101 = vrot.lane.b32.xlu0 %v1015_v51, %s8088_s13  ;;  %v1384_v48 = vld [vmem:[#allocation2 + $0x49] sm:$0xff] }
 0x11a   : > { %v734_v5 = vpop.permute.xlu1 %733  ;;  %v732_v12 = vpop.permute.xlu0 %731 }
 0x11b   : > { %799 = vst.msk [vmem:[#allocation3 + $0xf8] sm:$0xff] %vm767_vm3, %v734_v5  ;;  %798 = vst.msk [vmem:[#allocation3 + $0xf0] sm:$0xff] %vm767_vm3, %v732_v12  ;;  %v1389_v12 = vld [vmem:[#allocation2 + $0x81] sm:$0xff] }
 0x11c   : > { %1107 = vrot.lane.b32.xlu1 %v1018_v60, %s8088_s13  ;;  %1105 = vrot.lane.b32.xlu0 %v1017_v4, %s8088_s13  ;;  %v1386_v60 = vld [vmem:[#allocation2 + $0x61] sm:$0xff]  ;;  %vm7837_vm3 = vmpackc.low %vm5195_vm1, %vm8108_vm2  ;;  %vm5732_vm1 = vcmask 785920   ;;  %vm5781_vm2 = vcmask 1048320  }
 0x11e   : > { %v867_v21 = vpop.permute.xlu1 %866  ;;  %v865_v24 = vpop.permute.xlu0 %864 }
 0x11f   : > { %962 = vst.msk [vmem:[#allocation3 + $0x8] sm:$0xff] %vm960_vm4, %v867_v21  ;;  %961 = vst.msk [vmem:[#allocation3] sm:$0xff] %vm960_vm4, %v865_v24  ;;  %v1391_v24 = vld [vmem:[#allocation2 + $0x99] sm:$0xff] }
 0x120   : > { %1111 = vrot.lane.b32.xlu1 %v1020_v13, %s8088_s13  ;;  %1109 = vrot.lane.b32.xlu0 %v1019_v20, %s8088_s13  ;;  %v1388_v13 = vld [vmem:[#allocation2 + $0x79] sm:$0xff] }
 0x122   : > { %v871_v27 = vpop.permute.xlu1 %870  ;;  %v869_v28 = vpop.permute.xlu0 %868 }
 0x123   : > { %964 = vst.msk [vmem:[#allocation3 + $0x18] sm:$0xff] %vm960_vm4, %v871_v27  ;;  %963 = vst.msk [vmem:[#allocation3 + $0x10] sm:$0xff] %vm960_vm4, %v869_v28  ;;  %v1393_v28 = vld [vmem:[#allocation2 + $0xb1] sm:$0xff] }
 0x124   : > { %1115 = vrot.lane.b32.xlu1 %v1022_v25, %s8088_s13  ;;  %1113 = vrot.lane.b32.xlu0 %v1021_v26, %s8088_s13  ;;  %v1390_v25 = vld [vmem:[#allocation2 + $0x91] sm:$0xff] }
 0x126   : > { %v875_v31 = vpop.permute.xlu1 %874  ;;  %v873_v32 = vpop.permute.xlu0 %872 }
 0x127   : > { %966 = vst.msk [vmem:[#allocation3 + $0x28] sm:$0xff] %vm960_vm4, %v875_v31  ;;  %965 = vst.msk [vmem:[#allocation3 + $0x20] sm:$0xff] %vm960_vm4, %v873_v32  ;;  %v1395_v32 = vld [vmem:[#allocation2 + $0xc9] sm:$0xff] }
 0x128   : > { %1119 = vrot.lane.b32.xlu1 %v1024_v29, %s8088_s13  ;;  %1117 = vrot.lane.b32.xlu0 %v1023_v30, %s8088_s13  ;;  %v1392_v29 = vld [vmem:[#allocation2 + $0xa9] sm:$0xff]  ;;  %s8104_s13 = smov 60  }
 0x12a   : > { %v879_v33 = vpop.permute.xlu1 %878  ;;  %v877_v34 = vpop.permute.xlu0 %876 }
 0x12b   : > { %968 = vst.msk [vmem:[#allocation3 + $0x38] sm:$0xff] %vm960_vm4, %v879_v33  ;;  %967 = vst.msk [vmem:[#allocation3 + $0x30] sm:$0xff] %vm960_vm4, %v877_v34  ;;  %v1394_v33 = vld [vmem:[#allocation2 + $0xc1] sm:$0xff] }
 0x12c   : > { %1253 = vrot.lane.b32.xlu1 %v8397_v47, %s8089_s14  ;;  %1251 = vrot.lane.b32.xlu0 %v8392_v45, %s8089_s14 }
 0x12e   : > { %v883_v35 = vpop.permute.xlu1 %882  ;;  %v881_v36 = vpop.permute.xlu0 %880 }
 0x12f   : > { %970 = vst.msk [vmem:[#allocation3 + $0x48] sm:$0xff] %vm960_vm4, %v883_v35  ;;  %969 = vst.msk [vmem:[#allocation3 + $0x40] sm:$0xff] %vm960_vm4, %v881_v36  ;;  %v1397_v36 = vld [vmem:[#allocation2 + $0xe1] sm:$0xff] }
 0x130   : > { %1257 = vrot.lane.b32.xlu1 %v8404_v49, %s8089_s14  ;;  %1255 = vrot.lane.b32.xlu0 %v8406_v50, %s8089_s14 }
 0x132   : > { %v887_v37 = vpop.permute.xlu1 %886  ;;  %v885_v38 = vpop.permute.xlu0 %884 }
 0x133   : > { %972 = vst.msk [vmem:[#allocation3 + $0x58] sm:$0xff] %vm960_vm4, %v887_v37  ;;  %971 = vst.msk [vmem:[#allocation3 + $0x50] sm:$0xff] %vm960_vm4, %v885_v38  ;;  %v1396_v37 = vld [vmem:[#allocation2 + $0xd9] sm:$0xff] }
 0x134   : > { %1261 = vrot.lane.b32.xlu1 %v8412_v53, %s8089_s14  ;;  %1259 = vrot.lane.b32.xlu0 %v8416_v54, %s8089_s14 }
 0x136   : > { %v891_v45 = vpop.permute.xlu1 %890  ;;  %v889_v47 = vpop.permute.xlu0 %888 }
 0x137   : > { %974 = vst.msk [vmem:[#allocation3 + $0x68] sm:$0xff] %vm960_vm4, %v891_v45  ;;  %973 = vst.msk [vmem:[#allocation3 + $0x60] sm:$0xff] %vm960_vm4, %v889_v47  ;;  %v1399_v47 = vld [vmem:[#allocation2 + $0xf9] sm:$0xff] }
 0x138   : > { %1265 = vrot.lane.b32.xlu1 %v8420_v55, %s8089_s14  ;;  %1263 = vrot.lane.b32.xlu0 %v8422_v56, %s8089_s14 }
 0x13a   : > { %v895_v49 = vpop.permute.xlu1 %894  ;;  %v893_v50 = vpop.permute.xlu0 %892 }
 0x13b   : > { %976 = vst.msk [vmem:[#allocation3 + $0x78] sm:$0xff] %vm960_vm4, %v895_v49  ;;  %975 = vst.msk [vmem:[#allocation3 + $0x70] sm:$0xff] %vm960_vm4, %v893_v50  ;;  %v1398_v49 = vld [vmem:[#allocation2 + $0xf1] sm:$0xff] }
 0x13c   : > { %1269 = vrot.lane.b32.xlu1 %v8430_v57, %s8089_s14  ;;  %1267 = vrot.lane.b32.xlu0 %v8432_v58, %s8089_s14 }
 0x13e   : > { %v899_v53 = vpop.permute.xlu1 %898  ;;  %v897_v54 = vpop.permute.xlu0 %896 }
 0x13f   : > { %978 = vst.msk [vmem:[#allocation3 + $0x88] sm:$0xff] %vm960_vm4, %v899_v53  ;;  %977 = vst.msk [vmem:[#allocation3 + $0x80] sm:$0xff] %vm960_vm4, %v897_v54  ;;  %v1401_v54 = vld [vmem:[#allocation2 + $0x111] sm:$0xff] }
 0x140   : > { %1273 = vrot.lane.b32.xlu1 %v8438_v61, %s8089_s14  ;;  %1271 = vrot.lane.b32.xlu0 %v8442_v62, %s8089_s14 }
 0x142   : > { %v903_v55 = vpop.permute.xlu1 %902  ;;  %v901_v56 = vpop.permute.xlu0 %900 }
 0x143   : > { %980 = vst.msk [vmem:[#allocation3 + $0x98] sm:$0xff] %vm960_vm4, %v903_v55  ;;  %979 = vst.msk [vmem:[#allocation3 + $0x90] sm:$0xff] %vm960_vm4, %v901_v56  ;;  %v1400_v55 = vld [vmem:[#allocation2 + $0x109] sm:$0xff] }
 0x144   : > { %1277 = vrot.lane.b32.xlu1 %v8446_v63, %s8089_s14  ;;  %1275 = vrot.lane.b32.xlu0 %v8448_v1, %s8089_s14 }
 0x146   : > { %v907_v57 = vpop.permute.xlu1 %906  ;;  %v905_v58 = vpop.permute.xlu0 %904 }
 0x147   : > { %982 = vst.msk [vmem:[#allocation3 + $0xa8] sm:$0xff] %vm960_vm4, %v907_v57  ;;  %981 = vst.msk [vmem:[#allocation3 + $0xa0] sm:$0xff] %vm960_vm4, %v905_v58  ;;  %v1403_v58 = vld [vmem:[#allocation2 + $0x129] sm:$0xff] }
 0x148   : > { %1281 = vrot.lane.b32.xlu1 %v8456_v2, %s8089_s14  ;;  %1279 = vrot.lane.b32.xlu0 %v8458_v3, %s8089_s14 }
 0x14a   : > { %v911_v61 = vpop.permute.xlu1 %910  ;;  %v909_v62 = vpop.permute.xlu0 %908 }
 0x14b   : > { %984 = vst.msk [vmem:[#allocation3 + $0xb8] sm:$0xff] %vm960_vm4, %v911_v61  ;;  %983 = vst.msk [vmem:[#allocation3 + $0xb0] sm:$0xff] %vm960_vm4, %v909_v62  ;;  %v1402_v61 = vld [vmem:[#allocation2 + $0x121] sm:$0xff] }
 0x14c   : > { %1285 = vrot.lane.b32.xlu1 %v8464_v6, %s8089_s14  ;;  %1283 = vrot.lane.b32.xlu0 %v8468_v7, %s8089_s14 }
 0x14e   : > { %v915_v63 = vpop.permute.xlu1 %914  ;;  %v913_v1 = vpop.permute.xlu0 %912 }
 0x14f   : > { %986 = vst.msk [vmem:[#allocation3 + $0xc8] sm:$0xff] %vm960_vm4, %v915_v63  ;;  %985 = vst.msk [vmem:[#allocation3 + $0xc0] sm:$0xff] %vm960_vm4, %v913_v1  ;;  %v1405_v1 = vld [vmem:[#allocation2 + $0x141] sm:$0xff] }
 0x150   : > { %1289 = vrot.lane.b32.xlu1 %v8472_v8, %s8089_s14  ;;  %1287 = vrot.lane.b32.xlu0 %v8474_v9, %s8089_s14 }
 0x152   : > { %v919_v2 = vpop.permute.xlu1 %918  ;;  %v917_v3 = vpop.permute.xlu0 %916 }
 0x153   : > { %988 = vst.msk [vmem:[#allocation3 + $0xd8] sm:$0xff] %vm960_vm4, %v919_v2  ;;  %987 = vst.msk [vmem:[#allocation3 + $0xd0] sm:$0xff] %vm960_vm4, %v917_v3  ;;  %v1404_v2 = vld [vmem:[#allocation2 + $0x139] sm:$0xff] }
 0x154   : > { %1293 = vrot.lane.b32.xlu1 %v8482_v10, %s8089_s14  ;;  %1291 = vrot.lane.b32.xlu0 %v8484_v11, %s8089_s14 }
 0x156   : > { %v923_v6 = vpop.permute.xlu1 %922  ;;  %v921_v7 = vpop.permute.xlu0 %920 }
 0x157   : > { %990 = vst.msk [vmem:[#allocation3 + $0xe8] sm:$0xff] %vm960_vm4, %v923_v6  ;;  %989 = vst.msk [vmem:[#allocation3 + $0xe0] sm:$0xff] %vm960_vm4, %v921_v7  ;;  %v1407_v7 = vld [vmem:[#allocation2 + $0x159] sm:$0xff] }
 0x158   : > { %1297 = vrot.lane.b32.xlu1 %v8490_v14, %s8089_s14  ;;  %1295 = vrot.lane.b32.xlu0 %v8494_v15, %s8089_s14 }
 0x15a   : > { %v927_v8 = vpop.permute.xlu1 %926  ;;  %v925_v9 = vpop.permute.xlu0 %924 }
 0x15b   : > { %992 = vst.msk [vmem:[#allocation3 + $0xf8] sm:$0xff] %vm960_vm4, %v927_v8  ;;  %991 = vst.msk [vmem:[#allocation3 + $0xf0] sm:$0xff] %vm960_vm4, %v925_v9  ;;  %v1406_v8 = vld [vmem:[#allocation2 + $0x151] sm:$0xff]  ;;  %vm3471_vm4 = vcmask 417152  }
 0x15c   : > { %1301 = vrot.lane.b32.xlu1 %v8498_v16, %s8089_s14  ;;  %1299 = vrot.lane.b32.xlu0 %v8500_v17, %s8089_s14  ;;  %v1218_v16 = vld [vmem:[#allocation2 + $0x188] sm:$0xff]  ;;  %v1217_v17 = vld [vmem:[#allocation2 + $0x180] sm:$0xff] }
 0x15e   : > { %v1060_v10 = vpop.permute.xlu1 %1059  ;;  %v1058_v11 = vpop.permute.xlu0 %1057 }
 0x15f   : > { %1155 = vst.msk [vmem:[#allocation3 + $0x8] sm:$0xff] %vm1153_vm5, %v1060_v10  ;;  %1154 = vst.msk [vmem:[#allocation3] sm:$0xff] %vm1153_vm5, %v1058_v11  ;;  %v1409_v11 = vld [vmem:[#allocation2 + $0x171] sm:$0xff] }
 0x160   : > { %1305 = vrot.lane.b32.xlu1 %v8508_v18, %s8089_s14  ;;  %1303 = vrot.lane.b32.xlu0 %v8510_v19, %s8089_s14  ;;  %v1381_v18 = vld [vmem:[#allocation2 + $0x21] sm:$0xff]  ;;  %v1380_v19 = vld [vmem:[#allocation2 + $0x19] sm:$0xff] }
 0x162   : > { %v1064_v14 = vpop.permute.xlu1 %1063  ;;  %v1062_v15 = vpop.permute.xlu0 %1061 }
 0x163   : > { %1157 = vst.msk [vmem:[#allocation3 + $0x18] sm:$0xff] %vm1153_vm5, %v1064_v14  ;;  %1156 = vst.msk [vmem:[#allocation3 + $0x10] sm:$0xff] %vm1153_vm5, %v1062_v15  ;;  %v1408_v14 = vld [vmem:[#allocation2 + $0x169] sm:$0xff] }
 0x164   : > { %1309 = vrot.lane.b32.xlu1 %v8516_v22, %s8089_s14  ;;  %1307 = vrot.lane.b32.xlu0 %v8520_v23, %s8089_s14  ;;  %v1383_v22 = vld [vmem:[#allocation2 + $0x39] sm:$0xff]  ;;  %v1382_v23 = vld [vmem:[#allocation2 + $0x31] sm:$0xff] }
 0x166   : > { %v1068_v39 = vpop.permute.xlu1 %1067  ;;  %v1066_v40 = vpop.permute.xlu0 %1065 }
 0x167   : > { %1159 = vst.msk [vmem:[#allocation3 + $0x28] sm:$0xff] %vm1153_vm5, %v1068_v39  ;;  %1158 = vst.msk [vmem:[#allocation3 + $0x20] sm:$0xff] %vm1153_vm5, %v1066_v40  ;;  %v1410_v39 = vld [vmem:[#allocation2 + $0x181] sm:$0xff] }
 0x168   : > { %1313 = vrot.lane.b32.xlu1 %v1218_v16, %s8089_s14  ;;  %1311 = vrot.lane.b32.xlu0 %v1217_v17, %s8089_s14  ;;  %v1411_v17 = vld [vmem:[#allocation2 + $0x189] sm:$0xff]  ;;  %s8105_s14 = smov 63  }
 0x16a   : > { %v1072_v41 = vpop.permute.xlu1 %1071  ;;  %v1070_v42 = vpop.permute.xlu0 %1069 }
 0x16b   : > { %1161 = vst.msk [vmem:[#allocation3 + $0x38] sm:$0xff] %vm1153_vm5, %v1072_v41  ;;  %1160 = vst.msk [vmem:[#allocation3 + $0x30] sm:$0xff] %vm1153_vm5, %v1070_v42  ;;  %v1573_v41 = vld [vmem:[#allocation2 + $0x1a] sm:$0xff] }
 0x16c   : > { %1446 = vrot.lane.b32.xlu1 %v1381_v18, %s8090_s15  ;;  %1444 = vrot.lane.b32.xlu0 %v1380_v19, %s8090_s15  ;;  %v1574_v19 = vld [vmem:[#allocation2 + $0x22] sm:$0xff] }
 0x16e   : > { %v1076_v43 = vpop.permute.xlu1 %1075  ;;  %v1074_v44 = vpop.permute.xlu0 %1073 }
 0x16f   : > { %1163 = vst.msk [vmem:[#allocation3 + $0x48] sm:$0xff] %vm1153_vm5, %v1076_v43  ;;  %1162 = vst.msk [vmem:[#allocation3 + $0x40] sm:$0xff] %vm1153_vm5, %v1074_v44  ;;  %v1575_v43 = vld [vmem:[#allocation2 + $0x32] sm:$0xff] }
 0x170   : > { %1450 = vrot.lane.b32.xlu1 %v1383_v22, %s8090_s15  ;;  %1448 = vrot.lane.b32.xlu0 %v1382_v23, %s8090_s15  ;;  %v1576_v23 = vld [vmem:[#allocation2 + $0x3a] sm:$0xff] }
 0x172   : > { %v1080_v51 = vpop.permute.xlu1 %1079  ;;  %v1078_v52 = vpop.permute.xlu0 %1077 }
 0x173   : > { %1165 = vst.msk [vmem:[#allocation3 + $0x58] sm:$0xff] %vm1153_vm5, %v1080_v51  ;;  %1164 = vst.msk [vmem:[#allocation3 + $0x50] sm:$0xff] %vm1153_vm5, %v1078_v52  ;;  %v1577_v51 = vld [vmem:[#allocation2 + $0x4a] sm:$0xff] }
 0x174   : > { %1454 = vrot.lane.b32.xlu1 %v1385_v46, %s8090_s15  ;;  %1452 = vrot.lane.b32.xlu0 %v1384_v48, %s8090_s15  ;;  %v1578_v48 = vld [vmem:[#allocation2 + $0x52] sm:$0xff] }
 0x176   : > { %v1084_v4 = vpop.permute.xlu1 %1083  ;;  %v1082_v5 = vpop.permute.xlu0 %1081 }
 0x177   : > { %1167 = vst.msk [vmem:[#allocation3 + $0x68] sm:$0xff] %vm1153_vm5, %v1084_v4  ;;  %1166 = vst.msk [vmem:[#allocation3 + $0x60] sm:$0xff] %vm1153_vm5, %v1082_v5  ;;  %v1579_v4 = vld [vmem:[#allocation2 + $0x62] sm:$0xff] }
 0x178   : > { %1458 = vrot.lane.b32.xlu1 %v1387_v59, %s8090_s15  ;;  %1456 = vrot.lane.b32.xlu0 %v1386_v60, %s8090_s15  ;;  %v1580_v60 = vld [vmem:[#allocation2 + $0x6a] sm:$0xff] }
 0x17a   : > { %v1088_v20 = vpop.permute.xlu1 %1087  ;;  %v1086_v21 = vpop.permute.xlu0 %1085 }
 0x17b   : > { %1169 = vst.msk [vmem:[#allocation3 + $0x78] sm:$0xff] %vm1153_vm5, %v1088_v20  ;;  %1168 = vst.msk [vmem:[#allocation3 + $0x70] sm:$0xff] %vm1153_vm5, %v1086_v21  ;;  %v1581_v20 = vld [vmem:[#allocation2 + $0x7a] sm:$0xff] }
 0x17c   : > { %1462 = vrot.lane.b32.xlu1 %v1389_v12, %s8090_s15  ;;  %1460 = vrot.lane.b32.xlu0 %v1388_v13, %s8090_s15  ;;  %v1582_v13 = vld [vmem:[#allocation2 + $0x82] sm:$0xff] }
 0x17e   : > { %v1092_v26 = vpop.permute.xlu1 %1091  ;;  %v1090_v27 = vpop.permute.xlu0 %1089 }
 0x17f   : > { %1171 = vst.msk [vmem:[#allocation3 + $0x88] sm:$0xff] %vm1153_vm5, %v1092_v26  ;;  %1170 = vst.msk [vmem:[#allocation3 + $0x80] sm:$0xff] %vm1153_vm5, %v1090_v27  ;;  %v1583_v26 = vld [vmem:[#allocation2 + $0x92] sm:$0xff] }
 0x180   : > { %1466 = vrot.lane.b32.xlu1 %v1391_v24, %s8090_s15  ;;  %1464 = vrot.lane.b32.xlu0 %v1390_v25, %s8090_s15  ;;  %v1584_v25 = vld [vmem:[#allocation2 + $0x9a] sm:$0xff] }
 0x182   : > { %v1096_v30 = vpop.permute.xlu1 %1095  ;;  %v1094_v31 = vpop.permute.xlu0 %1093 }
 0x183   : > { %1173 = vst.msk [vmem:[#allocation3 + $0x98] sm:$0xff] %vm1153_vm5, %v1096_v30  ;;  %1172 = vst.msk [vmem:[#allocation3 + $0x90] sm:$0xff] %vm1153_vm5, %v1094_v31  ;;  %v1585_v30 = vld [vmem:[#allocation2 + $0xaa] sm:$0xff] }
 0x184   : > { %1470 = vrot.lane.b32.xlu1 %v1393_v28, %s8090_s15  ;;  %1468 = vrot.lane.b32.xlu0 %v1392_v29, %s8090_s15  ;;  %v1586_v29 = vld [vmem:[#allocation2 + $0xb2] sm:$0xff] }
 0x186   : > { %v1100_v34 = vpop.permute.xlu1 %1099  ;;  %v1098_v35 = vpop.permute.xlu0 %1097 }
 0x187   : > { %1175 = vst.msk [vmem:[#allocation3 + $0xa8] sm:$0xff] %vm1153_vm5, %v1100_v34  ;;  %1174 = vst.msk [vmem:[#allocation3 + $0xa0] sm:$0xff] %vm1153_vm5, %v1098_v35  ;;  %v1587_v34 = vld [vmem:[#allocation2 + $0xc2] sm:$0xff] }
 0x188   : > { %1474 = vrot.lane.b32.xlu1 %v1395_v32, %s8090_s15  ;;  %1472 = vrot.lane.b32.xlu0 %v1394_v33, %s8090_s15  ;;  %v1588_v33 = vld [vmem:[#allocation2 + $0xca] sm:$0xff] }
 0x18a   : > { %v1104_v38 = vpop.permute.xlu1 %1103  ;;  %v1102_v45 = vpop.permute.xlu0 %1101 }
 0x18b   : > { %1177 = vst.msk [vmem:[#allocation3 + $0xb8] sm:$0xff] %vm1153_vm5, %v1104_v38  ;;  %1176 = vst.msk [vmem:[#allocation3 + $0xb0] sm:$0xff] %vm1153_vm5, %v1102_v45  ;;  %v1589_v38 = vld [vmem:[#allocation2 + $0xda] sm:$0xff] }
 0x18c   : > { %1478 = vrot.lane.b32.xlu1 %v1397_v36, %s8090_s15  ;;  %1476 = vrot.lane.b32.xlu0 %v1396_v37, %s8090_s15  ;;  %v1590_v37 = vld [vmem:[#allocation2 + $0xe2] sm:$0xff] }
 0x18e   : > { %v1108_v50 = vpop.permute.xlu1 %1107  ;;  %v1106_v53 = vpop.permute.xlu0 %1105 }
 0x18f   : > { %1179 = vst.msk [vmem:[#allocation3 + $0xc8] sm:$0xff] %vm1153_vm5, %v1108_v50  ;;  %1178 = vst.msk [vmem:[#allocation3 + $0xc0] sm:$0xff] %vm1153_vm5, %v1106_v53  ;;  %v1591_v50 = vld [vmem:[#allocation2 + $0xf2] sm:$0xff] }
 0x190   : > { %1482 = vrot.lane.b32.xlu1 %v1399_v47, %s8090_s15  ;;  %1480 = vrot.lane.b32.xlu0 %v1398_v49, %s8090_s15  ;;  %v1592_v49 = vld [vmem:[#allocation2 + $0xfa] sm:$0xff] }
 0x192   : > { %v1112_v56 = vpop.permute.xlu1 %1111  ;;  %v1110_v57 = vpop.permute.xlu0 %1109 }
 0x193   : > { %1181 = vst.msk [vmem:[#allocation3 + $0xd8] sm:$0xff] %vm1153_vm5, %v1112_v56  ;;  %1180 = vst.msk [vmem:[#allocation3 + $0xd0] sm:$0xff] %vm1153_vm5, %v1110_v57  ;;  %v1593_v56 = vld [vmem:[#allocation2 + $0x10a] sm:$0xff] }
 0x194   : > { %1486 = vrot.lane.b32.xlu1 %v1401_v54, %s8090_s15  ;;  %1484 = vrot.lane.b32.xlu0 %v1400_v55, %s8090_s15  ;;  %v1594_v55 = vld [vmem:[#allocation2 + $0x112] sm:$0xff] }
 0x196   : > { %v1116_v62 = vpop.permute.xlu1 %1115  ;;  %v1114_v63 = vpop.permute.xlu0 %1113 }
 0x197   : > { %1183 = vst.msk [vmem:[#allocation3 + $0xe8] sm:$0xff] %vm1153_vm5, %v1116_v62  ;;  %1182 = vst.msk [vmem:[#allocation3 + $0xe0] sm:$0xff] %vm1153_vm5, %v1114_v63  ;;  %v1595_v62 = vld [vmem:[#allocation2 + $0x122] sm:$0xff] }
 0x198   : > { %1490 = vrot.lane.b32.xlu1 %v1403_v58, %s8090_s15  ;;  %1488 = vrot.lane.b32.xlu0 %v1402_v61, %s8090_s15  ;;  %v1596_v61 = vld [vmem:[#allocation2 + $0x12a] sm:$0xff] }
 0x19a   : > { %v1120_v3 = vpop.permute.xlu1 %1119  ;;  %v1118_v6 = vpop.permute.xlu0 %1117 }
 0x19b   : > { %1185 = vst.msk [vmem:[#allocation3 + $0xf8] sm:$0xff] %vm1153_vm5, %v1120_v3  ;;  %1184 = vst.msk [vmem:[#allocation3 + $0xf0] sm:$0xff] %vm1153_vm5, %v1118_v6  ;;  %v1597_v3 = vld [vmem:[#allocation2 + $0x13a] sm:$0xff]  ;;  %vm3664_vm5 = vcmask 441752  }
 0x19c   : > { %1494 = vrot.lane.b32.xlu1 %v1405_v1, %s8090_s15  ;;  %1492 = vrot.lane.b32.xlu0 %v1404_v2, %s8090_s15  ;;  %v1598_v2 = vld [vmem:[#allocation2 + $0x142] sm:$0xff] }
 0x19e   : > { %v1254_v9 = vpop.permute.xlu1 %1253  ;;  %v1252_v10 = vpop.permute.xlu0 %1251 }
 0x19f   : > { %1349 = vst.msk [vmem:[#allocation3 + $0x8] sm:$0xff] %vm1347_vm6, %v1254_v9  ;;  %1348 = vst.msk [vmem:[#allocation3] sm:$0xff] %vm1347_vm6, %v1252_v10  ;;  %v1599_v9 = vld [vmem:[#allocation2 + $0x152] sm:$0xff] }
 0x1a0   : > { %1498 = vrot.lane.b32.xlu1 %v1407_v7, %s8090_s15  ;;  %1496 = vrot.lane.b32.xlu0 %v1406_v8, %s8090_s15  ;;  %v1600_v8 = vld [vmem:[#allocation2 + $0x15a] sm:$0xff] }
 0x1a2   : > { %v1258_v15 = vpop.permute.xlu1 %1257  ;;  %v1256_v16 = vpop.permute.xlu0 %1255 }
 0x1a3   : > { %1351 = vst.msk [vmem:[#allocation3 + $0x18] sm:$0xff] %vm1347_vm6, %v1258_v15  ;;  %1350 = vst.msk [vmem:[#allocation3 + $0x10] sm:$0xff] %vm1347_vm6, %v1256_v16  ;;  %v1601_v15 = vld [vmem:[#allocation2 + $0x16a] sm:$0xff] }
 0x1a4   : > { %1502 = vrot.lane.b32.xlu1 %v1409_v11, %s8090_s15  ;;  %1500 = vrot.lane.b32.xlu0 %v1408_v14, %s8090_s15  ;;  %v1602_v14 = vld [vmem:[#allocation2 + $0x172] sm:$0xff] }
 0x1a6   : > { %v1262_v40 = vpop.permute.xlu1 %1261  ;;  %v1260_v18 = vpop.permute.xlu0 %1259 }
 0x1a7   : > { %1353 = vst.msk [vmem:[#allocation3 + $0x28] sm:$0xff] %vm1347_vm6, %v1262_v40  ;;  %1352 = vst.msk [vmem:[#allocation3 + $0x20] sm:$0xff] %vm1347_vm6, %v1260_v18  ;;  %v1603_v40 = vld [vmem:[#allocation2 + $0x182] sm:$0xff] }
 0x1a8   : > { %1506 = vrot.lane.b32.xlu1 %v1411_v17, %s8090_s15  ;;  %1504 = vrot.lane.b32.xlu0 %v1410_v39, %s8090_s15  ;;  %v1604_v39 = vld [vmem:[#allocation2 + $0x18a] sm:$0xff] }
 0x1aa   : > { %v1266_v42 = vpop.permute.xlu1 %1265  ;;  %v1264_v22 = vpop.permute.xlu0 %1263 }
 0x1ab   : > { %1355 = vst.msk [vmem:[#allocation3 + $0x38] sm:$0xff] %vm1347_vm6, %v1266_v42  ;;  %1354 = vst.msk [vmem:[#allocation3 + $0x30] sm:$0xff] %vm1347_vm6, %v1264_v22  ;;  %v1766_v42 = vld [vmem:[#allocation2 + $0x1b] sm:$0xff] }
 0x1ac   : > { %1639 = vrot.lane.b32.xlu1 %v1574_v19, %s8091_s16  ;;  %1637 = vrot.lane.b32.xlu0 %v1573_v41, %s8091_s16  ;;  %v1767_v41 = vld [vmem:[#allocation2 + $0x23] sm:$0xff] }
 0x1ae   : > { %v1270_v44 = vpop.permute.xlu1 %1269  ;;  %v1268_v46 = vpop.permute.xlu0 %1267 }
 0x1af   : > { %1357 = vst.msk [vmem:[#allocation3 + $0x48] sm:$0xff] %vm1347_vm6, %v1270_v44  ;;  %1356 = vst.msk [vmem:[#allocation3 + $0x40] sm:$0xff] %vm1347_vm6, %v1268_v46  ;;  %v1768_v44 = vld [vmem:[#allocation2 + $0x33] sm:$0xff] }
 0x1b0   : > { %1643 = vrot.lane.b32.xlu1 %v1576_v23, %s8091_s16  ;;  %1641 = vrot.lane.b32.xlu0 %v1575_v43, %s8091_s16  ;;  %v1769_v43 = vld [vmem:[#allocation2 + $0x3b] sm:$0xff] }
 0x1b2   : > { %v1274_v52 = vpop.permute.xlu1 %1273  ;;  %v1272_v59 = vpop.permute.xlu0 %1271 }
 0x1b3   : > { %1359 = vst.msk [vmem:[#allocation3 + $0x58] sm:$0xff] %vm1347_vm6, %v1274_v52  ;;  %1358 = vst.msk [vmem:[#allocation3 + $0x50] sm:$0xff] %vm1347_vm6, %v1272_v59  ;;  %v1770_v52 = vld [vmem:[#allocation2 + $0x4b] sm:$0xff] }
 0x1b4   : > { %1647 = vrot.lane.b32.xlu1 %v1578_v48, %s8091_s16  ;;  %1645 = vrot.lane.b32.xlu0 %v1577_v51, %s8091_s16  ;;  %v1771_v51 = vld [vmem:[#allocation2 + $0x53] sm:$0xff] }
 0x1b6   : > { %v1278_v5 = vpop.permute.xlu1 %1277  ;;  %v1276_v12 = vpop.permute.xlu0 %1275 }
 0x1b7   : > { %1361 = vst.msk [vmem:[#allocation3 + $0x68] sm:$0xff] %vm1347_vm6, %v1278_v5  ;;  %1360 = vst.msk [vmem:[#allocation3 + $0x60] sm:$0xff] %vm1347_vm6, %v1276_v12  ;;  %v1772_v5 = vld [vmem:[#allocation2 + $0x63] sm:$0xff] }
 0x1b8   : > { %1651 = vrot.lane.b32.xlu1 %v1580_v60, %s8091_s16  ;;  %1649 = vrot.lane.b32.xlu0 %v1579_v4, %s8091_s16  ;;  %v1773_v4 = vld [vmem:[#allocation2 + $0x6b] sm:$0xff] }
 0x1ba   : > { %v1282_v21 = vpop.permute.xlu1 %1281  ;;  %v1280_v24 = vpop.permute.xlu0 %1279 }
 0x1bb   : > { %1363 = vst.msk [vmem:[#allocation3 + $0x78] sm:$0xff] %vm1347_vm6, %v1282_v21  ;;  %1362 = vst.msk [vmem:[#allocation3 + $0x70] sm:$0xff] %vm1347_vm6, %v1280_v24  ;;  %v1774_v21 = vld [vmem:[#allocation2 + $0x7b] sm:$0xff] }
 0x1bc   : > { %1655 = vrot.lane.b32.xlu1 %v1582_v13, %s8091_s16  ;;  %1653 = vrot.lane.b32.xlu0 %v1581_v20, %s8091_s16  ;;  %v1775_v20 = vld [vmem:[#allocation2 + $0x83] sm:$0xff] }
 0x1be   : > { %v1286_v27 = vpop.permute.xlu1 %1285  ;;  %v1284_v28 = vpop.permute.xlu0 %1283 }
 0x1bf   : > { %1365 = vst.msk [vmem:[#allocation3 + $0x88] sm:$0xff] %vm1347_vm6, %v1286_v27  ;;  %1364 = vst.msk [vmem:[#allocation3 + $0x80] sm:$0xff] %vm1347_vm6, %v1284_v28  ;;  %v1776_v27 = vld [vmem:[#allocation2 + $0x93] sm:$0xff] }
 0x1c0   : > { %1659 = vrot.lane.b32.xlu1 %v1584_v25, %s8091_s16  ;;  %1657 = vrot.lane.b32.xlu0 %v1583_v26, %s8091_s16  ;;  %v1777_v26 = vld [vmem:[#allocation2 + $0x9b] sm:$0xff] }
 0x1c2   : > { %v1290_v31 = vpop.permute.xlu1 %1289  ;;  %v1288_v32 = vpop.permute.xlu0 %1287 }
 0x1c3   : > { %1367 = vst.msk [vmem:[#allocation3 + $0x98] sm:$0xff] %vm1347_vm6, %v1290_v31  ;;  %1366 = vst.msk [vmem:[#allocation3 + $0x90] sm:$0xff] %vm1347_vm6, %v1288_v32  ;;  %v1778_v31 = vld [vmem:[#allocation2 + $0xab] sm:$0xff] }
 0x1c4   : > { %1663 = vrot.lane.b32.xlu1 %v1586_v29, %s8091_s16  ;;  %1661 = vrot.lane.b32.xlu0 %v1585_v30, %s8091_s16  ;;  %v1779_v30 = vld [vmem:[#allocation2 + $0xb3] sm:$0xff] }
 0x1c6   : > { %v1294_v35 = vpop.permute.xlu1 %1293  ;;  %v1292_v36 = vpop.permute.xlu0 %1291 }
 0x1c7   : > { %1369 = vst.msk [vmem:[#allocation3 + $0xa8] sm:$0xff] %vm1347_vm6, %v1294_v35  ;;  %1368 = vst.msk [vmem:[#allocation3 + $0xa0] sm:$0xff] %vm1347_vm6, %v1292_v36  ;;  %v1780_v35 = vld [vmem:[#allocation2 + $0xc3] sm:$0xff] }
 0x1c8   : > { %1667 = vrot.lane.b32.xlu1 %v1588_v33, %s8091_s16  ;;  %1665 = vrot.lane.b32.xlu0 %v1587_v34, %s8091_s16  ;;  %v1781_v34 = vld [vmem:[#allocation2 + $0xcb] sm:$0xff] }
 0x1ca   : > { %v1298_v45 = vpop.permute.xlu1 %1297  ;;  %v1296_v47 = vpop.permute.xlu0 %1295 }
 0x1cb   : > { %1371 = vst.msk [vmem:[#allocation3 + $0xb8] sm:$0xff] %vm1347_vm6, %v1298_v45  ;;  %1370 = vst.msk [vmem:[#allocation3 + $0xb0] sm:$0xff] %vm1347_vm6, %v1296_v47  ;;  %v1782_v45 = vld [vmem:[#allocation2 + $0xdb] sm:$0xff] }
 0x1cc   : > { %1671 = vrot.lane.b32.xlu1 %v1590_v37, %s8091_s16  ;;  %1669 = vrot.lane.b32.xlu0 %v1589_v38, %s8091_s16  ;;  %v1783_v38 = vld [vmem:[#allocation2 + $0xe3] sm:$0xff] }
 0x1ce   : > { %v1302_v53 = vpop.permute.xlu1 %1301  ;;  %v1300_v54 = vpop.permute.xlu0 %1299 }
 0x1cf   : > { %1373 = vst.msk [vmem:[#allocation3 + $0xc8] sm:$0xff] %vm1347_vm6, %v1302_v53  ;;  %1372 = vst.msk [vmem:[#allocation3 + $0xc0] sm:$0xff] %vm1347_vm6, %v1300_v54  ;;  %v1784_v53 = vld [vmem:[#allocation2 + $0xf3] sm:$0xff] }
 0x1d0   : > { %1675 = vrot.lane.b32.xlu1 %v1592_v49, %s8091_s16  ;;  %1673 = vrot.lane.b32.xlu0 %v1591_v50, %s8091_s16  ;;  %v1785_v50 = vld [vmem:[#allocation2 + $0xfb] sm:$0xff] }
 0x1d2   : > { %v1306_v57 = vpop.permute.xlu1 %1305  ;;  %v1304_v58 = vpop.permute.xlu0 %1303 }
 0x1d3   : > { %1375 = vst.msk [vmem:[#allocation3 + $0xd8] sm:$0xff] %vm1347_vm6, %v1306_v57  ;;  %1374 = vst.msk [vmem:[#allocation3 + $0xd0] sm:$0xff] %vm1347_vm6, %v1304_v58  ;;  %v1786_v57 = vld [vmem:[#allocation2 + $0x10b] sm:$0xff] }
 0x1d4   : > { %1679 = vrot.lane.b32.xlu1 %v1594_v55, %s8091_s16  ;;  %1677 = vrot.lane.b32.xlu0 %v1593_v56, %s8091_s16  ;;  %v1787_v56 = vld [vmem:[#allocation2 + $0x113] sm:$0xff] }
 0x1d6   : > { %v1310_v63 = vpop.permute.xlu1 %1309  ;;  %v1308_v1 = vpop.permute.xlu0 %1307 }
 0x1d7   : > { %1377 = vst.msk [vmem:[#allocation3 + $0xe8] sm:$0xff] %vm1347_vm6, %v1310_v63  ;;  %1376 = vst.msk [vmem:[#allocation3 + $0xe0] sm:$0xff] %vm1347_vm6, %v1308_v1  ;;  %v1788_v63 = vld [vmem:[#allocation2 + $0x123] sm:$0xff] }
 0x1d8   : > { %1683 = vrot.lane.b32.xlu1 %v1596_v61, %s8091_s16  ;;  %1681 = vrot.lane.b32.xlu0 %v1595_v62, %s8091_s16  ;;  %v1789_v62 = vld [vmem:[#allocation2 + $0x12b] sm:$0xff] }
 0x1da   : > { %v1314_v6 = vpop.permute.xlu1 %1313  ;;  %v1312_v7 = vpop.permute.xlu0 %1311 }
 0x1db   : > { %1379 = vst.msk [vmem:[#allocation3 + $0xf8] sm:$0xff] %vm1347_vm6, %v1314_v6  ;;  %1378 = vst.msk [vmem:[#allocation3 + $0xf0] sm:$0xff] %vm1347_vm6, %v1312_v7  ;;  %v1790_v6 = vld [vmem:[#allocation2 + $0x13b] sm:$0xff]  ;;  %vm3857_vm6 = vcmask 466352  }
 0x1dc   : > { %1687 = vrot.lane.b32.xlu1 %v1598_v2, %s8091_s16  ;;  %1685 = vrot.lane.b32.xlu0 %v1597_v3, %s8091_s16  ;;  %v1791_v3 = vld [vmem:[#allocation2 + $0x143] sm:$0xff] }
 0x1de   : > { %v1447_v10 = vpop.permute.xlu1 %1446  ;;  %v1445_v11 = vpop.permute.xlu0 %1444 }
 0x1df   : > { %1542 = vst.msk [vmem:[#allocation3 + $0x8] sm:$0xff] %vm1540_vm7, %v1447_v10  ;;  %1541 = vst.msk [vmem:[#allocation3] sm:$0xff] %vm1540_vm7, %v1445_v11  ;;  %v1792_v10 = vld [vmem:[#allocation2 + $0x153] sm:$0xff] }
 0x1e0   : > { %1691 = vrot.lane.b32.xlu1 %v1600_v8, %s8091_s16  ;;  %1689 = vrot.lane.b32.xlu0 %v1599_v9, %s8091_s16  ;;  %v1793_v9 = vld [vmem:[#allocation2 + $0x15b] sm:$0xff] }
 0x1e2   : > { %v1451_v16 = vpop.permute.xlu1 %1450  ;;  %v1449_v17 = vpop.permute.xlu0 %1448 }
 0x1e3   : > { %1544 = vst.msk [vmem:[#allocation3 + $0x18] sm:$0xff] %vm1540_vm7, %v1451_v16  ;;  %1543 = vst.msk [vmem:[#allocation3 + $0x10] sm:$0xff] %vm1540_vm7, %v1449_v17  ;;  %v316_v16 = vld [vmem:[%s8320_s9 + $0xf8] sm:$0xff] }
 0x1e4   : > { %1695 = vrot.lane.b32.xlu1 %v1602_v14, %s8091_s16  ;;  %1693 = vrot.lane.b32.xlu0 %v1601_v15, %s8091_s16  ;;  %v315_v15 = vld [vmem:[%s8320_s9 + $0xf0] sm:$0xff]  ;;  %349 = vst.msk [vmem:[#allocation2 + $0x1a2] sm:$0xff] %vm223_vm0, %v316_v16  ;;  %s8100_s9 = smov 48  }
 0x1e5   : > { %348 = vst.msk [vmem:[#allocation2 + $0x19a] sm:$0xff] %vm223_vm0, %v315_v15  ;;  %v1795_v17 = vld [vmem:[#allocation2 + $0x173] sm:$0xff]  ;;  %vm3278_vm0 = vcmask 392552  }
 0x1e6   : > { %v1455_v18 = vpop.permute.xlu1 %1454  ;;  %v1453_v19 = vpop.permute.xlu0 %1452  ;;  %v1985_v15 = vld [vmem:[#allocation2 + $0x154] sm:$0xff] }
 0x1e7   : > { %1546 = vst.msk [vmem:[#allocation3 + $0x28] sm:$0xff] %vm1540_vm7, %v1455_v18  ;;  %1545 = vst.msk [vmem:[#allocation3 + $0x20] sm:$0xff] %vm1540_vm7, %v1453_v19  ;;  %v1797_v19 = vld [vmem:[#allocation2 + $0x18b] sm:$0xff] }
 0x1e8   : > { %1699 = vrot.lane.b32.xlu1 %v1604_v39, %s8091_s16  ;;  %1697 = vrot.lane.b32.xlu0 %v1603_v40, %s8091_s16  ;;  %v1794_v39 = vld [vmem:[#allocation2 + $0x16b] sm:$0xff]  ;;  %s215_s16 = sand.u32 1, %s8074_s19  }
 0x1ea   : > { %v1459_v22 = vpop.permute.xlu1 %1458  ;;  %v1457_v23 = vpop.permute.xlu0 %1456 }
 0x1eb   : > { %1548 = vst.msk [vmem:[#allocation3 + $0x38] sm:$0xff] %vm1540_vm7, %v1459_v22  ;;  %1547 = vst.msk [vmem:[#allocation3 + $0x30] sm:$0xff] %vm1540_vm7, %v1457_v23  ;;  %v1960_v23 = vld [vmem:[#allocation2 + $0x24] sm:$0xff] }
 0x1ec   : > { %1832 = vrot.lane.b32.xlu1 %v1767_v41, %s8092_s17  ;;  %1830 = vrot.lane.b32.xlu0 %v1766_v42, %s8092_s17  ;;  %v1796_v41 = vld [vmem:[#allocation2 + $0x183] sm:$0xff] }
 0x1ee   : > { %v1463_v46 = vpop.permute.xlu1 %1462  ;;  %v1461_v48 = vpop.permute.xlu0 %1460 }
 0x1ef   : > { %1550 = vst.msk [vmem:[#allocation3 + $0x48] sm:$0xff] %vm1540_vm7, %v1463_v46  ;;  %1549 = vst.msk [vmem:[#allocation3 + $0x40] sm:$0xff] %vm1540_vm7, %v1461_v48  ;;  %v1962_v48 = vld [vmem:[#allocation2 + $0x3c] sm:$0xff] }
 0x1f0   : > { %1836 = vrot.lane.b32.xlu1 %v1769_v43, %s8092_s17  ;;  %1834 = vrot.lane.b32.xlu0 %v1768_v44, %s8092_s17  ;;  %v1959_v43 = vld [vmem:[#allocation2 + $0x1c] sm:$0xff] }
 0x1f2   : > { %v1467_v59 = vpop.permute.xlu1 %1466  ;;  %v1465_v60 = vpop.permute.xlu0 %1464 }
 0x1f3   : > { %1552 = vst.msk [vmem:[#allocation3 + $0x58] sm:$0xff] %vm1540_vm7, %v1467_v59  ;;  %1551 = vst.msk [vmem:[#allocation3 + $0x50] sm:$0xff] %vm1540_vm7, %v1465_v60  ;;  %v1964_v60 = vld [vmem:[#allocation2 + $0x54] sm:$0xff] }
 0x1f4   : > { %1840 = vrot.lane.b32.xlu1 %v1771_v51, %s8092_s17  ;;  %1838 = vrot.lane.b32.xlu0 %v1770_v52, %s8092_s17  ;;  %v1961_v51 = vld [vmem:[#allocation2 + $0x34] sm:$0xff] }
 0x1f6   : > { %v1471_v12 = vpop.permute.xlu1 %1470  ;;  %v1469_v13 = vpop.permute.xlu0 %1468 }
 0x1f7   : > { %1554 = vst.msk [vmem:[#allocation3 + $0x68] sm:$0xff] %vm1540_vm7, %v1471_v12  ;;  %1553 = vst.msk [vmem:[#allocation3 + $0x60] sm:$0xff] %vm1540_vm7, %v1469_v13  ;;  %v1966_v13 = vld [vmem:[#allocation2 + $0x6c] sm:$0xff] }
 0x1f8   : > { %1844 = vrot.lane.b32.xlu1 %v1773_v4, %s8092_s17  ;;  %1842 = vrot.lane.b32.xlu0 %v1772_v5, %s8092_s17  ;;  %v1963_v4 = vld [vmem:[#allocation2 + $0x4c] sm:$0xff] }
 0x1fa   : > { %v1475_v24 = vpop.permute.xlu1 %1474  ;;  %v1473_v25 = vpop.permute.xlu0 %1472 }
 0x1fb   : > { %1556 = vst.msk [vmem:[#allocation3 + $0x78] sm:$0xff] %vm1540_vm7, %v1475_v24  ;;  %1555 = vst.msk [vmem:[#allocation3 + $0x70] sm:$0xff] %vm1540_vm7, %v1473_v25  ;;  %v1968_v25 = vld [vmem:[#allocation2 + $0x84] sm:$0xff] }
 0x1fc   : > { %1848 = vrot.lane.b32.xlu1 %v1775_v20, %s8092_s17  ;;  %1846 = vrot.lane.b32.xlu0 %v1774_v21, %s8092_s17  ;;  %v1965_v20 = vld [vmem:[#allocation2 + $0x64] sm:$0xff] }
 0x1fe   : > { %v1479_v28 = vpop.permute.xlu1 %1478  ;;  %v1477_v29 = vpop.permute.xlu0 %1476 }
 0x1ff   : > { %1558 = vst.msk [vmem:[#allocation3 + $0x88] sm:$0xff] %vm1540_vm7, %v1479_v28  ;;  %1557 = vst.msk [vmem:[#allocation3 + $0x80] sm:$0xff] %vm1540_vm7, %v1477_v29  ;;  %v1970_v29 = vld [vmem:[#allocation2 + $0x9c] sm:$0xff] }
 0x200   : > { %1852 = vrot.lane.b32.xlu1 %v1777_v26, %s8092_s17  ;;  %1850 = vrot.lane.b32.xlu0 %v1776_v27, %s8092_s17  ;;  %v1967_v26 = vld [vmem:[#allocation2 + $0x7c] sm:$0xff] }
 0x202   : > { %v1483_v32 = vpop.permute.xlu1 %1482  ;;  %v1481_v33 = vpop.permute.xlu0 %1480 }
 0x203   : > { %1560 = vst.msk [vmem:[#allocation3 + $0x98] sm:$0xff] %vm1540_vm7, %v1483_v32  ;;  %1559 = vst.msk [vmem:[#allocation3 + $0x90] sm:$0xff] %vm1540_vm7, %v1481_v33  ;;  %v1972_v33 = vld [vmem:[#allocation2 + $0xb4] sm:$0xff] }
 0x204   : > { %1856 = vrot.lane.b32.xlu1 %v1779_v30, %s8092_s17  ;;  %1854 = vrot.lane.b32.xlu0 %v1778_v31, %s8092_s17  ;;  %v1969_v30 = vld [vmem:[#allocation2 + $0x94] sm:$0xff] }
 0x206   : > { %v1487_v36 = vpop.permute.xlu1 %1486  ;;  %v1485_v37 = vpop.permute.xlu0 %1484 }
 0x207   : > { %1562 = vst.msk [vmem:[#allocation3 + $0xa8] sm:$0xff] %vm1540_vm7, %v1487_v36  ;;  %1561 = vst.msk [vmem:[#allocation3 + $0xa0] sm:$0xff] %vm1540_vm7, %v1485_v37  ;;  %v1974_v37 = vld [vmem:[#allocation2 + $0xcc] sm:$0xff] }
 0x208   : > { %1860 = vrot.lane.b32.xlu1 %v1781_v34, %s8092_s17  ;;  %1858 = vrot.lane.b32.xlu0 %v1780_v35, %s8092_s17  ;;  %v1971_v34 = vld [vmem:[#allocation2 + $0xac] sm:$0xff] }
 0x20a   : > { %v1491_v47 = vpop.permute.xlu1 %1490  ;;  %v1489_v49 = vpop.permute.xlu0 %1488 }
 0x20b   : > { %1564 = vst.msk [vmem:[#allocation3 + $0xb8] sm:$0xff] %vm1540_vm7, %v1491_v47  ;;  %1563 = vst.msk [vmem:[#allocation3 + $0xb0] sm:$0xff] %vm1540_vm7, %v1489_v49  ;;  %v1976_v49 = vld [vmem:[#allocation2 + $0xe4] sm:$0xff] }
 0x20c   : > { %1864 = vrot.lane.b32.xlu1 %v1783_v38, %s8092_s17  ;;  %1862 = vrot.lane.b32.xlu0 %v1782_v45, %s8092_s17  ;;  %v1973_v38 = vld [vmem:[#allocation2 + $0xc4] sm:$0xff] }
 0x20e   : > { %v1495_v54 = vpop.permute.xlu1 %1494  ;;  %v1493_v55 = vpop.permute.xlu0 %1492 }
 0x20f   : > { %1566 = vst.msk [vmem:[#allocation3 + $0xc8] sm:$0xff] %vm1540_vm7, %v1495_v54  ;;  %1565 = vst.msk [vmem:[#allocation3 + $0xc0] sm:$0xff] %vm1540_vm7, %v1493_v55  ;;  %v1978_v55 = vld [vmem:[#allocation2 + $0xfc] sm:$0xff] }
 0x210   : > { %1868 = vrot.lane.b32.xlu1 %v1785_v50, %s8092_s17  ;;  %1866 = vrot.lane.b32.xlu0 %v1784_v53, %s8092_s17  ;;  %v1975_v50 = vld [vmem:[#allocation2 + $0xdc] sm:$0xff] }
 0x212   : > { %v1499_v58 = vpop.permute.xlu1 %1498  ;;  %v1497_v61 = vpop.permute.xlu0 %1496 }
 0x213   : > { %1568 = vst.msk [vmem:[#allocation3 + $0xd8] sm:$0xff] %vm1540_vm7, %v1499_v58  ;;  %1567 = vst.msk [vmem:[#allocation3 + $0xd0] sm:$0xff] %vm1540_vm7, %v1497_v61  ;;  %v1980_v61 = vld [vmem:[#allocation2 + $0x114] sm:$0xff] }
 0x214   : > { %1872 = vrot.lane.b32.xlu1 %v1787_v56, %s8092_s17  ;;  %1870 = vrot.lane.b32.xlu0 %v1786_v57, %s8092_s17  ;;  %v1977_v56 = vld [vmem:[#allocation2 + $0xf4] sm:$0xff] }
 0x216   : > { %v1503_v1 = vpop.permute.xlu1 %1502  ;;  %v1501_v2 = vpop.permute.xlu0 %1500 }
 0x217   : > { %1570 = vst.msk [vmem:[#allocation3 + $0xe8] sm:$0xff] %vm1540_vm7, %v1503_v1  ;;  %1569 = vst.msk [vmem:[#allocation3 + $0xe0] sm:$0xff] %vm1540_vm7, %v1501_v2  ;;  %v1982_v2 = vld [vmem:[#allocation2 + $0x12c] sm:$0xff] }
 0x218   : > { %1876 = vrot.lane.b32.xlu1 %v1789_v62, %s8092_s17  ;;  %1874 = vrot.lane.b32.xlu0 %v1788_v63, %s8092_s17  ;;  %v1979_v62 = vld [vmem:[#allocation2 + $0x10c] sm:$0xff] }
 0x21a   : > { %v1507_v7 = vpop.permute.xlu1 %1506  ;;  %v1505_v8 = vpop.permute.xlu0 %1504 }
 0x21b   : > { %1572 = vst.msk [vmem:[#allocation3 + $0xf8] sm:$0xff] %vm1540_vm7, %v1507_v7  ;;  %1571 = vst.msk [vmem:[#allocation3 + $0xf0] sm:$0xff] %vm1540_vm7, %v1505_v8  ;;  %v1984_v8 = vld [vmem:[#allocation2 + $0x144] sm:$0xff]  ;;  %vm4050_vm7 = vcmask 490952  }
 0x21c   : > { %1880 = vrot.lane.b32.xlu1 %v1791_v3, %s8092_s17  ;;  %1878 = vrot.lane.b32.xlu0 %v1790_v6, %s8092_s17  ;;  %v1981_v3 = vld [vmem:[#allocation2 + $0x124] sm:$0xff] }
 0x21e   : > { %v1640_v11 = vpop.permute.xlu1 %1639  ;;  %v1638_v14 = vpop.permute.xlu0 %1637 }
 0x21f   : > { %1735 = vst.msk [vmem:[#allocation3 + $0x8] sm:$0xff] %vm1733_vm8, %v1640_v11  ;;  %1734 = vst.msk [vmem:[#allocation3] sm:$0xff] %vm1733_vm8, %v1638_v14  ;;  %v1986_v14 = vld [vmem:[#allocation2 + $0x15c] sm:$0xff] }
 0x220   : > { %1884 = vrot.lane.b32.xlu1 %v1793_v9, %s8092_s17  ;;  %1882 = vrot.lane.b32.xlu0 %v1792_v10, %s8092_s17  ;;  %v1983_v9 = vld [vmem:[#allocation2 + $0x13c] sm:$0xff] }
 0x222   : > { %v1644_v40 = vpop.permute.xlu1 %1643  ;;  %v1642_v18 = vpop.permute.xlu0 %1641 }
 0x223   : > { %1737 = vst.msk [vmem:[#allocation3 + $0x18] sm:$0xff] %vm1733_vm8, %v1644_v40  ;;  %1736 = vst.msk [vmem:[#allocation3 + $0x10] sm:$0xff] %vm1733_vm8, %v1642_v18  ;;  %v1987_v40 = vld [vmem:[#allocation2 + $0x16c] sm:$0xff] }
 0x224   : > { %1888 = vrot.lane.b32.xlu1 %v1795_v17, %s8092_s17  ;;  %1886 = vrot.lane.b32.xlu0 %v1794_v39, %s8092_s17  ;;  %v1988_v39 = vld [vmem:[#allocation2 + $0x174] sm:$0xff] }
 0x226   : > { %v1648_v42 = vpop.permute.xlu1 %1647  ;;  %v1646_v22 = vpop.permute.xlu0 %1645 }
 0x227   : > { %1739 = vst.msk [vmem:[#allocation3 + $0x28] sm:$0xff] %vm1733_vm8, %v1648_v42  ;;  %1738 = vst.msk [vmem:[#allocation3 + $0x20] sm:$0xff] %vm1733_vm8, %v1646_v22  ;;  %v1989_v42 = vld [vmem:[#allocation2 + $0x184] sm:$0xff] }
 0x228   : > { %1892 = vrot.lane.b32.xlu1 %v1797_v19, %s8092_s17  ;;  %1890 = vrot.lane.b32.xlu0 %v1796_v41, %s8092_s17  ;;  %v1990_v41 = vld [vmem:[#allocation2 + $0x18c] sm:$0xff]  ;;  %s7457_s17 = sshll.u32 %s215_s16, 3 }
 0x22a   : > { %v1652_v44 = vpop.permute.xlu1 %1651  ;;  %v1650_v46 = vpop.permute.xlu0 %1649 }
 0x22b   : > { %1741 = vst.msk [vmem:[#allocation3 + $0x38] sm:$0xff] %vm1733_vm8, %v1652_v44  ;;  %1740 = vst.msk [vmem:[#allocation3 + $0x30] sm:$0xff] %vm1733_vm8, %v1650_v46  ;;  %v2152_v44 = vld [vmem:[#allocation2 + $0x30] sm:$0xff] }
 0x22c   : > { %2025 = vrot.lane.b32.xlu1 %v1960_v23, %s8093_s23  ;;  %2023 = vrot.lane.b32.xlu0 %v1959_v43, %s8093_s23  ;;  %v2153_v43 = vld [vmem:[#allocation2 + $0x38] sm:$0xff] }
 0x22e   : > { %v1656_v52 = vpop.permute.xlu1 %1655  ;;  %v1654_v59 = vpop.permute.xlu0 %1653 }
 0x22f   : > { %1743 = vst.msk [vmem:[#allocation3 + $0x48] sm:$0xff] %vm1733_vm8, %v1656_v52  ;;  %1742 = vst.msk [vmem:[#allocation3 + $0x40] sm:$0xff] %vm1733_vm8, %v1654_v59  ;;  %v2154_v52 = vld [vmem:[#allocation2 + $0x48] sm:$0xff] }
 0x230   : > { %2029 = vrot.lane.b32.xlu1 %v1962_v48, %s8093_s23  ;;  %2027 = vrot.lane.b32.xlu0 %v1961_v51, %s8093_s23  ;;  %v2155_v51 = vld [vmem:[#allocation2 + $0x50] sm:$0xff] }
 0x232   : > { %v1660_v5 = vpop.permute.xlu1 %1659  ;;  %v1658_v12 = vpop.permute.xlu0 %1657 }
 0x233   : > { %1745 = vst.msk [vmem:[#allocation3 + $0x58] sm:$0xff] %vm1733_vm8, %v1660_v5  ;;  %1744 = vst.msk [vmem:[#allocation3 + $0x50] sm:$0xff] %vm1733_vm8, %v1658_v12  ;;  %v2156_v5 = vld [vmem:[#allocation2 + $0x60] sm:$0xff] }
 0x234   : > { %2033 = vrot.lane.b32.xlu1 %v1964_v60, %s8093_s23  ;;  %2031 = vrot.lane.b32.xlu0 %v1963_v4, %s8093_s23  ;;  %v2157_v4 = vld [vmem:[#allocation2 + $0x68] sm:$0xff] }
 0x236   : > { %v1664_v21 = vpop.permute.xlu1 %1663  ;;  %v1662_v24 = vpop.permute.xlu0 %1661 }
 0x237   : > { %1747 = vst.msk [vmem:[#allocation3 + $0x68] sm:$0xff] %vm1733_vm8, %v1664_v21  ;;  %1746 = vst.msk [vmem:[#allocation3 + $0x60] sm:$0xff] %vm1733_vm8, %v1662_v24  ;;  %v2158_v21 = vld [vmem:[#allocation2 + $0x78] sm:$0xff] }
 0x238   : > { %2037 = vrot.lane.b32.xlu1 %v1966_v13, %s8093_s23  ;;  %2035 = vrot.lane.b32.xlu0 %v1965_v20, %s8093_s23  ;;  %v2159_v20 = vld [vmem:[#allocation2 + $0x80] sm:$0xff] }
 0x23a   : > { %v1668_v27 = vpop.permute.xlu1 %1667  ;;  %v1666_v28 = vpop.permute.xlu0 %1665 }
 0x23b   : > { %1749 = vst.msk [vmem:[#allocation3 + $0x78] sm:$0xff] %vm1733_vm8, %v1668_v27  ;;  %1748 = vst.msk [vmem:[#allocation3 + $0x70] sm:$0xff] %vm1733_vm8, %v1666_v28  ;;  %v2160_v27 = vld [vmem:[#allocation2 + $0x90] sm:$0xff] }
 0x23c   : > { %2041 = vrot.lane.b32.xlu1 %v1968_v25, %s8093_s23  ;;  %2039 = vrot.lane.b32.xlu0 %v1967_v26, %s8093_s23  ;;  %v2161_v26 = vld [vmem:[#allocation2 + $0x98] sm:$0xff] }
 0x23e   : > { %v1672_v31 = vpop.permute.xlu1 %1671  ;;  %v1670_v32 = vpop.permute.xlu0 %1669 }
 0x23f   : > { %1751 = vst.msk [vmem:[#allocation3 + $0x88] sm:$0xff] %vm1733_vm8, %v1672_v31  ;;  %1750 = vst.msk [vmem:[#allocation3 + $0x80] sm:$0xff] %vm1733_vm8, %v1670_v32  ;;  %v2162_v31 = vld [vmem:[#allocation2 + $0xa8] sm:$0xff] }
 0x240   : > { %2045 = vrot.lane.b32.xlu1 %v1970_v29, %s8093_s23  ;;  %2043 = vrot.lane.b32.xlu0 %v1969_v30, %s8093_s23  ;;  %v2163_v30 = vld [vmem:[#allocation2 + $0xb0] sm:$0xff] }
 0x242   : > { %v1676_v35 = vpop.permute.xlu1 %1675  ;;  %v1674_v36 = vpop.permute.xlu0 %1673 }
 0x243   : > { %1753 = vst.msk [vmem:[#allocation3 + $0x98] sm:$0xff] %vm1733_vm8, %v1676_v35  ;;  %1752 = vst.msk [vmem:[#allocation3 + $0x90] sm:$0xff] %vm1733_vm8, %v1674_v36  ;;  %v2164_v35 = vld [vmem:[#allocation2 + $0xc0] sm:$0xff] }
 0x244   : > { %2049 = vrot.lane.b32.xlu1 %v1972_v33, %s8093_s23  ;;  %2047 = vrot.lane.b32.xlu0 %v1971_v34, %s8093_s23  ;;  %v2165_v34 = vld [vmem:[#allocation2 + $0xc8] sm:$0xff] }
 0x246   : > { %v1680_v45 = vpop.permute.xlu1 %1679  ;;  %v1678_v47 = vpop.permute.xlu0 %1677 }
 0x247   : > { %1755 = vst.msk [vmem:[#allocation3 + $0xa8] sm:$0xff] %vm1733_vm8, %v1680_v45  ;;  %1754 = vst.msk [vmem:[#allocation3 + $0xa0] sm:$0xff] %vm1733_vm8, %v1678_v47  ;;  %v2166_v45 = vld [vmem:[#allocation2 + $0xd8] sm:$0xff] }
 0x248   : > { %2053 = vrot.lane.b32.xlu1 %v1974_v37, %s8093_s23  ;;  %2051 = vrot.lane.b32.xlu0 %v1973_v38, %s8093_s23  ;;  %v2167_v38 = vld [vmem:[#allocation2 + $0xe0] sm:$0xff] }
 0x24a   : > { %v1684_v53 = vpop.permute.xlu1 %1683  ;;  %v1682_v54 = vpop.permute.xlu0 %1681 }
 0x24b   : > { %1757 = vst.msk [vmem:[#allocation3 + $0xb8] sm:$0xff] %vm1733_vm8, %v1684_v53  ;;  %1756 = vst.msk [vmem:[#allocation3 + $0xb0] sm:$0xff] %vm1733_vm8, %v1682_v54  ;;  %v2168_v53 = vld [vmem:[#allocation2 + $0xf0] sm:$0xff] }
 0x24c   : > { %2057 = vrot.lane.b32.xlu1 %v1976_v49, %s8093_s23  ;;  %2055 = vrot.lane.b32.xlu0 %v1975_v50, %s8093_s23  ;;  %v2169_v50 = vld [vmem:[#allocation2 + $0xf8] sm:$0xff] }
 0x24e   : > { %v1688_v57 = vpop.permute.xlu1 %1687  ;;  %v1686_v58 = vpop.permute.xlu0 %1685 }
 0x24f   : > { %1759 = vst.msk [vmem:[#allocation3 + $0xc8] sm:$0xff] %vm1733_vm8, %v1688_v57  ;;  %1758 = vst.msk [vmem:[#allocation3 + $0xc0] sm:$0xff] %vm1733_vm8, %v1686_v58  ;;  %v2170_v57 = vld [vmem:[#allocation2 + $0x108] sm:$0xff] }
 0x250   : > { %2061 = vrot.lane.b32.xlu1 %v1978_v55, %s8093_s23  ;;  %2059 = vrot.lane.b32.xlu0 %v1977_v56, %s8093_s23  ;;  %v2171_v56 = vld [vmem:[#allocation2 + $0x110] sm:$0xff] }
 0x252   : > { %v1692_v63 = vpop.permute.xlu1 %1691  ;;  %v1690_v1 = vpop.permute.xlu0 %1689 }
 0x253   : > { %1761 = vst.msk [vmem:[#allocation3 + $0xd8] sm:$0xff] %vm1733_vm8, %v1692_v63  ;;  %1760 = vst.msk [vmem:[#allocation3 + $0xd0] sm:$0xff] %vm1733_vm8, %v1690_v1  ;;  %v2172_v63 = vld [vmem:[#allocation2 + $0x120] sm:$0xff] }
 0x254   : > { %2065 = vrot.lane.b32.xlu1 %v1980_v61, %s8093_s23  ;;  %2063 = vrot.lane.b32.xlu0 %v1979_v62, %s8093_s23  ;;  %v2173_v62 = vld [vmem:[#allocation2 + $0x128] sm:$0xff] }
 0x256   : > { %v1696_v6 = vpop.permute.xlu1 %1695  ;;  %v1694_v7 = vpop.permute.xlu0 %1693 }
 0x257   : > { %1763 = vst.msk [vmem:[#allocation3 + $0xe8] sm:$0xff] %vm1733_vm8, %v1696_v6  ;;  %1762 = vst.msk [vmem:[#allocation3 + $0xe0] sm:$0xff] %vm1733_vm8, %v1694_v7  ;;  %v2174_v6 = vld [vmem:[#allocation2 + $0x138] sm:$0xff] }
 0x258   : > { %2069 = vrot.lane.b32.xlu1 %v1982_v2, %s8093_s23  ;;  %2067 = vrot.lane.b32.xlu0 %v1981_v3, %s8093_s23  ;;  %v2175_v3 = vld [vmem:[#allocation2 + $0x140] sm:$0xff] }
 0x25a   : > { %v1700_v10 = vpop.permute.xlu1 %1699  ;;  %v1698_v11 = vpop.permute.xlu0 %1697 }
 0x25b   : > { %1765 = vst.msk [vmem:[#allocation3 + $0xf8] sm:$0xff] %vm1733_vm8, %v1700_v10  ;;  %1764 = vst.msk [vmem:[#allocation3 + $0xf0] sm:$0xff] %vm1733_vm8, %v1698_v11  ;;  %v2176_v10 = vld [vmem:[#allocation2 + $0x150] sm:$0xff]  ;;  %vm4244_vm8 = vcmask 515552  }
 0x25c   : > { %2073 = vrot.lane.b32.xlu1 %v1984_v8, %s8093_s23  ;;  %2071 = vrot.lane.b32.xlu0 %v1983_v9, %s8093_s23  ;;  %v2177_v9 = vld [vmem:[#allocation2 + $0x158] sm:$0xff] }
 0x25e   : > { %v1833_v16 = vpop.permute.xlu1 %1832  ;;  %v1831_v17 = vpop.permute.xlu0 %1830 }
 0x25f   : > { %1928 = vst.msk [vmem:[#allocation3 + $0x8] sm:$0xff] %vm1926_vm9, %v1833_v16  ;;  %1927 = vst.msk [vmem:[#allocation3] sm:$0xff] %vm1926_vm9, %v1831_v17  ;;  %v2178_v16 = vld [vmem:[#allocation2 + $0x168] sm:$0xff] }
 0x260   : > { %2077 = vrot.lane.b32.xlu1 %v1986_v14, %s8093_s23  ;;  %2075 = vrot.lane.b32.xlu0 %v1985_v15, %s8093_s23  ;;  %v2179_v15 = vld [vmem:[#allocation2 + $0x170] sm:$0xff] }
 0x262   : > { %v1837_v18 = vpop.permute.xlu1 %1836  ;;  %v1835_v19 = vpop.permute.xlu0 %1834 }
 0x263   : > { %1930 = vst.msk [vmem:[#allocation3 + $0x18] sm:$0xff] %vm1926_vm9, %v1837_v18  ;;  %1929 = vst.msk [vmem:[#allocation3 + $0x10] sm:$0xff] %vm1926_vm9, %v1835_v19  ;;  %v2180_v18 = vld [vmem:[#allocation2 + $0x180] sm:$0xff] }
 0x264   : > { %2081 = vrot.lane.b32.xlu1 %v1988_v39, %s8093_s23  ;;  %2079 = vrot.lane.b32.xlu0 %v1987_v40, %s8093_s23  ;;  %v2181_v40 = vld [vmem:[#allocation2 + $0x188] sm:$0xff] }
 0x266   : > { %v1841_v22 = vpop.permute.xlu1 %1840  ;;  %v1839_v23 = vpop.permute.xlu0 %1838 }
 0x267   : > { %1932 = vst.msk [vmem:[#allocation3 + $0x28] sm:$0xff] %vm1926_vm9, %v1841_v22  ;;  %1931 = vst.msk [vmem:[#allocation3 + $0x20] sm:$0xff] %vm1926_vm9, %v1839_v23  ;;  %v2182_v22 = vld [vmem:[#allocation2 + $0x198] sm:$0xff] }
 0x268   : > { %2085 = vrot.lane.b32.xlu1 %v1990_v41, %s8093_s23  ;;  %2083 = vrot.lane.b32.xlu0 %v1989_v42, %s8093_s23  ;;  %v2183_v42 = vld [vmem:[#allocation2 + $0x1a0] sm:$0xff]  ;;  %s8107_s23 = smov 69  }
 0x26a   : > { %v1845_v46 = vpop.permute.xlu1 %1844  ;;  %v1843_v48 = vpop.permute.xlu0 %1842 }
 0x26b   : > { %1934 = vst.msk [vmem:[#allocation3 + $0x38] sm:$0xff] %vm1926_vm9, %v1845_v46  ;;  %1933 = vst.msk [vmem:[#allocation3 + $0x30] sm:$0xff] %vm1926_vm9, %v1843_v48  ;;  %v2345_v46 = vld [vmem:[#allocation2 + $0x31] sm:$0xff] }
 0x26c   : > { %2218 = vrot.lane.b32.xlu1 %v2153_v43, %s8094_s25  ;;  %2216 = vrot.lane.b32.xlu0 %v2152_v44, %s8094_s25  ;;  %v2346_v44 = vld [vmem:[#allocation2 + $0x39] sm:$0xff] }
 0x26e   : > { %v1849_v59 = vpop.permute.xlu1 %1848  ;;  %v1847_v60 = vpop.permute.xlu0 %1846 }
 0x26f   : > { %1936 = vst.msk [vmem:[#allocation3 + $0x48] sm:$0xff] %vm1926_vm9, %v1849_v59  ;;  %1935 = vst.msk [vmem:[#allocation3 + $0x40] sm:$0xff] %vm1926_vm9, %v1847_v60  ;;  %v2347_v59 = vld [vmem:[#allocation2 + $0x49] sm:$0xff] }
 0x270   : > { %2222 = vrot.lane.b32.xlu1 %v2155_v51, %s8094_s25  ;;  %2220 = vrot.lane.b32.xlu0 %v2154_v52, %s8094_s25  ;;  %v2348_v52 = vld [vmem:[#allocation2 + $0x51] sm:$0xff] }
 0x272   : > { %v1853_v12 = vpop.permute.xlu1 %1852  ;;  %v1851_v13 = vpop.permute.xlu0 %1850 }
 0x273   : > { %1938 = vst.msk [vmem:[#allocation3 + $0x58] sm:$0xff] %vm1926_vm9, %v1853_v12  ;;  %1937 = vst.msk [vmem:[#allocation3 + $0x50] sm:$0xff] %vm1926_vm9, %v1851_v13  ;;  %v2349_v12 = vld [vmem:[#allocation2 + $0x61] sm:$0xff] }
 0x274   : > { %2226 = vrot.lane.b32.xlu1 %v2157_v4, %s8094_s25  ;;  %2224 = vrot.lane.b32.xlu0 %v2156_v5, %s8094_s25  ;;  %v2350_v5 = vld [vmem:[#allocation2 + $0x69] sm:$0xff] }
 0x276   : > { %v1857_v24 = vpop.permute.xlu1 %1856  ;;  %v1855_v25 = vpop.permute.xlu0 %1854 }
 0x277   : > { %1940 = vst.msk [vmem:[#allocation3 + $0x68] sm:$0xff] %vm1926_vm9, %v1857_v24  ;;  %1939 = vst.msk [vmem:[#allocation3 + $0x60] sm:$0xff] %vm1926_vm9, %v1855_v25  ;;  %v2351_v24 = vld [vmem:[#allocation2 + $0x79] sm:$0xff] }
 0x278   : > { %2230 = vrot.lane.b32.xlu1 %v2159_v20, %s8094_s25  ;;  %2228 = vrot.lane.b32.xlu0 %v2158_v21, %s8094_s25  ;;  %v2352_v21 = vld [vmem:[#allocation2 + $0x81] sm:$0xff] }
 0x27a   : > { %v1861_v28 = vpop.permute.xlu1 %1860  ;;  %v1859_v29 = vpop.permute.xlu0 %1858 }
 0x27b   : > { %1942 = vst.msk [vmem:[#allocation3 + $0x78] sm:$0xff] %vm1926_vm9, %v1861_v28  ;;  %1941 = vst.msk [vmem:[#allocation3 + $0x70] sm:$0xff] %vm1926_vm9, %v1859_v29  ;;  %v2353_v28 = vld [vmem:[#allocation2 + $0x91] sm:$0xff] }
 0x27c   : > { %2234 = vrot.lane.b32.xlu1 %v2161_v26, %s8094_s25  ;;  %2232 = vrot.lane.b32.xlu0 %v2160_v27, %s8094_s25  ;;  %v2354_v27 = vld [vmem:[#allocation2 + $0x99] sm:$0xff] }
 0x27e   : > { %v1865_v32 = vpop.permute.xlu1 %1864  ;;  %v1863_v33 = vpop.permute.xlu0 %1862 }
 0x27f   : > { %1944 = vst.msk [vmem:[#allocation3 + $0x88] sm:$0xff] %vm1926_vm9, %v1865_v32  ;;  %1943 = vst.msk [vmem:[#allocation3 + $0x80] sm:$0xff] %vm1926_vm9, %v1863_v33  ;;  %v2355_v32 = vld [vmem:[#allocation2 + $0xa9] sm:$0xff] }
 0x280   : > { %2238 = vrot.lane.b32.xlu1 %v2163_v30, %s8094_s25  ;;  %2236 = vrot.lane.b32.xlu0 %v2162_v31, %s8094_s25  ;;  %v2356_v31 = vld [vmem:[#allocation2 + $0xb1] sm:$0xff] }
 0x282   : > { %v1869_v36 = vpop.permute.xlu1 %1868  ;;  %v1867_v37 = vpop.permute.xlu0 %1866 }
 0x283   : > { %1946 = vst.msk [vmem:[#allocation3 + $0x98] sm:$0xff] %vm1926_vm9, %v1869_v36  ;;  %1945 = vst.msk [vmem:[#allocation3 + $0x90] sm:$0xff] %vm1926_vm9, %v1867_v37  ;;  %v2357_v36 = vld [vmem:[#allocation2 + $0xc1] sm:$0xff] }
 0x284   : > { %2242 = vrot.lane.b32.xlu1 %v2165_v34, %s8094_s25  ;;  %2240 = vrot.lane.b32.xlu0 %v2164_v35, %s8094_s25  ;;  %v2358_v35 = vld [vmem:[#allocation2 + $0xc9] sm:$0xff] }
 0x286   : > { %v1873_v47 = vpop.permute.xlu1 %1872  ;;  %v1871_v49 = vpop.permute.xlu0 %1870 }
 0x287   : > { %1948 = vst.msk [vmem:[#allocation3 + $0xa8] sm:$0xff] %vm1926_vm9, %v1873_v47  ;;  %1947 = vst.msk [vmem:[#allocation3 + $0xa0] sm:$0xff] %vm1926_vm9, %v1871_v49  ;;  %v2359_v47 = vld [vmem:[#allocation2 + $0xd9] sm:$0xff] }
 0x288   : > { %2246 = vrot.lane.b32.xlu1 %v2167_v38, %s8094_s25  ;;  %2244 = vrot.lane.b32.xlu0 %v2166_v45, %s8094_s25  ;;  %v2360_v45 = vld [vmem:[#allocation2 + $0xe1] sm:$0xff] }
 0x28a   : > { %v1877_v54 = vpop.permute.xlu1 %1876  ;;  %v1875_v55 = vpop.permute.xlu0 %1874 }
 0x28b   : > { %1950 = vst.msk [vmem:[#allocation3 + $0xb8] sm:$0xff] %vm1926_vm9, %v1877_v54  ;;  %1949 = vst.msk [vmem:[#allocation3 + $0xb0] sm:$0xff] %vm1926_vm9, %v1875_v55  ;;  %v2361_v54 = vld [vmem:[#allocation2 + $0xf1] sm:$0xff] }
 0x28c   : > { %2250 = vrot.lane.b32.xlu1 %v2169_v50, %s8094_s25  ;;  %2248 = vrot.lane.b32.xlu0 %v2168_v53, %s8094_s25  ;;  %v2362_v53 = vld [vmem:[#allocation2 + $0xf9] sm:$0xff] }
 0x28e   : > { %v1881_v58 = vpop.permute.xlu1 %1880  ;;  %v1879_v61 = vpop.permute.xlu0 %1878 }
 0x28f   : > { %1952 = vst.msk [vmem:[#allocation3 + $0xc8] sm:$0xff] %vm1926_vm9, %v1881_v58  ;;  %1951 = vst.msk [vmem:[#allocation3 + $0xc0] sm:$0xff] %vm1926_vm9, %v1879_v61  ;;  %v2363_v58 = vld [vmem:[#allocation2 + $0x109] sm:$0xff] }
 0x290   : > { %2254 = vrot.lane.b32.xlu1 %v2171_v56, %s8094_s25  ;;  %2252 = vrot.lane.b32.xlu0 %v2170_v57, %s8094_s25  ;;  %v2364_v57 = vld [vmem:[#allocation2 + $0x111] sm:$0xff] }
 0x292   : > { %v1885_v1 = vpop.permute.xlu1 %1884  ;;  %v1883_v2 = vpop.permute.xlu0 %1882 }
 0x293   : > { %1954 = vst.msk [vmem:[#allocation3 + $0xd8] sm:$0xff] %vm1926_vm9, %v1885_v1  ;;  %1953 = vst.msk [vmem:[#allocation3 + $0xd0] sm:$0xff] %vm1926_vm9, %v1883_v2  ;;  %v2365_v1 = vld [vmem:[#allocation2 + $0x121] sm:$0xff] }
 0x294   : > { %2258 = vrot.lane.b32.xlu1 %v2173_v62, %s8094_s25  ;;  %2256 = vrot.lane.b32.xlu0 %v2172_v63, %s8094_s25  ;;  %v2366_v63 = vld [vmem:[#allocation2 + $0x129] sm:$0xff] }
 0x296   : > { %v1889_v7 = vpop.permute.xlu1 %1888  ;;  %v1887_v8 = vpop.permute.xlu0 %1886 }
 0x297   : > { %1956 = vst.msk [vmem:[#allocation3 + $0xe8] sm:$0xff] %vm1926_vm9, %v1889_v7  ;;  %1955 = vst.msk [vmem:[#allocation3 + $0xe0] sm:$0xff] %vm1926_vm9, %v1887_v8  ;;  %v2367_v7 = vld [vmem:[#allocation2 + $0x139] sm:$0xff] }
 0x298   : > { %2262 = vrot.lane.b32.xlu1 %v2175_v3, %s8094_s25  ;;  %2260 = vrot.lane.b32.xlu0 %v2174_v6, %s8094_s25  ;;  %v2368_v6 = vld [vmem:[#allocation2 + $0x141] sm:$0xff] }
 0x29a   : > { %v1893_v11 = vpop.permute.xlu1 %1892  ;;  %v1891_v14 = vpop.permute.xlu0 %1890 }
 0x29b   : > { %1958 = vst.msk [vmem:[#allocation3 + $0xf8] sm:$0xff] %vm1926_vm9, %v1893_v11  ;;  %1957 = vst.msk [vmem:[#allocation3 + $0xf0] sm:$0xff] %vm1926_vm9, %v1891_v14  ;;  %v2369_v11 = vld [vmem:[#allocation2 + $0x151] sm:$0xff]  ;;  %vm4437_vm9 = vcmask 540152  }
 0x29c   : > { %2266 = vrot.lane.b32.xlu1 %v2177_v9, %s8094_s25  ;;  %2264 = vrot.lane.b32.xlu0 %v2176_v10, %s8094_s25  ;;  %v2370_v10 = vld [vmem:[#allocation2 + $0x159] sm:$0xff] }
 0x29e   : > { %v2026_v17 = vpop.permute.xlu1 %2025  ;;  %v2024_v39 = vpop.permute.xlu0 %2023 }
 0x29f   : > { %2121 = vst.msk [vmem:[#allocation3 + $0x8] sm:$0xff] %vm2119_vm10, %v2026_v17  ;;  %2120 = vst.msk [vmem:[#allocation3] sm:$0xff] %vm2119_vm10, %v2024_v39  ;;  %v2371_v17 = vld [vmem:[#allocation2 + $0x169] sm:$0xff] }
 0x2a0   : > { %2270 = vrot.lane.b32.xlu1 %v2179_v15, %s8094_s25  ;;  %2268 = vrot.lane.b32.xlu0 %v2178_v16, %s8094_s25  ;;  %v2372_v16 = vld [vmem:[#allocation2 + $0x171] sm:$0xff] }
 0x2a2   : > { %v2030_v19 = vpop.permute.xlu1 %2029  ;;  %v2028_v41 = vpop.permute.xlu0 %2027 }
 0x2a3   : > { %2123 = vst.msk [vmem:[#allocation3 + $0x18] sm:$0xff] %vm2119_vm10, %v2030_v19  ;;  %2122 = vst.msk [vmem:[#allocation3 + $0x10] sm:$0xff] %vm2119_vm10, %v2028_v41  ;;  %v2373_v19 = vld [vmem:[#allocation2 + $0x181] sm:$0xff] }
 0x2a4   : > { %2274 = vrot.lane.b32.xlu1 %v2181_v40, %s8094_s25  ;;  %2272 = vrot.lane.b32.xlu0 %v2180_v18, %s8094_s25  ;;  %v2374_v18 = vld [vmem:[#allocation2 + $0x189] sm:$0xff] }
 0x2a6   : > { %v2034_v23 = vpop.permute.xlu1 %2033  ;;  %v2032_v43 = vpop.permute.xlu0 %2031 }
 0x2a7   : > { %2125 = vst.msk [vmem:[#allocation3 + $0x28] sm:$0xff] %vm2119_vm10, %v2034_v23  ;;  %2124 = vst.msk [vmem:[#allocation3 + $0x20] sm:$0xff] %vm2119_vm10, %v2032_v43  ;;  %v2375_v23 = vld [vmem:[#allocation2 + $0x199] sm:$0xff] }
 0x2a8   : > { %2278 = vrot.lane.b32.xlu1 %v2183_v42, %s8094_s25  ;;  %2276 = vrot.lane.b32.xlu0 %v2182_v22, %s8094_s25  ;;  %v2376_v22 = vld [vmem:[#allocation2 + $0x1a1] sm:$0xff]  ;;  %s8106_s25 = smov 66  }
 0x2aa   : > { %v2038_v48 = vpop.permute.xlu1 %2037  ;;  %v2036_v51 = vpop.permute.xlu0 %2035 }
 0x2ab   : > { %2127 = vst.msk [vmem:[#allocation3 + $0x38] sm:$0xff] %vm2119_vm10, %v2038_v48  ;;  %2126 = vst.msk [vmem:[#allocation3 + $0x30] sm:$0xff] %vm2119_vm10, %v2036_v51  ;;  %v2538_v48 = vld [vmem:[#allocation2 + $0x32] sm:$0xff] }
 0x2ac   : > { %2411 = vrot.lane.b32.xlu1 %v2346_v44, %s8095_s26  ;;  %2409 = vrot.lane.b32.xlu0 %v2345_v46, %s8095_s26  ;;  %v2539_v46 = vld [vmem:[#allocation2 + $0x3a] sm:$0xff] }
 0x2ae   : > { %v2042_v60 = vpop.permute.xlu1 %2041  ;;  %v2040_v4 = vpop.permute.xlu0 %2039 }
 0x2af   : > { %2129 = vst.msk [vmem:[#allocation3 + $0x48] sm:$0xff] %vm2119_vm10, %v2042_v60  ;;  %2128 = vst.msk [vmem:[#allocation3 + $0x40] sm:$0xff] %vm2119_vm10, %v2040_v4  ;;  %v2540_v60 = vld [vmem:[#allocation2 + $0x4a] sm:$0xff] }
 0x2b0   : > { %2415 = vrot.lane.b32.xlu1 %v2348_v52, %s8095_s26  ;;  %2413 = vrot.lane.b32.xlu0 %v2347_v59, %s8095_s26  ;;  %v2541_v59 = vld [vmem:[#allocation2 + $0x52] sm:$0xff] }
 0x2b2   : > { %v2046_v13 = vpop.permute.xlu1 %2045  ;;  %v2044_v20 = vpop.permute.xlu0 %2043 }
 0x2b3   : > { %2131 = vst.msk [vmem:[#allocation3 + $0x58] sm:$0xff] %vm2119_vm10, %v2046_v13  ;;  %2130 = vst.msk [vmem:[#allocation3 + $0x50] sm:$0xff] %vm2119_vm10, %v2044_v20  ;;  %v2542_v13 = vld [vmem:[#allocation2 + $0x62] sm:$0xff] }
 0x2b4   : > { %2419 = vrot.lane.b32.xlu1 %v2350_v5, %s8095_s26  ;;  %2417 = vrot.lane.b32.xlu0 %v2349_v12, %s8095_s26  ;;  %v2543_v12 = vld [vmem:[#allocation2 + $0x6a] sm:$0xff] }
 0x2b6   : > { %v2050_v25 = vpop.permute.xlu1 %2049  ;;  %v2048_v26 = vpop.permute.xlu0 %2047 }
 0x2b7   : > { %2133 = vst.msk [vmem:[#allocation3 + $0x68] sm:$0xff] %vm2119_vm10, %v2050_v25  ;;  %2132 = vst.msk [vmem:[#allocation3 + $0x60] sm:$0xff] %vm2119_vm10, %v2048_v26  ;;  %v2544_v25 = vld [vmem:[#allocation2 + $0x7a] sm:$0xff] }
 0x2b8   : > { %2423 = vrot.lane.b32.xlu1 %v2352_v21, %s8095_s26  ;;  %2421 = vrot.lane.b32.xlu0 %v2351_v24, %s8095_s26  ;;  %v2545_v24 = vld [vmem:[#allocation2 + $0x82] sm:$0xff] }
 0x2ba   : > { %v2054_v29 = vpop.permute.xlu1 %2053  ;;  %v2052_v30 = vpop.permute.xlu0 %2051 }
 0x2bb   : > { %2135 = vst.msk [vmem:[#allocation3 + $0x78] sm:$0xff] %vm2119_vm10, %v2054_v29  ;;  %2134 = vst.msk [vmem:[#allocation3 + $0x70] sm:$0xff] %vm2119_vm10, %v2052_v30  ;;  %v2546_v29 = vld [vmem:[#allocation2 + $0x92] sm:$0xff] }
 0x2bc   : > { %2427 = vrot.lane.b32.xlu1 %v2354_v27, %s8095_s26  ;;  %2425 = vrot.lane.b32.xlu0 %v2353_v28, %s8095_s26  ;;  %v2547_v28 = vld [vmem:[#allocation2 + $0x9a] sm:$0xff] }
 0x2be   : > { %v2058_v33 = vpop.permute.xlu1 %2057  ;;  %v2056_v34 = vpop.permute.xlu0 %2055 }
 0x2bf   : > { %2137 = vst.msk [vmem:[#allocation3 + $0x88] sm:$0xff] %vm2119_vm10, %v2058_v33  ;;  %2136 = vst.msk [vmem:[#allocation3 + $0x80] sm:$0xff] %vm2119_vm10, %v2056_v34  ;;  %v2548_v33 = vld [vmem:[#allocation2 + $0xaa] sm:$0xff] }
 0x2c0   : > { %2431 = vrot.lane.b32.xlu1 %v2356_v31, %s8095_s26  ;;  %2429 = vrot.lane.b32.xlu0 %v2355_v32, %s8095_s26  ;;  %v2549_v32 = vld [vmem:[#allocation2 + $0xb2] sm:$0xff] }
 0x2c2   : > { %v2062_v37 = vpop.permute.xlu1 %2061  ;;  %v2060_v38 = vpop.permute.xlu0 %2059 }
 0x2c3   : > { %2139 = vst.msk [vmem:[#allocation3 + $0x98] sm:$0xff] %vm2119_vm10, %v2062_v37  ;;  %2138 = vst.msk [vmem:[#allocation3 + $0x90] sm:$0xff] %vm2119_vm10, %v2060_v38  ;;  %v2550_v37 = vld [vmem:[#allocation2 + $0xc2] sm:$0xff] }
 0x2c4   : > { %2435 = vrot.lane.b32.xlu1 %v2358_v35, %s8095_s26  ;;  %2433 = vrot.lane.b32.xlu0 %v2357_v36, %s8095_s26  ;;  %v2551_v36 = vld [vmem:[#allocation2 + $0xca] sm:$0xff] }
 0x2c6   : > { %v2066_v49 = vpop.permute.xlu1 %2065  ;;  %v2064_v50 = vpop.permute.xlu0 %2063 }
 0x2c7   : > { %2141 = vst.msk [vmem:[#allocation3 + $0xa8] sm:$0xff] %vm2119_vm10, %v2066_v49  ;;  %2140 = vst.msk [vmem:[#allocation3 + $0xa0] sm:$0xff] %vm2119_vm10, %v2064_v50  ;;  %v2552_v49 = vld [vmem:[#allocation2 + $0xda] sm:$0xff] }
 0x2c8   : > { %2439 = vrot.lane.b32.xlu1 %v2360_v45, %s8095_s26  ;;  %2437 = vrot.lane.b32.xlu0 %v2359_v47, %s8095_s26  ;;  %v2553_v47 = vld [vmem:[#allocation2 + $0xe2] sm:$0xff] }
 0x2ca   : > { %v2070_v55 = vpop.permute.xlu1 %2069  ;;  %v2068_v56 = vpop.permute.xlu0 %2067 }
 0x2cb   : > { %2143 = vst.msk [vmem:[#allocation3 + $0xb8] sm:$0xff] %vm2119_vm10, %v2070_v55  ;;  %2142 = vst.msk [vmem:[#allocation3 + $0xb0] sm:$0xff] %vm2119_vm10, %v2068_v56  ;;  %v2554_v55 = vld [vmem:[#allocation2 + $0xf2] sm:$0xff] }
 0x2cc   : > { %2443 = vrot.lane.b32.xlu1 %v2362_v53, %s8095_s26  ;;  %2441 = vrot.lane.b32.xlu0 %v2361_v54, %s8095_s26  ;;  %v2555_v54 = vld [vmem:[#allocation2 + $0xfa] sm:$0xff] }
 0x2ce   : > { %v2074_v61 = vpop.permute.xlu1 %2073  ;;  %v2072_v62 = vpop.permute.xlu0 %2071 }
 0x2cf   : > { %2145 = vst.msk [vmem:[#allocation3 + $0xc8] sm:$0xff] %vm2119_vm10, %v2074_v61  ;;  %2144 = vst.msk [vmem:[#allocation3 + $0xc0] sm:$0xff] %vm2119_vm10, %v2072_v62  ;;  %v2556_v61 = vld [vmem:[#allocation2 + $0x10a] sm:$0xff] }
 0x2d0   : > { %2447 = vrot.lane.b32.xlu1 %v2364_v57, %s8095_s26  ;;  %2445 = vrot.lane.b32.xlu0 %v2363_v58, %s8095_s26  ;;  %v2557_v58 = vld [vmem:[#allocation2 + $0x112] sm:$0xff] }
 0x2d2   : > { %v2078_v2 = vpop.permute.xlu1 %2077  ;;  %v2076_v3 = vpop.permute.xlu0 %2075 }
 0x2d3   : > { %2147 = vst.msk [vmem:[#allocation3 + $0xd8] sm:$0xff] %vm2119_vm10, %v2078_v2  ;;  %2146 = vst.msk [vmem:[#allocation3 + $0xd0] sm:$0xff] %vm2119_vm10, %v2076_v3  ;;  %v2558_v2 = vld [vmem:[#allocation2 + $0x122] sm:$0xff] }
 0x2d4   : > { %2451 = vrot.lane.b32.xlu1 %v2366_v63, %s8095_s26  ;;  %2449 = vrot.lane.b32.xlu0 %v2365_v1, %s8095_s26  ;;  %v2559_v1 = vld [vmem:[#allocation2 + $0x12a] sm:$0xff] }
 0x2d6   : > { %v2082_v8 = vpop.permute.xlu1 %2081  ;;  %v2080_v9 = vpop.permute.xlu0 %2079 }
 0x2d7   : > { %2149 = vst.msk [vmem:[#allocation3 + $0xe8] sm:$0xff] %vm2119_vm10, %v2082_v8  ;;  %2148 = vst.msk [vmem:[#allocation3 + $0xe0] sm:$0xff] %vm2119_vm10, %v2080_v9  ;;  %v2560_v8 = vld [vmem:[#allocation2 + $0x13a] sm:$0xff] }
 0x2d8   : > { %2455 = vrot.lane.b32.xlu1 %v2368_v6, %s8095_s26  ;;  %2453 = vrot.lane.b32.xlu0 %v2367_v7, %s8095_s26  ;;  %v2561_v7 = vld [vmem:[#allocation2 + $0x142] sm:$0xff] }
 0x2da   : > { %v2086_v14 = vpop.permute.xlu1 %2085  ;;  %v2084_v15 = vpop.permute.xlu0 %2083 }
 0x2db   : > { %2151 = vst.msk [vmem:[#allocation3 + $0xf8] sm:$0xff] %vm2119_vm10, %v2086_v14  ;;  %2150 = vst.msk [vmem:[#allocation3 + $0xf0] sm:$0xff] %vm2119_vm10, %v2084_v15  ;;  %v2562_v14 = vld [vmem:[#allocation2 + $0x152] sm:$0xff]  ;;  %vm4630_vm10 = vcmask 564752  }
 0x2dc   : > { %2459 = vrot.lane.b32.xlu1 %v2370_v10, %s8095_s26  ;;  %2457 = vrot.lane.b32.xlu0 %v2369_v11, %s8095_s26  ;;  %v2563_v11 = vld [vmem:[#allocation2 + $0x15a] sm:$0xff] }
 0x2de   : > { %v2219_v39 = vpop.permute.xlu1 %2218  ;;  %v2217_v40 = vpop.permute.xlu0 %2216 }
 0x2df   : > { %2314 = vst.msk [vmem:[#allocation3 + $0x8] sm:$0xff] %vm2312_vm11, %v2219_v39  ;;  %2313 = vst.msk [vmem:[#allocation3] sm:$0xff] %vm2312_vm11, %v2217_v40  ;;  %v2564_v39 = vld [vmem:[#allocation2 + $0x16a] sm:$0xff] }
 0x2e0   : > { %2463 = vrot.lane.b32.xlu1 %v2372_v16, %s8095_s26  ;;  %2461 = vrot.lane.b32.xlu0 %v2371_v17, %s8095_s26  ;;  %v2565_v17 = vld [vmem:[#allocation2 + $0x172] sm:$0xff] }
 0x2e2   : > { %v2223_v41 = vpop.permute.xlu1 %2222  ;;  %v2221_v42 = vpop.permute.xlu0 %2220 }
 0x2e3   : > { %2316 = vst.msk [vmem:[#allocation3 + $0x18] sm:$0xff] %vm2312_vm11, %v2223_v41  ;;  %2315 = vst.msk [vmem:[#allocation3 + $0x10] sm:$0xff] %vm2312_vm11, %v2221_v42  ;;  %v2566_v41 = vld [vmem:[#allocation2 + $0x182] sm:$0xff] }
 0x2e4   : > { %2467 = vrot.lane.b32.xlu1 %v2374_v18, %s8095_s26  ;;  %2465 = vrot.lane.b32.xlu0 %v2373_v19, %s8095_s26  ;;  %v2567_v19 = vld [vmem:[#allocation2 + $0x18a] sm:$0xff] }
 0x2e6   : > { %v2227_v43 = vpop.permute.xlu1 %2226  ;;  %v2225_v44 = vpop.permute.xlu0 %2224 }
 0x2e7   : > { %2318 = vst.msk [vmem:[#allocation3 + $0x28] sm:$0xff] %vm2312_vm11, %v2227_v43  ;;  %2317 = vst.msk [vmem:[#allocation3 + $0x20] sm:$0xff] %vm2312_vm11, %v2225_v44  ;;  %v2568_v43 = vld [vmem:[#allocation2 + $0x19a] sm:$0xff] }
 0x2e8   : > { %2471 = vrot.lane.b32.xlu1 %v2376_v22, %s8095_s26  ;;  %2469 = vrot.lane.b32.xlu0 %v2375_v23, %s8095_s26  ;;  %v2569_v23 = vld [vmem:[#allocation2 + $0x1a2] sm:$0xff]  ;;  %s8109_s26 = smov 72  }
 0x2ea   : > { %v2231_v51 = vpop.permute.xlu1 %2230  ;;  %v2229_v52 = vpop.permute.xlu0 %2228 }
 0x2eb   : > { %2320 = vst.msk [vmem:[#allocation3 + $0x38] sm:$0xff] %vm2312_vm11, %v2231_v51  ;;  %2319 = vst.msk [vmem:[#allocation3 + $0x30] sm:$0xff] %vm2312_vm11, %v2229_v52  ;;  %v2731_v51 = vld [vmem:[#allocation2 + $0x33] sm:$0xff] }
 0x2ec   : > { %2604 = vrot.lane.b32.xlu1 %v2539_v46, %s8096_s30  ;;  %2602 = vrot.lane.b32.xlu0 %v2538_v48, %s8096_s30  ;;  %v2732_v48 = vld [vmem:[#allocation2 + $0x3b] sm:$0xff] }
 0x2ee   : > { %v2235_v4 = vpop.permute.xlu1 %2234  ;;  %v2233_v5 = vpop.permute.xlu0 %2232 }
 0x2ef   : > { %2322 = vst.msk [vmem:[#allocation3 + $0x48] sm:$0xff] %vm2312_vm11, %v2235_v4  ;;  %2321 = vst.msk [vmem:[#allocation3 + $0x40] sm:$0xff] %vm2312_vm11, %v2233_v5  ;;  %v2733_v4 = vld [vmem:[#allocation2 + $0x4b] sm:$0xff] }
 0x2f0   : > { %2608 = vrot.lane.b32.xlu1 %v2541_v59, %s8096_s30  ;;  %2606 = vrot.lane.b32.xlu0 %v2540_v60, %s8096_s30  ;;  %v2734_v60 = vld [vmem:[#allocation2 + $0x53] sm:$0xff] }
 0x2f2   : > { %v2239_v20 = vpop.permute.xlu1 %2238  ;;  %v2237_v21 = vpop.permute.xlu0 %2236 }
 0x2f3   : > { %2324 = vst.msk [vmem:[#allocation3 + $0x58] sm:$0xff] %vm2312_vm11, %v2239_v20  ;;  %2323 = vst.msk [vmem:[#allocation3 + $0x50] sm:$0xff] %vm2312_vm11, %v2237_v21  ;;  %v2735_v20 = vld [vmem:[#allocation2 + $0x63] sm:$0xff] }
 0x2f4   : > { %2612 = vrot.lane.b32.xlu1 %v2543_v12, %s8096_s30  ;;  %2610 = vrot.lane.b32.xlu0 %v2542_v13, %s8096_s30  ;;  %v2736_v13 = vld [vmem:[#allocation2 + $0x6b] sm:$0xff] }
 0x2f6   : > { %v2243_v26 = vpop.permute.xlu1 %2242  ;;  %v2241_v27 = vpop.permute.xlu0 %2240 }
 0x2f7   : > { %2326 = vst.msk [vmem:[#allocation3 + $0x68] sm:$0xff] %vm2312_vm11, %v2243_v26  ;;  %2325 = vst.msk [vmem:[#allocation3 + $0x60] sm:$0xff] %vm2312_vm11, %v2241_v27  ;;  %v2737_v26 = vld [vmem:[#allocation2 + $0x7b] sm:$0xff] }
 0x2f8   : > { %2616 = vrot.lane.b32.xlu1 %v2545_v24, %s8096_s30  ;;  %2614 = vrot.lane.b32.xlu0 %v2544_v25, %s8096_s30  ;;  %v2738_v25 = vld [vmem:[#allocation2 + $0x83] sm:$0xff] }
 0x2fa   : > { %v2247_v30 = vpop.permute.xlu1 %2246  ;;  %v2245_v31 = vpop.permute.xlu0 %2244 }
 0x2fb   : > { %2328 = vst.msk [vmem:[#allocation3 + $0x78] sm:$0xff] %vm2312_vm11, %v2247_v30  ;;  %2327 = vst.msk [vmem:[#allocation3 + $0x70] sm:$0xff] %vm2312_vm11, %v2245_v31  ;;  %v2739_v30 = vld [vmem:[#allocation2 + $0x93] sm:$0xff] }
 0x2fc   : > { %2620 = vrot.lane.b32.xlu1 %v2547_v28, %s8096_s30  ;;  %2618 = vrot.lane.b32.xlu0 %v2546_v29, %s8096_s30  ;;  %v2740_v29 = vld [vmem:[#allocation2 + $0x9b] sm:$0xff] }
 0x2fe   : > { %v2251_v34 = vpop.permute.xlu1 %2250  ;;  %v2249_v35 = vpop.permute.xlu0 %2248 }
 0x2ff   : > { %2330 = vst.msk [vmem:[#allocation3 + $0x88] sm:$0xff] %vm2312_vm11, %v2251_v34  ;;  %2329 = vst.msk [vmem:[#allocation3 + $0x80] sm:$0xff] %vm2312_vm11, %v2249_v35  ;;  %v2741_v34 = vld [vmem:[#allocation2 + $0xab] sm:$0xff] }
 0x300   : > { %2624 = vrot.lane.b32.xlu1 %v2549_v32, %s8096_s30  ;;  %2622 = vrot.lane.b32.xlu0 %v2548_v33, %s8096_s30  ;;  %v2742_v33 = vld [vmem:[#allocation2 + $0xb3] sm:$0xff] }
 0x302   : > { %v2255_v38 = vpop.permute.xlu1 %2254  ;;  %v2253_v45 = vpop.permute.xlu0 %2252 }
 0x303   : > { %2332 = vst.msk [vmem:[#allocation3 + $0x98] sm:$0xff] %vm2312_vm11, %v2255_v38  ;;  %2331 = vst.msk [vmem:[#allocation3 + $0x90] sm:$0xff] %vm2312_vm11, %v2253_v45  ;;  %v2743_v38 = vld [vmem:[#allocation2 + $0xc3] sm:$0xff] }
 0x304   : > { %2628 = vrot.lane.b32.xlu1 %v2551_v36, %s8096_s30  ;;  %2626 = vrot.lane.b32.xlu0 %v2550_v37, %s8096_s30  ;;  %v2744_v37 = vld [vmem:[#allocation2 + $0xcb] sm:$0xff] }
 0x306   : > { %v2259_v50 = vpop.permute.xlu1 %2258  ;;  %v2257_v53 = vpop.permute.xlu0 %2256 }
 0x307   : > { %2334 = vst.msk [vmem:[#allocation3 + $0xa8] sm:$0xff] %vm2312_vm11, %v2259_v50  ;;  %2333 = vst.msk [vmem:[#allocation3 + $0xa0] sm:$0xff] %vm2312_vm11, %v2257_v53  ;;  %v2745_v50 = vld [vmem:[#allocation2 + $0xdb] sm:$0xff] }
 0x308   : > { %2632 = vrot.lane.b32.xlu1 %v2553_v47, %s8096_s30  ;;  %2630 = vrot.lane.b32.xlu0 %v2552_v49, %s8096_s30  ;;  %v2746_v49 = vld [vmem:[#allocation2 + $0xe3] sm:$0xff] }
 0x30a   : > { %v2263_v56 = vpop.permute.xlu1 %2262  ;;  %v2261_v57 = vpop.permute.xlu0 %2260 }
 0x30b   : > { %2336 = vst.msk [vmem:[#allocation3 + $0xb8] sm:$0xff] %vm2312_vm11, %v2263_v56  ;;  %2335 = vst.msk [vmem:[#allocation3 + $0xb0] sm:$0xff] %vm2312_vm11, %v2261_v57  ;;  %v2747_v56 = vld [vmem:[#allocation2 + $0xf3] sm:$0xff] }
 0x30c   : > { %2636 = vrot.lane.b32.xlu1 %v2555_v54, %s8096_s30  ;;  %2634 = vrot.lane.b32.xlu0 %v2554_v55, %s8096_s30  ;;  %v2748_v55 = vld [vmem:[#allocation2 + $0xfb] sm:$0xff] }
 0x30e   : > { %v2267_v62 = vpop.permute.xlu1 %2266  ;;  %v2265_v63 = vpop.permute.xlu0 %2264 }
 0x30f   : > { %2338 = vst.msk [vmem:[#allocation3 + $0xc8] sm:$0xff] %vm2312_vm11, %v2267_v62  ;;  %2337 = vst.msk [vmem:[#allocation3 + $0xc0] sm:$0xff] %vm2312_vm11, %v2265_v63  ;;  %v2749_v62 = vld [vmem:[#allocation2 + $0x10b] sm:$0xff] }
 0x310   : > { %2640 = vrot.lane.b32.xlu1 %v2557_v58, %s8096_s30  ;;  %2638 = vrot.lane.b32.xlu0 %v2556_v61, %s8096_s30  ;;  %v2750_v61 = vld [vmem:[#allocation2 + $0x113] sm:$0xff] }
 0x312   : > { %v2271_v3 = vpop.permute.xlu1 %2270  ;;  %v2269_v6 = vpop.permute.xlu0 %2268 }
 0x313   : > { %2340 = vst.msk [vmem:[#allocation3 + $0xd8] sm:$0xff] %vm2312_vm11, %v2271_v3  ;;  %2339 = vst.msk [vmem:[#allocation3 + $0xd0] sm:$0xff] %vm2312_vm11, %v2269_v6  ;;  %v2751_v3 = vld [vmem:[#allocation2 + $0x123] sm:$0xff] }
 0x314   : > { %2644 = vrot.lane.b32.xlu1 %v2559_v1, %s8096_s30  ;;  %2642 = vrot.lane.b32.xlu0 %v2558_v2, %s8096_s30  ;;  %v2752_v2 = vld [vmem:[#allocation2 + $0x12b] sm:$0xff] }
 0x316   : > { %v2275_v9 = vpop.permute.xlu1 %2274  ;;  %v2273_v10 = vpop.permute.xlu0 %2272 }
 0x317   : > { %2342 = vst.msk [vmem:[#allocation3 + $0xe8] sm:$0xff] %vm2312_vm11, %v2275_v9  ;;  %2341 = vst.msk [vmem:[#allocation3 + $0xe0] sm:$0xff] %vm2312_vm11, %v2273_v10  ;;  %v2753_v9 = vld [vmem:[#allocation2 + $0x13b] sm:$0xff] }
 0x318   : > { %2648 = vrot.lane.b32.xlu1 %v2561_v7, %s8096_s30  ;;  %2646 = vrot.lane.b32.xlu0 %v2560_v8, %s8096_s30  ;;  %v2754_v8 = vld [vmem:[#allocation2 + $0x143] sm:$0xff] }
 0x31a   : > { %v2279_v15 = vpop.permute.xlu1 %2278  ;;  %v2277_v16 = vpop.permute.xlu0 %2276 }
 0x31b   : > { %2344 = vst.msk [vmem:[#allocation3 + $0xf8] sm:$0xff] %vm2312_vm11, %v2279_v15  ;;  %2343 = vst.msk [vmem:[#allocation3 + $0xf0] sm:$0xff] %vm2312_vm11, %v2277_v16  ;;  %v2755_v15 = vld [vmem:[#allocation2 + $0x153] sm:$0xff]  ;;  %vm4823_vm11 = vcmask 589352  }
 0x31c   : > { %2652 = vrot.lane.b32.xlu1 %v2563_v11, %s8096_s30  ;;  %2650 = vrot.lane.b32.xlu0 %v2562_v14, %s8096_s30  ;;  %v2756_v14 = vld [vmem:[#allocation2 + $0x15b] sm:$0xff] }
 0x31e   : > { %v2412_v40 = vpop.permute.xlu1 %2411  ;;  %v2410_v18 = vpop.permute.xlu0 %2409 }
 0x31f   : > { %2507 = vst.msk [vmem:[#allocation3 + $0x8] sm:$0xff] %vm2505_vm12, %v2412_v40  ;;  %2506 = vst.msk [vmem:[#allocation3] sm:$0xff] %vm2505_vm12, %v2410_v18  ;;  %v2757_v40 = vld [vmem:[#allocation2 + $0x16b] sm:$0xff] }
 0x320   : > { %2656 = vrot.lane.b32.xlu1 %v2565_v17, %s8096_s30  ;;  %2654 = vrot.lane.b32.xlu0 %v2564_v39, %s8096_s30  ;;  %v2758_v39 = vld [vmem:[#allocation2 + $0x173] sm:$0xff] }
 0x322   : > { %v2416_v42 = vpop.permute.xlu1 %2415  ;;  %v2414_v22 = vpop.permute.xlu0 %2413 }
 0x323   : > { %2509 = vst.msk [vmem:[#allocation3 + $0x18] sm:$0xff] %vm2505_vm12, %v2416_v42  ;;  %2508 = vst.msk [vmem:[#allocation3 + $0x10] sm:$0xff] %vm2505_vm12, %v2414_v22  ;;  %v2759_v42 = vld [vmem:[#allocation2 + $0x183] sm:$0xff] }
 0x324   : > { %2660 = vrot.lane.b32.xlu1 %v2567_v19, %s8096_s30  ;;  %2658 = vrot.lane.b32.xlu0 %v2566_v41, %s8096_s30  ;;  %v2760_v41 = vld [vmem:[#allocation2 + $0x18b] sm:$0xff] }
 0x326   : > { %v2420_v44 = vpop.permute.xlu1 %2419  ;;  %v2418_v46 = vpop.permute.xlu0 %2417 }
 0x327   : > { %2511 = vst.msk [vmem:[#allocation3 + $0x28] sm:$0xff] %vm2505_vm12, %v2420_v44  ;;  %2510 = vst.msk [vmem:[#allocation3 + $0x20] sm:$0xff] %vm2505_vm12, %v2418_v46  ;;  %v2761_v44 = vld [vmem:[#allocation2 + $0x19b] sm:$0xff] }
 0x328   : > { %2664 = vrot.lane.b32.xlu1 %v2569_v23, %s8096_s30  ;;  %2662 = vrot.lane.b32.xlu0 %v2568_v43, %s8096_s30  ;;  %v2762_v43 = vld [vmem:[#allocation2 + $0x1a3] sm:$0xff]  ;;  %s217_s30 = scalar_lea.vmem [#allocation10], %s7457_s17 }
 0x32a   : > { %v2424_v52 = vpop.permute.xlu1 %2423  ;;  %v2422_v59 = vpop.permute.xlu0 %2421 }
 0x32b   : > { %2513 = vst.msk [vmem:[#allocation3 + $0x38] sm:$0xff] %vm2505_vm12, %v2424_v52  ;;  %2512 = vst.msk [vmem:[#allocation3 + $0x30] sm:$0xff] %vm2505_vm12, %v2422_v59  ;;  %v2924_v52 = vld [vmem:[#allocation2 + $0x34] sm:$0xff] }
 0x32c   : > { %2797 = vrot.lane.b32.xlu1 %v2732_v48, %s8097_s6  ;;  %2795 = vrot.lane.b32.xlu0 %v2731_v51, %s8097_s6  ;;  %v2925_v51 = vld [vmem:[#allocation2 + $0x3c] sm:$0xff] }
 0x32e   : > { %v2428_v5 = vpop.permute.xlu1 %2427  ;;  %v2426_v12 = vpop.permute.xlu0 %2425 }
 0x32f   : > { %2515 = vst.msk [vmem:[#allocation3 + $0x48] sm:$0xff] %vm2505_vm12, %v2428_v5  ;;  %2514 = vst.msk [vmem:[#allocation3 + $0x40] sm:$0xff] %vm2505_vm12, %v2426_v12  ;;  %v9318_v5 = vld [vmem:[#allocation2 + $0x4c] sm:$0xff] }
 0x330   : > { %2801 = vrot.lane.b32.xlu1 %v2734_v60, %s8097_s6  ;;  %2799 = vrot.lane.b32.xlu0 %v2733_v4, %s8097_s6  ;;  %v9316_v4 = vld [vmem:[#allocation2 + $0x54] sm:$0xff] }
 0x332   : > { %v2432_v21 = vpop.permute.xlu1 %2431  ;;  %v2430_v24 = vpop.permute.xlu0 %2429 }
 0x333   : > { %2517 = vst.msk [vmem:[#allocation3 + $0x58] sm:$0xff] %vm2505_vm12, %v2432_v21  ;;  %2516 = vst.msk [vmem:[#allocation3 + $0x50] sm:$0xff] %vm2505_vm12, %v2430_v24  ;;  %v9328_v21 = vld [vmem:[#allocation2 + $0x64] sm:$0xff] }
 0x334   : > { %2805 = vrot.lane.b32.xlu1 %v2736_v13, %s8097_s6  ;;  %2803 = vrot.lane.b32.xlu0 %v2735_v20, %s8097_s6  ;;  %v9326_v20 = vld [vmem:[#allocation2 + $0x6c] sm:$0xff] }
 0x336   : > { %v2436_v27 = vpop.permute.xlu1 %2435  ;;  %v2434_v28 = vpop.permute.xlu0 %2433 }
 0x337   : > { %2519 = vst.msk [vmem:[#allocation3 + $0x68] sm:$0xff] %vm2505_vm12, %v2436_v27  ;;  %2518 = vst.msk [vmem:[#allocation3 + $0x60] sm:$0xff] %vm2505_vm12, %v2434_v28  ;;  %v2930_v27 = vld [vmem:[#allocation2 + $0x7c] sm:$0xff] }
 0x338   : > { %2809 = vrot.lane.b32.xlu1 %v2738_v25, %s8097_s6  ;;  %2807 = vrot.lane.b32.xlu0 %v2737_v26, %s8097_s6  ;;  %v2931_v26 = vld [vmem:[#allocation2 + $0x84] sm:$0xff] }
 0x33a   : > { %v2440_v31 = vpop.permute.xlu1 %2439  ;;  %v2438_v32 = vpop.permute.xlu0 %2437 }
 0x33b   : > { %2521 = vst.msk [vmem:[#allocation3 + $0x78] sm:$0xff] %vm2505_vm12, %v2440_v31  ;;  %2520 = vst.msk [vmem:[#allocation3 + $0x70] sm:$0xff] %vm2505_vm12, %v2438_v32  ;;  %v2932_v31 = vld [vmem:[#allocation2 + $0x94] sm:$0xff] }
 0x33c   : > { %2813 = vrot.lane.b32.xlu1 %v2740_v29, %s8097_s6  ;;  %2811 = vrot.lane.b32.xlu0 %v2739_v30, %s8097_s6  ;;  %v2933_v30 = vld [vmem:[#allocation2 + $0x9c] sm:$0xff] }
 0x33e   : > { %v2444_v35 = vpop.permute.xlu1 %2443  ;;  %v2442_v36 = vpop.permute.xlu0 %2441 }
 0x33f   : > { %2523 = vst.msk [vmem:[#allocation3 + $0x88] sm:$0xff] %vm2505_vm12, %v2444_v35  ;;  %2522 = vst.msk [vmem:[#allocation3 + $0x80] sm:$0xff] %vm2505_vm12, %v2442_v36  ;;  %v2934_v35 = vld [vmem:[#allocation2 + $0xac] sm:$0xff] }
 0x340   : > { %2817 = vrot.lane.b32.xlu1 %v2742_v33, %s8097_s6  ;;  %2815 = vrot.lane.b32.xlu0 %v2741_v34, %s8097_s6  ;;  %v2935_v34 = vld [vmem:[#allocation2 + $0xb4] sm:$0xff] }
 0x342   : > { %v2448_v45 = vpop.permute.xlu1 %2447  ;;  %v2446_v47 = vpop.permute.xlu0 %2445 }
 0x343   : > { %2525 = vst.msk [vmem:[#allocation3 + $0x98] sm:$0xff] %vm2505_vm12, %v2448_v45  ;;  %2524 = vst.msk [vmem:[#allocation3 + $0x90] sm:$0xff] %vm2505_vm12, %v2446_v47  ;;  %v2936_v45 = vld [vmem:[#allocation2 + $0xc4] sm:$0xff] }
 0x344   : > { %2821 = vrot.lane.b32.xlu1 %v2744_v37, %s8097_s6  ;;  %2819 = vrot.lane.b32.xlu0 %v2743_v38, %s8097_s6  ;;  %v2937_v38 = vld [vmem:[#allocation2 + $0xcc] sm:$0xff] }
 0x346   : > { %v2452_v53 = vpop.permute.xlu1 %2451  ;;  %v2450_v54 = vpop.permute.xlu0 %2449 }
 0x347   : > { %2527 = vst.msk [vmem:[#allocation3 + $0xa8] sm:$0xff] %vm2505_vm12, %v2452_v53  ;;  %2526 = vst.msk [vmem:[#allocation3 + $0xa0] sm:$0xff] %vm2505_vm12, %v2450_v54  ;;  %v2938_v53 = vld [vmem:[#allocation2 + $0xdc] sm:$0xff] }
 0x348   : > { %2825 = vrot.lane.b32.xlu1 %v2746_v49, %s8097_s6  ;;  %2823 = vrot.lane.b32.xlu0 %v2745_v50, %s8097_s6  ;;  %v2939_v50 = vld [vmem:[#allocation2 + $0xe4] sm:$0xff] }
 0x34a   : > { %v2456_v57 = vpop.permute.xlu1 %2455  ;;  %v2454_v58 = vpop.permute.xlu0 %2453 }
 0x34b   : > { %2529 = vst.msk [vmem:[#allocation3 + $0xb8] sm:$0xff] %vm2505_vm12, %v2456_v57  ;;  %2528 = vst.msk [vmem:[#allocation3 + $0xb0] sm:$0xff] %vm2505_vm12, %v2454_v58  ;;  %v2940_v57 = vld [vmem:[#allocation2 + $0xf4] sm:$0xff] }
 0x34c   : > { %2829 = vrot.lane.b32.xlu1 %v2748_v55, %s8097_s6  ;;  %2827 = vrot.lane.b32.xlu0 %v2747_v56, %s8097_s6  ;;  %v2941_v56 = vld [vmem:[#allocation2 + $0xfc] sm:$0xff] }
 0x34e   : > { %v2460_v63 = vpop.permute.xlu1 %2459  ;;  %v2458_v1 = vpop.permute.xlu0 %2457 }
 0x34f   : > { %2531 = vst.msk [vmem:[#allocation3 + $0xc8] sm:$0xff] %vm2505_vm12, %v2460_v63  ;;  %2530 = vst.msk [vmem:[#allocation3 + $0xc0] sm:$0xff] %vm2505_vm12, %v2458_v1  ;;  %v2942_v63 = vld [vmem:[#allocation2 + $0x10c] sm:$0xff] }
 0x350   : > { %2833 = vrot.lane.b32.xlu1 %v2750_v61, %s8097_s6  ;;  %2831 = vrot.lane.b32.xlu0 %v2749_v62, %s8097_s6  ;;  %v2943_v62 = vld [vmem:[#allocation2 + $0x114] sm:$0xff] }
 0x352   : > { %v2464_v6 = vpop.permute.xlu1 %2463  ;;  %v2462_v7 = vpop.permute.xlu0 %2461 }
 0x353   : > { %2533 = vst.msk [vmem:[#allocation3 + $0xd8] sm:$0xff] %vm2505_vm12, %v2464_v6  ;;  %2532 = vst.msk [vmem:[#allocation3 + $0xd0] sm:$0xff] %vm2505_vm12, %v2462_v7  ;;  %v2944_v6 = vld [vmem:[#allocation2 + $0x124] sm:$0xff] }
 0x354   : > { %2837 = vrot.lane.b32.xlu1 %v2752_v2, %s8097_s6  ;;  %2835 = vrot.lane.b32.xlu0 %v2751_v3, %s8097_s6  ;;  %v2945_v3 = vld [vmem:[#allocation2 + $0x12c] sm:$0xff] }
 0x356   : > { %v2468_v10 = vpop.permute.xlu1 %2467  ;;  %v2466_v11 = vpop.permute.xlu0 %2465 }
 0x357   : > { %2535 = vst.msk [vmem:[#allocation3 + $0xe8] sm:$0xff] %vm2505_vm12, %v2468_v10  ;;  %2534 = vst.msk [vmem:[#allocation3 + $0xe0] sm:$0xff] %vm2505_vm12, %v2466_v11  ;;  %v2946_v10 = vld [vmem:[#allocation2 + $0x13c] sm:$0xff] }
 0x358   : > { %2841 = vrot.lane.b32.xlu1 %v2754_v8, %s8097_s6  ;;  %2839 = vrot.lane.b32.xlu0 %v2753_v9, %s8097_s6  ;;  %v2947_v9 = vld [vmem:[#allocation2 + $0x144] sm:$0xff] }
 0x35a   : > { %v2472_v16 = vpop.permute.xlu1 %2471  ;;  %v2470_v17 = vpop.permute.xlu0 %2469 }
 0x35b   : > { %2537 = vst.msk [vmem:[#allocation3 + $0xf8] sm:$0xff] %vm2505_vm12, %v2472_v16  ;;  %2536 = vst.msk [vmem:[#allocation3 + $0xf0] sm:$0xff] %vm2505_vm12, %v2470_v17  ;;  %v2948_v16 = vld [vmem:[#allocation2 + $0x154] sm:$0xff]  ;;  %vm5016_vm12 = vcmask 613952  }
 0x35c   : > { %2845 = vrot.lane.b32.xlu1 %v2756_v14, %s8097_s6  ;;  %2843 = vrot.lane.b32.xlu0 %v2755_v15, %s8097_s6  ;;  %v2949_v15 = vld [vmem:[#allocation2 + $0x15c] sm:$0xff] }
 0x35e   : > { %v2605_v18 = vpop.permute.xlu1 %2604  ;;  %v2603_v19 = vpop.permute.xlu0 %2602 }
 0x35f   : > { %2700 = vst.msk [vmem:[#allocation3 + $0x8] sm:$0xff] %vm2698_vm13, %v2605_v18  ;;  %2699 = vst.msk [vmem:[#allocation3] sm:$0xff] %vm2698_vm13, %v2603_v19  ;;  %v2950_v18 = vld [vmem:[#allocation2 + $0x16c] sm:$0xff] }
 0x360   : > { %2849 = vrot.lane.b32.xlu1 %v2758_v39, %s8097_s6  ;;  %2847 = vrot.lane.b32.xlu0 %v2757_v40, %s8097_s6  ;;  %v2951_v40 = vld [vmem:[#allocation2 + $0x174] sm:$0xff] }
 0x362   : > { %v2609_v22 = vpop.permute.xlu1 %2608  ;;  %v2607_v23 = vpop.permute.xlu0 %2606 }
 0x363   : > { %2702 = vst.msk [vmem:[#allocation3 + $0x18] sm:$0xff] %vm2698_vm13, %v2609_v22  ;;  %2701 = vst.msk [vmem:[#allocation3 + $0x10] sm:$0xff] %vm2698_vm13, %v2607_v23  ;;  %v2952_v22 = vld [vmem:[#allocation2 + $0x184] sm:$0xff] }
 0x364   : > { %2853 = vrot.lane.b32.xlu1 %v2760_v41, %s8097_s6  ;;  %2851 = vrot.lane.b32.xlu0 %v2759_v42, %s8097_s6  ;;  %v2953_v42 = vld [vmem:[#allocation2 + $0x18c] sm:$0xff] }
 0x366   : > { %v2613_v46 = vpop.permute.xlu1 %2612  ;;  %v2611_v48 = vpop.permute.xlu0 %2610 }
 0x367   : > { %2704 = vst.msk [vmem:[#allocation3 + $0x28] sm:$0xff] %vm2698_vm13, %v2613_v46  ;;  %2703 = vst.msk [vmem:[#allocation3 + $0x20] sm:$0xff] %vm2698_vm13, %v2611_v48  ;;  %v2954_v46 = vld [vmem:[#allocation2 + $0x19c] sm:$0xff] }
 0x368   : > { %2857 = vrot.lane.b32.xlu1 %v2762_v43, %s8097_s6  ;;  %2855 = vrot.lane.b32.xlu0 %v2761_v44, %s8097_s6  ;;  %v2955_v44 = vld [vmem:[#allocation2 + $0x1a4] sm:$0xff]  ;;  %s7394_s6 = sshll.u32 %s217_s30, 4  ;;  %s11390_s6 = int_to_ptr.vmem [resolvable:$true] %s7394_s6 }
 0x36a   : > { %v2617_v59 = vpop.permute.xlu1 %2616  ;;  %v2615_v60 = vpop.permute.xlu0 %2614 }
 0x36b   : > { %2706 = vst.msk [vmem:[#allocation3 + $0x38] sm:$0xff] %vm2698_vm13, %v2617_v59  ;;  %2705 = vst.msk [vmem:[#allocation3 + $0x30] sm:$0xff] %vm2698_vm13, %v2615_v60  ;;  %v3118_v59 = vld [vmem:[#allocation2 + $0x48] sm:$0xff] }
 0x36c   : > { %2990 = vrot.lane.b32.xlu1 %v2925_v51, %s8098_s7  ;;  %2988 = vrot.lane.b32.xlu0 %v2924_v52, %s8098_s7  ;;  %v3119_v52 = vld [vmem:[#allocation2 + $0x50] sm:$0xff] }
 0x36e   : > { %v2621_v12 = vpop.permute.xlu1 %2620  ;;  %v2619_v13 = vpop.permute.xlu0 %2618 }
 0x36f   : > { %2708 = vst.msk [vmem:[#allocation3 + $0x48] sm:$0xff] %vm2698_vm13, %v2621_v12  ;;  %2707 = vst.msk [vmem:[#allocation3 + $0x40] sm:$0xff] %vm2698_vm13, %v2619_v13  ;;  %v9392_v13 = vld [vmem:[#allocation2 + $0x68] sm:$0xff] }
 0x370   : > { %2994 = vrot.lane.b32.xlu1 %v9316_v4, %s8098_s7  ;;  %2992 = vrot.lane.b32.xlu0 %v9318_v5, %s8098_s7 }
 0x372   : > { %v2625_v24 = vpop.permute.xlu1 %2624  ;;  %v2623_v25 = vpop.permute.xlu0 %2622 }
 0x373   : > { %2710 = vst.msk [vmem:[#allocation3 + $0x58] sm:$0xff] %vm2698_vm13, %v2625_v24  ;;  %2709 = vst.msk [vmem:[#allocation3 + $0x50] sm:$0xff] %vm2698_vm13, %v2623_v25  ;;  %v9394_v24 = vld [vmem:[#allocation2 + $0x60] sm:$0xff] }
 0x374   : > { %2998 = vrot.lane.b32.xlu1 %v9326_v20, %s8098_s7  ;;  %2996 = vrot.lane.b32.xlu0 %v9328_v21, %s8098_s7 }
 0x376   : > { %v2629_v28 = vpop.permute.xlu1 %2628  ;;  %v2627_v29 = vpop.permute.xlu0 %2626 }
 0x377   : > { %2712 = vst.msk [vmem:[#allocation3 + $0x68] sm:$0xff] %vm2698_vm13, %v2629_v28  ;;  %2711 = vst.msk [vmem:[#allocation3 + $0x60] sm:$0xff] %vm2698_vm13, %v2627_v29  ;;  %v9404_v28 = vld [vmem:[#allocation2 + $0x78] sm:$0xff] }
 0x378   : > { %3002 = vrot.lane.b32.xlu1 %v2931_v26, %s8098_s7  ;;  %3000 = vrot.lane.b32.xlu0 %v2930_v27, %s8098_s7  ;;  %v9402_v27 = vld [vmem:[#allocation2 + $0x80] sm:$0xff] }
 0x37a   : > { %v2633_v32 = vpop.permute.xlu1 %2632  ;;  %v2631_v33 = vpop.permute.xlu0 %2630 }
 0x37b   : > { %2714 = vst.msk [vmem:[#allocation3 + $0x78] sm:$0xff] %vm2698_vm13, %v2633_v32  ;;  %2713 = vst.msk [vmem:[#allocation3 + $0x70] sm:$0xff] %vm2698_vm13, %v2631_v33  ;;  %v9414_v32 = vld [vmem:[#allocation2 + $0x90] sm:$0xff] }
 0x37c   : > { %3006 = vrot.lane.b32.xlu1 %v2933_v30, %s8098_s7  ;;  %3004 = vrot.lane.b32.xlu0 %v2932_v31, %s8098_s7  ;;  %v9412_v31 = vld [vmem:[#allocation2 + $0x98] sm:$0xff] }
 0x37e   : > { %v2637_v36 = vpop.permute.xlu1 %2636  ;;  %v2635_v37 = vpop.permute.xlu0 %2634 }
 0x37f   : > { %2716 = vst.msk [vmem:[#allocation3 + $0x88] sm:$0xff] %vm2698_vm13, %v2637_v36  ;;  %2715 = vst.msk [vmem:[#allocation3 + $0x80] sm:$0xff] %vm2698_vm13, %v2635_v37  ;;  %v9424_v36 = vld [vmem:[#allocation2 + $0xa8] sm:$0xff] }
 0x380   : > { %3010 = vrot.lane.b32.xlu1 %v2935_v34, %s8098_s7  ;;  %3008 = vrot.lane.b32.xlu0 %v2934_v35, %s8098_s7  ;;  %v9422_v35 = vld [vmem:[#allocation2 + $0xb0] sm:$0xff] }
 0x382   : > { %v2641_v47 = vpop.permute.xlu1 %2640  ;;  %v2639_v49 = vpop.permute.xlu0 %2638 }
 0x383   : > { %2718 = vst.msk [vmem:[#allocation3 + $0x98] sm:$0xff] %vm2698_vm13, %v2641_v47  ;;  %2717 = vst.msk [vmem:[#allocation3 + $0x90] sm:$0xff] %vm2698_vm13, %v2639_v49  ;;  %v9434_v47 = vld [vmem:[#allocation2 + $0xc0] sm:$0xff] }
 0x384   : > { %3014 = vrot.lane.b32.xlu1 %v2937_v38, %s8098_s7  ;;  %3012 = vrot.lane.b32.xlu0 %v2936_v45, %s8098_s7  ;;  %v9432_v45 = vld [vmem:[#allocation2 + $0xc8] sm:$0xff] }
 0x386   : > { %v2645_v54 = vpop.permute.xlu1 %2644  ;;  %v2643_v55 = vpop.permute.xlu0 %2642 }
 0x387   : > { %2720 = vst.msk [vmem:[#allocation3 + $0xa8] sm:$0xff] %vm2698_vm13, %v2645_v54  ;;  %2719 = vst.msk [vmem:[#allocation3 + $0xa0] sm:$0xff] %vm2698_vm13, %v2643_v55  ;;  %v3130_v54 = vld [vmem:[#allocation2 + $0xd8] sm:$0xff] }
 0x388   : > { %3018 = vrot.lane.b32.xlu1 %v2939_v50, %s8098_s7  ;;  %3016 = vrot.lane.b32.xlu0 %v2938_v53, %s8098_s7  ;;  %v3131_v53 = vld [vmem:[#allocation2 + $0xe0] sm:$0xff] }
 0x38a   : > { %v2649_v58 = vpop.permute.xlu1 %2648  ;;  %v2647_v61 = vpop.permute.xlu0 %2646 }
 0x38b   : > { %2722 = vst.msk [vmem:[#allocation3 + $0xb8] sm:$0xff] %vm2698_vm13, %v2649_v58  ;;  %2721 = vst.msk [vmem:[#allocation3 + $0xb0] sm:$0xff] %vm2698_vm13, %v2647_v61  ;;  %v3132_v58 = vld [vmem:[#allocation2 + $0xf0] sm:$0xff] }
 0x38c   : > { %3022 = vrot.lane.b32.xlu1 %v2941_v56, %s8098_s7  ;;  %3020 = vrot.lane.b32.xlu0 %v2940_v57, %s8098_s7  ;;  %v3133_v57 = vld [vmem:[#allocation2 + $0xf8] sm:$0xff] }
 0x38e   : > { %v2653_v1 = vpop.permute.xlu1 %2652  ;;  %v2651_v2 = vpop.permute.xlu0 %2650 }
 0x38f   : > { %2724 = vst.msk [vmem:[#allocation3 + $0xc8] sm:$0xff] %vm2698_vm13, %v2653_v1  ;;  %2723 = vst.msk [vmem:[#allocation3 + $0xc0] sm:$0xff] %vm2698_vm13, %v2651_v2  ;;  %v3134_v1 = vld [vmem:[#allocation2 + $0x108] sm:$0xff] }
 0x390   : > { %3026 = vrot.lane.b32.xlu1 %v2943_v62, %s8098_s7  ;;  %3024 = vrot.lane.b32.xlu0 %v2942_v63, %s8098_s7  ;;  %v3135_v63 = vld [vmem:[#allocation2 + $0x110] sm:$0xff] }
 0x392   : > { %v2657_v7 = vpop.permute.xlu1 %2656  ;;  %v2655_v8 = vpop.permute.xlu0 %2654 }
 0x393   : > { %2726 = vst.msk [vmem:[#allocation3 + $0xd8] sm:$0xff] %vm2698_vm13, %v2657_v7  ;;  %2725 = vst.msk [vmem:[#allocation3 + $0xd0] sm:$0xff] %vm2698_vm13, %v2655_v8  ;;  %v3136_v7 = vld [vmem:[#allocation2 + $0x120] sm:$0xff] }
 0x394   : > { %3030 = vrot.lane.b32.xlu1 %v2945_v3, %s8098_s7  ;;  %3028 = vrot.lane.b32.xlu0 %v2944_v6, %s8098_s7  ;;  %v3137_v6 = vld [vmem:[#allocation2 + $0x128] sm:$0xff] }
 0x396   : > { %v2661_v11 = vpop.permute.xlu1 %2660  ;;  %v2659_v14 = vpop.permute.xlu0 %2658 }
 0x397   : > { %2728 = vst.msk [vmem:[#allocation3 + $0xe8] sm:$0xff] %vm2698_vm13, %v2661_v11  ;;  %2727 = vst.msk [vmem:[#allocation3 + $0xe0] sm:$0xff] %vm2698_vm13, %v2659_v14  ;;  %v3138_v11 = vld [vmem:[#allocation2 + $0x138] sm:$0xff] }
 0x398   : > { %3034 = vrot.lane.b32.xlu1 %v2947_v9, %s8098_s7  ;;  %3032 = vrot.lane.b32.xlu0 %v2946_v10, %s8098_s7  ;;  %v3139_v10 = vld [vmem:[#allocation2 + $0x140] sm:$0xff] }
 0x39a   : > { %v2665_v17 = vpop.permute.xlu1 %2664  ;;  %v2663_v39 = vpop.permute.xlu0 %2662 }
 0x39b   : > { %2730 = vst.msk [vmem:[#allocation3 + $0xf8] sm:$0xff] %vm2698_vm13, %v2665_v17  ;;  %2729 = vst.msk [vmem:[#allocation3 + $0xf0] sm:$0xff] %vm2698_vm13, %v2663_v39  ;;  %v3140_v17 = vld [vmem:[#allocation2 + $0x150] sm:$0xff]  ;;  %vm5098_vm13 = vcmask 613376  }
 0x39c   : > { %3038 = vrot.lane.b32.xlu1 %v2949_v15, %s8098_s7  ;;  %3036 = vrot.lane.b32.xlu0 %v2948_v16, %s8098_s7  ;;  %v3141_v16 = vld [vmem:[#allocation2 + $0x158] sm:$0xff] }
 0x39e   : > { %v2798_v19 = vpop.permute.xlu1 %2797  ;;  %v2796_v41 = vpop.permute.xlu0 %2795 }
 0x39f   : > { %2893 = vst.msk [vmem:[#allocation3 + $0x8] sm:$0xff] %vm2891_vm14, %v2798_v19  ;;  %2892 = vst.msk [vmem:[#allocation3] sm:$0xff] %vm2891_vm14, %v2796_v41  ;;  %v3142_v19 = vld [vmem:[#allocation2 + $0x168] sm:$0xff] }
 0x3a0   : > { %3042 = vrot.lane.b32.xlu1 %v2951_v40, %s8098_s7  ;;  %3040 = vrot.lane.b32.xlu0 %v2950_v18, %s8098_s7  ;;  %v3143_v18 = vld [vmem:[#allocation2 + $0x170] sm:$0xff] }
 0x3a2   : > { %v2802_v23 = vpop.permute.xlu1 %2801  ;;  %v2800_v43 = vpop.permute.xlu0 %2799 }
 0x3a3   : > { %2895 = vst.msk [vmem:[#allocation3 + $0x18] sm:$0xff] %vm2891_vm14, %v2802_v23  ;;  %2894 = vst.msk [vmem:[#allocation3 + $0x10] sm:$0xff] %vm2891_vm14, %v2800_v43  ;;  %v3144_v23 = vld [vmem:[#allocation2 + $0x180] sm:$0xff] }
 0x3a4   : > { %3046 = vrot.lane.b32.xlu1 %v2953_v42, %s8098_s7  ;;  %3044 = vrot.lane.b32.xlu0 %v2952_v22, %s8098_s7  ;;  %v3145_v22 = vld [vmem:[#allocation2 + $0x188] sm:$0xff] }
 0x3a6   : > { %v2806_v48 = vpop.permute.xlu1 %2805  ;;  %v2804_v51 = vpop.permute.xlu0 %2803 }
 0x3a7   : > { %2897 = vst.msk [vmem:[#allocation3 + $0x28] sm:$0xff] %vm2891_vm14, %v2806_v48  ;;  %2896 = vst.msk [vmem:[#allocation3 + $0x20] sm:$0xff] %vm2891_vm14, %v2804_v51  ;;  %v3146_v48 = vld [vmem:[#allocation2 + $0x198] sm:$0xff] }
 0x3a8   : > { %3050 = vrot.lane.b32.xlu1 %v2955_v44, %s8098_s7  ;;  %3048 = vrot.lane.b32.xlu0 %v2954_v46, %s8098_s7  ;;  %v3147_v46 = vld [vmem:[#allocation2 + $0x1a0] sm:$0xff] }
 0x3aa   : > { %v2810_v60 = vpop.permute.xlu1 %2809  ;;  %v2808_v12 = vpop.permute.xlu0 %2807 }
 0x3ab   : > { %2899 = vst.msk [vmem:[#allocation3 + $0x38] sm:$0xff] %vm2891_vm14, %v2810_v60  ;;  %2898 = vst.msk [vmem:[#allocation3 + $0x30] sm:$0xff] %vm2891_vm14, %v2808_v12  ;;  %v3148_v60 = vld [vmem:[#allocation2 + $0x1b0] sm:$0xff] }
 0x3ac   : > { %3184 = vrot.lane.b32.xlu1 %v3119_v52, %s8099_s8  ;;  %3182 = vrot.lane.b32.xlu0 %v3118_v59, %s8099_s8  ;;  %v3149_v59 = vld [vmem:[#allocation2 + $0x1b8] sm:$0xff] }
 0x3ae   : > { %v2814_v25 = vpop.permute.xlu1 %2813  ;;  %v2812_v26 = vpop.permute.xlu0 %2811 }
 0x3af   : > { %2901 = vst.msk [vmem:[#allocation3 + $0x48] sm:$0xff] %vm2891_vm14, %v2814_v25  ;;  %2900 = vst.msk [vmem:[#allocation3 + $0x40] sm:$0xff] %vm2891_vm14, %v2812_v26  ;;  %v3312_v26 = vld [vmem:[#allocation2 + $0x51] sm:$0xff] }
 0x3b0   : > { %3188 = vrot.lane.b32.xlu1 %v9392_v13, %s8099_s8  ;;  %3186 = vrot.lane.b32.xlu0 %v9394_v24, %s8099_s8 }
 0x3b2   : > { %v2818_v29 = vpop.permute.xlu1 %2817  ;;  %v2816_v30 = vpop.permute.xlu0 %2815 }
 0x3b3   : > { %2903 = vst.msk [vmem:[#allocation3 + $0x58] sm:$0xff] %vm2891_vm14, %v2818_v29  ;;  %2902 = vst.msk [vmem:[#allocation3 + $0x50] sm:$0xff] %vm2891_vm14, %v2816_v30  ;;  %v3311_v29 = vld [vmem:[#allocation2 + $0x49] sm:$0xff] }
 0x3b4   : > { %3192 = vrot.lane.b32.xlu1 %v9402_v27, %s8099_s8  ;;  %3190 = vrot.lane.b32.xlu0 %v9404_v28, %s8099_s8 }
 0x3b6   : > { %v2822_v33 = vpop.permute.xlu1 %2821  ;;  %v2820_v34 = vpop.permute.xlu0 %2819 }
 0x3b7   : > { %2905 = vst.msk [vmem:[#allocation3 + $0x68] sm:$0xff] %vm2891_vm14, %v2822_v33  ;;  %2904 = vst.msk [vmem:[#allocation3 + $0x60] sm:$0xff] %vm2891_vm14, %v2820_v34  ;;  %v9486_v34 = vld [vmem:[#allocation2 + $0x69] sm:$0xff] }
 0x3b8   : > { %3196 = vrot.lane.b32.xlu1 %v9412_v31, %s8099_s8  ;;  %3194 = vrot.lane.b32.xlu0 %v9414_v32, %s8099_s8 }
 0x3ba   : > { %v2826_v37 = vpop.permute.xlu1 %2825  ;;  %v2824_v38 = vpop.permute.xlu0 %2823 }
 0x3bb   : > { %2907 = vst.msk [vmem:[#allocation3 + $0x78] sm:$0xff] %vm2891_vm14, %v2826_v37  ;;  %2906 = vst.msk [vmem:[#allocation3 + $0x70] sm:$0xff] %vm2891_vm14, %v2824_v38  ;;  %v9488_v37 = vld [vmem:[#allocation2 + $0x61] sm:$0xff] }
 0x3bc   : > { %3200 = vrot.lane.b32.xlu1 %v9422_v35, %s8099_s8  ;;  %3198 = vrot.lane.b32.xlu0 %v9424_v36, %s8099_s8 }
 0x3be   : > { %v2830_v49 = vpop.permute.xlu1 %2829  ;;  %v2828_v50 = vpop.permute.xlu0 %2827 }
 0x3bf   : > { %2909 = vst.msk [vmem:[#allocation3 + $0x88] sm:$0xff] %vm2891_vm14, %v2830_v49  ;;  %2908 = vst.msk [vmem:[#allocation3 + $0x80] sm:$0xff] %vm2891_vm14, %v2828_v50  ;;  %v9496_v50 = vld [vmem:[#allocation2 + $0x81] sm:$0xff] }
 0x3c0   : > { %3204 = vrot.lane.b32.xlu1 %v9432_v45, %s8099_s8  ;;  %3202 = vrot.lane.b32.xlu0 %v9434_v47, %s8099_s8 }
 0x3c2   : > { %v2834_v55 = vpop.permute.xlu1 %2833  ;;  %v2832_v56 = vpop.permute.xlu0 %2831 }
 0x3c3   : > { %2911 = vst.msk [vmem:[#allocation3 + $0x98] sm:$0xff] %vm2891_vm14, %v2834_v55  ;;  %2910 = vst.msk [vmem:[#allocation3 + $0x90] sm:$0xff] %vm2891_vm14, %v2832_v56  ;;  %v9506_v56 = vld [vmem:[#allocation2 + $0x99] sm:$0xff] }
 0x3c4   : > { %3208 = vrot.lane.b32.xlu1 %v3131_v53, %s8099_s8  ;;  %3206 = vrot.lane.b32.xlu0 %v3130_v54, %s8099_s8  ;;  %v9498_v53 = vld [vmem:[#allocation2 + $0x79] sm:$0xff] }
 0x3c6   : > { %v2838_v61 = vpop.permute.xlu1 %2837  ;;  %v2836_v62 = vpop.permute.xlu0 %2835 }
 0x3c7   : > { %2913 = vst.msk [vmem:[#allocation3 + $0xa8] sm:$0xff] %vm2891_vm14, %v2838_v61  ;;  %2912 = vst.msk [vmem:[#allocation3 + $0xa0] sm:$0xff] %vm2891_vm14, %v2836_v62  ;;  %v9516_v62 = vld [vmem:[#allocation2 + $0xb1] sm:$0xff] }
 0x3c8   : > { %3212 = vrot.lane.b32.xlu1 %v3133_v57, %s8099_s8  ;;  %3210 = vrot.lane.b32.xlu0 %v3132_v58, %s8099_s8  ;;  %v9508_v57 = vld [vmem:[#allocation2 + $0x91] sm:$0xff] }
 0x3ca   : > { %v2842_v2 = vpop.permute.xlu1 %2841  ;;  %v2840_v3 = vpop.permute.xlu0 %2839 }
 0x3cb   : > { %2915 = vst.msk [vmem:[#allocation3 + $0xb8] sm:$0xff] %vm2891_vm14, %v2842_v2  ;;  %2914 = vst.msk [vmem:[#allocation3 + $0xb0] sm:$0xff] %vm2891_vm14, %v2840_v3  ;;  %v9526_v3 = vld [vmem:[#allocation2 + $0xc9] sm:$0xff] }
 0x3cc   : > { %3216 = vrot.lane.b32.xlu1 %v3135_v63, %s8099_s8  ;;  %3214 = vrot.lane.b32.xlu0 %v3134_v1, %s8099_s8  ;;  %v9518_v63 = vld [vmem:[#allocation2 + $0xa9] sm:$0xff] }
 0x3ce   : > { %v2846_v8 = vpop.permute.xlu1 %2845  ;;  %v2844_v9 = vpop.permute.xlu0 %2843 }
 0x3cf   : > { %2917 = vst.msk [vmem:[#allocation3 + $0xc8] sm:$0xff] %vm2891_vm14, %v2846_v8  ;;  %2916 = vst.msk [vmem:[#allocation3 + $0xc0] sm:$0xff] %vm2891_vm14, %v2844_v9  ;;  %v9536_v9 = vld [vmem:[#allocation2 + $0xe1] sm:$0xff] }
 0x3d0   : > { %3220 = vrot.lane.b32.xlu1 %v3137_v6, %s8099_s8  ;;  %3218 = vrot.lane.b32.xlu0 %v3136_v7, %s8099_s8  ;;  %v9528_v6 = vld [vmem:[#allocation2 + $0xc1] sm:$0xff] }
 0x3d2   : > { %v2850_v14 = vpop.permute.xlu1 %2849  ;;  %v2848_v15 = vpop.permute.xlu0 %2847 }
 0x3d3   : > { %2919 = vst.msk [vmem:[#allocation3 + $0xd8] sm:$0xff] %vm2891_vm14, %v2850_v14  ;;  %2918 = vst.msk [vmem:[#allocation3 + $0xd0] sm:$0xff] %vm2891_vm14, %v2848_v15  ;;  %v3326_v15 = vld [vmem:[#allocation2 + $0xf9] sm:$0xff] }
 0x3d4   : > { %3224 = vrot.lane.b32.xlu1 %v3139_v10, %s8099_s8  ;;  %3222 = vrot.lane.b32.xlu0 %v3138_v11, %s8099_s8  ;;  %v9538_v10 = vld [vmem:[#allocation2 + $0xd9] sm:$0xff] }
 0x3d6   : > { %v2854_v39 = vpop.permute.xlu1 %2853  ;;  %v2852_v40 = vpop.permute.xlu0 %2851 }
 0x3d7   : > { %2921 = vst.msk [vmem:[#allocation3 + $0xe8] sm:$0xff] %vm2891_vm14, %v2854_v39  ;;  %2920 = vst.msk [vmem:[#allocation3 + $0xe0] sm:$0xff] %vm2891_vm14, %v2852_v40  ;;  %v3328_v40 = vld [vmem:[#allocation2 + $0x111] sm:$0xff] }
 0x3d8   : > { %3228 = vrot.lane.b32.xlu1 %v3141_v16, %s8099_s8  ;;  %3226 = vrot.lane.b32.xlu0 %v3140_v17, %s8099_s8  ;;  %v3325_v16 = vld [vmem:[#allocation2 + $0xf1] sm:$0xff] }
 0x3da   : > { %v2858_v41 = vpop.permute.xlu1 %2857  ;;  %v2856_v42 = vpop.permute.xlu0 %2855 }
 0x3db   : > { %2923 = vst.msk [vmem:[#allocation3 + $0xf8] sm:$0xff] %vm2891_vm14, %v2858_v41  ;;  %2922 = vst.msk [vmem:[#allocation3 + $0xf0] sm:$0xff] %vm2891_vm14, %v2856_v42  ;;  %v3330_v42 = vld [vmem:[#allocation2 + $0x129] sm:$0xff]  ;;  %vm5456_vm14 = vcmask 261120  }
 0x3dc   : > { %3232 = vrot.lane.b32.xlu1 %v3143_v18, %s8099_s8  ;;  %3230 = vrot.lane.b32.xlu0 %v3142_v19, %s8099_s8  ;;  %v3327_v18 = vld [vmem:[#allocation2 + $0x109] sm:$0xff]  ;;  %5593 = vst.msk [vmem:[#allocation6] sm:$0xff] %vm5456_vm14, %v8084_v0  ;;  %5596 = vst.msk [vmem:[#allocation6 + $0x10] sm:$0xff] %vm5456_vm14, %v8084_v0 }
 0x3dd   : > { %5598 = vst.msk [vmem:[#allocation6 + $0x20] sm:$0xff] %vm5456_vm14, %v8084_v0  ;;  %5600 = vst.msk [vmem:[#allocation6 + $0x30] sm:$0xff] %vm5456_vm14, %v8084_v0 }
 0x3de   : > { %v2991_v43 = vpop.permute.xlu1 %2990  ;;  %v2989_v44 = vpop.permute.xlu0 %2988  ;;  %5602 = vst.msk [vmem:[#allocation6 + $0x40] sm:$0xff] %vm5456_vm14, %v8084_v0  ;;  %5604 = vst.msk [vmem:[#allocation6 + $0x50] sm:$0xff] %vm5456_vm14, %v8084_v0 }
 0x3df   : > { %3086 = vst.msk [vmem:[#allocation3 + $0x8] sm:$0xff] %vm3084_vm15, %v2991_v43  ;;  %3085 = vst.msk [vmem:[#allocation3] sm:$0xff] %vm3084_vm15, %v2989_v44  ;;  %v3332_v44 = vld [vmem:[#allocation2 + $0x141] sm:$0xff] }
 0x3e0   : > { %3236 = vrot.lane.b32.xlu1 %v3145_v22, %s8099_s8  ;;  %3234 = vrot.lane.b32.xlu0 %v3144_v23, %s8099_s8  ;;  %v3329_v22 = vld [vmem:[#allocation2 + $0x121] sm:$0xff]  ;;  %5606 = vst.msk [vmem:[#allocation6 + $0x60] sm:$0xff] %vm5456_vm14, %v8084_v0  ;;  %5608 = vst.msk [vmem:[#allocation6 + $0x70] sm:$0xff] %vm5456_vm14, %v8084_v0 }
 0x3e1   : > { %5610 = vst.msk [vmem:[#allocation6 + $0x80] sm:$0xff] %vm5456_vm14, %v8084_v0  ;;  %5612 = vst.msk [vmem:[#allocation6 + $0x90] sm:$0xff] %vm5456_vm14, %v8084_v0 }
 0x3e2   : > { %v2995_v51 = vpop.permute.xlu1 %2994  ;;  %v2993_v52 = vpop.permute.xlu0 %2992  ;;  %5614 = vst.msk [vmem:[#allocation6 + $0xa0] sm:$0xff] %vm5456_vm14, %v8084_v0  ;;  %5616 = vst.msk [vmem:[#allocation6 + $0xb0] sm:$0xff] %vm5456_vm14, %v8084_v0 }
 0x3e3   : > { %3088 = vst.msk [vmem:[#allocation3 + $0x18] sm:$0xff] %vm3084_vm15, %v2995_v51  ;;  %3087 = vst.msk [vmem:[#allocation3 + $0x10] sm:$0xff] %vm3084_vm15, %v2993_v52  ;;  %v3334_v52 = vld [vmem:[#allocation2 + $0x159] sm:$0xff] }
 0x3e4   : > { %3240 = vrot.lane.b32.xlu1 %v3147_v46, %s8099_s8  ;;  %3238 = vrot.lane.b32.xlu0 %v3146_v48, %s8099_s8  ;;  %v3331_v46 = vld [vmem:[#allocation2 + $0x139] sm:$0xff] }
 0x3e6   : > { %v2999_v12 = vpop.permute.xlu1 %2998  ;;  %v2997_v25 = vpop.permute.xlu0 %2996 }
 0x3e7   : > { %3090 = vst.msk [vmem:[#allocation3 + $0x28] sm:$0xff] %vm3084_vm15, %v2999_v12  ;;  %3089 = vst.msk [vmem:[#allocation3 + $0x20] sm:$0xff] %vm3084_vm15, %v2997_v25  ;;  %v3336_v25 = vld [vmem:[#allocation2 + $0x171] sm:$0xff] }
 0x3e8   : > { %3244 = vrot.lane.b32.xlu1 %v3149_v59, %s8099_s8  ;;  %3242 = vrot.lane.b32.xlu0 %v3148_v60, %s8099_s8  ;;  %v3333_v59 = vld [vmem:[#allocation2 + $0x151] sm:$0xff]  ;;  %s8112_s8 = smov 96  }
 0x3ea   : > { %v3003_v30 = vpop.permute.xlu1 %3002  ;;  %v3001_v33 = vpop.permute.xlu0 %3000 }
 0x3eb   : > { %3092 = vst.msk [vmem:[#allocation3 + $0x38] sm:$0xff] %vm3084_vm15, %v3003_v30  ;;  %3091 = vst.msk [vmem:[#allocation3 + $0x30] sm:$0xff] %vm3084_vm15, %v3001_v33  ;;  %v3338_v33 = vld [vmem:[#allocation2 + $0x189] sm:$0xff] }
 0x3ec   : > { %3377 = vrot.lane.b32.xlu1 %v3312_v26, %s8100_s9  ;;  %3375 = vrot.lane.b32.xlu0 %v3311_v29, %s8100_s9  ;;  %v3335_v26 = vld [vmem:[#allocation2 + $0x169] sm:$0xff] }
 0x3ee   : > { %v3007_v38 = vpop.permute.xlu1 %3006  ;;  %v3005_v49 = vpop.permute.xlu0 %3004 }
 0x3ef   : > { %3094 = vst.msk [vmem:[#allocation3 + $0x48] sm:$0xff] %vm3084_vm15, %v3007_v38  ;;  %3093 = vst.msk [vmem:[#allocation3 + $0x40] sm:$0xff] %vm3084_vm15, %v3005_v49  ;;  %v3337_v38 = vld [vmem:[#allocation2 + $0x181] sm:$0xff] }
 0x3f0   : > { %3381 = vrot.lane.b32.xlu1 %v9486_v34, %s8100_s9  ;;  %3379 = vrot.lane.b32.xlu0 %v9488_v37, %s8100_s9 }
 0x3f2   : > { %v3011_v54 = vpop.permute.xlu1 %3010  ;;  %v3009_v55 = vpop.permute.xlu0 %3008 }
 0x3f3   : > { %3096 = vst.msk [vmem:[#allocation3 + $0x58] sm:$0xff] %vm3084_vm15, %v3011_v54  ;;  %3095 = vst.msk [vmem:[#allocation3 + $0x50] sm:$0xff] %vm3084_vm15, %v3009_v55  ;;  %v3340_v55 = vld [vmem:[#allocation2 + $0x1a1] sm:$0xff] }
 0x3f4   : > { %3385 = vrot.lane.b32.xlu1 %v9496_v50, %s8100_s9  ;;  %3383 = vrot.lane.b32.xlu0 %v9498_v53, %s8100_s9 }
 0x3f6   : > { %v3015_v58 = vpop.permute.xlu1 %3014  ;;  %v3013_v61 = vpop.permute.xlu0 %3012 }
 0x3f7   : > { %3098 = vst.msk [vmem:[#allocation3 + $0x68] sm:$0xff] %vm3084_vm15, %v3015_v58  ;;  %3097 = vst.msk [vmem:[#allocation3 + $0x60] sm:$0xff] %vm3084_vm15, %v3013_v61  ;;  %v3339_v58 = vld [vmem:[#allocation2 + $0x199] sm:$0xff] }
 0x3f8   : > { %3389 = vrot.lane.b32.xlu1 %v9506_v56, %s8100_s9  ;;  %3387 = vrot.lane.b32.xlu0 %v9508_v57, %s8100_s9 }
 0x3fa   : > { %v3019_v1 = vpop.permute.xlu1 %3018  ;;  %v3017_v2 = vpop.permute.xlu0 %3016 }
 0x3fb   : > { %3100 = vst.msk [vmem:[#allocation3 + $0x78] sm:$0xff] %vm3084_vm15, %v3019_v1  ;;  %3099 = vst.msk [vmem:[#allocation3 + $0x70] sm:$0xff] %vm3084_vm15, %v3017_v2  ;;  %v3342_v2 = vld [vmem:[#allocation2 + $0x1b9] sm:$0xff] }
 0x3fc   : > { %3393 = vrot.lane.b32.xlu1 %v9516_v62, %s8100_s9  ;;  %3391 = vrot.lane.b32.xlu0 %v9518_v63, %s8100_s9 }
 0x3fe   : > { %v3023_v7 = vpop.permute.xlu1 %3022  ;;  %v3021_v8 = vpop.permute.xlu0 %3020 }
 0x3ff   : > { %3102 = vst.msk [vmem:[#allocation3 + $0x88] sm:$0xff] %vm3084_vm15, %v3023_v7  ;;  %3101 = vst.msk [vmem:[#allocation3 + $0x80] sm:$0xff] %vm3084_vm15, %v3021_v8  ;;  %v3341_v7 = vld [vmem:[#allocation2 + $0x1b1] sm:$0xff] }
 0x400   : > { %3397 = vrot.lane.b32.xlu1 %v9526_v3, %s8100_s9  ;;  %3395 = vrot.lane.b32.xlu0 %v9528_v6, %s8100_s9 }
 0x402   : > { %v3027_v11 = vpop.permute.xlu1 %3026  ;;  %v3025_v14 = vpop.permute.xlu0 %3024 }
 0x403   : > { %3104 = vst.msk [vmem:[#allocation3 + $0x98] sm:$0xff] %vm3084_vm15, %v3027_v11  ;;  %3103 = vst.msk [vmem:[#allocation3 + $0x90] sm:$0xff] %vm3084_vm15, %v3025_v14  ;;  %v3505_v14 = vld [vmem:[#allocation2 + $0x52] sm:$0xff] }
 0x404   : > { %3401 = vrot.lane.b32.xlu1 %v9536_v9, %s8100_s9  ;;  %3399 = vrot.lane.b32.xlu0 %v9538_v10, %s8100_s9 }
 0x406   : > { %v3031_v17 = vpop.permute.xlu1 %3030  ;;  %v3029_v39 = vpop.permute.xlu0 %3028 }
 0x407   : > { %3106 = vst.msk [vmem:[#allocation3 + $0xa8] sm:$0xff] %vm3084_vm15, %v3031_v17  ;;  %3105 = vst.msk [vmem:[#allocation3 + $0xa0] sm:$0xff] %vm3084_vm15, %v3029_v39  ;;  %v9586_v39 = vld [vmem:[#allocation2 + $0x6a] sm:$0xff] }
 0x408   : > { %3405 = vrot.lane.b32.xlu1 %v3326_v15, %s8100_s9  ;;  %3403 = vrot.lane.b32.xlu0 %v3325_v16, %s8100_s9  ;;  %v3504_v15 = vld [vmem:[#allocation2 + $0x4a] sm:$0xff] }
 0x40a   : > { %v3035_v19 = vpop.permute.xlu1 %3034  ;;  %v3033_v41 = vpop.permute.xlu0 %3032 }
 0x40b   : > { %3108 = vst.msk [vmem:[#allocation3 + $0xb8] sm:$0xff] %vm3084_vm15, %v3035_v19  ;;  %3107 = vst.msk [vmem:[#allocation3 + $0xb0] sm:$0xff] %vm3084_vm15, %v3033_v41  ;;  %v9593_v41 = vld [vmem:[#allocation2 + $0x82] sm:$0xff] }
 0x40c   : > { %3409 = vrot.lane.b32.xlu1 %v3328_v40, %s8100_s9  ;;  %3407 = vrot.lane.b32.xlu0 %v3327_v18, %s8100_s9  ;;  %v3506_v40 = vld [vmem:[#allocation2 + $0x62] sm:$0xff] }
 0x40e   : > { %v3039_v23 = vpop.permute.xlu1 %3038  ;;  %v3037_v43 = vpop.permute.xlu0 %3036 }
 0x40f   : > { %3110 = vst.msk [vmem:[#allocation3 + $0xc8] sm:$0xff] %vm3084_vm15, %v3039_v23  ;;  %3109 = vst.msk [vmem:[#allocation3 + $0xc0] sm:$0xff] %vm3084_vm15, %v3037_v43  ;;  %v9603_v43 = vld [vmem:[#allocation2 + $0x9a] sm:$0xff] }
 0x410   : > { %3413 = vrot.lane.b32.xlu1 %v3330_v42, %s8100_s9  ;;  %3411 = vrot.lane.b32.xlu0 %v3329_v22, %s8100_s9  ;;  %v9595_v42 = vld [vmem:[#allocation2 + $0x7a] sm:$0xff] }
 0x412   : > { %v3043_v48 = vpop.permute.xlu1 %3042  ;;  %v3041_v51 = vpop.permute.xlu0 %3040 }
 0x413   : > { %3112 = vst.msk [vmem:[#allocation3 + $0xd8] sm:$0xff] %vm3084_vm15, %v3043_v48  ;;  %3111 = vst.msk [vmem:[#allocation3 + $0xd0] sm:$0xff] %vm3084_vm15, %v3041_v51  ;;  %v3698_v51 = vld [vmem:[#allocation2 + $0x53] sm:$0xff] }
 0x414   : > { %3417 = vrot.lane.b32.xlu1 %v3332_v44, %s8100_s9  ;;  %3415 = vrot.lane.b32.xlu0 %v3331_v46, %s8100_s9  ;;  %v9605_v44 = vld [vmem:[#allocation2 + $0x92] sm:$0xff] }
 0x416   : > { %v3047_v60 = vpop.permute.xlu1 %3046  ;;  %v3045_v12 = vpop.permute.xlu0 %3044 }
 0x417   : > { %3114 = vst.msk [vmem:[#allocation3 + $0xe8] sm:$0xff] %vm3084_vm15, %v3047_v60  ;;  %3113 = vst.msk [vmem:[#allocation3 + $0xe0] sm:$0xff] %vm3084_vm15, %v3045_v12 }
 0x418   : > { %3421 = vrot.lane.b32.xlu1 %v3334_v52, %s8100_s9  ;;  %3419 = vrot.lane.b32.xlu0 %v3333_v59, %s8100_s9  ;;  %v3697_v52 = vld [vmem:[#allocation2 + $0x4b] sm:$0xff] }
 0x41a   : > { %v3051_v29 = vpop.permute.xlu1 %3050  ;;  %v3049_v30 = vpop.permute.xlu0 %3048 }
 0x41b   : > { %3116 = vst.msk [vmem:[#allocation3 + $0xf8] sm:$0xff] %vm3084_vm15, %v3051_v29  ;;  %3115 = vst.msk [vmem:[#allocation3 + $0xf0] sm:$0xff] %vm3084_vm15, %v3049_v30  ;;  %v3699_v30 = vld [vmem:[#allocation2 + $0x63] sm:$0xff]  ;;  %vm5594_vm15 = vcmask 257024  }
 0x41c   : > { %3425 = vrot.lane.b32.xlu1 %v3336_v25, %s8100_s9  ;;  %3423 = vrot.lane.b32.xlu0 %v3335_v26, %s8100_s9  ;;  %5595 = vst.msk [vmem:[#allocation6 + $0x8] sm:$0xf] %vm5594_vm15, %v8084_v0  ;;  %5597 = vst.msk [vmem:[#allocation6 + $0x18] sm:$0xf] %vm5594_vm15, %v8084_v0 }
 0x41d   : > { %5599 = vst.msk [vmem:[#allocation6 + $0x28] sm:$0xf] %vm5594_vm15, %v8084_v0  ;;  %5601 = vst.msk [vmem:[#allocation6 + $0x38] sm:$0xf] %vm5594_vm15, %v8084_v0 }
 0x41e   : > { %v3185_v49 = vpop.permute.xlu1 %3184  ;;  %v3183_v54 = vpop.permute.xlu0 %3182  ;;  %5603 = vst.msk [vmem:[#allocation6 + $0x48] sm:$0xf] %vm5594_vm15, %v8084_v0  ;;  %5605 = vst.msk [vmem:[#allocation6 + $0x58] sm:$0xf] %vm5594_vm15, %v8084_v0 }
 0x41f   : > { %3280 = vst.msk [vmem:[#allocation3 + $0x8] sm:$0xff] %vm3278_vm0, %v3185_v49  ;;  %3279 = vst.msk [vmem:[#allocation3] sm:$0xff] %vm3278_vm0, %v3183_v54  ;;  %v5084_v54 = vld [vmem:[%s11433_s1 + $0x18] sm:$0xff] }
 0x420   : > { %3429 = vrot.lane.b32.xlu1 %v3338_v33, %s8100_s9  ;;  %3427 = vrot.lane.b32.xlu0 %v3337_v38, %s8100_s9  ;;  %5607 = vst.msk [vmem:[#allocation6 + $0x68] sm:$0xf] %vm5594_vm15, %v8084_v0  ;;  %5609 = vst.msk [vmem:[#allocation6 + $0x78] sm:$0xf] %vm5594_vm15, %v8084_v0 }
 0x421   : > { %5611 = vst.msk [vmem:[#allocation6 + $0x88] sm:$0xf] %vm5594_vm15, %v8084_v0  ;;  %5613 = vst.msk [vmem:[#allocation6 + $0x98] sm:$0xf] %vm5594_vm15, %v8084_v0 }
 0x422   : > { %v3189_v61 = vpop.permute.xlu1 %3188  ;;  %v3187_v1 = vpop.permute.xlu0 %3186  ;;  %5615 = vst.msk [vmem:[#allocation6 + $0xa8] sm:$0xf] %vm5594_vm15, %v8084_v0  ;;  %5617 = vst.msk [vmem:[#allocation6 + $0xb8] sm:$0xf] %vm5594_vm15, %v8084_v0 }
 0x423   : > { %3282 = vst.msk [vmem:[#allocation3 + $0x18] sm:$0xff] %vm3278_vm0, %v3189_v61  ;;  %3281 = vst.msk [vmem:[#allocation3 + $0x10] sm:$0xff] %vm3278_vm0, %v3187_v1 }
 0x424   : > { %3433 = vrot.lane.b32.xlu1 %v3340_v55, %s8100_s9  ;;  %3431 = vrot.lane.b32.xlu0 %v3339_v58, %s8100_s9  ;;  %v3700_v55 = vld [vmem:[#allocation2 + $0x6b] sm:$0xff] }
 0x426   : > { %v3193_v8 = vpop.permute.xlu1 %3192  ;;  %v3191_v11 = vpop.permute.xlu0 %3190 }
 0x427   : > { %3284 = vst.msk [vmem:[#allocation3 + $0x28] sm:$0xff] %vm3278_vm0, %v3193_v8  ;;  %3283 = vst.msk [vmem:[#allocation3 + $0x20] sm:$0xff] %vm3278_vm0, %v3191_v11 }
 0x428   : > { %3437 = vrot.lane.b32.xlu1 %v3342_v2, %s8100_s9  ;;  %3435 = vrot.lane.b32.xlu0 %v3341_v7, %s8100_s9  ;;  %v5086_v2 = vld [vmem:[%s11433_s1 + $0x28] sm:$0xff] }
 0x42a   : > { %v3197_v16 = vpop.permute.xlu1 %3196  ;;  %v3195_v17 = vpop.permute.xlu0 %3194 }
 0x42b   : > { %3286 = vst.msk [vmem:[#allocation3 + $0x38] sm:$0xff] %vm3278_vm0, %v3197_v16  ;;  %3285 = vst.msk [vmem:[#allocation3 + $0x30] sm:$0xff] %vm3278_vm0, %v3195_v17 }
 0x42c   : > { %3570 = vrot.lane.b32.xlu1 %v3505_v14, %s8101_s10  ;;  %3568 = vrot.lane.b32.xlu0 %v3504_v15, %s8101_s10  ;;  %v5087_v14 = vld [vmem:[%s11433_s1 + $0x30] sm:$0xff]  ;;  %v5088_v15 = vld [vmem:[%s11433_s1 + $0x38] sm:$0xff] }
 0x42d   : > { %v7832_v16 = vpack.c.bf16 %v5088_v15, %v5087_v14  ;;  %v3513_v14 = vld [vmem:[#allocation2 + $0xb2] sm:$0xff] }
 0x42e   : > { %v3201_v18 = vpop.permute.xlu1 %3200  ;;  %v3199_v19 = vpop.permute.xlu0 %3198 }
 0x42f   : > { %3288 = vst.msk [vmem:[#allocation3 + $0x48] sm:$0xff] %vm3278_vm0, %v3201_v18  ;;  %3287 = vst.msk [vmem:[#allocation3 + $0x40] sm:$0xff] %vm3278_vm0, %v3199_v19  ;;  %v5090_v18 = vld [vmem:[%s11433_s1 + $0x48] sm:$0x7] }
 0x430   : > { %3574 = vrot.lane.b32.xlu1 %v9586_v39, %s8101_s10  ;;  %3572 = vrot.lane.b32.xlu0 %v3506_v40, %s8101_s10 }
 0x432   : > { %v3205_v22 = vpop.permute.xlu1 %3204  ;;  %v3203_v23 = vpop.permute.xlu0 %3202 }
 0x433   : > { %3290 = vst.msk [vmem:[#allocation3 + $0x58] sm:$0xff] %vm3278_vm0, %v3205_v22  ;;  %3289 = vst.msk [vmem:[#allocation3 + $0x50] sm:$0xff] %vm3278_vm0, %v3203_v23 }
 0x434   : > { %3578 = vrot.lane.b32.xlu1 %v9593_v41, %s8101_s10  ;;  %3576 = vrot.lane.b32.xlu0 %v9595_v42, %s8101_s10 }
 0x436   : > { %v3209_v46 = vpop.permute.xlu1 %3208  ;;  %v3207_v48 = vpop.permute.xlu0 %3206 }
 0x437   : > { %3292 = vst.msk [vmem:[#allocation3 + $0x68] sm:$0xff] %vm3278_vm0, %v3209_v46  ;;  %3291 = vst.msk [vmem:[#allocation3 + $0x60] sm:$0xff] %vm3278_vm0, %v3207_v48  ;;  %v3701_v46 = vld [vmem:[#allocation2 + $0x7b] sm:$0xff] }
 0x438   : > { %3582 = vrot.lane.b32.xlu1 %v9603_v43, %s8101_s10  ;;  %3580 = vrot.lane.b32.xlu0 %v9605_v44, %s8101_s10 }
 0x43a   : > { %v3213_v59 = vpop.permute.xlu1 %3212  ;;  %v3211_v60 = vpop.permute.xlu0 %3210 }
 0x43b   : > { %3294 = vst.msk [vmem:[#allocation3 + $0x78] sm:$0xff] %vm3278_vm0, %v3213_v59  ;;  %3293 = vst.msk [vmem:[#allocation3 + $0x70] sm:$0xff] %vm3278_vm0, %v3211_v60 }
 0x43c   : > { %3763 = vrot.lane.b32.xlu1 %v3698_v51, %s8102_s11  ;;  %3761 = vrot.lane.b32.xlu0 %v3697_v52, %s8102_s11 }
 0x43e   : > { %v3217_v12 = vpop.permute.xlu1 %3216  ;;  %v3215_v25 = vpop.permute.xlu0 %3214 }
 0x43f   : > { %3296 = vst.msk [vmem:[#allocation3 + $0x88] sm:$0xff] %vm3278_vm0, %v3217_v12  ;;  %3295 = vst.msk [vmem:[#allocation3 + $0x80] sm:$0xff] %vm3278_vm0, %v3215_v25  ;;  %v8016_v12 = vld [vmem:[#allocation2 + $0x7c] sm:$0xff] }
 0x440   : > { %3956 = vrot.lane.b32.xlu1 %v9316_v4, %s8103_s12  ;;  %3954 = vrot.lane.b32.xlu0 %v9318_v5, %s8103_s12  ;;  %v5081_v4 = vld [vmem:[%s11433_s1] sm:$0xff]  ;;  %v5082_v5 = vld [vmem:[%s11433_s1 + $0x8] sm:$0xff] }
 0x442   : > { %v3221_v26 = vpop.permute.xlu1 %3220  ;;  %v3219_v29 = vpop.permute.xlu0 %3218 }
 0x443   : > { %3298 = vst.msk [vmem:[#allocation3 + $0x98] sm:$0xff] %vm3278_vm0, %v3221_v26  ;;  %3297 = vst.msk [vmem:[#allocation3 + $0x90] sm:$0xff] %vm3278_vm0, %v3219_v29 }
 0x444   : > { %4150 = vrot.lane.b32.xlu1 %v9392_v13, %s8104_s13  ;;  %4148 = vrot.lane.b32.xlu0 %v9394_v24, %s8104_s13  ;;  %v7820_v13 = vpack.c.bf16 %v5082_v5, %v5081_v4 }
 0x446   : > { %v3225_v33 = vpop.permute.xlu1 %3224  ;;  %v3223_v38 = vpop.permute.xlu0 %3222  ;;  %7821 = vmatprep.subr.bf16.mxu0 %v7820_v13 }
 0x447   : > { %3300 = vst.msk [vmem:[#allocation3 + $0xa8] sm:$0xff] %vm3278_vm0, %v3225_v33  ;;  %3299 = vst.msk [vmem:[#allocation3 + $0xa0] sm:$0xff] %vm3278_vm0, %v3223_v38  ;;  %7823 = vmatpush3.bf16.msra.mxu0 %v7820_v13 }
 0x448   : > { %3765 = vrot.lane.b32.xlu1 %v3699_v30, %s8102_s11  ;;  %4341 = vrot.lane.b32.xlu0 %v9488_v37, %s8105_s14  ;;  %v5083_v37 = vld [vmem:[%s11433_s1 + $0x10] sm:$0xff] }
 0x449   : > { %v7824_v58 = vpack.c.bf16 %v5084_v54, %v5083_v37 }
 0x44a   : > { %v3229_v24 = vpop.permute.xlu1 %3228  ;;  %v3227_v49 = vpop.permute.xlu0 %3226 }
 0x44b   : > { %3302 = vst.msk [vmem:[#allocation3 + $0xb8] sm:$0xff] %vm3278_vm0, %v3229_v24  ;;  %3301 = vst.msk [vmem:[#allocation3 + $0xb0] sm:$0xff] %vm3278_vm0, %v3227_v49  ;;  %7825 = vmatprep.subr.bf16.mxu0 %v7824_v58 }
 0x44c   : > { %4534 = vrot.lane.b32.xlu1 %v3506_v40, %s8106_s25  ;;  %4343 = vrot.lane.b32.xlu0 %v9486_v34, %s8105_s14  ;;  %v5085_v34 = vld [vmem:[%s11433_s1 + $0x20] sm:$0xff] }
 0x44d   : > { %7827 = vmatpush3.bf16.msra.mxu0 %v7824_v58  ;;  %v7828_v7 = vpack.c.bf16 %v5086_v2, %v5085_v34 }
 0x44e   : > { %v3233_v61 = vpop.permute.xlu1 %3232  ;;  %v3231_v1 = vpop.permute.xlu0 %3230 }
 0x44f   : > { %3304 = vst.msk [vmem:[#allocation3 + $0xc8] sm:$0xff] %vm3278_vm0, %v3233_v61  ;;  %3303 = vst.msk [vmem:[#allocation3 + $0xc0] sm:$0xff] %vm3278_vm0, %v3231_v1  ;;  %7829 = vmatprep.subr.bf16.mxu0 %v7828_v7 }
 0x450   : > { %3958 = vrot.lane.b32.xlu1 %v9328_v21, %s8103_s12  ;;  %3767 = vrot.lane.b32.xlu0 %v3700_v55, %s8102_s11 }
 0x451   : > { %7831 = vmatpush3.bf16.msra.mxu0 %v7828_v7 }
 0x452   : > { %v3237_v8 = vpop.permute.xlu1 %3236  ;;  %v3235_v11 = vpop.permute.xlu0 %3234  ;;  %7833 = vmatprep.subr.bf16.mxu0 %v7832_v16 }
 0x453   : > { %3306 = vst.msk [vmem:[#allocation3 + $0xd8] sm:$0xff] %vm3278_vm0, %v3237_v8  ;;  %3305 = vst.msk [vmem:[#allocation3 + $0xd0] sm:$0xff] %vm3278_vm0, %v3235_v11  ;;  %v3705_v11 = vld [vmem:[#allocation2 + $0xab] sm:$0xff] }
 0x454   : > { %4727 = vrot.lane.b32.xlu1 %v3699_v30, %s8107_s23  ;;  %4536 = vrot.lane.b32.xlu0 %v9586_v39, %s8106_s25  ;;  %v5089_v39 = vld [vmem:[%s11433_s1 + $0x40] sm:$0xff] }
 0x455   : > { %7835 = vmatpush3.bf16.msra.mxu0 %v7832_v16  ;;  %v7836_v19 = vpack.c.bf16 %v5090_v18, %v5089_v39  ;;  %v4858_v30 = vld [vmem:[#allocation2 + $0x7c] sm:$0xff] }
 0x456   : > { %v3241_v17 = vpop.permute.xlu1 %3240  ;;  %v3239_v40 = vpop.permute.xlu0 %3238 }
 0x457   : > { %3308 = vst.msk [vmem:[#allocation3 + $0xe8] sm:$0xff] %vm3278_vm0, %v3241_v17  ;;  %3307 = vst.msk [vmem:[#allocation3 + $0xe0] sm:$0xff] %vm3278_vm0, %v3239_v40  ;;  %7838 = vmatprep.subr.msk.bf16.mxu0 %vm7837_vm3, %v7836_v19  ;;  %v3706_v40 = vld [vmem:[#allocation2 + $0xb3] sm:$0xff] }
 0x458   : > { %4152 = vrot.lane.b32.xlu1 %v9404_v28, %s8104_s13  ;;  %3960 = vrot.lane.b32.xlu0 %v9326_v20, %s8103_s12 }
 0x459   : > { %7841 = vmatpush3.bf16.msk.msra.mxu0 %vm7837_vm3, %v7836_v19  ;;  %vm7224_vm3 = vcmask 392192  }
 0x45a   : > { %v3245_v22 = vpop.permute.xlu1 %3244  ;;  %v3243_v23 = vpop.permute.xlu0 %3242 }
 0x45b   : > { %3310 = vst.msk [vmem:[#allocation3 + $0xf8] sm:$0xff] %vm3278_vm0, %v3245_v22  ;;  %3309 = vst.msk [vmem:[#allocation3 + $0xf0] sm:$0xff] %vm3278_vm0, %v3243_v23  ;;  %vm5683_vm0 = vcmask 523520  }
 0x45c   : > { %4920 = vrot.lane.b32.xlu1 %v9328_v21, %s8109_s26  ;;  %4729 = vrot.lane.b32.xlu0 %v3700_v55, %s8107_s23  ;;  %v8015_v21 = vld [vmem:[#allocation2 + $0x6c] sm:$0xff] }
 0x45e   : > { %v3378_v20 = vpop.permute.xlu1 %3377  ;;  %v3376_v28 = vpop.permute.xlu0 %3375 }
 0x45f   : > { %3473 = vst.msk [vmem:[#allocation3 + $0x8] sm:$0xff] %vm3471_vm4, %v3378_v20  ;;  %3472 = vst.msk [vmem:[#allocation3] sm:$0xff] %vm3471_vm4, %v3376_v28 }
 0x460   : > { %4345 = vrot.lane.b32.xlu1 %v9498_v53, %s8105_s14  ;;  %4154 = vrot.lane.b32.xlu0 %v9402_v27, %s8104_s13  ;;  %v3702_v27 = vld [vmem:[#allocation2 + $0x83] sm:$0xff] }
 0x462   : > { %v3382_v48 = vpop.permute.xlu1 %3381  ;;  %v3380_v51 = vpop.permute.xlu0 %3379 }
 0x463   : > { %3475 = vst.msk [vmem:[#allocation3 + $0x18] sm:$0xff] %vm3471_vm4, %v3382_v48  ;;  %3474 = vst.msk [vmem:[#allocation3 + $0x10] sm:$0xff] %vm3471_vm4, %v3380_v51  ;;  %v3514_v48 = vld [vmem:[#allocation2 + $0xc2] sm:$0xff] }
 0x464   : > { %3769 = vrot.lane.b32.xlu1 %v3701_v46, %s8102_s11  ;;  %4922 = vrot.lane.b32.xlu0 %v8015_v21, %s8109_s26 }
 0x466   : > { %v3386_v52 = vpop.permute.xlu1 %3385  ;;  %v3384_v59 = vpop.permute.xlu0 %3383 }
 0x467   : > { %3477 = vst.msk [vmem:[#allocation3 + $0x28] sm:$0xff] %vm3471_vm4, %v3386_v52  ;;  %3476 = vst.msk [vmem:[#allocation3 + $0x20] sm:$0xff] %vm3471_vm4, %v3384_v59  ;;  %v3707_v59 = vld [vmem:[#allocation2 + $0xc3] sm:$0xff] }
 0x468   : > { %4538 = vrot.lane.b32.xlu1 %v9595_v42, %s8106_s25  ;;  %4347 = vrot.lane.b32.xlu0 %v9496_v50, %s8105_s14  ;;  %v3895_v50 = vld [vmem:[#allocation2 + $0x84] sm:$0xff] }
 0x46a   : > { %v3390_v53 = vpop.permute.xlu1 %3389  ;;  %v3388_v60 = vpop.permute.xlu0 %3387 }
 0x46b   : > { %3479 = vst.msk [vmem:[#allocation3 + $0x38] sm:$0xff] %vm3471_vm4, %v3390_v53  ;;  %3478 = vst.msk [vmem:[#allocation3 + $0x30] sm:$0xff] %vm3471_vm4, %v3388_v60 }
 0x46c   : > { %3962 = vrot.lane.b32.xlu1 %v8016_v12, %s8103_s12  ;;  %3771 = vrot.lane.b32.xlu0 %v3702_v27, %s8102_s11 }
 0x46e   : > { %v3394_v25 = vpop.permute.xlu1 %3393  ;;  %v3392_v26 = vpop.permute.xlu0 %3391 }
 0x46f   : > { %3481 = vst.msk [vmem:[#allocation3 + $0x48] sm:$0xff] %vm3471_vm4, %v3394_v25  ;;  %3480 = vst.msk [vmem:[#allocation3 + $0x40] sm:$0xff] %vm3471_vm4, %v3392_v26  ;;  %v3708_v25 = vld [vmem:[#allocation2 + $0xcb] sm:$0xff] }
 0x470   : > { %4731 = vrot.lane.b32.xlu1 %v3701_v46, %s8107_s23  ;;  %4540 = vrot.lane.b32.xlu0 %v9593_v41, %s8106_s25 }
 0x472   : > { %v3398_v42 = vpop.permute.xlu1 %3397  ;;  %v3396_v29 = vpop.permute.xlu0 %3395 }
 0x473   : > { %3483 = vst.msk [vmem:[#allocation3 + $0x58] sm:$0xff] %vm3471_vm4, %v3398_v42  ;;  %3482 = vst.msk [vmem:[#allocation3 + $0x50] sm:$0xff] %vm3471_vm4, %v3396_v29 }
 0x474   : > { %4156 = vrot.lane.b32.xlu1 %v9414_v32, %s8104_s13  ;;  %3964 = vrot.lane.b32.xlu0 %v3895_v50, %s8103_s12  ;;  %v3703_v32 = vld [vmem:[#allocation2 + $0x93] sm:$0xff] }
 0x476   : > { %v3402_v33 = vpop.permute.xlu1 %3401  ;;  %v3400_v38 = vpop.permute.xlu0 %3399 }
 0x477   : > { %3485 = vst.msk [vmem:[#allocation3 + $0x68] sm:$0xff] %vm3471_vm4, %v3402_v33  ;;  %3484 = vst.msk [vmem:[#allocation3 + $0x60] sm:$0xff] %vm3471_vm4, %v3400_v38 }
 0x478   : > { %4924 = vrot.lane.b32.xlu1 %v4858_v30, %s8109_s26  ;;  %4733 = vrot.lane.b32.xlu0 %v3702_v27, %s8107_s23  ;;  %v3515_v27 = vld [vmem:[#allocation2 + $0xca] sm:$0xff] }
 0x479   : > { %v3901_v30 = vld [vmem:[#allocation2 + $0xcc] sm:$0xff] }
 0x47a   : > { %v3406_v41 = vpop.permute.xlu1 %3405  ;;  %v3404_v4 = vpop.permute.xlu0 %3403 }
 0x47b   : > { %3487 = vst.msk [vmem:[#allocation3 + $0x78] sm:$0xff] %vm3471_vm4, %v3406_v41  ;;  %3486 = vst.msk [vmem:[#allocation3 + $0x70] sm:$0xff] %vm3471_vm4, %v3404_v4 }
 0x47c   : > { %4349 = vrot.lane.b32.xlu1 %v9508_v57, %s8105_s14  ;;  %4158 = vrot.lane.b32.xlu0 %v9412_v31, %s8104_s13  ;;  %v3896_v31 = vld [vmem:[#allocation2 + $0x94] sm:$0xff] }
 0x47d   : > { %v3704_v57 = vld [vmem:[#allocation2 + $0x9b] sm:$0xff] }
 0x47e   : > { %v3410_v5 = vpop.permute.xlu1 %3409  ;;  %v3408_v13 = vpop.permute.xlu0 %3407 }
 0x47f   : > { %3489 = vst.msk [vmem:[#allocation3 + $0x88] sm:$0xff] %vm3471_vm4, %v3410_v5  ;;  %3488 = vst.msk [vmem:[#allocation3 + $0x80] sm:$0xff] %vm3471_vm4, %v3408_v13  ;;  %v3516_v5 = vld [vmem:[#allocation2 + $0xda] sm:$0xff] }
 0x480   : > { %3773 = vrot.lane.b32.xlu1 %v3703_v32, %s8102_s11  ;;  %4926 = vrot.lane.b32.xlu0 %v3895_v50, %s8109_s26 }
 0x482   : > { %v3414_v24 = vpop.permute.xlu1 %3413  ;;  %v3412_v49 = vpop.permute.xlu0 %3411 }
 0x483   : > { %3491 = vst.msk [vmem:[#allocation3 + $0x98] sm:$0xff] %vm3471_vm4, %v3414_v24  ;;  %3490 = vst.msk [vmem:[#allocation3 + $0x90] sm:$0xff] %vm3471_vm4, %v3412_v49 }
 0x484   : > { %4542 = vrot.lane.b32.xlu1 %v9605_v44, %s8106_s25  ;;  %4351 = vrot.lane.b32.xlu0 %v9506_v56, %s8105_s14  ;;  %v3897_v56 = vld [vmem:[#allocation2 + $0x9c] sm:$0xff] }
 0x486   : > { %v3418_v37 = vpop.permute.xlu1 %3417  ;;  %v3416_v54 = vpop.permute.xlu0 %3415 }
 0x487   : > { %3493 = vst.msk [vmem:[#allocation3 + $0xa8] sm:$0xff] %vm3471_vm4, %v3418_v37  ;;  %3492 = vst.msk [vmem:[#allocation3 + $0xa0] sm:$0xff] %vm3471_vm4, %v3416_v54  ;;  %v3709_v37 = vld [vmem:[#allocation2 + $0xdb] sm:$0xff] }
 0x488   : > { %3966 = vrot.lane.b32.xlu1 %v3896_v31, %s8103_s12  ;;  %3775 = vrot.lane.b32.xlu0 %v3704_v57, %s8102_s11  ;;  %v3517_v54 = vld [vmem:[#allocation2 + $0xe2] sm:$0xff] }
 0x48a   : > { %v3422_v55 = vpop.permute.xlu1 %3421  ;;  %v3420_v58 = vpop.permute.xlu0 %3419 }
 0x48b   : > { %3495 = vst.msk [vmem:[#allocation3 + $0xb8] sm:$0xff] %vm3471_vm4, %v3422_v55  ;;  %3494 = vst.msk [vmem:[#allocation3 + $0xb0] sm:$0xff] %vm3471_vm4, %v3420_v58 }
 0x48c   : > { %4735 = vrot.lane.b32.xlu1 %v3703_v32, %s8107_s23  ;;  %4544 = vrot.lane.b32.xlu0 %v9603_v43, %s8106_s25  ;;  %v3512_v43 = vld [vmem:[#allocation2 + $0xaa] sm:$0xff]  ;;  %v4095_v32 = vld [vmem:[#allocation2 + $0xe0] sm:$0xff] }
 0x48e   : > { %v3426_v44 = vpop.permute.xlu1 %3425  ;;  %v3424_v61 = vpop.permute.xlu0 %3423 }
 0x48f   : > { %3497 = vst.msk [vmem:[#allocation3 + $0xc8] sm:$0xff] %vm3471_vm4, %v3426_v44  ;;  %3496 = vst.msk [vmem:[#allocation3 + $0xc0] sm:$0xff] %vm3471_vm4, %v3424_v61 }
 0x490   : > { %4160 = vrot.lane.b32.xlu1 %v9424_v36, %s8104_s13  ;;  %3968 = vrot.lane.b32.xlu0 %v3897_v56, %s8103_s12 }
 0x492   : > { %v3430_v1 = vpop.permute.xlu1 %3429  ;;  %v3428_v34 = vpop.permute.xlu0 %3427 }
 0x493   : > { %3499 = vst.msk [vmem:[#allocation3 + $0xd8] sm:$0xff] %vm3471_vm4, %v3430_v1  ;;  %3498 = vst.msk [vmem:[#allocation3 + $0xd0] sm:$0xff] %vm3471_vm4, %v3428_v34  ;;  %v3710_v1 = vld [vmem:[#allocation2 + $0xe3] sm:$0xff] }
 0x494   : > { %4928 = vrot.lane.b32.xlu1 %v3896_v31, %s8109_s26  ;;  %4737 = vrot.lane.b32.xlu0 %v3704_v57, %s8107_s23 }
 0x496   : > { %v3434_v2 = vpop.permute.xlu1 %3433  ;;  %v3432_v7 = vpop.permute.xlu0 %3431 }
 0x497   : > { %3501 = vst.msk [vmem:[#allocation3 + $0xe8] sm:$0xff] %vm3471_vm4, %v3434_v2  ;;  %3500 = vst.msk [vmem:[#allocation3 + $0xe0] sm:$0xff] %vm3471_vm4, %v3432_v7 }
 0x498   : > { %4162 = vrot.lane.b32.xlu1 %v9422_v35, %s8104_s13  ;;  %3584 = vrot.lane.b32.xlu0 %v3512_v43, %s8101_s10 }
 0x49a   : > { %v3438_v36 = vpop.permute.xlu1 %3437  ;;  %v3436_v8 = vpop.permute.xlu0 %3435 }
 0x49b   : > { %3503 = vst.msk [vmem:[#allocation3 + $0xf8] sm:$0xff] %vm3471_vm4, %v3438_v36  ;;  %3502 = vst.msk [vmem:[#allocation3 + $0xf0] sm:$0xff] %vm3471_vm4, %v3436_v8  ;;  %v3903_v36 = vld [vmem:[#allocation2 + $0xe4] sm:$0xff]  ;;  %vm7267_vm4 = vcmask 1041409  }
 0x49c   : > { %4930 = vrot.lane.b32.xlu1 %v3897_v56, %s8109_s26  ;;  %4353 = vrot.lane.b32.xlu0 %v9518_v63, %s8105_s14  ;;  %v3898_v63 = vld [vmem:[#allocation2 + $0xac] sm:$0xff] }
 0x49e   : > { %v3571_v15 = vpop.permute.xlu1 %3570  ;;  %v3569_v16 = vpop.permute.xlu0 %3568 }
 0x49f   : > { %3666 = vst.msk [vmem:[#allocation3 + $0x8] sm:$0xff] %vm3664_vm5, %v3571_v15  ;;  %3665 = vst.msk [vmem:[#allocation3] sm:$0xff] %vm3664_vm5, %v3569_v16 }
 0x4a0   : > { %3777 = vrot.lane.b32.xlu1 %v3705_v11, %s8102_s11  ;;  %3586 = vrot.lane.b32.xlu0 %v3513_v14, %s8101_s10 }
 0x4a2   : > { %v3575_v35 = vpop.permute.xlu1 %3574  ;;  %v3573_v17 = vpop.permute.xlu0 %3572 }
 0x4a3   : > { %3668 = vst.msk [vmem:[#allocation3 + $0x18] sm:$0xff] %vm3664_vm5, %v3575_v35  ;;  %3667 = vst.msk [vmem:[#allocation3 + $0x10] sm:$0xff] %vm3664_vm5, %v3573_v17  ;;  %v4097_v35 = vld [vmem:[#allocation2 + $0xf8] sm:$0xff] }
 0x4a4   : > { %4546 = vrot.lane.b32.xlu1 %v3512_v43, %s8106_s25  ;;  %4355 = vrot.lane.b32.xlu0 %v9516_v62, %s8105_s14  ;;  %v3899_v62 = vld [vmem:[#allocation2 + $0xb4] sm:$0xff] }
 0x4a5   : > { %v3518_v17 = vld [vmem:[#allocation2 + $0xf2] sm:$0xff] }
 0x4a6   : > { %v3579_v39 = vpop.permute.xlu1 %3578  ;;  %v3577_v18 = vpop.permute.xlu0 %3576 }
 0x4a7   : > { %3670 = vst.msk [vmem:[#allocation3 + $0x28] sm:$0xff] %vm3664_vm5, %v3579_v39  ;;  %3669 = vst.msk [vmem:[#allocation3 + $0x20] sm:$0xff] %vm3664_vm5, %v3577_v18  ;;  %v4289_v39 = vld [vmem:[#allocation2 + $0xf1] sm:$0xff] }
 0x4a8   : > { %3970 = vrot.lane.b32.xlu1 %v3898_v63, %s8103_s12  ;;  %3779 = vrot.lane.b32.xlu0 %v3706_v40, %s8102_s11 }
 0x4aa   : > { %v3583_v19 = vpop.permute.xlu1 %3582  ;;  %v3581_v22 = vpop.permute.xlu0 %3580 }
 0x4ab   : > { %3672 = vst.msk [vmem:[#allocation3 + $0x38] sm:$0xff] %vm3664_vm5, %v3583_v19  ;;  %3671 = vst.msk [vmem:[#allocation3 + $0x30] sm:$0xff] %vm3664_vm5, %v3581_v22 }
 0x4ac   : > { %4739 = vrot.lane.b32.xlu1 %v3705_v11, %s8107_s23  ;;  %4548 = vrot.lane.b32.xlu0 %v3513_v14, %s8106_s25 }
 0x4ae   : > { %v3764_v23 = vpop.permute.xlu1 %3763  ;;  %v3762_v20 = vpop.permute.xlu0 %3761 }
 0x4af   : > { %3859 = vst.msk [vmem:[#allocation3 + $0x8] sm:$0xff] %vm3857_vm6, %v3764_v23  ;;  %3858 = vst.msk [vmem:[#allocation3] sm:$0xff] %vm3857_vm6, %v3762_v20  ;;  %v3519_v23 = vld [vmem:[#allocation2 + $0xfa] sm:$0xff] }
 0x4b0   : > { %4164 = vrot.lane.b32.xlu1 %v9434_v47, %s8104_s13  ;;  %3972 = vrot.lane.b32.xlu0 %v3899_v62, %s8103_s12 }
 0x4b2   : > { %v3957_v28 = vpop.permute.xlu1 %3956  ;;  %v3955_v46 = vpop.permute.xlu0 %3954 }
 0x4b3   : > { %4052 = vst.msk [vmem:[#allocation3 + $0x8] sm:$0xff] %vm4050_vm7, %v3957_v28  ;;  %4051 = vst.msk [vmem:[#allocation3] sm:$0xff] %vm4050_vm7, %v3955_v46  ;;  %v4290_v46 = vld [vmem:[#allocation2 + $0xf9] sm:$0xff] }
 0x4b4   : > { %4932 = vrot.lane.b32.xlu1 %v3898_v63, %s8109_s26  ;;  %4741 = vrot.lane.b32.xlu0 %v3706_v40, %s8107_s23 }
 0x4b6   : > { %v4151_v51 = vpop.permute.xlu1 %4150  ;;  %v4149_v21 = vpop.permute.xlu0 %4148 }
 0x4b7   : > { %4246 = vst.msk [vmem:[#allocation3 + $0x8] sm:$0xff] %vm4244_vm8, %v4151_v51  ;;  %4245 = vst.msk [vmem:[#allocation3] sm:$0xff] %vm4244_vm8, %v4149_v21  ;;  %v3904_v21 = vld [vmem:[#allocation2 + $0xf4] sm:$0xff] }
 0x4b8   : > { %4166 = vrot.lane.b32.xlu1 %v9432_v45, %s8104_s13  ;;  %3588 = vrot.lane.b32.xlu0 %v3514_v48, %s8101_s10 }
 0x4ba   : > { %v3766_v47 = vpop.permute.xlu1 %3765  ;;  %v4342_v52 = vpop.permute.xlu0 %4341 }
 0x4bb   : > { %3860 = vst.msk [vmem:[#allocation3 + $0x10] sm:$0xff] %vm3857_vm6, %v3766_v47  ;;  %v3712_v47 = vld [vmem:[#allocation2 + $0xfb] sm:$0xff] }
 0x4bc   : > { %4438 = vst.msk [vmem:[#allocation3] sm:$0xff] %vm4437_vm9, %v4342_v52  ;;  %4934 = vrot.lane.b32.xlu1 %v3899_v62, %s8109_s26  ;;  %4357 = vrot.lane.b32.xlu0 %v9528_v6, %s8105_s14  ;;  %v3900_v6 = vld [vmem:[#allocation2 + $0xc4] sm:$0xff]  ;;  %v3711_v62 = vld [vmem:[#allocation2 + $0xf3] sm:$0xff] }
 0x4be   : > { %v4535_v53 = vpop.permute.xlu1 %4534  ;;  %v4344_v60 = vpop.permute.xlu0 %4343 }
 0x4bf   : > { %4631 = vst.msk [vmem:[#allocation3] sm:$0xff] %vm4630_vm10, %v4535_v53 }
 0x4c0   : > { %4439 = vst.msk [vmem:[#allocation3 + $0x8] sm:$0xff] %vm4437_vm9, %v4344_v60  ;;  %3781 = vrot.lane.b32.xlu1 %v3707_v59, %s8102_s11  ;;  %3590 = vrot.lane.b32.xlu0 %v3515_v27, %s8101_s10  ;;  %v4098_v60 = vld [vmem:[#allocation2 + $0x108] sm:$0xff] }
 0x4c2   : > { %v3959_v45 = vpop.permute.xlu1 %3958  ;;  %v3768_v12 = vpop.permute.xlu0 %3767 }
 0x4c3   : > { %4053 = vst.msk [vmem:[#allocation3 + $0x10] sm:$0xff] %vm4050_vm7, %v3959_v45  ;;  %v3905_v45 = vld [vmem:[#allocation2 + $0xfc] sm:$0xff] }
 0x4c4   : > { %3861 = vst.msk [vmem:[#allocation3 + $0x18] sm:$0xff] %vm3857_vm6, %v3768_v12  ;;  %4550 = vrot.lane.b32.xlu1 %v3514_v48, %s8106_s25  ;;  %4359 = vrot.lane.b32.xlu0 %v9526_v3, %s8105_s14  ;;  %v4094_v3 = vld [vmem:[#allocation2 + $0xd8] sm:$0xff] }
 0x4c6   : > { %v4728_v26 = vpop.permute.xlu1 %4727  ;;  %v4537_v50 = vpop.permute.xlu0 %4536 }
 0x4c7   : > { %4824 = vst.msk [vmem:[#allocation3] sm:$0xff] %vm4823_vm11, %v4728_v26 }
 0x4c8   : > { %4632 = vst.msk [vmem:[#allocation3 + $0x8] sm:$0xff] %vm4630_vm10, %v4537_v50  ;;  %3974 = vrot.lane.b32.xlu1 %v3900_v6, %s8103_s12  ;;  %3783 = vrot.lane.b32.xlu0 %v3708_v25, %s8102_s11 }
 0x4ca   : > { %v4153_v42 = vpop.permute.xlu1 %4152  ;;  %v3961_v29 = vpop.permute.xlu0 %3960 }
 0x4cb   : > { %4247 = vst.msk [vmem:[#allocation3 + $0x10] sm:$0xff] %vm4244_vm8, %v4153_v42  ;;  %v4099_v42 = vld [vmem:[#allocation2 + $0x110] sm:$0xff] }
 0x4cc   : > { %4054 = vst.msk [vmem:[#allocation3 + $0x18] sm:$0xff] %vm4050_vm7, %v3961_v29  ;;  %4743 = vrot.lane.b32.xlu1 %v3707_v59, %s8107_s23  ;;  %4552 = vrot.lane.b32.xlu0 %v3515_v27, %s8106_s25  ;;  %v3520_v29 = vld [vmem:[#allocation2 + $0x10a] sm:$0xff] }
 0x4ce   : > { %v4921_v33 = vpop.permute.xlu1 %4920  ;;  %v4730_v38 = vpop.permute.xlu0 %4729 }
 0x4cf   : > { %5017 = vst.msk [vmem:[#allocation3] sm:$0xff] %vm5016_vm12, %v4921_v33 }
 0x4d0   : > { %4825 = vst.msk [vmem:[#allocation3 + $0x8] sm:$0xff] %vm4823_vm11, %v4730_v38  ;;  %4168 = vrot.lane.b32.xlu1 %v4094_v3, %s8104_s13  ;;  %3976 = vrot.lane.b32.xlu0 %v3901_v30, %s8103_s12  ;;  %v4291_v38 = vld [vmem:[#allocation2 + $0x109] sm:$0xff] }
 0x4d2   : > { %v4346_v41 = vpop.permute.xlu1 %4345  ;;  %v4155_v4 = vpop.permute.xlu0 %4154 }
 0x4d3   : > { %4440 = vst.msk [vmem:[#allocation3 + $0x10] sm:$0xff] %vm4437_vm9, %v4346_v41 }
 0x4d4   : > { %4248 = vst.msk [vmem:[#allocation3 + $0x18] sm:$0xff] %vm4244_vm8, %v4155_v4  ;;  %4936 = vrot.lane.b32.xlu1 %v3900_v6, %s8109_s26  ;;  %4745 = vrot.lane.b32.xlu0 %v3708_v25, %s8107_s23 }
 0x4d6   : > { %v3770_v13 = vpop.permute.xlu1 %3769  ;;  %v4923_v24 = vpop.permute.xlu0 %4922  ;;  %v5049_v49 = vld [vmem:[#allocation3] sm:$0xff] }
 0x4d7   : > { %3862 = vst.msk [vmem:[#allocation3 + $0x20] sm:$0xff] %vm3857_vm6, %v3770_v13  ;;  %7752 = vmatprep.mubr.msk.f32.mxu0 %vm5098_vm13, %v5049_v49  ;;  %v4292_v49 = vld [vmem:[#allocation2 + $0x111] sm:$0xff] }
 0x4d8   : > { %5018 = vst.msk [vmem:[#allocation3 + $0x8] sm:$0xff] %vm5016_vm12, %v4923_v24  ;;  %4170 = vrot.lane.b32.xlu1 %v4095_v32, %s8104_s13  ;;  %3592 = vrot.lane.b32.xlu0 %v3516_v5, %s8101_s10  ;;  %v3713_v32 = vld [vmem:[#allocation2 + $0x10b] sm:$0xff] }
 0x4da   : > { %v4539_v31 = vpop.permute.xlu1 %4538  ;;  %v4348_v57 = vpop.permute.xlu0 %4347 }
 0x4db   : > { %4633 = vst.msk [vmem:[#allocation3 + $0x10] sm:$0xff] %vm4630_vm10, %v4539_v31 }
 0x4dc   : > { %4441 = vst.msk [vmem:[#allocation3 + $0x18] sm:$0xff] %vm4437_vm9, %v4348_v57  ;;  %4938 = vrot.lane.b32.xlu1 %v3901_v30, %s8109_s26  ;;  %4361 = vrot.lane.b32.xlu0 %v9538_v10, %s8105_s14  ;;  %v3902_v10 = vld [vmem:[#allocation2 + $0xdc] sm:$0xff] }
 0x4de   : > { %v3963_v55 = vpop.permute.xlu1 %3962  ;;  %v3772_v58 = vpop.permute.xlu0 %3771 }
 0x4df   : > { %v5050_v56 = vld [vmem:[#allocation3 + $0x8] sm:$0xff]  ;;  %4055 = vst.msk [vmem:[#allocation3 + $0x20] sm:$0xff] %vm4050_vm7, %v3963_v55 }
 0x4e0   : > { %3863 = vst.msk [vmem:[#allocation3 + $0x28] sm:$0xff] %vm3857_vm6, %v3772_v58  ;;  %7753 = vmatmul.mubr.msk.f32.vlgmr.msra.gmra.mrb[0].mxu0 %vm5098_vm13, %v5050_v56  ;;  %3785 = vrot.lane.b32.xlu1 %v3709_v37, %s8102_s11 }
 0x4e1   : > { %3594 = vrot.lane.b32.xlu0 %v3517_v54, %s8101_s10 }
 0x4e2   : > { %v4732_v44 = vpop.permute.xlu1 %4731  ;;  %v4541_v61 = vpop.permute.xlu0 %4540 }
 0x4e3   : > { %4826 = vst.msk [vmem:[#allocation3 + $0x10] sm:$0xff] %vm4823_vm11, %v4732_v44 }
 0x4e4   : > { %4634 = vst.msk [vmem:[#allocation3 + $0x18] sm:$0xff] %vm4630_vm10, %v4541_v61  ;;  %4554 = vrot.lane.b32.xlu1 %v3516_v5, %s8106_s25  ;;  %v3521_v5 = vld [vmem:[#allocation2 + $0x112] sm:$0xff]  ;;  %v4100_v61 = vld [vmem:[#allocation2 + $0x120] sm:$0xff] }
 0x4e5   : > { %4363 = vrot.lane.b32.xlu0 %v9536_v9, %s8105_s14  ;;  %v4096_v9 = vld [vmem:[#allocation2 + $0xf0] sm:$0xff] }
 0x4e6   : > { %v4157_v34 = vpop.permute.xlu1 %4156  ;;  %v3965_v43 = vpop.permute.xlu0 %3964 }
 0x4e7   : > { %4249 = vst.msk [vmem:[#allocation3 + $0x20] sm:$0xff] %vm4244_vm8, %v4157_v34 }
 0x4e8   : > { %4056 = vst.msk [vmem:[#allocation3 + $0x28] sm:$0xff] %vm4050_vm7, %v3965_v43  ;;  %3978 = vrot.lane.b32.xlu1 %v3902_v10, %s8103_s12 }
 0x4e9   : > { %3787 = vrot.lane.b32.xlu0 %v3710_v1, %s8102_s11 }
 0x4ea   : > { %v4925_v2 = vpop.permute.xlu1 %4924  ;;  %v4734_v7 = vpop.permute.xlu0 %4733 }
 0x4eb   : > { %5019 = vst.msk [vmem:[#allocation3 + $0x10] sm:$0xff] %vm5016_vm12, %v4925_v2 }
 0x4ec   : > { %4827 = vst.msk [vmem:[#allocation3 + $0x18] sm:$0xff] %vm4823_vm11, %v4734_v7  ;;  %4747 = vrot.lane.b32.xlu1 %v3709_v37, %s8107_s23  ;;  %v3906_v37 = vld [vmem:[#allocation2 + $0x10c] sm:$0xff] }
 0x4ed   : > { %4556 = vrot.lane.b32.xlu0 %v3517_v54, %s8106_s25  ;;  %v3714_v54 = vld [vmem:[#allocation2 + $0x113] sm:$0xff] }
 0x4ee   : > { %v4350_v8 = vpop.permute.xlu1 %4349  ;;  %v4159_v11 = vpop.permute.xlu0 %4158 }
 0x4ef   : > { %4442 = vst.msk [vmem:[#allocation3 + $0x20] sm:$0xff] %vm4437_vm9, %v4350_v8 }
 0x4f0   : > { %4250 = vst.msk [vmem:[#allocation3 + $0x28] sm:$0xff] %vm4244_vm8, %v4159_v11  ;;  %4172 = vrot.lane.b32.xlu1 %v4096_v9, %s8104_s13  ;;  %v4101_v9 = vld [vmem:[#allocation2 + $0x128] sm:$0xff] }
 0x4f1   : > { %3980 = vrot.lane.b32.xlu0 %v3903_v36, %s8103_s12 }
 0x4f2   : > { %v3774_v14 = vpop.permute.xlu1 %3773  ;;  %v4927_v15 = vpop.permute.xlu0 %4926  ;;  %v5051_v16 = vld [vmem:[#allocation3 + $0x10] sm:$0xff] }
 0x4f3   : > { %3864 = vst.msk [vmem:[#allocation3 + $0x30] sm:$0xff] %vm3857_vm6, %v3774_v14  ;;  %7755 = vmatprep.mubr.msk.f32.mxu0 %vm5098_vm13, %v5051_v16 }
 0x4f4   : > { %5020 = vst.msk [vmem:[#allocation3 + $0x18] sm:$0xff] %vm5016_vm12, %v4927_v15  ;;  %4940 = vrot.lane.b32.xlu1 %v3902_v10, %s8109_s26  ;;  %v3907_v10 = vld [vmem:[#allocation2 + $0x114] sm:$0xff]  ;;  %v4293_v15 = vld [vmem:[#allocation2 + $0x121] sm:$0xff] }
 0x4f5   : > { %4749 = vrot.lane.b32.xlu0 %v3710_v1, %s8107_s23 }
 0x4f6   : > { %v4543_v63 = vpop.permute.xlu1 %4542  ;;  %v4352_v40 = vpop.permute.xlu0 %4351 }
 0x4f7   : > { %4635 = vst.msk [vmem:[#allocation3 + $0x20] sm:$0xff] %vm4630_vm10, %v4543_v63  ;;  %v3523_v63 = vld [vmem:[#allocation2 + $0x12a] sm:$0xff] }
 0x4f8   : > { %4443 = vst.msk [vmem:[#allocation3 + $0x28] sm:$0xff] %vm4437_vm9, %v4352_v40  ;;  %4174 = vrot.lane.b32.xlu1 %v4097_v35, %s8104_s13 }
 0x4f9   : > { %3596 = vrot.lane.b32.xlu0 %v3518_v17, %s8101_s10 }
 0x4fa   : > { %v3967_v18 = vpop.permute.xlu1 %3966  ;;  %v3776_v19 = vpop.permute.xlu0 %3775 }
 0x4fb   : > { %v5052_v22 = vld [vmem:[#allocation3 + $0x18] sm:$0xff]  ;;  %4057 = vst.msk [vmem:[#allocation3 + $0x30] sm:$0xff] %vm4050_vm7, %v3967_v18  ;;  %v4294_v18 = vld [vmem:[#allocation2 + $0x129] sm:$0xff] }
 0x4fc   : > { %3865 = vst.msk [vmem:[#allocation3 + $0x38] sm:$0xff] %vm3857_vm6, %v3776_v19  ;;  %7756 = vmatmul.mubr.msk.f32.gmra.mrb[2].mxu0 %vm5098_vm13, %v5052_v22  ;;  %4942 = vrot.lane.b32.xlu1 %v3903_v36, %s8109_s26  ;;  %v3522_v36 = vld [vmem:[#allocation2 + $0x122] sm:$0xff] }
 0x4fd   : > { %4365 = vrot.lane.b32.xlu0 %v4289_v39, %s8105_s14 }
 0x4fe   : > { %v4736_v20 = vpop.permute.xlu1 %4735  ;;  %v4545_v28 = vpop.permute.xlu0 %4544 }
 0x4ff   : > { %4828 = vst.msk [vmem:[#allocation3 + $0x20] sm:$0xff] %vm4823_vm11, %v4736_v20 }
 0x500   : > { %4636 = vst.msk [vmem:[#allocation3 + $0x28] sm:$0xff] %vm4630_vm10, %v4545_v28  ;;  %3789 = vrot.lane.b32.xlu1 %v3711_v62, %s8102_s11 }
 0x501   : > { %3598 = vrot.lane.b32.xlu0 %v3519_v23, %s8101_s10 }
 0x502   : > { %v4161_v48 = vpop.permute.xlu1 %4160  ;;  %v3969_v51 = vpop.permute.xlu0 %3968 }
 0x503   : > { %4251 = vst.msk [vmem:[#allocation3 + $0x30] sm:$0xff] %vm4244_vm8, %v4161_v48 }
 0x504   : > { %4058 = vst.msk [vmem:[#allocation3 + $0x38] sm:$0xff] %vm4050_vm7, %v3969_v51  ;;  %4558 = vrot.lane.b32.xlu1 %v3518_v17, %s8106_s25  ;;  %v3715_v17 = vld [vmem:[#allocation2 + $0x123] sm:$0xff]  ;;  %v4102_v51 = vld [vmem:[#allocation2 + $0x138] sm:$0xff] }
 0x505   : > { %4367 = vrot.lane.b32.xlu0 %v4290_v46, %s8105_s14 }
 0x506   : > { %v4929_v52 = vpop.permute.xlu1 %4928  ;;  %v4738_v59 = vpop.permute.xlu0 %4737 }
 0x507   : > { %5021 = vst.msk [vmem:[#allocation3 + $0x20] sm:$0xff] %vm5016_vm12, %v4929_v52 }
 0x508   : > { %4829 = vst.msk [vmem:[#allocation3 + $0x28] sm:$0xff] %vm4823_vm11, %v4738_v59  ;;  %3982 = vrot.lane.b32.xlu1 %v3904_v21, %s8103_s12 }
 0x509   : > { %3791 = vrot.lane.b32.xlu0 %v3712_v47, %s8102_s11 }
 0x50a   : > { %v4163_v27 = vpop.permute.xlu1 %4162  ;;  %v3585_v53 = vpop.permute.xlu0 %3584 }
 0x50b   : > { %4252 = vst.msk [vmem:[#allocation3 + $0x38] sm:$0xff] %vm4244_vm8, %v4163_v27 }
 0x50c   : > { %3673 = vst.msk [vmem:[#allocation3 + $0x40] sm:$0xff] %vm3664_vm5, %v3585_v53  ;;  %4751 = vrot.lane.b32.xlu1 %v3711_v62, %s8107_s23  ;;  %v3908_v62 = vld [vmem:[#allocation2 + $0x124] sm:$0xff] }
 0x50d   : > { %4560 = vrot.lane.b32.xlu0 %v3519_v23, %s8106_s25  ;;  %v3716_v23 = vld [vmem:[#allocation2 + $0x12b] sm:$0xff] }
 0x50e   : > { %v4931_v12 = vpop.permute.xlu1 %4930  ;;  %v4354_v6 = vpop.permute.xlu0 %4353  ;;  %v5053_v25 = vld [vmem:[#allocation3 + $0x20] sm:$0xff] }
 0x50f   : > { %5022 = vst.msk [vmem:[#allocation3 + $0x28] sm:$0xff] %vm5016_vm12, %v4931_v12  ;;  %7758 = vmatprep.mubr.msk.f32.mxu0 %vm5098_vm13, %v5053_v25 }
 0x510   : > { %4444 = vst.msk [vmem:[#allocation3 + $0x30] sm:$0xff] %vm4437_vm9, %v4354_v6  ;;  %4176 = vrot.lane.b32.xlu1 %v4098_v60, %s8104_s13  ;;  %v4103_v60 = vld [vmem:[#allocation2 + $0x140] sm:$0xff] }
 0x511   : > { %3984 = vrot.lane.b32.xlu0 %v3905_v45, %s8103_s12 }
 0x512   : > { %v3778_v26 = vpop.permute.xlu1 %3777  ;;  %v3587_v50 = vpop.permute.xlu0 %3586 }
 0x513   : > { %3866 = vst.msk [vmem:[#allocation3 + $0x40] sm:$0xff] %vm3857_vm6, %v3778_v26  ;;  %v4295_v26 = vld [vmem:[#allocation2 + $0x139] sm:$0xff] }
 0x514   : > { %3674 = vst.msk [vmem:[#allocation3 + $0x48] sm:$0xff] %vm3664_vm5, %v3587_v50  ;;  %4944 = vrot.lane.b32.xlu1 %v3904_v21, %s8109_s26  ;;  %v3909_v21 = vld [vmem:[#allocation2 + $0x12c] sm:$0xff] }
 0x515   : > { %4753 = vrot.lane.b32.xlu0 %v3712_v47, %s8107_s23 }
 0x516   : > { %v4547_v3 = vpop.permute.xlu1 %4546  ;;  %v4356_v30 = vpop.permute.xlu0 %4355  ;;  %v5054_v33 = vld [vmem:[#allocation3 + $0x28] sm:$0xff] }
 0x517   : > { %4637 = vst.msk [vmem:[#allocation3 + $0x30] sm:$0xff] %vm4630_vm10, %v4547_v3  ;;  %7759 = vmatmul.mubr.msk.f32.gmra.mrb[4].mxu0 %vm5098_vm13, %v5054_v33  ;;  %v3525_v3 = vld [vmem:[#allocation2 + $0x142] sm:$0xff] }
 0x518   : > { %4445 = vst.msk [vmem:[#allocation3 + $0x38] sm:$0xff] %vm4437_vm9, %v4356_v30  ;;  %4178 = vrot.lane.b32.xlu1 %v4099_v42, %s8104_s13 }
 0x519   : > { %3600 = vrot.lane.b32.xlu0 %v3520_v29, %s8101_s10 }
 0x51a   : > { %v3971_v41 = vpop.permute.xlu1 %3970  ;;  %v3780_v4 = vpop.permute.xlu0 %3779 }
 0x51b   : > { %4059 = vst.msk [vmem:[#allocation3 + $0x40] sm:$0xff] %vm4050_vm7, %v3971_v41 }
 0x51c   : > { %3867 = vst.msk [vmem:[#allocation3 + $0x48] sm:$0xff] %vm3857_vm6, %v3780_v4  ;;  %4946 = vrot.lane.b32.xlu1 %v3905_v45, %s8109_s26  ;;  %v3524_v45 = vld [vmem:[#allocation2 + $0x13a] sm:$0xff] }
 0x51d   : > { %4369 = vrot.lane.b32.xlu0 %v4291_v38, %s8105_s14  ;;  %v4296_v38 = vld [vmem:[#allocation2 + $0x141] sm:$0xff] }
 0x51e   : > { %v4740_v13 = vpop.permute.xlu1 %4739  ;;  %v4549_v24 = vpop.permute.xlu0 %4548 }
 0x51f   : > { %4830 = vst.msk [vmem:[#allocation3 + $0x30] sm:$0xff] %vm4823_vm11, %v4740_v13 }
 0x520   : > { %4638 = vst.msk [vmem:[#allocation3 + $0x38] sm:$0xff] %vm4630_vm10, %v4549_v24  ;;  %3793 = vrot.lane.b32.xlu1 %v3713_v32, %s8102_s11 }
 0x521   : > { %3602 = vrot.lane.b32.xlu0 %v3521_v5, %s8101_s10 }
 0x522   : > { %v4165_v31 = vpop.permute.xlu1 %4164  ;;  %v3973_v57 = vpop.permute.xlu0 %3972 }
 0x523   : > { %4253 = vst.msk [vmem:[#allocation3 + $0x40] sm:$0xff] %vm4244_vm8, %v4165_v31 }
 0x524   : > { %4060 = vst.msk [vmem:[#allocation3 + $0x48] sm:$0xff] %vm4050_vm7, %v3973_v57  ;;  %4562 = vrot.lane.b32.xlu1 %v3520_v29, %s8106_s25  ;;  %v3717_v29 = vld [vmem:[#allocation2 + $0x13b] sm:$0xff]  ;;  %v4104_v57 = vld [vmem:[#allocation2 + $0x150] sm:$0xff] }
 0x525   : > { %4371 = vrot.lane.b32.xlu0 %v4292_v49, %s8105_s14 }
 0x526   : > { %v4933_v55 = vpop.permute.xlu1 %4932  ;;  %v4742_v58 = vpop.permute.xlu0 %4741 }
 0x527   : > { %5023 = vst.msk [vmem:[#allocation3 + $0x30] sm:$0xff] %vm5016_vm12, %v4933_v55 }
 0x528   : > { %4831 = vst.msk [vmem:[#allocation3 + $0x38] sm:$0xff] %vm4823_vm11, %v4742_v58  ;;  %3986 = vrot.lane.b32.xlu1 %v3906_v37, %s8103_s12 }
 0x529   : > { %3795 = vrot.lane.b32.xlu0 %v3714_v54, %s8102_s11 }
 0x52a   : > { %v4167_v56 = vpop.permute.xlu1 %4166  ;;  %v3589_v44 = vpop.permute.xlu0 %3588 }
 0x52b   : > { %4254 = vst.msk [vmem:[#allocation3 + $0x48] sm:$0xff] %vm4244_vm8, %v4167_v56 }
 0x52c   : > { %3675 = vst.msk [vmem:[#allocation3 + $0x50] sm:$0xff] %vm3664_vm5, %v3589_v44  ;;  %4755 = vrot.lane.b32.xlu1 %v3713_v32, %s8107_s23  ;;  %v3910_v32 = vld [vmem:[#allocation2 + $0x13c] sm:$0xff] }
 0x52d   : > { %4564 = vrot.lane.b32.xlu0 %v3521_v5, %s8106_s25  ;;  %v3718_v5 = vld [vmem:[#allocation2 + $0x143] sm:$0xff]  ;;  %v4105_v44 = vld [vmem:[#allocation2 + $0x158] sm:$0xff] }
 0x52e   : > { %v4935_v1 = vpop.permute.xlu1 %4934  ;;  %v4358_v34 = vpop.permute.xlu0 %4357  ;;  %v5055_v43 = vld [vmem:[#allocation3 + $0x30] sm:$0xff] }
 0x52f   : > { %5024 = vst.msk [vmem:[#allocation3 + $0x38] sm:$0xff] %vm5016_vm12, %v4935_v1  ;;  %7761 = vmatprep.mubr.msk.f32.mxu0 %vm5098_vm13, %v5055_v43  ;;  %v4297_v43 = vld [vmem:[#allocation2 + $0x151] sm:$0xff] }
 0x530   : > { %4446 = vst.msk [vmem:[#allocation3 + $0x40] sm:$0xff] %vm4437_vm9, %v4358_v34  ;;  %4180 = vrot.lane.b32.xlu1 %v4100_v61, %s8104_s13  ;;  %v3526_v61 = vld [vmem:[#allocation2 + $0x152] sm:$0xff] }
 0x531   : > { %3988 = vrot.lane.b32.xlu0 %v3907_v10, %s8103_s12 }
 0x532   : > { %v3782_v2 = vpop.permute.xlu1 %3781  ;;  %v3591_v7 = vpop.permute.xlu0 %3590 }
 0x533   : > { %3868 = vst.msk [vmem:[#allocation3 + $0x50] sm:$0xff] %vm3857_vm6, %v3782_v2 }
 0x534   : > { %3676 = vst.msk [vmem:[#allocation3 + $0x58] sm:$0xff] %vm3664_vm5, %v3591_v7  ;;  %4948 = vrot.lane.b32.xlu1 %v3906_v37, %s8109_s26  ;;  %v3911_v37 = vld [vmem:[#allocation2 + $0x144] sm:$0xff] }
 0x535   : > { %4757 = vrot.lane.b32.xlu0 %v3714_v54, %s8107_s23 }
 0x536   : > { %v4551_v8 = vpop.permute.xlu1 %4550  ;;  %v4360_v11 = vpop.permute.xlu0 %4359  ;;  %v5056_v14 = vld [vmem:[#allocation3 + $0x38] sm:$0xff] }
 0x537   : > { %4639 = vst.msk [vmem:[#allocation3 + $0x40] sm:$0xff] %vm4630_vm10, %v4551_v8  ;;  %7762 = vmatmul.mubr.msk.f32.gmra.mrb[6].mxu0 %vm5098_vm13, %v5056_v14  ;;  %v4298_v14 = vld [vmem:[#allocation2 + $0x159] sm:$0xff] }
 0x538   : > { %4447 = vst.msk [vmem:[#allocation3 + $0x48] sm:$0xff] %vm4437_vm9, %v4360_v11  ;;  %4182 = vrot.lane.b32.xlu1 %v4101_v9, %s8104_s13  ;;  %v3719_v9 = vld [vmem:[#allocation2 + $0x153] sm:$0xff] }
 0x539   : > { %3604 = vrot.lane.b32.xlu0 %v3522_v36, %s8101_s10 }
 0x53a   : > { %v3975_v16 = vpop.permute.xlu1 %3974  ;;  %v3784_v35 = vpop.permute.xlu0 %3783 }
 0x53b   : > { %4061 = vst.msk [vmem:[#allocation3 + $0x50] sm:$0xff] %vm4050_vm7, %v3975_v16 }
 0x53c   : > { %3869 = vst.msk [vmem:[#allocation3 + $0x58] sm:$0xff] %vm3857_vm6, %v3784_v35  ;;  %4950 = vrot.lane.b32.xlu1 %v3907_v10, %s8109_s26  ;;  %v3912_v35 = vld [vmem:[#allocation2 + $0x154] sm:$0xff] }
 0x53d   : > { %4373 = vrot.lane.b32.xlu0 %v4293_v15, %s8105_s14 }
 0x53e   : > { %v4744_v40 = vpop.permute.xlu1 %4743  ;;  %v4553_v39 = vpop.permute.xlu0 %4552 }
 0x53f   : > { %4832 = vst.msk [vmem:[#allocation3 + $0x40] sm:$0xff] %vm4823_vm11, %v4744_v40 }
 0x540   : > { %4640 = vst.msk [vmem:[#allocation3 + $0x48] sm:$0xff] %vm4630_vm10, %v4553_v39  ;;  %3797 = vrot.lane.b32.xlu1 %v3715_v17, %s8102_s11 }
 0x541   : > { %3606 = vrot.lane.b32.xlu0 %v3523_v63, %s8101_s10 }
 0x542   : > { %v4169_v19 = vpop.permute.xlu1 %4168  ;;  %v3977_v22 = vpop.permute.xlu0 %3976 }
 0x543   : > { %4255 = vst.msk [vmem:[#allocation3 + $0x50] sm:$0xff] %vm4244_vm8, %v4169_v19  ;;  %v4106_v19 = vld [vmem:[#allocation2 + $0x168] sm:$0xff] }
 0x544   : > { %4062 = vst.msk [vmem:[#allocation3 + $0x58] sm:$0xff] %vm4050_vm7, %v3977_v22  ;;  %4566 = vrot.lane.b32.xlu1 %v3522_v36, %s8106_s25  ;;  %v3527_v36 = vld [vmem:[#allocation2 + $0x15a] sm:$0xff] }
 0x545   : > { %4375 = vrot.lane.b32.xlu0 %v4294_v18, %s8105_s14  ;;  %v3913_v22 = vld [vmem:[#allocation2 + $0x15c] sm:$0xff] }
 0x546   : > { %v4937_v20 = vpop.permute.xlu1 %4936  ;;  %v4746_v28 = vpop.permute.xlu0 %4745 }
 0x547   : > { %5025 = vst.msk [vmem:[#allocation3 + $0x40] sm:$0xff] %vm5016_vm12, %v4937_v20 }
 0x548   : > { %4833 = vst.msk [vmem:[#allocation3 + $0x48] sm:$0xff] %vm4823_vm11, %v4746_v28  ;;  %3990 = vrot.lane.b32.xlu1 %v3908_v62, %s8103_s12 }
 0x549   : > { %3799 = vrot.lane.b32.xlu0 %v3716_v23, %s8102_s11 }
 0x54a   : > { %v4171_v46 = vpop.permute.xlu1 %4170  ;;  %v3593_v48 = vpop.permute.xlu0 %3592 }
 0x54b   : > { %4256 = vst.msk [vmem:[#allocation3 + $0x58] sm:$0xff] %vm4244_vm8, %v4171_v46 }
 0x54c   : > { %3677 = vst.msk [vmem:[#allocation3 + $0x60] sm:$0xff] %vm3664_vm5, %v3593_v48  ;;  %4759 = vrot.lane.b32.xlu1 %v3715_v17, %s8107_s23  ;;  %v3720_v17 = vld [vmem:[#allocation2 + $0x15b] sm:$0xff]  ;;  %v4107_v48 = vld [vmem:[#allocation2 + $0x170] sm:$0xff] }
 0x54d   : > { %4568 = vrot.lane.b32.xlu0 %v3523_v63, %s8106_s25 }
 0x54e   : > { %v4939_v47 = vpop.permute.xlu1 %4938  ;;  %v4362_v52 = vpop.permute.xlu0 %4361  ;;  %v5057_v59 = vld [vmem:[#allocation3 + $0x40] sm:$0xff] }
 0x54f   : > { %5026 = vst.msk [vmem:[#allocation3 + $0x48] sm:$0xff] %vm5016_vm12, %v4939_v47  ;;  %7764 = vmatprep.mubr.msk.f32.mxu0 %vm5098_vm13, %v5057_v59  ;;  %v4299_v59 = vld [vmem:[#allocation2 + $0x169] sm:$0xff] }
 0x550   : > { %4448 = vst.msk [vmem:[#allocation3 + $0x50] sm:$0xff] %vm4437_vm9, %v4362_v52  ;;  %4184 = vrot.lane.b32.xlu1 %v4102_v51, %s8104_s13  ;;  %v3528_v51 = vld [vmem:[#allocation2 + $0x16a] sm:$0xff] }
 0x551   : > { %3992 = vrot.lane.b32.xlu0 %v3909_v21, %s8103_s12 }
 0x552   : > { %v3786_v27 = vpop.permute.xlu1 %3785 }
 0x553   : > { %v3595_v53 = vpop.permute.xlu0 %3594  ;;  %3870 = vst.msk [vmem:[#allocation3 + $0x60] sm:$0xff] %vm3857_vm6, %v3786_v27 }
 0x554   : > { %3678 = vst.msk [vmem:[#allocation3 + $0x68] sm:$0xff] %vm3664_vm5, %v3595_v53  ;;  %4952 = vrot.lane.b32.xlu1 %v3908_v62, %s8109_s26 }
 0x555   : > { %4761 = vrot.lane.b32.xlu0 %v3716_v23, %s8107_s23 }
 0x556   : > { %v4555_v12 = vpop.permute.xlu1 %4554  ;;  %v5058_v25 = vld [vmem:[#allocation3 + $0x48] sm:$0xff] }
 0x557   : > { %v4364_v6 = vpop.permute.xlu0 %4363  ;;  %4641 = vst.msk [vmem:[#allocation3 + $0x50] sm:$0xff] %vm4630_vm10, %v4555_v12  ;;  %7765 = vmatmul.mubr.msk.f32.gmra.mrb[8].mxu0 %vm5098_vm13, %v5058_v25  ;;  %v4300_v25 = vld [vmem:[#allocation2 + $0x171] sm:$0xff] }
 0x558   : > { %4449 = vst.msk [vmem:[#allocation3 + $0x58] sm:$0xff] %vm4437_vm9, %v4364_v6  ;;  %4186 = vrot.lane.b32.xlu1 %v4103_v60, %s8104_s13  ;;  %v3721_v60 = vld [vmem:[#allocation2 + $0x16b] sm:$0xff] }
 0x559   : > { %3608 = vrot.lane.b32.xlu0 %v3524_v45, %s8101_s10 }
 0x55a   : > { %v3979_v50 = vpop.permute.xlu1 %3978 }
 0x55b   : > { %v3788_v42 = vpop.permute.xlu0 %3787  ;;  %4063 = vst.msk [vmem:[#allocation3 + $0x60] sm:$0xff] %vm4050_vm7, %v3979_v50 }
 0x55c   : > { %3871 = vst.msk [vmem:[#allocation3 + $0x68] sm:$0xff] %vm3857_vm6, %v3788_v42  ;;  %4954 = vrot.lane.b32.xlu1 %v3909_v21, %s8109_s26  ;;  %v3914_v42 = vld [vmem:[#allocation2 + $0x16c] sm:$0xff] }
 0x55d   : > { %4377 = vrot.lane.b32.xlu0 %v4295_v26, %s8105_s14 }
 0x55e   : > { %v4748_v30 = vpop.permute.xlu1 %4747 }
 0x55f   : > { %v4557_v33 = vpop.permute.xlu0 %4556  ;;  %4834 = vst.msk [vmem:[#allocation3 + $0x50] sm:$0xff] %vm4823_vm11, %v4748_v30 }
 0x560   : > { %4642 = vst.msk [vmem:[#allocation3 + $0x58] sm:$0xff] %vm4630_vm10, %v4557_v33  ;;  %3801 = vrot.lane.b32.xlu1 %v3717_v29, %s8102_s11 }
 0x561   : > { %3610 = vrot.lane.b32.xlu0 %v3525_v3, %s8101_s10 }
 0x562   : > { %v4173_v41 = vpop.permute.xlu1 %4172 }
 0x563   : > { %v3981_v4 = vpop.permute.xlu0 %3980  ;;  %4257 = vst.msk [vmem:[#allocation3 + $0x60] sm:$0xff] %vm4244_vm8, %v4173_v41  ;;  %v10097_v41 = vld [vmem:[#allocation6 + $0x10] sm:$0xff] }
 0x564   : > { %4064 = vst.msk [vmem:[#allocation3 + $0x68] sm:$0xff] %vm4050_vm7, %v3981_v4  ;;  %4570 = vrot.lane.b32.xlu1 %v3524_v45, %s8106_s25  ;;  %v3529_v45 = vld [vmem:[#allocation2 + $0x172] sm:$0xff]  ;;  %v4108_v4 = vld [vmem:[#allocation2 + $0x180] sm:$0xff] }
 0x565   : > { %4379 = vrot.lane.b32.xlu0 %v4296_v38, %s8105_s14  ;;  %5636 = vst.msk [vmem:[#allocation7 + $0x38] sm:$0xff] %vm5456_vm14, %v10097_v41 }
 0x566   : > { %v4941_v13 = vpop.permute.xlu1 %4940 }
 0x567   : > { %v4750_v24 = vpop.permute.xlu0 %4749  ;;  %5027 = vst.msk [vmem:[#allocation3 + $0x50] sm:$0xff] %vm5016_vm12, %v4941_v13 }
 0x568   : > { %4835 = vst.msk [vmem:[#allocation3 + $0x58] sm:$0xff] %vm4823_vm11, %v4750_v24  ;;  %3994 = vrot.lane.b32.xlu1 %v3910_v32, %s8103_s12 }
 0x569   : > { %3803 = vrot.lane.b32.xlu0 %v3718_v5, %s8102_s11 }
 0x56a   : > { %v4175_v49 = vpop.permute.xlu1 %4174 }
 0x56b   : > { %v3597_v31 = vpop.permute.xlu0 %3596  ;;  %4258 = vst.msk [vmem:[#allocation3 + $0x68] sm:$0xff] %vm4244_vm8, %v4175_v49  ;;  %v10109_v49 = vld [vmem:[%s11434_s2] ss:$0 sm:$0xff] }
 0x56c   : > { %3679 = vst.msk [vmem:[#allocation3 + $0x70] sm:$0xff] %vm3664_vm5, %v3597_v31  ;;  %4763 = vrot.lane.b32.xlu1 %v3717_v29, %s8107_s23  ;;  %v3722_v29 = vld [vmem:[#allocation2 + $0x173] sm:$0xff] }
 0x56d   : > { %4572 = vrot.lane.b32.xlu0 %v3525_v3, %s8106_s25 }
 0x56e   : > { %v4943_v54 = vpop.permute.xlu1 %4942  ;;  %v5059_v58 = vld [vmem:[#allocation3 + $0x50] sm:$0xff] }
 0x56f   : > { %v4366_v55 = vpop.permute.xlu0 %4365  ;;  %5028 = vst.msk [vmem:[#allocation3 + $0x58] sm:$0xff] %vm5016_vm12, %v4943_v54  ;;  %7767 = vmatprep.mubr.msk.f32.mxu0 %vm5098_vm13, %v5059_v58 }
 0x570   : > { %4450 = vst.msk [vmem:[#allocation3 + $0x60] sm:$0xff] %vm4437_vm9, %v4366_v55  ;;  %4188 = vrot.lane.b32.xlu1 %v4104_v57, %s8104_s13 }
 0x571   : > { %3996 = vrot.lane.b32.xlu0 %v3911_v37, %s8103_s12 }
 0x572   : > { %v3790_v0 = vpop.permute.xlu1 %3789 }
 0x573   : > { %v3599_v56 = vpop.permute.xlu0 %3598  ;;  %3872 = vst.msk [vmem:[#allocation3 + $0x70] sm:$0xff] %vm3857_vm6, %v3790_v0 }
 0x574   : > { %3680 = vst.msk [vmem:[#allocation3 + $0x78] sm:$0xff] %vm3664_vm5, %v3599_v56  ;;  %4956 = vrot.lane.b32.xlu1 %v3910_v32, %s8109_s26  ;;  %v3915_v32 = vld [vmem:[#allocation2 + $0x174] sm:$0xff]  ;;  %v4109_v56 = vld [vmem:[#allocation2 + $0x188] sm:$0xff] }
 0x575   : > { %4765 = vrot.lane.b32.xlu0 %v3718_v5, %s8107_s23 }
 0x576   : > { %v4559_v10 = vpop.permute.xlu1 %4558  ;;  %v5060_v34 = vld [vmem:[#allocation3 + $0x58] sm:$0xff] }
 0x577   : > { %v4368_v1 = vpop.permute.xlu0 %4367  ;;  %4643 = vst.msk [vmem:[#allocation3 + $0x60] sm:$0xff] %vm4630_vm10, %v4559_v10  ;;  %7768 = vmatmul.mubr.msk.f32.gmra.mrb[10].mxu0 %vm5098_vm13, %v5060_v34 }
 0x578   : > { %4451 = vst.msk [vmem:[#allocation3 + $0x68] sm:$0xff] %vm4437_vm9, %v4368_v1  ;;  %4190 = vrot.lane.b32.xlu1 %v4105_v44, %s8104_s13  ;;  %v3530_v44 = vld [vmem:[#allocation2 + $0x182] sm:$0xff] }
 0x579   : > { %3612 = vrot.lane.b32.xlu0 %v3526_v61, %s8101_s10 }
 0x57a   : > { %v3983_v2 = vpop.permute.xlu1 %3982 }
 0x57b   : > { %v3792_v7 = vpop.permute.xlu0 %3791  ;;  %4065 = vst.msk [vmem:[#allocation3 + $0x70] sm:$0xff] %vm4050_vm7, %v3983_v2 }
 0x57c   : > { %3873 = vst.msk [vmem:[#allocation3 + $0x78] sm:$0xff] %vm3857_vm6, %v3792_v7  ;;  %4958 = vrot.lane.b32.xlu1 %v3911_v37, %s8109_s26 }
 0x57d   : > { %4381 = vrot.lane.b32.xlu0 %v4297_v43, %s8105_s14  ;;  %v4301_v43 = vld [vmem:[#allocation2 + $0x181] sm:$0xff] }
 0x57e   : > { %v4752_v8 = vpop.permute.xlu1 %4751 }
 0x57f   : > { %v4561_v11 = vpop.permute.xlu0 %4560  ;;  %4836 = vst.msk [vmem:[#allocation3 + $0x60] sm:$0xff] %vm4823_vm11, %v4752_v8 }
 0x580   : > { %4644 = vst.msk [vmem:[#allocation3 + $0x68] sm:$0xff] %vm4630_vm10, %v4561_v11  ;;  %3805 = vrot.lane.b32.xlu1 %v3719_v9, %s8102_s11 }
 0x581   : > { %3614 = vrot.lane.b32.xlu0 %v3527_v36, %s8101_s10 }
 0x582   : > { %v4177_v15 = vpop.permute.xlu1 %4176 }
 0x583   : > { %v3985_v16 = vpop.permute.xlu0 %3984  ;;  %4259 = vst.msk [vmem:[#allocation3 + $0x70] sm:$0xff] %vm4244_vm8, %v4177_v15 }
 0x584   : > { %4066 = vst.msk [vmem:[#allocation3 + $0x78] sm:$0xff] %vm4050_vm7, %v3985_v16  ;;  %4574 = vrot.lane.b32.xlu1 %v3526_v61, %s8106_s25 }
 0x585   : > { %4383 = vrot.lane.b32.xlu0 %v4298_v14, %s8105_s14  ;;  %v4302_v14 = vld [vmem:[#allocation2 + $0x189] sm:$0xff] }
 0x586   : > { %v4945_v63 = vpop.permute.xlu1 %4944 }
 0x587   : > { %v4754_v40 = vpop.permute.xlu0 %4753  ;;  %5029 = vst.msk [vmem:[#allocation3 + $0x60] sm:$0xff] %vm5016_vm12, %v4945_v63 }
 0x588   : > { %4837 = vst.msk [vmem:[#allocation3 + $0x68] sm:$0xff] %vm4823_vm11, %v4754_v40  ;;  %3998 = vrot.lane.b32.xlu1 %v3912_v35, %s8103_s12 }
 0x589   : > { %3807 = vrot.lane.b32.xlu0 %v3720_v17, %s8102_s11 }
 0x58a   : > { %v4179_v39 = vpop.permute.xlu1 %4178 }
 0x58b   : > { %v3601_v18 = vpop.permute.xlu0 %3600  ;;  %4260 = vst.msk [vmem:[#allocation3 + $0x78] sm:$0xff] %vm4244_vm8, %v4179_v39 }
 0x58c   : > { %3681 = vst.msk [vmem:[#allocation3 + $0x80] sm:$0xff] %vm3664_vm5, %v3601_v18  ;;  %4767 = vrot.lane.b32.xlu1 %v3719_v9, %s8107_s23  ;;  %v3723_v9 = vld [vmem:[#allocation2 + $0x183] sm:$0xff] }
 0x58d   : > { %4576 = vrot.lane.b32.xlu0 %v3527_v36, %s8106_s25  ;;  %v3531_v36 = vld [vmem:[#allocation2 + $0x18a] sm:$0xff] }
 0x58e   : > { %v4947_v62 = vpop.permute.xlu1 %4946  ;;  %v5061_v20 = vld [vmem:[#allocation3 + $0x60] sm:$0xff] }
 0x58f   : > { %v4370_v23 = vpop.permute.xlu0 %4369  ;;  %5030 = vst.msk [vmem:[#allocation3 + $0x68] sm:$0xff] %vm5016_vm12, %v4947_v62  ;;  %7770 = vmatprep.mubr.msk.f32.mxu0 %vm5098_vm13, %v5061_v20 }
 0x590   : > { %4452 = vst.msk [vmem:[#allocation3 + $0x70] sm:$0xff] %vm4437_vm9, %v4370_v23  ;;  %4192 = vrot.lane.b32.xlu1 %v4106_v19, %s8104_s13  ;;  %v4110_v19 = vld [vmem:[#allocation2 + $0x198] sm:$0xff] }
 0x591   : > { %4000 = vrot.lane.b32.xlu0 %v3913_v22, %s8103_s12 }
 0x592   : > { %v3794_v28 = vpop.permute.xlu1 %3793 }
 0x593   : > { %v3603_v46 = vpop.permute.xlu0 %3602  ;;  %3874 = vst.msk [vmem:[#allocation3 + $0x80] sm:$0xff] %vm3857_vm6, %v3794_v28 }
 0x594   : > { %3682 = vst.msk [vmem:[#allocation3 + $0x88] sm:$0xff] %vm3664_vm5, %v3603_v46  ;;  %4960 = vrot.lane.b32.xlu1 %v3912_v35, %s8109_s26  ;;  %v3916_v35 = vld [vmem:[#allocation2 + $0x184] sm:$0xff] }
 0x595   : > { %4769 = vrot.lane.b32.xlu0 %v3720_v17, %s8107_s23  ;;  %v3724_v17 = vld [vmem:[#allocation2 + $0x18b] sm:$0xff] }
 0x596   : > { %v4563_v21 = vpop.permute.xlu1 %4562  ;;  %v5062_v52 = vld [vmem:[#allocation3 + $0x68] sm:$0xff] }
 0x597   : > { %v4372_v47 = vpop.permute.xlu0 %4371  ;;  %4645 = vst.msk [vmem:[#allocation3 + $0x70] sm:$0xff] %vm4630_vm10, %v4563_v21  ;;  %7771 = vmatmul.mubr.msk.f32.gmra.mrb[12].mxu0 %vm5098_vm13, %v5062_v52 }
 0x598   : > { %4453 = vst.msk [vmem:[#allocation3 + $0x78] sm:$0xff] %vm4437_vm9, %v4372_v47  ;;  %4194 = vrot.lane.b32.xlu1 %v4107_v48, %s8104_s13 }
 0x599   : > { %3616 = vrot.lane.b32.xlu0 %v3528_v51, %s8101_s10 }
 0x59a   : > { %v3987_v27 = vpop.permute.xlu1 %3986 }
 0x59b   : > { %v3796_v53 = vpop.permute.xlu0 %3795  ;;  %4067 = vst.msk [vmem:[#allocation3 + $0x80] sm:$0xff] %vm4050_vm7, %v3987_v27  ;;  %v4303_v27 = vld [vmem:[#allocation2 + $0x199] sm:$0xff] }
 0x59c   : > { %3875 = vst.msk [vmem:[#allocation3 + $0x88] sm:$0xff] %vm3857_vm6, %v3796_v53  ;;  %4962 = vrot.lane.b32.xlu1 %v3913_v22, %s8109_s26  ;;  %v3917_v22 = vld [vmem:[#allocation2 + $0x18c] sm:$0xff]  ;;  %v4111_v53 = vld [vmem:[#allocation2 + $0x1a0] sm:$0xff] }
 0x59d   : > { %4385 = vrot.lane.b32.xlu0 %v4299_v59, %s8105_s14 }
 0x59e   : > { %v4756_v12 = vpop.permute.xlu1 %4755 }
 0x59f   : > { %v4565_v6 = vpop.permute.xlu0 %4564  ;;  %4838 = vst.msk [vmem:[#allocation3 + $0x70] sm:$0xff] %vm4823_vm11, %v4756_v12 }
 0x5a0   : > { %4646 = vst.msk [vmem:[#allocation3 + $0x78] sm:$0xff] %vm4630_vm10, %v4565_v6  ;;  %3809 = vrot.lane.b32.xlu1 %v3721_v60, %s8102_s11  ;;  %v4304_v6 = vld [vmem:[#allocation2 + $0x1a1] sm:$0xff] }
 0x5a1   : > { %3618 = vrot.lane.b32.xlu0 %v3529_v45, %s8101_s10 }
 0x5a2   : > { %v4181_v26 = vpop.permute.xlu1 %4180 }
 0x5a3   : > { %v3989_v50 = vpop.permute.xlu0 %3988  ;;  %4261 = vst.msk [vmem:[#allocation3 + $0x80] sm:$0xff] %vm4244_vm8, %v4181_v26 }
 0x5a4   : > { %4068 = vst.msk [vmem:[#allocation3 + $0x88] sm:$0xff] %vm4050_vm7, %v3989_v50  ;;  %4578 = vrot.lane.b32.xlu1 %v3528_v51, %s8106_s25 }
 0x5a5   : > { %4387 = vrot.lane.b32.xlu0 %v4300_v25, %s8105_s14 }
 0x5a6   : > { %v4949_v3 = vpop.permute.xlu1 %4948 }
 0x5a7   : > { %v4758_v30 = vpop.permute.xlu0 %4757  ;;  %5031 = vst.msk [vmem:[#allocation3 + $0x70] sm:$0xff] %vm5016_vm12, %v4949_v3 }
 0x5a8   : > { %4839 = vst.msk [vmem:[#allocation3 + $0x78] sm:$0xff] %vm4823_vm11, %v4758_v30  ;;  %4002 = vrot.lane.b32.xlu1 %v3914_v42, %s8103_s12 }
 0x5a9   : > { %3811 = vrot.lane.b32.xlu0 %v3722_v29, %s8102_s11 }
 0x5aa   : > { %v4183_v33 = vpop.permute.xlu1 %4182 }
 0x5ab   : > { %v3605_v38 = vpop.permute.xlu0 %3604  ;;  %4262 = vst.msk [vmem:[#allocation3 + $0x88] sm:$0xff] %vm4244_vm8, %v4183_v33 }
 0x5ac   : > { %3683 = vst.msk [vmem:[#allocation3 + $0x90] sm:$0xff] %vm3664_vm5, %v3605_v38  ;;  %4771 = vrot.lane.b32.xlu1 %v3721_v60, %s8107_s23  ;;  %v4497_v38 = vld [vmem:[#allocation2 + $0x1a2] sm:$0xff] }
 0x5ad   : > { %4580 = vrot.lane.b32.xlu0 %v3529_v45, %s8106_s25 }
 0x5ae   : > { %v4951_v5 = vpop.permute.xlu1 %4950  ;;  %v5063_v24 = vld [vmem:[#allocation3 + $0x70] sm:$0xff] }
 0x5af   : > { %v4374_v13 = vpop.permute.xlu0 %4373  ;;  %5032 = vst.msk [vmem:[#allocation3 + $0x78] sm:$0xff] %vm5016_vm12, %v4951_v5  ;;  %7773 = vmatprep.mubr.msk.f32.mxu0 %vm5098_vm13, %v5063_v24  ;;  %v4689_v24 = vld [vmem:[#allocation2 + $0x19b] sm:$0xff] }
 0x5b0   : > { %4454 = vst.msk [vmem:[#allocation3 + $0x80] sm:$0xff] %vm4437_vm9, %v4374_v13  ;;  %4196 = vrot.lane.b32.xlu1 %v4108_v4, %s8104_s13  ;;  %v4496_v4 = vld [vmem:[#allocation2 + $0x19a] sm:$0xff]  ;;  %v4690_v13 = vld [vmem:[#allocation2 + $0x1a3] sm:$0xff] }
 0x5b1   : > { %4004 = vrot.lane.b32.xlu0 %v3915_v32, %s8103_s12 }
 0x5b2   : > { %v3798_v31 = vpop.permute.xlu1 %3797 }
 0x5b3   : > { %v7754_v57 = vpop.f32.mrb[0].mxu0  ;;  %3876 = vst.msk [vmem:[#allocation3 + $0x90] sm:$0xff] %vm3857_vm6, %v3798_v31  ;;  %v3607_v54 = vpop.permute.xlu0 %3606 }
 0x5b4   : > { %v5271_v37 = vadd.f32 %v7754_v57, %v10109_v49  ;;  %v5265_v55 = vpop.f32.mrb[1].mxu0  ;;  %3684 = vst.msk [vmem:[#allocation3 + $0x98] sm:$0xff] %vm3664_vm5, %v3607_v54  ;;  %4964 = vrot.lane.b32.xlu1 %v3914_v42, %s8109_s26  ;;  %v4882_v54 = vld [vmem:[#allocation2 + $0x19c] sm:$0xff] }
 0x5b5   : > { %v5266_v58 = vadd.f32 %v10109_v49, %v5265_v55  ;;  %4773 = vrot.lane.b32.xlu0 %v3722_v29, %s8107_s23 }
 0x5b6   : > { %v5425_v0 = vmax.f32 %v5271_v37, 0.0  ;;  %v4567_v10 = vpop.permute.xlu1 %4566  ;;  %v5064_v1 = vld [vmem:[#allocation3 + $0x78] sm:$0xff]  ;;  %v4883_v37 = vld [vmem:[#allocation2 + $0x1a4] sm:$0xff] }
 0x5b7   : > { %v5424_v61 = vmax.f32 %v5266_v58, 0.0  ;;  %4647 = vst.msk [vmem:[#allocation3 + $0x80] sm:$0xff] %vm4630_vm10, %v4567_v10  ;;  %v4376_v34 = vpop.permute.xlu0 %4375  ;;  %7774 = vmatmul.mubr.msk.f32.gmra.mrb[14].mxu0 %vm5098_vm13, %v5064_v1 }
 0x5b8   : > { %5458 = vst.msk [vmem:[#allocation4 + $0x8] sm:$0xff] %vm5456_vm14, %v5425_v0  ;;  %4198 = vrot.lane.b32.xlu1 %v4109_v56, %s8104_s13 }
 0x5b9   : > { %5457 = vst.msk [vmem:[#allocation4] sm:$0xff] %vm5456_vm14, %v5424_v61  ;;  %3620 = vrot.lane.b32.xlu0 %v3530_v44, %s8101_s10 }
 0x5ba   : > { %4455 = vst.msk [vmem:[#allocation3 + $0x88] sm:$0xff] %vm4437_vm9, %v4376_v34  ;;  %v3991_v2 = vpop.permute.xlu1 %3990 }
 0x5bb   : > { %4069 = vst.msk [vmem:[#allocation3 + $0x90] sm:$0xff] %vm4050_vm7, %v3991_v2  ;;  %v3800_v7 = vpop.permute.xlu0 %3799 }
 0x5bc   : > { %3877 = vst.msk [vmem:[#allocation3 + $0x98] sm:$0xff] %vm3857_vm6, %v3800_v7  ;;  %4966 = vrot.lane.b32.xlu1 %v3915_v32, %s8109_s26 }
 0x5bd   : > { %4389 = vrot.lane.b32.xlu0 %v4301_v43, %s8105_s14 }
 0x5be   : > { %v4760_v8 = vpop.permute.xlu1 %4759 }
 0x5bf   : > { %4840 = vst.msk [vmem:[#allocation3 + $0x80] sm:$0xff] %vm4823_vm11, %v4760_v8  ;;  %v4569_v11 = vpop.permute.xlu0 %4568  ;;  %v5490_v25 = vld [vmem:[#allocation4 + $0x8] sm:$0xff] }
 0x5c0   : > { %4648 = vst.msk [vmem:[#allocation3 + $0x88] sm:$0xff] %vm4630_vm10, %v4569_v11  ;;  %3813 = vrot.lane.b32.xlu1 %v3723_v9, %s8102_s11  ;;  %v5489_v42 = vld [vmem:[#allocation4] sm:$0xff] }
 0x5c1   : > { %3622 = vrot.lane.b32.xlu0 %v3531_v36, %s8101_s10 }
 0x5c2   : > { %v4185_v15 = vpop.permute.xlu1 %4184 }
 0x5c3   : > { %4263 = vst.msk [vmem:[#allocation3 + $0x90] sm:$0xff] %vm4244_vm8, %v4185_v15  ;;  %v3993_v16 = vpop.permute.xlu0 %3992 }
 0x5c4   : > { %4070 = vst.msk [vmem:[#allocation3 + $0x98] sm:$0xff] %vm4050_vm7, %v3993_v16  ;;  %4582 = vrot.lane.b32.xlu1 %v3530_v44, %s8106_s25 }
 0x5c5   : > { %4391 = vrot.lane.b32.xlu0 %v4302_v14, %s8105_s14 }
 0x5c6   : > { %v4953_v63 = vpop.permute.xlu1 %4952 }
 0x5c7   : > { %5033 = vst.msk [vmem:[#allocation3 + $0x80] sm:$0xff] %vm5016_vm12, %v4953_v63  ;;  %v4762_v40 = vpop.permute.xlu0 %4761 }
 0x5c8   : > { %4841 = vst.msk [vmem:[#allocation3 + $0x88] sm:$0xff] %vm4823_vm11, %v4762_v40  ;;  %4006 = vrot.lane.b32.xlu1 %v3916_v35, %s8103_s12  ;;  %v3534_v40 = vld [vmem:[#allocation2 + $0x1b2] sm:$0xff] }
 0x5c9   : > { %3815 = vrot.lane.b32.xlu0 %v3724_v17, %s8102_s11 }
 0x5ca   : > { %v4187_v39 = vpop.permute.xlu1 %4186 }
 0x5cb   : > { %4264 = vst.msk [vmem:[#allocation3 + $0x98] sm:$0xff] %vm4244_vm8, %v4187_v39  ;;  %v3609_v18 = vpop.permute.xlu0 %3608  ;;  %v4112_v39 = vld [vmem:[#allocation2 + $0x1b0] sm:$0xff] }
 0x5cc   : > { %3685 = vst.msk [vmem:[#allocation3 + $0xa0] sm:$0xff] %vm3664_vm5, %v3609_v18  ;;  %4775 = vrot.lane.b32.xlu1 %v3723_v9, %s8107_s23 }
 0x5cd   : > { %4584 = vrot.lane.b32.xlu0 %v3531_v36, %s8106_s25 }
 0x5ce   : > { %v4955_v62 = vpop.permute.xlu1 %4954  ;;  %v5065_v20 = vld [vmem:[#allocation3 + $0x80] sm:$0xff] }
 0x5cf   : > { %v7757_v23 = vpop.f32.mrb[2].mxu0  ;;  %5034 = vst.msk [vmem:[#allocation3 + $0x88] sm:$0xff] %vm5016_vm12, %v4955_v62  ;;  %v4378_v46 = vpop.permute.xlu0 %4377  ;;  %7776 = vmatprep.mubr.msk.f32.mxu0 %vm5098_vm13, %v5065_v20  ;;  %v4305_v62 = vld [vmem:[#allocation2 + $0x1b1] sm:$0xff] }
 0x5d0   : > { %v5281_v28 = vadd.f32 %v7757_v23, %v10109_v49  ;;  %v5275_v48 = vpop.f32.mrb[3].mxu0  ;;  %4456 = vst.msk [vmem:[#allocation3 + $0x90] sm:$0xff] %vm4437_vm9, %v4378_v46  ;;  %4200 = vrot.lane.b32.xlu1 %v4110_v19, %s8104_s13  ;;  %v4113_v23 = vld [vmem:[#allocation2 + $0x1b8] sm:$0xff] }
 0x5d1   : > { %v5276_v51 = vadd.f32 %v10109_v49, %v5275_v48  ;;  %4008 = vrot.lane.b32.xlu0 %v3917_v22, %s8103_s12  ;;  %v3727_v46 = vld [vmem:[#allocation2 + $0x1b3] sm:$0xff] }
 0x5d2   : > { %v5427_v21 = vmax.f32 %v5281_v28, 0.0  ;;  %v3802_v52 = vpop.permute.xlu1 %3801  ;;  %v3535_v48 = vld [vmem:[#allocation2 + $0x1ba] sm:$0xff] }
 0x5d3   : > { %v5426_v47 = vmax.f32 %v5276_v51, 0.0  ;;  %3878 = vst.msk [vmem:[#allocation3 + $0xa0] sm:$0xff] %vm3857_vm6, %v3802_v52  ;;  %v3611_v59 = vpop.permute.xlu0 %3610 }
 0x5d4   : > { %5460 = vst.msk [vmem:[#allocation4 + $0x18] sm:$0xff] %vm5456_vm14, %v5427_v21  ;;  %4968 = vrot.lane.b32.xlu1 %v3916_v35, %s8109_s26 }
 0x5d5   : > { %5459 = vst.msk [vmem:[#allocation4 + $0x10] sm:$0xff] %vm5456_vm14, %v5426_v47  ;;  %4777 = vrot.lane.b32.xlu0 %v3724_v17, %s8107_s23  ;;  %v4306_v47 = vld [vmem:[#allocation2 + $0x1b9] sm:$0xff] }
 0x5d6   : > { %3686 = vst.msk [vmem:[#allocation3 + $0xa8] sm:$0xff] %vm3664_vm5, %v3611_v59  ;;  %v4571_v60 = vpop.permute.xlu1 %4570  ;;  %v5066_v45 = vld [vmem:[#allocation3 + $0x88] sm:$0xff] }
 0x5d7   : > { %4649 = vst.msk [vmem:[#allocation3 + $0x90] sm:$0xff] %vm4630_vm10, %v4571_v60  ;;  %v4380_v12 = vpop.permute.xlu0 %4379  ;;  %7777 = vmatmul.mubr.msk.f32.gmra.mrb[16].mxu0 %vm5098_vm13, %v5066_v45 }
 0x5d8   : > { %4457 = vst.msk [vmem:[#allocation3 + $0x98] sm:$0xff] %vm4437_vm9, %v4380_v12  ;;  %4393 = vrot.lane.b32.xlu1 %v4303_v27, %s8105_s14  ;;  %v3920_v27 = vld [vmem:[#allocation2 + $0x1b4] sm:$0xff] }
 0x5d9   : > { %4202 = vrot.lane.b32.xlu0 %v4111_v53, %s8104_s13  ;;  %v3728_v53 = vld [vmem:[#allocation2 + $0x1bb] sm:$0xff] }
 0x5da   : > { %v3995_v50 = vpop.permute.xlu1 %3994 }
 0x5db   : > { %v5507_v26 = vld [vmem:[#allocation4 + $0x18] sm:$0xff]  ;;  %4071 = vst.msk [vmem:[#allocation3 + $0xa0] sm:$0xff] %vm4050_vm7, %v3995_v50  ;;  %v3804_v30 = vpop.permute.xlu0 %3803 }
 0x5dc   : > { %v5523_v29 = vmax.f32 %v5490_v25, %v5507_v26  ;;  %v5506_v3 = vld [vmem:[#allocation4 + $0x10] sm:$0xff]  ;;  %3879 = vst.msk [vmem:[#allocation3 + $0xa8] sm:$0xff] %vm3857_vm6, %v3804_v30  ;;  %4395 = vrot.lane.b32.xlu1 %v4304_v6, %s8105_s14  ;;  %v3921_v30 = vld [vmem:[#allocation2 + $0x1bc] sm:$0xff] }
 0x5dd   : > { %v5522_v33 = vmax.f32 %v5489_v42, %v5506_v3  ;;  %4970 = vrot.lane.b32.xlu0 %v3917_v22, %s8109_s26  ;;  %v4114_v3 = vld [vmem:[#allocation2 + $0x1c8] sm:$0xff] }
 0x5de   : > { %5539 = vst.msk [vmem:[#allocation5 + $0x8] sm:$0xff] %vm5456_vm14, %v5523_v29  ;;  %v4764_v32 = vpop.permute.xlu1 %4763 }
 0x5df   : > { %5538 = vst.msk [vmem:[#allocation5] sm:$0xff] %vm5456_vm14, %v5522_v33  ;;  %v4573_v5 = vpop.permute.xlu0 %4572 }
 0x5e0   : > { %4842 = vst.msk [vmem:[#allocation3 + $0x90] sm:$0xff] %vm4823_vm11, %v4764_v32  ;;  %4588 = vrot.lane.b32.xlu1 %v4497_v38, %s8106_s25 }
 0x5e1   : > { %4650 = vst.msk [vmem:[#allocation3 + $0x98] sm:$0xff] %vm4630_vm10, %v4573_v5  ;;  %4586 = vrot.lane.b32.xlu0 %v4496_v4, %s8106_s25 }
 0x5e2   : > { %v4189_v31 = vpop.permute.xlu1 %4188 }
 0x5e3   : > { %4265 = vst.msk [vmem:[#allocation3 + $0xa0] sm:$0xff] %vm4244_vm8, %v4189_v31  ;;  %v3997_v57 = vpop.permute.xlu0 %3996  ;;  %v4115_v31 = vld [vmem:[#allocation2 + $0x1d0] sm:$0xff] }
 0x5e4   : > { %4072 = vst.msk [vmem:[#allocation3 + $0xa8] sm:$0xff] %vm4050_vm7, %v3997_v57  ;;  %4781 = vrot.lane.b32.xlu1 %v4690_v13, %s8107_s23 }
 0x5e5   : > { %4779 = vrot.lane.b32.xlu0 %v4689_v24, %s8107_s23 }
 0x5e6   : > { %v5554_v55 = vld [vmem:[#allocation5] ss:$2 sm:$0xff]  ;;  %v5570_v58 = vld [vmem:[#allocation5 + $0x1] ss:$2 sm:$0xff]  ;;  %v4957_v0 = vpop.permute.xlu1 %4956 }
 0x5e7   : > { %v5585_v56 = vmax.f32 %v5554_v55, %v5570_v58  ;;  %5035 = vst.msk [vmem:[#allocation3 + $0x90] sm:$0xff] %vm5016_vm12, %v4957_v0  ;;  %v4766_v44 = vpop.permute.xlu0 %4765 }
 0x5e8   : > { %4843 = vst.msk [vmem:[#allocation3 + $0x98] sm:$0xff] %vm4823_vm11, %v4766_v44  ;;  %4974 = vrot.lane.b32.xlu1 %v4883_v37, %s8109_s26 }
 0x5e9   : > { %4972 = vrot.lane.b32.xlu0 %v4882_v54, %s8109_s26  ;;  %5619 = vst.msk [vmem:[#allocation6 + $0x22] sm:$0xff] %vm5456_vm14, %v5585_v56 }
 0x5ea   : > { %v4191_v61 = vpop.permute.xlu1 %4190  ;;  %v7760_v10 = vpop.f32.mrb[4].mxu0 }
 0x5eb   : > { %4266 = vst.msk [vmem:[#allocation3 + $0xa8] sm:$0xff] %vm4244_vm8, %v4191_v61  ;;  %v3613_v1 = vpop.permute.xlu0 %3612  ;;  %v5291_v34 = vadd.f32 %v7760_v10, %v10109_v49  ;;  %v5285_v43 = vpop.f32.mrb[5].mxu0  ;;  %v6681_v10 = vld [vmem:[%s11435_s3 + $0x80] sm:$0xff] }
 0x5ec   : > { %3687 = vst.msk [vmem:[#allocation3 + $0xb0] sm:$0xff] %vm3664_vm5, %v3613_v1  ;;  %v5286_v2 = vadd.f32 %v10109_v49, %v5285_v43  ;;  %3626 = vrot.lane.b32.xlu1 %v4497_v38, %s8101_s10  ;;  %v6682_v1 = vld [vmem:[%s11435_s3 + $0x88] sm:$0xff] }
 0x5ed   : > { %3624 = vrot.lane.b32.xlu0 %v4496_v4, %s8101_s10  ;;  %v5429_v7 = vmax.f32 %v5291_v34, 0.0  ;;  %v4308_v34 = vld [vmem:[#allocation2 + $0x1d1] sm:$0xff]  ;;  %v7842_v43 = vpack.c.bf16 %v6682_v1, %v6681_v10 }
 0x5ee   : > { %v5428_v9 = vmax.f32 %v5286_v2, 0.0  ;;  %v4959_v36 = vpop.permute.xlu1 %4958  ;;  %v5067_v8 = vld [vmem:[#allocation3 + $0x90] sm:$0xff]  ;;  %v6665_v2 = vld [vmem:[%s11435_s3] sm:$0xff] }
 0x5ef   : > { %5462 = vst.msk [vmem:[#allocation4 + $0x28] sm:$0xff] %vm5456_vm14, %v5429_v7  ;;  %v4382_v11 = vpop.permute.xlu0 %4381  ;;  %7779 = vmatprep.mubr.msk.f32.mxu0 %vm5098_vm13, %v5067_v8  ;;  %v6666_v7 = vld [vmem:[%s11435_s3 + $0x8] sm:$0xff]  ;;  %7843 = vmatprep.subr.bf16.mxu1 %v7842_v43  ;;  %v5855_v10 = vld [vmem:[#allocation6 + $0x11] sm:$0xff] }
 0x5f0   : > { %5036 = vst.msk [vmem:[#allocation3 + $0x98] sm:$0xff] %vm5016_vm12, %v4959_v36  ;;  %v10190_v14 = vld [vmem:[#allocation6 + $0x20] sm:$0xff]  ;;  %3819 = vrot.lane.b32.xlu1 %v4690_v13, %s8102_s11  ;;  %v7844_v36 = vpack.c.bf16 %v6666_v7, %v6665_v2  ;;  %v6691_v1 = vld [vmem:[%s11435_s3 + $0xd0] sm:$0xff] }
 0x5f1   : > { %5461 = vst.msk [vmem:[#allocation4 + $0x20] sm:$0xff] %vm5456_vm14, %v5428_v9  ;;  %3817 = vrot.lane.b32.xlu0 %v4689_v24, %s8102_s11  ;;  %5637 = vst.msk [vmem:[#allocation7 + $0x70] sm:$0xff] %vm5456_vm14, %v10190_v14  ;;  %v10198_v15 = vld [vmem:[#allocation6 + $0x24] sm:$0xff]  ;;  %v6675_v7 = vld [vmem:[%s11435_s3 + $0x50] sm:$0xff] }
 0x5f2   : > { %4458 = vst.msk [vmem:[#allocation3 + $0xa0] sm:$0xff] %vm4437_vm9, %v4382_v11  ;;  %v5952_v16 = vld [vmem:[#allocation6 + $0x23] sm:$0xff]  ;;  %v3806_v17 = vpop.permute.xlu1 %3805  ;;  %v4501_v11 = vld [vmem:[#allocation2 + $0x1d2] sm:$0xff]  ;;  %7845 = vmatpush3.bf16.msra.mxu1 %v7844_v36 }
 0x5f3   : > { %5800 = vst.msk [vmem:[#allocation7 + $0x78] sm:$0xff] %vm5456_vm14, %v10198_v15  ;;  %5960 = vst.msk [vmem:[#allocation7 + $0x48] sm:$0xff] %vm5456_vm14, %v5952_v16  ;;  %v6111_v35 = vld [vmem:[#allocation6 + $0x22] sm:$0xff]  ;;  %v3615_v63 = vpop.permute.xlu0 %3614  ;;  %v6683_v16 = vld [vmem:[%s11435_s3 + $0x90] sm:$0xff] }
 0x5f4   : > { %6119 = vst.msk [vmem:[#allocation7 + $0x18] sm:$0xff] %vm5456_vm14, %v6111_v35  ;;  %4012 = vrot.lane.b32.xlu1 %v4883_v37, %s8103_s12  ;;  %v4307_v24 = vld [vmem:[#allocation2 + $0x1c9] sm:$0xff]  ;;  %v6684_v35 = vld [vmem:[%s11435_s3 + $0x98] sm:$0xff] }
 0x5f5   : > { %3880 = vst.msk [vmem:[#allocation3 + $0xb0] sm:$0xff] %vm3857_vm6, %v3806_v17  ;;  %4010 = vrot.lane.b32.xlu0 %v4882_v54, %s8103_s12  ;;  %v5627_v17 = vld [vmem:[#allocation6] sm:$0xff] }
 0x5f6   : > { %3688 = vst.msk [vmem:[#allocation3 + $0xb8] sm:$0xff] %vm3664_vm5, %v3615_v63  ;;  %v4575_v18 = vpop.permute.xlu1 %4574  ;;  %v5492_v57 = vld [vmem:[#allocation4 + $0x28] sm:$0xff] }
 0x5f7   : > { %v5068_v19 = vld [vmem:[#allocation3 + $0x98] sm:$0xff]  ;;  %4651 = vst.msk [vmem:[#allocation3 + $0xa0] sm:$0xff] %vm4630_vm10, %v4575_v18  ;;  %v4384_v22 = vpop.permute.xlu0 %4383  ;;  %v4500_v63 = vld [vmem:[#allocation2 + $0x1ca] sm:$0xff] }
 0x5f8   : > { %7780 = vmatmul.mubr.msk.f32.gmra.mrb[18].mxu0 %vm5098_vm13, %v5068_v19  ;;  %4459 = vst.msk [vmem:[#allocation3 + $0xa8] sm:$0xff] %vm4437_vm9, %v4384_v22  ;;  %3628 = vrot.lane.b32.xlu1 %v3534_v40, %s8101_s10  ;;  %v5491_v58 = vld [vmem:[#allocation4 + $0x20] sm:$0xff]  ;;  %v6668_v18 = vld [vmem:[%s11435_s3 + $0x18] sm:$0xff] }
 0x5f9   : > { %4204 = vrot.lane.b32.xlu0 %v4112_v39, %s8104_s13  ;;  %5635 = vst.msk [vmem:[#allocation7] sm:$0xff] %vm5456_vm14, %v5627_v17  ;;  %v6667_v39 = vld [vmem:[%s11435_s3 + $0x10] sm:$0xff] }
 0x5fa   : > { %v3999_v20 = vpop.permute.xlu1 %3998  ;;  %v7848_v22 = vpack.c.bf16 %v6668_v18, %v6667_v39  ;;  %v5741_v39 = vld [vmem:[#allocation6 + $0x3] sm:$0xff] }
 0x5fb   : > { %4073 = vst.msk [vmem:[#allocation3 + $0xb0] sm:$0xff] %vm4050_vm7, %v3999_v20  ;;  %v3808_v28 = vpop.permute.xlu0 %3807  ;;  %v5790_v20 = vld [vmem:[#allocation6 + $0x4] sm:$0xff] }
 0x5fc   : > { %3881 = vst.msk [vmem:[#allocation3 + $0xb8] sm:$0xff] %vm3857_vm6, %v3808_v28  ;;  %4397 = vrot.lane.b32.xlu1 %v4305_v62, %s8105_s14  ;;  %v4693_v28 = vld [vmem:[#allocation2 + $0x1cb] sm:$0xff]  ;;  %v6693_v18 = vld [vmem:[%s11435_s3 + $0xe0] sm:$0xff] }
 0x5fd   : > { %4206 = vrot.lane.b32.xlu0 %v4113_v23, %s8104_s13  ;;  %v4694_v23 = vld [vmem:[#allocation2 + $0x1d3] sm:$0xff]  ;;  %5798 = vst.msk [vmem:[#allocation7 + $0x8] sm:$0xff] %vm5456_vm14, %v5790_v20  ;;  %v6678_v20 = vld [vmem:[%s11435_s3 + $0x68] sm:$0xff] }
 0x5fe   : > { %v4768_v51 = vpop.permute.xlu1 %4767 }
 0x5ff   : > { %4844 = vst.msk [vmem:[#allocation3 + $0xa0] sm:$0xff] %vm4823_vm11, %v4768_v51  ;;  %v4577_v21 = vpop.permute.xlu0 %4576 }
 0x600   : > { %4652 = vst.msk [vmem:[#allocation3 + $0xa8] sm:$0xff] %vm4630_vm10, %v4577_v21  ;;  %3821 = vrot.lane.b32.xlu1 %v3727_v46, %s8102_s11 }
 0x601   : > { %3630 = vrot.lane.b32.xlu0 %v3535_v48, %s8101_s10 }
 0x602   : > { %v4193_v52 = vpop.permute.xlu1 %4192 }
 0x603   : > { %4267 = vst.msk [vmem:[#allocation3 + $0xb0] sm:$0xff] %vm4244_vm8, %v4193_v52  ;;  %v4001_v59 = vpop.permute.xlu0 %4000  ;;  %v6669_v52 = vld [vmem:[%s11435_s3 + $0x20] sm:$0xff] }
 0x604   : > { %4074 = vst.msk [vmem:[#allocation3 + $0xb8] sm:$0xff] %vm4050_vm7, %v4001_v59  ;;  %4590 = vrot.lane.b32.xlu1 %v3534_v40, %s8106_s25  ;;  %v7846_v40 = vpack.c.bf16 %v6684_v35, %v6683_v16 }
 0x605   : > { %4399 = vrot.lane.b32.xlu0 %v4306_v47, %s8105_s14 }
 0x606   : > { %v4961_v60 = vpop.permute.xlu1 %4960  ;;  %7847 = vmatprep.subr.bf16.mxu1 %v7846_v40 }
 0x607   : > { %5037 = vst.msk [vmem:[#allocation3 + $0xa0] sm:$0xff] %vm5016_vm12, %v4961_v60  ;;  %v4770_v45 = vpop.permute.xlu0 %4769  ;;  %7849 = vmatpush3.bf16.msra.mxu1 %v7848_v22  ;;  %v5903_v22 = vld [vmem:[#allocation6 + $0x12] sm:$0xff] }
 0x608   : > { %4845 = vst.msk [vmem:[#allocation3 + $0xa8] sm:$0xff] %vm4823_vm11, %v4770_v45  ;;  %4014 = vrot.lane.b32.xlu1 %v3920_v27, %s8103_s12 }
 0x609   : > { %3823 = vrot.lane.b32.xlu0 %v3728_v53, %s8102_s11 }
 0x60a   : > { %v4195_v12 = vpop.permute.xlu1 %4194  ;;  %v7763_v6 = vpop.f32.mrb[6].mxu0 }
 0x60b   : > { %4268 = vst.msk [vmem:[#allocation3 + $0xb8] sm:$0xff] %vm4244_vm8, %v4195_v12  ;;  %v3617_v25 = vpop.permute.xlu0 %3616  ;;  %v5301_v26 = vadd.f32 %v7763_v6, %v10109_v49  ;;  %v5295_v50 = vpop.f32.mrb[7].mxu0  ;;  %v4887_v12 = vld [vmem:[#allocation2 + $0x1d4] sm:$0xff] }
 0x60c   : > { %3689 = vst.msk [vmem:[#allocation3 + $0xc0] sm:$0xff] %vm3664_vm5, %v3617_v25  ;;  %v5296_v42 = vadd.f32 %v10109_v49, %v5295_v50  ;;  %4783 = vrot.lane.b32.xlu1 %v3727_v46, %s8107_s23  ;;  %v6685_v46 = vld [vmem:[%s11435_s3 + $0xa0] sm:$0xff]  ;;  %v6687_v6 = vld [vmem:[%s11435_s3 + $0xb0] sm:$0xff]  ;;  %v6688_v25 = vld [vmem:[%s11435_s3 + $0xb8] sm:$0xff] }
 0x60d   : > { %4592 = vrot.lane.b32.xlu0 %v3535_v48, %s8106_s25  ;;  %v5431_v29 = vmax.f32 %v5301_v26, 0.0  ;;  %v6686_v48 = vld [vmem:[%s11435_s3 + $0xa8] sm:$0xff]  ;;  %v7854_v50 = vpack.c.bf16 %v6688_v25, %v6687_v6 }
 0x60e   : > { %v5430_v33 = vmax.f32 %v5296_v42, 0.0  ;;  %v4963_v38 = vpop.permute.xlu1 %4962  ;;  %v5069_v4 = vld [vmem:[#allocation3 + $0xa0] sm:$0xff]  ;;  %v7850_v47 = vpack.c.bf16 %v6686_v48, %v6685_v46  ;;  %v4886_v26 = vld [vmem:[#allocation2 + $0x1cc] sm:$0xff] }
 0x60f   : > { %5464 = vst.msk [vmem:[#allocation4 + $0x38] sm:$0xff] %vm5456_vm14, %v5431_v29  ;;  %v4386_v32 = vpop.permute.xlu0 %4385  ;;  %7782 = vmatprep.mubr.msk.f32.mxu0 %vm5098_vm13, %v5069_v4  ;;  %v6671_v42 = vld [vmem:[%s11435_s3 + $0x30] sm:$0xff]  ;;  %v6672_v29 = vld [vmem:[%s11435_s3 + $0x38] sm:$0xff]  ;;  %v6690_v4 = vld [vmem:[%s11435_s3 + $0xc8] sm:$0xff] }
 0x610   : > { %5038 = vst.msk [vmem:[#allocation3 + $0xa8] sm:$0xff] %vm5016_vm12, %v4963_v38  ;;  %4208 = vrot.lane.b32.xlu1 %v4114_v3, %s8104_s13  ;;  %7851 = vmatprep.subr.bf16.mxu1 %v7850_v47  ;;  %v6689_v38 = vld [vmem:[%s11435_s3 + $0xc0] sm:$0xff] }
 0x611   : > { %5463 = vst.msk [vmem:[#allocation4 + $0x30] sm:$0xff] %vm5456_vm14, %v5430_v33  ;;  %4016 = vrot.lane.b32.xlu0 %v3921_v30, %s8103_s12  ;;  %v10414_v25 = vld [vmem:[#allocation6 + $0x21] sm:$0xff]  ;;  %s8020_s12 = scalar_lea.vmem %s11390_s6, 128 }
 0x612   : > { %4460 = vst.msk [vmem:[#allocation3 + $0xb0] sm:$0xff] %vm4437_vm9, %v4386_v32  ;;  %v3810_v5 = vpop.permute.xlu1 %3809  ;;  %v5643_v32 = vld [vmem:[#allocation6 + $0x1] sm:$0xff]  ;;  %p8021_p11 = scmp.ne.s32.totalorder %s11390_s6, %s8020_s12 }
 0x613   : > { %3882 = vst.msk [vmem:[#allocation3 + $0xc0] sm:$0xff] %vm3857_vm6, %v3810_v5  ;;  %v3619_v13 = vpop.permute.xlu0 %3618  ;;  %v7858_v5 = vpack.c.bf16 %v6690_v4, %v6689_v38 }
 0x614   : > { %3690 = vst.msk [vmem:[#allocation3 + $0xc8] sm:$0xff] %vm3664_vm5, %v3619_v13  ;;  %4976 = vrot.lane.b32.xlu1 %v3920_v27, %s8109_s26  ;;  %v6673_v13 = vld [vmem:[%s11435_s3 + $0x40] sm:$0xff]  ;;  %p8022_p12 = pnand %p8021_p11, %p8183_p5 }
 0x615   : > { %4785 = vrot.lane.b32.xlu0 %v3728_v53, %s8107_s23  ;;  %v6670_v53 = vld [vmem:[%s11435_s3 + $0x28] sm:$0xff] }
 0x616   : > { %v5509_v37 = vld [vmem:[#allocation4 + $0x38] sm:$0xff]  ;;  %v4579_v54 = vpop.permute.xlu1 %4578  ;;  %v7852_v45 = vpack.c.bf16 %v6670_v53, %v6669_v52  ;;  %v6679_v52 = vld [vmem:[%s11435_s3 + $0x70] sm:$0xff]  ;;  %p8023_p13 = pneg %p8022_p12 }
 0x617   : > { %v5070_v55 = vld [vmem:[#allocation3 + $0xa8] sm:$0xff]  ;;  %v5525_v0 = vmax.f32 %v5492_v57, %v5509_v37  ;;  %4653 = vst.msk [vmem:[#allocation3 + $0xb0] sm:$0xff] %vm4630_vm10, %v4579_v54  ;;  %v4388_v44 = vpop.permute.xlu0 %4387  ;;  %v10332_v37 = vld [vmem:[#allocation6 + $0x14] sm:$0xff] }
 0x618   : > { %v5508_v56 = vld [vmem:[#allocation4 + $0x30] sm:$0xff]  ;;  %7783 = vmatmul.mubr.msk.f32.gmra.mrb[20].mxu0 %vm5098_vm13, %v5070_v55  ;;  %4461 = vst.msk [vmem:[#allocation3 + $0xb8] sm:$0xff] %vm4437_vm9, %v4388_v44  ;;  %4401 = vrot.lane.b32.xlu1 %v4307_v24, %s8105_s14  ;;  %v6674_v24 = vld [vmem:[%s11435_s3 + $0x48] sm:$0xff] }
 0x619   : > { %v5524_v61 = vmax.f32 %v5491_v58, %v5508_v56  ;;  %4210 = vrot.lane.b32.xlu0 %v4115_v31, %s8104_s13  ;;  %5541 = vst.msk [vmem:[#allocation5 + $0x18] sm:$0xff] %vm5456_vm14, %v5525_v0  ;;  %7853 = vmatpush3.bf16.msra.mxu1 %v7852_v45  ;;  %v7860_v54 = vpack.c.bf16 %v6674_v24, %v6673_v13  ;;  %v5692_v56 = vld [vmem:[#allocation6 + $0x2] sm:$0xff]  ;;  %5799 = vst.msk [vmem:[#allocation7 + $0x40] sm:$0xff] %vm5456_vm14, %v10332_v37  ;;  %s8111_s13 = smov 64  }
 0x61a   : > { %v4003_v9 = vpop.permute.xlu1 %4002  ;;  %7855 = vmatprep.subr.bf16.mxu1 %v7854_v50 }
 0x61b   : > { %5540 = vst.msk [vmem:[#allocation5 + $0x10] sm:$0xff] %vm5456_vm14, %v5524_v61  ;;  %v3812_v8 = vpop.permute.xlu0 %3811 }
 0x61c   : > { %4075 = vst.msk [vmem:[#allocation3 + $0xc0] sm:$0xff] %vm4050_vm7, %v4003_v9  ;;  %4403 = vrot.lane.b32.xlu1 %v4308_v34, %s8105_s14  ;;  %v6692_v34 = vld [vmem:[%s11435_s3 + $0xd8] sm:$0xff]  ;;  %s8114_s14 = smov [#allocation10]  }
 0x61d   : > { %3883 = vst.msk [vmem:[#allocation3 + $0xc8] sm:$0xff] %vm3857_vm6, %v3812_v8  ;;  %4978 = vrot.lane.b32.xlu0 %v3921_v30, %s8109_s26  ;;  %v7856_v30 = vpack.c.bf16 %v6672_v29, %v6671_v42  ;;  %v7862_v2 = vpack.c.bf16 %v6692_v34, %v6691_v1  ;;  %v5904_v29 = vld [vmem:[#allocation6 + $0x22] sm:$0xff]  ;;  %s8024_s7 = sshll.u32 %s8114_s14, 4  ;;  %s8025_s7 = int_to_ptr.vmem [resolvable:$false] %s8024_s7 }
 0x61e   : > { %v4772_v19 = vpop.permute.xlu1 %4771  ;;  %s8026_s15 = scalar_lea.vmem %s8025_s7, 256  ;;  %p8027_p0 = scmp.lt.s32.totalorder %s11390_s6, %s8025_s7 }
 0x61f   : > { %4846 = vst.msk [vmem:[#allocation3 + $0xb0] sm:$0xff] %vm4823_vm11, %v4772_v19  ;;  %v4581_v62 = vpop.permute.xlu0 %4580  ;;  %7857 = vmatpush3.bf16.msra.mxu1 %v7856_v30  ;;  %v6694_v19 = vld [vmem:[%s11435_s3 + $0xe8] sm:$0xff]  ;;  %p8028_p1 = scmp.lt.s32.totalorder %s8026_s15, %s8020_s12 }
 0x620   : > { %4654 = vst.msk [vmem:[#allocation3 + $0xb8] sm:$0xff] %vm4630_vm10, %v4581_v62  ;;  %4596 = vrot.lane.b32.xlu1 %v4501_v11, %s8106_s25  ;;  %7859 = vmatprep.subr.bf16.mxu1 %v7858_v5  ;;  %v7866_v62 = vpack.c.bf16 %v6694_v19, %v6693_v18 }
 0x621   : > { %4594 = vrot.lane.b32.xlu0 %v4500_v63, %s8106_s25  ;;  %s8113_s25 = smov 16   ;;  %p8029_p2 = por %p8028_p1, %p8027_p0 }
 0x622   : > { %v5556_v51 = vld [vmem:[#allocation5 + $0x10] ss:$2 sm:$0xff]  ;;  %v5572_v21 = vld [vmem:[#allocation5 + $0x11] ss:$2 sm:$0xff]  ;;  %v4197_v59 = vpop.permute.xlu1 %4196 }
 0x623   : > { %v5586_v27 = vmax.f32 %v5556_v51, %v5572_v21  ;;  %4269 = vst.msk [vmem:[#allocation3 + $0xc0] sm:$0xff] %vm4244_vm8, %v4197_v59  ;;  %v4005_v60 = vpop.permute.xlu0 %4004  ;;  %7861 = vmatpush3.bf16.msra.mxu1 %v7860_v54  ;;  %v6695_v51 = vld [vmem:[%s11435_s3 + $0xf0] sm:$0xff]  ;;  %v6696_v21 = vld [vmem:[%s11435_s3 + $0xf8] sm:$0xff]  ;;  %p8030_p3 = pnand %p8029_p2, %p8023_p13 }
 0x624   : > { %4076 = vst.msk [vmem:[#allocation3 + $0xc8] sm:$0xff] %vm4050_vm7, %v4005_v60  ;;  %4789 = vrot.lane.b32.xlu1 %v4694_v23, %s8107_s23  ;;  %7863 = vmatprep.subr.bf16.mxu1 %v7862_v2  ;;  %v6677_v23 = vld [vmem:[%s11435_s3 + $0x60] sm:$0xff]  ;;  %v7870_v47 = vpack.c.bf16 %v6696_v21, %v6695_v51  ;;  %v6680_v59 = vld [vmem:[%s11435_s3 + $0x78] sm:$0xff] }
 0x625   : > { %4787 = vrot.lane.b32.xlu0 %v4693_v28, %s8107_s23  ;;  %5620 = vst.msk [vmem:[#allocation6 + $0x32] sm:$0xff] %vm5456_vm14, %v5586_v27  ;;  %v7868_v46 = vpack.c.bf16 %v6678_v20, %v6677_v23  ;;  %v7872_v60 = vpack.c.bf16 %v6680_v59, %v6679_v52 }
 0x626   : > { %v4965_v3 = vpop.permute.xlu1 %4964 }
 0x627   : > { %5039 = vst.msk [vmem:[#allocation3 + $0xb0] sm:$0xff] %vm5016_vm12, %v4965_v3  ;;  %v4774_v33 = vpop.permute.xlu0 %4773 }
 0x628   : > { %4847 = vst.msk [vmem:[#allocation3 + $0xb8] sm:$0xff] %vm4823_vm11, %v4774_v33  ;;  %4982 = vrot.lane.b32.xlu1 %v4887_v12, %s8109_s26 }
 0x629   : > { %4980 = vrot.lane.b32.xlu0 %v4886_v26, %s8109_s26  ;;  %s8110_s26 = smov 32   ;;  %v5742_v26 = vld [vmem:[#allocation6 + $0x13] sm:$0xff] }
 0x62a   : > { %v4199_v31 = vpop.permute.xlu1 %4198  ;;  %v7766_v57 = vpop.f32.mrb[8].mxu0 }
 0x62b   : > { %4270 = vst.msk [vmem:[#allocation3 + $0xc8] sm:$0xff] %vm4244_vm8, %v4199_v31  ;;  %v3621_v55 = vpop.permute.xlu0 %3620  ;;  %v5311_v58 = vadd.f32 %v7766_v57, %v10109_v49  ;;  %v5305_v0 = vpop.f32.mrb[9].mxu0  ;;  %v5743_v57 = vld [vmem:[#allocation6 + $0x23] sm:$0xff] }
 0x62c   : > { %v10336_v44 = vld [vmem:[#allocation6 + $0x30] sm:$0xff]  ;;  %3691 = vst.msk [vmem:[#allocation3 + $0xd0] sm:$0xff] %vm3664_vm5, %v3621_v55  ;;  %v5306_v61 = vadd.f32 %v10109_v49, %v5305_v0  ;;  %5659 = vrot.lane.b32.xlu1 %v5643_v32, %s8110_s26 }
 0x62d   : > { %5823 = vrot.lane.b32.xlu0 %v10097_v41, %s8110_s26  ;;  %5638 = vst.msk [vmem:[#allocation7 + $0xa8] sm:$0xff] %vm5456_vm14, %v10336_v44  ;;  %v5433_v43 = vmax.f32 %v5311_v58, 0.0  ;;  %v6676_v41 = vld [vmem:[%s11435_s3 + $0x58] sm:$0xff] }
 0x62e   : > { %v10359_v9 = vld [vmem:[#allocation6 + $0x34] sm:$0xff]  ;;  %v5432_v36 = vmax.f32 %v5306_v61, 0.0  ;;  %v4967_v8 = vpop.permute.xlu1 %4966  ;;  %v7864_v16 = vpack.c.bf16 %v6676_v41, %v6675_v7 }
 0x62f   : > { %v5071_v11 = vld [vmem:[#allocation3 + $0xb0] sm:$0xff]  ;;  %5801 = vst.msk [vmem:[#allocation7 + $0xb0] sm:$0xff] %vm5456_vm14, %v10359_v9  ;;  %5466 = vst.msk [vmem:[#allocation4 + $0x48] sm:$0xff] %vm5456_vm14, %v5433_v43  ;;  %v4390_v17 = vpop.permute.xlu0 %4389 }
 0x630   : > { %v10363_v35 = vld [vmem:[#allocation6 + $0x32] sm:$0xff]  ;;  %5040 = vst.msk [vmem:[#allocation3 + $0xb8] sm:$0xff] %vm5016_vm12, %v4967_v8  ;;  %7785 = vmatprep.mubr.msk.f32.mxu0 %vm5098_vm13, %v5071_v11  ;;  %5708 = vrot.lane.b32.xlu1 %v5692_v56, %s8111_s13 }
 0x631   : > { %v10368_v63 = vld [vmem:[#allocation6 + $0x33] sm:$0xff]  ;;  %6120 = vst.msk [vmem:[#allocation7 + $0x50] sm:$0xff] %vm5456_vm14, %v10363_v35  ;;  %5465 = vst.msk [vmem:[#allocation4 + $0x40] sm:$0xff] %vm5456_vm14, %v5432_v36  ;;  %5871 = vrot.lane.b32.xlu0 %v5855_v10, %s8111_s13  ;;  %7865 = vmatpush3.bf16.msra.mxu1 %v7864_v16 }
 0x632   : > { %v6272_v40 = vld [vmem:[#allocation6 + $0x31] sm:$0xff]  ;;  %4462 = vst.msk [vmem:[#allocation3 + $0xc0] sm:$0xff] %vm4437_vm9, %v4390_v17  ;;  %v3814_v28 = vpop.permute.xlu1 %3813  ;;  %7867 = vmatprep.subr.bf16.mxu1 %v7866_v62 }
 0x633   : > { %5961 = vst.msk [vmem:[#allocation7 + $0x80] sm:$0xff] %vm5456_vm14, %v10368_v63  ;;  %6280 = vst.msk [vmem:[#allocation7 + $0x20] sm:$0xff] %vm5456_vm14, %v6272_v40  ;;  %v3623_v48 = vpop.permute.xlu0 %3622  ;;  %v10431_v4 = vld [vmem:[#allocation6 + $0x31] sm:$0xff] }
 0x634   : > { %3884 = vst.msk [vmem:[#allocation3 + $0xd0] sm:$0xff] %vm3857_vm6, %v3814_v28  ;;  %5757 = vrot.lane.b32.xlu1 %v5741_v39, %s8112_s8  ;;  %v5905_v54 = vld [vmem:[#allocation6 + $0x32] sm:$0xff] }
 0x635   : > { %3692 = vst.msk [vmem:[#allocation3 + $0xd8] sm:$0xff] %vm3664_vm5, %v3623_v48  ;;  %5919 = vrot.lane.b32.xlu0 %v5903_v22, %s8112_s8  ;;  %7869 = vmatpush3.bf16.msra.mxu1 %v7868_v46  ;;  %v5744_v7 = vld [vmem:[#allocation6 + $0x33] sm:$0xff] }
 0x636   : > { %v4583_v27 = vpop.permute.xlu1 %4582  ;;  %7871 = vmatprep.subr.bf16.mxu1 %v7870_v47  ;;  %v5494_v34 = vld [vmem:[#allocation4 + $0x48] sm:$0xff] }
 0x637   : > { %v5072_v53 = vld [vmem:[#allocation3 + $0xb8] sm:$0xff]  ;;  %4655 = vst.msk [vmem:[#allocation3 + $0xc0] sm:$0xff] %vm4630_vm10, %v4583_v27  ;;  %v4392_v45 = vpop.permute.xlu0 %4391  ;;  %v10474_v27 = vld [vmem:[%s11434_s2] ss:$0 sm:$0xff] }
 0x638   : > { %7786 = vmatmul.mubr.msk.f32.gmra.mrb[22].mxu0 %vm5098_vm13, %v5072_v53  ;;  %4463 = vst.msk [vmem:[#allocation3 + $0xc8] sm:$0xff] %vm4437_vm9, %v4392_v45  ;;  %5661 = vrot.lane.b32.xlu1 %v5855_v10, %s8110_s26  ;;  %v5493_v41 = vld [vmem:[#allocation4 + $0x40] sm:$0xff] }
 0x639   : > { %5825 = vrot.lane.b32.xlu0 %v10190_v14, %s8110_s26  ;;  %7873 = vmatpush3.bf16.msra.mxu1 %v7872_v60 }
 0x63a   : > { %v4007_v12 = vpop.permute.xlu1 %4006 }
 0x63b   : > { %4077 = vst.msk [vmem:[#allocation3 + $0xd0] sm:$0xff] %vm4050_vm7, %v4007_v12  ;;  %v3816_v6 = vpop.permute.xlu0 %3815 }
 0x63c   : > { %3885 = vst.msk [vmem:[#allocation3 + $0xd8] sm:$0xff] %vm3857_vm6, %v3816_v6  ;;  %5710 = vrot.lane.b32.xlu1 %v5903_v22, %s8111_s13 }
 0x63d   : > { %5873 = vrot.lane.b32.xlu0 %v10414_v25, %s8111_s13 }
 0x63e   : > { %v4776_v50 = vpop.permute.xlu1 %4775 }
 0x63f   : > { %4848 = vst.msk [vmem:[#allocation3 + $0xc0] sm:$0xff] %vm4823_vm11, %v4776_v50  ;;  %v4585_v42 = vpop.permute.xlu0 %4584 }
 0x640   : > { %4656 = vst.msk [vmem:[#allocation3 + $0xc8] sm:$0xff] %vm4630_vm10, %v4585_v42  ;;  %5759 = vrot.lane.b32.xlu1 %v5742_v26, %s8112_s8 }
 0x641   : > { %5921 = vrot.lane.b32.xlu0 %v5904_v29, %s8112_s8 }
 0x642   : > { %v4201_v3 = vpop.permute.xlu1 %4200 }
 0x643   : > { %4271 = vst.msk [vmem:[#allocation3 + $0xd0] sm:$0xff] %vm4244_vm8, %v4201_v3  ;;  %v4009_v30 = vpop.permute.xlu0 %4008 }
 0x644   : > { %4078 = vst.msk [vmem:[#allocation3 + $0xd8] sm:$0xff] %vm4050_vm7, %v4009_v30  ;;  %5663 = vrot.lane.b32.xlu1 %v10414_v25, %s8110_s26 }
 0x645   : > { %5827 = vrot.lane.b32.xlu0 %v10336_v44, %s8110_s26 }
 0x646   : > { %v4969_v33 = vpop.permute.xlu1 %4968 }
 0x647   : > { %5041 = vst.msk [vmem:[#allocation3 + $0xc0] sm:$0xff] %vm5016_vm12, %v4969_v33  ;;  %v4778_v38 = vpop.permute.xlu0 %4777 }
 0x648   : > { %4849 = vst.msk [vmem:[#allocation3 + $0xc8] sm:$0xff] %vm4823_vm11, %v4778_v38  ;;  %5712 = vrot.lane.b32.xlu1 %v5904_v29, %s8111_s13 }
 0x649   : > { %5875 = vrot.lane.b32.xlu0 %v10431_v4, %s8111_s13 }
 0x64a   : > { %v4394_v32 = vpop.permute.xlu1 %4393  ;;  %v7769_v5 = vpop.f32.mrb[10].mxu0 }
 0x64b   : > { %4464 = vst.msk [vmem:[#allocation3 + $0xd0] sm:$0xff] %vm4437_vm9, %v4394_v32  ;;  %v4203_v13 = vpop.permute.xlu0 %4202  ;;  %v5321_v24 = vadd.f32 %v7769_v5, %v10109_v49  ;;  %v5315_v31 = vpop.f32.mrb[11].mxu0 }
 0x64c   : > { %4272 = vst.msk [vmem:[#allocation3 + $0xd8] sm:$0xff] %vm4244_vm8, %v4203_v13  ;;  %v5316_v55 = vadd.f32 %v10109_v49, %v5315_v31  ;;  %5761 = vrot.lane.b32.xlu1 %v5743_v57, %s8112_s8 }
 0x64d   : > { %5923 = vrot.lane.b32.xlu0 %v5905_v54, %s8112_s8  ;;  %v5435_v58 = vmax.f32 %v5321_v24, 0.0 }
 0x64e   : > { %v5434_v0 = vmax.f32 %v5316_v55, 0.0  ;;  %v4396_v56 = vpop.permute.xlu1 %4395  ;;  %v5073_v61 = vld [vmem:[#allocation3 + $0xc0] sm:$0xff] }
 0x64f   : > { %5468 = vst.msk [vmem:[#allocation4 + $0x58] sm:$0xff] %vm5456_vm14, %v5435_v58  ;;  %v4971_v10 = vpop.permute.xlu0 %4970  ;;  %7788 = vmatprep.mubr.msk.f32.mxu0 %vm5098_vm13, %v5073_v61 }
 0x650   : > { %4465 = vst.msk [vmem:[#allocation3 + $0xd8] sm:$0xff] %vm4437_vm9, %v4396_v56  ;;  %5665 = vrot.lane.b32.xlu1 %v10431_v4, %s8110_s26 }
 0x651   : > { %5467 = vst.msk [vmem:[#allocation4 + $0x50] sm:$0xff] %vm5456_vm14, %v5434_v0 }
 0x652   : > { %5042 = vst.msk [vmem:[#allocation3 + $0xc8] sm:$0xff] %vm5016_vm12, %v4971_v10  ;;  %v4589_v49 = vpop.permute.xlu1 %4588 }
 0x653   : > { %4658 = vst.msk [vmem:[#allocation3 + $0xd8] sm:$0xff] %vm4630_vm10, %v4589_v49  ;;  %v4587_v1 = vpop.permute.xlu0 %4586 }
 0x654   : > { %4657 = vst.msk [vmem:[#allocation3 + $0xd0] sm:$0xff] %vm4630_vm10, %v4587_v1  ;;  %5714 = vrot.lane.b32.xlu1 %v5905_v54, %s8111_s13 }
 0x656   : > { %v5511_v43 = vld [vmem:[#allocation4 + $0x58] sm:$0xff]  ;;  %v4782_v2 = vpop.permute.xlu1 %4781 }
 0x657   : > { %v5527_v36 = vmax.f32 %v5494_v34, %v5511_v43  ;;  %4851 = vst.msk [vmem:[#allocation3 + $0xd8] sm:$0xff] %vm4823_vm11, %v4782_v2  ;;  %v4780_v11 = vpop.permute.xlu0 %4779 }
 0x658   : > { %v5510_v8 = vld [vmem:[#allocation4 + $0x50] sm:$0xff]  ;;  %4850 = vst.msk [vmem:[#allocation3 + $0xd0] sm:$0xff] %vm4823_vm11, %v4780_v11  ;;  %5763 = vrot.lane.b32.xlu1 %v5744_v7, %s8112_s8 }
 0x659   : > { %v5074_v16 = vld [vmem:[#allocation3 + $0xc8] sm:$0xff]  ;;  %v5526_v17 = vmax.f32 %v5493_v41, %v5510_v8  ;;  %5543 = vst.msk [vmem:[#allocation5 + $0x28] sm:$0xff] %vm5456_vm14, %v5527_v36 }
 0x65a   : > { %7789 = vmatmul.mubr.msk.f32.gmra.mrb[24].mxu0 %vm5098_vm13, %v5074_v16  ;;  %v4975_v40 = vpop.permute.xlu1 %4974 }
 0x65b   : > { %5542 = vst.msk [vmem:[#allocation5 + $0x20] sm:$0xff] %vm5456_vm14, %v5526_v17  ;;  %v4973_v39 = vpop.permute.xlu0 %4972 }
 0x65c   : > { %5044 = vst.msk [vmem:[#allocation3 + $0xd8] sm:$0xff] %vm5016_vm12, %v4975_v40  ;;  %5043 = vst.msk [vmem:[#allocation3 + $0xd0] sm:$0xff] %vm5016_vm12, %v4973_v39 }
 0x65e   : > { %v3627_v18 = vpop.permute.xlu1 %3626 }
 0x65f   : > { %3694 = vst.msk [vmem:[#allocation3 + $0xe8] sm:$0xff] %vm3664_vm5, %v3627_v18  ;;  %v3625_v19 = vpop.permute.xlu0 %3624 }
 0x660   : > { %3693 = vst.msk [vmem:[#allocation3 + $0xe0] sm:$0xff] %vm3664_vm5, %v3625_v19 }
 0x662   : > { %v5558_v22 = vld [vmem:[#allocation5 + $0x20] ss:$2 sm:$0xff]  ;;  %v5574_v62 = vld [vmem:[#allocation5 + $0x21] ss:$2 sm:$0xff]  ;;  %v3820_v23 = vpop.permute.xlu1 %3819 }
 0x663   : > { %v5076_v20 = vld [vmem:[#allocation3 + $0xd8] sm:$0xff]  ;;  %v5587_v28 = vmax.f32 %v5558_v22, %v5574_v62  ;;  %3887 = vst.msk [vmem:[#allocation3 + $0xe8] sm:$0xff] %vm3857_vm6, %v3820_v23  ;;  %v3818_v46 = vpop.permute.xlu0 %3817  ;;  %v5075_v48 = vld [vmem:[#allocation3 + $0xd0] sm:$0xff] }
 0x664   : > { %3886 = vst.msk [vmem:[#allocation3 + $0xe0] sm:$0xff] %vm3857_vm6, %v3818_v46  ;;  %7791 = vmatprep.mubr.msk.f32.mxu0 %vm5098_vm13, %v5075_v48 }
 0x665   : > { %5621 = vst.msk [vmem:[#allocation6 + $0x42] sm:$0xff] %vm5456_vm14, %v5587_v28  ;;  %7792 = vmatmul.mubr.msk.f32.gmra.mrb[26].mxu0 %vm5098_vm13, %v5076_v20 }
 0x666   : > { %v4013_v51 = vpop.permute.xlu1 %4012 }
 0x667   : > { %4080 = vst.msk [vmem:[#allocation3 + $0xe8] sm:$0xff] %vm4050_vm7, %v4013_v51  ;;  %v4011_v21 = vpop.permute.xlu0 %4010 }
 0x668   : > { %4079 = vst.msk [vmem:[#allocation3 + $0xe0] sm:$0xff] %vm4050_vm7, %v4011_v21 }
 0x66a   : > { %v3629_v47 = vpop.permute.xlu1 %3628  ;;  %v7772_v52 = vpop.f32.mrb[12].mxu0 }
 0x66b   : > { %3695 = vst.msk [vmem:[#allocation3 + $0xf0] sm:$0xff] %vm3664_vm5, %v3629_v47  ;;  %v4205_v59 = vpop.permute.xlu0 %4204  ;;  %v5331_v53 = vadd.f32 %v10474_v27, %v7772_v52  ;;  %v5325_v60 = vpop.f32.mrb[13].mxu0 }
 0x66c   : > { %v10477_v45 = vld [vmem:[#allocation6 + $0x40] sm:$0xff]  ;;  %4273 = vst.msk [vmem:[#allocation3 + $0xe0] sm:$0xff] %vm4244_vm8, %v4205_v59  ;;  %v5326_v6 = vadd.f32 %v10474_v27, %v5325_v60 }
 0x66d   : > { %v10479_v12 = vld [vmem:[#allocation6 + $0x41] sm:$0xff]  ;;  %5829 = vrot.lane.b32.xlu0 %v10477_v45, %s8110_s26  ;;  %5639 = vst.msk [vmem:[#allocation7 + $0xe0] sm:$0xff] %vm5456_vm14, %v10477_v45  ;;  %v5437_v42 = vmax.f32 %v5331_v53, 0.0 }
 0x66e   : > { %5667 = vrot.lane.b32.xlu1 %v10479_v12, %s8110_s26  ;;  %v10489_v26 = vld [vmem:[#allocation6 + $0x44] sm:$0xff]  ;;  %v5436_v33 = vmax.f32 %v5326_v6, 0.0  ;;  %v4398_v38 = vpop.permute.xlu1 %4397 }
 0x66f   : > { %v10491_v50 = vld [vmem:[#allocation6 + $0x42] sm:$0xff]  ;;  %5802 = vst.msk [vmem:[#allocation7 + $0xe8] sm:$0xff] %vm5456_vm14, %v10489_v26  ;;  %5470 = vst.msk [vmem:[#allocation4 + $0x68] sm:$0xff] %vm5456_vm14, %v5437_v42  ;;  %v4207_v5 = vpop.permute.xlu0 %4206 }
 0x670   : > { %v10495_v29 = vld [vmem:[#allocation6 + $0x43] sm:$0xff]  ;;  %6121 = vst.msk [vmem:[#allocation7 + $0x88] sm:$0xff] %vm5456_vm14, %v10491_v50  ;;  %5469 = vst.msk [vmem:[#allocation4 + $0x60] sm:$0xff] %vm5456_vm14, %v5436_v33 }
 0x671   : > { %v6433_v3 = vld [vmem:[#allocation6 + $0x40] sm:$0xff]  ;;  %5962 = vst.msk [vmem:[#allocation7 + $0xb8] sm:$0xff] %vm5456_vm14, %v10495_v29  ;;  %5877 = vrot.lane.b32.xlu0 %v10479_v12, %s8111_s13 }
 0x672   : > { %v6273_v30 = vld [vmem:[#allocation6 + $0x41] sm:$0xff]  ;;  %6441 = vst.msk [vmem:[#allocation7 + $0x28] sm:$0xff] %vm5456_vm14, %v6433_v3  ;;  %v3822_v24 = vpop.permute.xlu1 %3821 }
 0x673   : > { %6281 = vst.msk [vmem:[#allocation7 + $0x58] sm:$0xff] %vm5456_vm14, %v6273_v30  ;;  %v6593_v32 = vld [vmem:[#allocation6 + $0x44] sm:$0xff]  ;;  %v3631_v31 = vpop.permute.xlu0 %3630 }
 0x674   : > { %4466 = vst.msk [vmem:[#allocation3 + $0xe0] sm:$0xff] %vm4437_vm9, %v4398_v38  ;;  %v10505_v13 = vld [vmem:[#allocation6 + $0x42] sm:$0xff] }
 0x675   : > { %6601 = vst.msk [vmem:[#allocation7 + $0x30] sm:$0xff] %vm5456_vm14, %v6593_v32  ;;  %5716 = vrot.lane.b32.xlu1 %v10505_v13, %s8111_s13  ;;  %v10515_v57 = vld [vmem:[#allocation6 + $0x43] sm:$0xff]  ;;  %5925 = vrot.lane.b32.xlu0 %v10505_v13, %s8112_s8 }
 0x676   : > { %4274 = vst.msk [vmem:[#allocation3 + $0xe8] sm:$0xff] %vm4244_vm8, %v4207_v5  ;;  %v4591_v54 = vpop.permute.xlu1 %4590  ;;  %v5496_v22 = vld [vmem:[#allocation4 + $0x68] sm:$0xff] }
 0x677   : > { %3888 = vst.msk [vmem:[#allocation3 + $0xf0] sm:$0xff] %vm3857_vm6, %v3822_v24  ;;  %v4400_v55 = vpop.permute.xlu0 %4399  ;;  %v5495_v20 = vld [vmem:[#allocation4 + $0x60] sm:$0xff] }
 0x678   : > { %3696 = vst.msk [vmem:[#allocation3 + $0xf8] sm:$0xff] %vm3664_vm5, %v3631_v31  ;;  %vm7269_vm5 = vcmask 1045509  }
 0x679   : > { %5765 = vrot.lane.b32.xlu1 %v10515_v57, %s8112_s8  ;;  %4659 = vst.msk [vmem:[#allocation3 + $0xe0] sm:$0xff] %vm4630_vm10, %v4591_v54 }
 0x67a   : > { %4467 = vst.msk [vmem:[#allocation3 + $0xe8] sm:$0xff] %vm4437_vm9, %v4400_v55  ;;  %v4015_v58 = vpop.permute.xlu1 %4014 }
 0x67b   : > { %4081 = vst.msk [vmem:[#allocation3 + $0xf0] sm:$0xff] %vm4050_vm7, %v4015_v58  ;;  %v3824_v0 = vpop.permute.xlu0 %3823 }
 0x67c   : > { %3889 = vst.msk [vmem:[#allocation3 + $0xf8] sm:$0xff] %vm3857_vm6, %v3824_v0  ;;  %vm7272_vm6 = vcmask 1042434  }
 0x67e   : > { %v4784_v56 = vpop.permute.xlu1 %4783 }
 0x67f   : > { %4852 = vst.msk [vmem:[#allocation3 + $0xe0] sm:$0xff] %vm4823_vm11, %v4784_v56  ;;  %v4593_v61 = vpop.permute.xlu0 %4592 }
 0x680   : > { %4660 = vst.msk [vmem:[#allocation3 + $0xe8] sm:$0xff] %vm4630_vm10, %v4593_v61 }
 0x682   : > { %v4209_v10 = vpop.permute.xlu1 %4208 }
 0x683   : > { %4275 = vst.msk [vmem:[#allocation3 + $0xf0] sm:$0xff] %vm4244_vm8, %v4209_v10  ;;  %v4017_v49 = vpop.permute.xlu0 %4016 }
 0x684   : > { %4082 = vst.msk [vmem:[#allocation3 + $0xf8] sm:$0xff] %vm4050_vm7, %v4017_v49  ;;  %vm7274_vm7 = vcmask 1046534  }
 0x686   : > { %v4977_v1 = vpop.permute.xlu1 %4976 }
 0x687   : > { %5045 = vst.msk [vmem:[#allocation3 + $0xe0] sm:$0xff] %vm5016_vm12, %v4977_v1  ;;  %v4786_v34 = vpop.permute.xlu0 %4785 }
 0x688   : > { %4853 = vst.msk [vmem:[#allocation3 + $0xe8] sm:$0xff] %vm4823_vm11, %v4786_v34 }
 0x68a   : > { %v4402_v43 = vpop.permute.xlu1 %4401  ;;  %v7775_v2 = vpop.f32.mrb[14].mxu0 }
 0x68b   : > { %4468 = vst.msk [vmem:[#allocation3 + $0xf0] sm:$0xff] %vm4437_vm9, %v4402_v43  ;;  %v4211_v7 = vpop.permute.xlu0 %4210  ;;  %v5341_v41 = vadd.f32 %v10474_v27, %v7775_v2  ;;  %v5335_v36 = vpop.f32.mrb[15].mxu0 }
 0x68c   : > { %4276 = vst.msk [vmem:[#allocation3 + $0xf8] sm:$0xff] %vm4244_vm8, %v4211_v7  ;;  %v5336_v8 = vadd.f32 %v10474_v27, %v5335_v36  ;;  %vm7277_vm8 = vcmask 1043459  }
 0x68d   : > { %v5439_v11 = vmax.f32 %v5341_v41, 0.0 }
 0x68e   : > { %v5438_v16 = vmax.f32 %v5336_v8, 0.0  ;;  %v4404_v17 = vpop.permute.xlu1 %4403  ;;  %v5077_v40 = vld [vmem:[#allocation3 + $0xe0] sm:$0xff] }
 0x68f   : > { %5472 = vst.msk [vmem:[#allocation4 + $0x78] sm:$0xff] %vm5456_vm14, %v5439_v11  ;;  %v4979_v39 = vpop.permute.xlu0 %4978  ;;  %7794 = vmatprep.mubr.msk.f32.mxu0 %vm5098_vm13, %v5077_v40 }
 0x690   : > { %4469 = vst.msk [vmem:[#allocation3 + $0xf8] sm:$0xff] %vm4437_vm9, %v4404_v17  ;;  %vm7279_vm9 = vcmask 1047559  }
 0x691   : > { %5471 = vst.msk [vmem:[#allocation4 + $0x70] sm:$0xff] %vm5456_vm14, %v5438_v16 }
 0x692   : > { %5046 = vst.msk [vmem:[#allocation3 + $0xe8] sm:$0xff] %vm5016_vm12, %v4979_v39  ;;  %v4597_v18 = vpop.permute.xlu1 %4596 }
 0x693   : > { %4662 = vst.msk [vmem:[#allocation3 + $0xf8] sm:$0xff] %vm4630_vm10, %v4597_v18  ;;  %v4595_v19 = vpop.permute.xlu0 %4594 }
 0x694   : > { %4661 = vst.msk [vmem:[#allocation3 + $0xf0] sm:$0xff] %vm4630_vm10, %v4595_v19  ;;  %vm7282_vm10 = vcmask 388096  }
 0x696   : > { %v5513_v62 = vld [vmem:[#allocation4 + $0x78] sm:$0xff]  ;;  %v4790_v23 = vpop.permute.xlu1 %4789 }
 0x697   : > { %v5529_v28 = vmax.f32 %v5496_v22, %v5513_v62  ;;  %4855 = vst.msk [vmem:[#allocation3 + $0xf8] sm:$0xff] %vm4823_vm11, %v4790_v23  ;;  %v4788_v48 = vpop.permute.xlu0 %4787 }
 0x698   : > { %v5512_v46 = vld [vmem:[#allocation4 + $0x70] sm:$0xff]  ;;  %4854 = vst.msk [vmem:[#allocation3 + $0xf0] sm:$0xff] %vm4823_vm11, %v4788_v48  ;;  %vm7345_vm11 = vcmask 1044224  }
 0x699   : > { %v5078_v51 = vld [vmem:[#allocation3 + $0xe8] sm:$0xff]  ;;  %v5528_v21 = vmax.f32 %v5495_v20, %v5512_v46  ;;  %5545 = vst.msk [vmem:[#allocation5 + $0x38] sm:$0xff] %vm5456_vm14, %v5529_v28 }
 0x69a   : > { %7795 = vmatmul.mubr.msk.f32.gmra.mrb[28].mxu0 %vm5098_vm13, %v5078_v51  ;;  %v4983_v47 = vpop.permute.xlu1 %4982 }
 0x69b   : > { %5544 = vst.msk [vmem:[#allocation5 + $0x30] sm:$0xff] %vm5456_vm14, %v5528_v21  ;;  %v4981_v52 = vpop.permute.xlu0 %4980 }
 0x69c   : > { %5048 = vst.msk [vmem:[#allocation3 + $0xf8] sm:$0xff] %vm5016_vm12, %v4983_v47  ;;  %5047 = vst.msk [vmem:[#allocation3 + $0xf0] sm:$0xff] %vm5016_vm12, %v4981_v52  ;;  %vm7346_vm12 = vcmask 130052  }
 0x69d   : > { %vm7347_vm15 = vmor %vm7346_vm12, %vm7345_vm11 }
 0x69e   : > { %v5660_v59 = vpop.permute.xlu1 %5659 }
 0x69f   : > { %5684 = vst.msk [vmem:[#allocation7] sm:$0xff] %vm5683_vm0, %v5660_v59  ;;  %v5824_v53 = vpop.permute.xlu0 %5823 }
 0x6a0   : > { %5847 = vst.msk [vmem:[#allocation7 + $0x8] sm:$0xff] %vm5683_vm0, %v5824_v53 }
 0x6a2   : > { %v5560_v60 = vld [vmem:[#allocation5 + $0x30] ss:$2 sm:$0xff]  ;;  %v5576_v6 = vld [vmem:[#allocation5 + $0x31] ss:$2 sm:$0xff]  ;;  %v5709_v42 = vpop.permute.xlu1 %5708 }
 0x6a3   : > { %v5588_v3 = vmax.f32 %v5560_v60, %v5576_v6  ;;  %v5080_v30 = vld [vmem:[#allocation3 + $0xf8] sm:$0xff]  ;;  %5733 = vst.msk [vmem:[#allocation7] sm:$0xff] %vm5732_vm1, %v5709_v42  ;;  %v5872_v33 = vpop.permute.xlu0 %5871  ;;  %v5079_v38 = vld [vmem:[#allocation3 + $0xf0] sm:$0xff] }
 0x6a4   : > { %5895 = vst.msk [vmem:[#allocation7 + $0x8] sm:$0xff] %vm5732_vm1, %v5872_v33  ;;  %7797 = vmatprep.mubr.msk.f32.mxu0 %vm5098_vm13, %v5079_v38 }
 0x6a5   : > { %5622 = vst.msk [vmem:[#allocation6 + $0x52] sm:$0xff] %vm5456_vm14, %v5588_v3  ;;  %7798 = vmatmul.mubr.msk.f32.gmra.mrb[30].mxu0 %vm5098_vm13, %v5080_v30  ;;  %vm7312_vm13 = vcmask 781696  }
 0x6a6   : > { %v5758_v32 = vpop.permute.xlu1 %5757 }
 0x6a7   : > { %5782 = vst.msk [vmem:[#allocation7] sm:$0xff] %vm5781_vm2, %v5758_v32  ;;  %v5920_v5 = vpop.permute.xlu0 %5919 }
 0x6a8   : > { %5943 = vst.msk [vmem:[#allocation7 + $0x8] sm:$0xff] %vm5781_vm2, %v5920_v5 }
 0x6aa   : > { %v5662_v24 = vpop.permute.xlu1 %5661  ;;  %v7778_v31 = vpop.f32.mrb[16].mxu0 }
 0x6ab   : > { %5685 = vst.msk [vmem:[#allocation7 + $0x38] sm:$0xff] %vm5683_vm0, %v5662_v24  ;;  %v5826_v54 = vpop.permute.xlu0 %5825  ;;  %v5351_v55 = vadd.f32 %v10474_v27, %v7778_v31  ;;  %v5345_v58 = vpop.f32.mrb[17].mxu0 }
 0x6ac   : > { %v10561_v0 = vld [vmem:[#allocation6 + $0x50] sm:$0xff]  ;;  %5848 = vst.msk [vmem:[#allocation7 + $0x40] sm:$0xff] %vm5683_vm0, %v5826_v54  ;;  %v5346_v61 = vadd.f32 %v10474_v27, %v5345_v58 }
 0x6ad   : > { %v10563_v56 = vld [vmem:[#allocation6 + $0x51] sm:$0xff]  ;;  %5831 = vrot.lane.b32.xlu0 %v10561_v0, %s8110_s26  ;;  %5640 = vst.msk [vmem:[#allocation7 + $0x118] sm:$0xff] %vm5456_vm14, %v10561_v0  ;;  %v5441_v1 = vmax.f32 %v5351_v55, 0.0 }
 0x6ae   : > { %5669 = vrot.lane.b32.xlu1 %v10563_v56, %s8110_s26  ;;  %v10573_v10 = vld [vmem:[#allocation6 + $0x54] sm:$0xff]  ;;  %v5440_v7 = vmax.f32 %v5346_v61, 0.0  ;;  %v5711_v41 = vpop.permute.xlu1 %5710  ;;  %v6609_v17 = vld [vmem:[#allocation7] sm:$0xff] }
 0x6af   : > { %v6434_v49 = vld [vmem:[#allocation6 + $0x50] sm:$0xff]  ;;  %5803 = vst.msk [vmem:[#allocation7 + $0x120] sm:$0xff] %vm5456_vm14, %v10573_v10  ;;  %5474 = vst.msk [vmem:[#allocation4 + $0x88] sm:$0xff] %vm5456_vm14, %v5441_v1  ;;  %v5874_v8 = vpop.permute.xlu0 %5873  ;;  %v6610_v16 = vld [vmem:[#allocation7 + $0x8] sm:$0xff] }
 0x6b0   : > { %6442 = vst.msk [vmem:[#allocation7 + $0x60] sm:$0xff] %vm5456_vm14, %v6434_v49  ;;  %v6114_v34 = vld [vmem:[#allocation6 + $0x52] sm:$0xff]  ;;  %5473 = vst.msk [vmem:[#allocation4 + $0x80] sm:$0xff] %vm5456_vm14, %v5440_v7  ;;  %6860 = vmatprep.mubr.f32.mxu1 %v6610_v16 }
 0x6b1   : > { %v5955_v43 = vld [vmem:[#allocation6 + $0x53] sm:$0xff]  ;;  %6122 = vst.msk [vmem:[#allocation7 + $0xc0] sm:$0xff] %vm5456_vm14, %v6114_v34  ;;  %5879 = vrot.lane.b32.xlu0 %v10563_v56, %s8111_s13  ;;  %6861 = vmatmul.mubr.f32.vlgmr.msra.gmra.mrb[0].mxu1 %v6609_v17 }
 0x6b2   : > { %v6274_v2 = vld [vmem:[#allocation6 + $0x51] sm:$0xff]  ;;  %5963 = vst.msk [vmem:[#allocation7 + $0xf0] sm:$0xff] %vm5456_vm14, %v5955_v43  ;;  %v5760_v40 = vpop.permute.xlu1 %5759 }
 0x6b3   : > { %6282 = vst.msk [vmem:[#allocation7 + $0x90] sm:$0xff] %vm5456_vm14, %v6274_v2  ;;  %v6594_v36 = vld [vmem:[#allocation6 + $0x54] sm:$0xff]  ;;  %v5922_v39 = vpop.permute.xlu0 %5921 }
 0x6b4   : > { %5734 = vst.msk [vmem:[#allocation7 + $0x38] sm:$0xff] %vm5732_vm1, %v5711_v41  ;;  %v10583_v11 = vld [vmem:[#allocation6 + $0x52] sm:$0xff]  ;;  %5896 = vst.msk [vmem:[#allocation7 + $0x40] sm:$0xff] %vm5732_vm1, %v5874_v8 }
 0x6b5   : > { %6602 = vst.msk [vmem:[#allocation7 + $0x68] sm:$0xff] %vm5456_vm14, %v6594_v36  ;;  %5718 = vrot.lane.b32.xlu1 %v10583_v11, %s8111_s13  ;;  %v10593_v18 = vld [vmem:[#allocation6 + $0x53] sm:$0xff]  ;;  %5927 = vrot.lane.b32.xlu0 %v10583_v11, %s8112_s8 }
 0x6b6   : > { %5783 = vst.msk [vmem:[#allocation7 + $0x38] sm:$0xff] %vm5781_vm2, %v5760_v40  ;;  %5944 = vst.msk [vmem:[#allocation7 + $0x40] sm:$0xff] %vm5781_vm2, %v5922_v39  ;;  %v5664_v19 = vpop.permute.xlu1 %5663  ;;  %v5498_v33 = vld [vmem:[#allocation4 + $0x88] sm:$0xff] }
 0x6b7   : > { %5686 = vst.msk [vmem:[#allocation7 + $0x70] sm:$0xff] %vm5683_vm0, %v5664_v19  ;;  %v5828_v22 = vpop.permute.xlu0 %5827  ;;  %v5497_v32 = vld [vmem:[#allocation4 + $0x80] sm:$0xff] }
 0x6b8   : > { %5849 = vst.msk [vmem:[#allocation7 + $0x78] sm:$0xff] %vm5683_vm0, %v5828_v22 }
 0x6b9   : > { %5767 = vrot.lane.b32.xlu1 %v10593_v18, %s8112_s8 }
 0x6ba   : > { %v5713_v62 = vpop.permute.xlu1 %5712 }
 0x6bb   : > { %5735 = vst.msk [vmem:[#allocation7 + $0x70] sm:$0xff] %vm5732_vm1, %v5713_v62  ;;  %v5876_v20 = vpop.permute.xlu0 %5875 }
 0x6bc   : > { %5897 = vst.msk [vmem:[#allocation7 + $0x78] sm:$0xff] %vm5732_vm1, %v5876_v20 }
 0x6bd   : > { %v6616_v23 = vld [vmem:[#allocation7 + $0x38] sm:$0xff]  ;;  %v6617_v28 = vld [vmem:[#allocation7 + $0x40] sm:$0xff] }
 0x6be   : > { %6865 = vmatprep.mubr.f32.mxu1 %v6617_v28  ;;  %v5762_v46 = vpop.permute.xlu1 %5761 }
 0x6bf   : > { %6866 = vmatmul.mubr.f32.gmra.mrb[2].mxu1 %v6616_v23  ;;  %5784 = vst.msk [vmem:[#allocation7 + $0x70] sm:$0xff] %vm5781_vm2, %v5762_v46  ;;  %v5924_v48 = vpop.permute.xlu0 %5923 }
 0x6c0   : > { %5945 = vst.msk [vmem:[#allocation7 + $0x78] sm:$0xff] %vm5781_vm2, %v5924_v48 }
 0x6c2   : > { %v5666_v51 = vpop.permute.xlu1 %5665 }
 0x6c3   : > { %5687 = vst.msk [vmem:[#allocation7 + $0xa8] sm:$0xff] %vm5683_vm0, %v5666_v51 }
 0x6c6   : > { %v5715_v21 = vpop.permute.xlu1 %5714  ;;  %v6623_v47 = vld [vmem:[#allocation7 + $0x70] sm:$0xff] }
 0x6c7   : > { %5736 = vst.msk [vmem:[#allocation7 + $0xa8] sm:$0xff] %vm5732_vm1, %v5715_v21  ;;  %v6624_v52 = vld [vmem:[#allocation7 + $0x78] sm:$0xff] }
 0x6c8   : > { %6870 = vmatprep.mubr.f32.mxu1 %v6624_v52 }
 0x6c9   : > { %6871 = vmatmul.mubr.f32.gmra.mrb[4].mxu1 %v6623_v47 }
 0x6ca   : > { %v5764_v53 = vpop.permute.xlu1 %5763 }
 0x6cb   : > { %v7781_v59 = vpop.f32.mrb[18].mxu0  ;;  %5785 = vst.msk [vmem:[#allocation7 + $0xa8] sm:$0xff] %vm5781_vm2, %v5764_v53 }
 0x6cc   : > { %v5361_v60 = vadd.f32 %v10474_v27, %v7781_v59  ;;  %v5355_v6 = vpop.f32.mrb[19].mxu0 }
 0x6cd   : > { %v5356_v42 = vadd.f32 %v10474_v27, %v5355_v6 }
 0x6ce   : > { %v5443_v3 = vmax.f32 %v5361_v60, 0.0 }
 0x6cf   : > { %v5442_v30 = vmax.f32 %v5356_v42, 0.0 }
 0x6d0   : > { %5476 = vst.msk [vmem:[#allocation4 + $0x98] sm:$0xff] %vm5456_vm14, %v5443_v3 }
 0x6d1   : > { %5475 = vst.msk [vmem:[#allocation4 + $0x90] sm:$0xff] %vm5456_vm14, %v5442_v30 }
 0x6d2   : > { %v6630_v51 = vld [vmem:[#allocation7 + $0xa8] sm:$0xff] }
 0x6d7   : > { %v5515_v38 = vld [vmem:[#allocation4 + $0x98] sm:$0xff] }
 0x6d8   : > { %v5531_v5 = vmax.f32 %v5498_v33, %v5515_v38  ;;  %v5514_v24 = vld [vmem:[#allocation4 + $0x90] sm:$0xff] }
 0x6d9   : > { %v5530_v31 = vmax.f32 %v5497_v32, %v5514_v24 }
 0x6da   : > { %5547 = vst.msk [vmem:[#allocation5 + $0x48] sm:$0xff] %vm5456_vm14, %v5531_v5 }
 0x6db   : > { %5546 = vst.msk [vmem:[#allocation5 + $0x40] sm:$0xff] %vm5456_vm14, %v5530_v31 }
 0x6df   : > { %v5830_v54 = vpop.permute.xlu0 %5829 }
 0x6e0   : > { %v5668_v55 = vpop.permute.xlu1 %5667  ;;  %5850 = vst.msk [vmem:[#allocation7 + $0xb0] sm:$0xff] %vm5683_vm0, %v5830_v54 }
 0x6e1   : > { %5688 = vst.msk [vmem:[#allocation7 + $0xe0] sm:$0xff] %vm5683_vm0, %v5668_v55 }
 0x6e2   : > { %v5562_v58 = vld [vmem:[#allocation5 + $0x40] ss:$2 sm:$0xff]  ;;  %v5578_v61 = vld [vmem:[#allocation5 + $0x41] ss:$2 sm:$0xff] }
 0x6e3   : > { %v5878_v49 = vpop.permute.xlu0 %5877  ;;  %v5589_v34 = vmax.f32 %v5562_v58, %v5578_v61 }
 0x6e4   : > { %5898 = vst.msk [vmem:[#allocation7 + $0xb0] sm:$0xff] %vm5732_vm1, %v5878_v49 }
 0x6e5   : > { %5623 = vst.msk [vmem:[#allocation6 + $0x62] sm:$0xff] %vm5456_vm14, %v5589_v34  ;;  %v5951_v34 = vld [vmem:[#allocation6 + $0x13] sm:$0xff] }
 0x6e6   : > { %5959 = vst.msk [vmem:[#allocation7 + $0x10] sm:$0xff] %vm5456_vm14, %v5951_v34  ;;  %v6699_v34 = vld [vmem:[%s11435_s3 + $0x110] sm:$0xff] }
 0x6e7   : > { %v5717_v1 = vpop.permute.xlu1 %5716  ;;  %v5926_v43 = vpop.permute.xlu0 %5925 }
 0x6e8   : > { %5737 = vst.msk [vmem:[#allocation7 + $0xe0] sm:$0xff] %vm5732_vm1, %v5717_v1 }
 0x6e9   : > { %5946 = vst.msk [vmem:[#allocation7 + $0xb0] sm:$0xff] %vm5781_vm2, %v5926_v43 }
 0x6eb   : > { %v5766_v2 = vpop.permute.xlu1 %5765  ;;  %v7784_v7 = vpop.f32.mrb[20].mxu0 }
 0x6ec   : > { %5786 = vst.msk [vmem:[#allocation7 + $0xe0] sm:$0xff] %vm5781_vm2, %v5766_v2  ;;  %v5371_v41 = vadd.f32 %v10474_v27, %v7784_v7  ;;  %v5365_v36 = vpop.f32.mrb[21].mxu0  ;;  %v10623_v8 = vld [vmem:[#allocation6 + $0x60] sm:$0xff] }
 0x6ed   : > { %v10625_v16 = vld [vmem:[#allocation6 + $0x61] sm:$0xff]  ;;  %v5366_v17 = vadd.f32 %v10474_v27, %v5365_v36  ;;  %5833 = vrot.lane.b32.xlu0 %v10623_v8, %s8110_s26  ;;  %5641 = vst.msk [vmem:[#allocation7 + $0x150] sm:$0xff] %vm5456_vm14, %v10623_v8 }
 0x6ee   : > { %5671 = vrot.lane.b32.xlu1 %v10625_v16, %s8110_s26  ;;  %v10634_v40 = vld [vmem:[#allocation6 + $0x64] sm:$0xff]  ;;  %v5445_v19 = vmax.f32 %v5371_v41, 0.0 }
 0x6ef   : > { %v6435_v39 = vld [vmem:[#allocation6 + $0x60] sm:$0xff]  ;;  %5804 = vst.msk [vmem:[#allocation7 + $0x158] sm:$0xff] %vm5456_vm14, %v10634_v40  ;;  %v5444_v20 = vmax.f32 %v5366_v17, 0.0 }
 0x6f0   : > { %6443 = vst.msk [vmem:[#allocation7 + $0x98] sm:$0xff] %vm5456_vm14, %v6435_v39  ;;  %v6115_v22 = vld [vmem:[#allocation6 + $0x62] sm:$0xff]  ;;  %v6631_v28 = vld [vmem:[#allocation7 + $0xb0] sm:$0xff]  ;;  %5478 = vst.msk [vmem:[#allocation4 + $0xa8] sm:$0xff] %vm5456_vm14, %v5445_v19 }
 0x6f1   : > { %v5956_v62 = vld [vmem:[#allocation6 + $0x63] sm:$0xff]  ;;  %6123 = vst.msk [vmem:[#allocation7 + $0xf8] sm:$0xff] %vm5456_vm14, %v6115_v22  ;;  %6875 = vmatprep.mubr.f32.mxu1 %v6631_v28  ;;  %5477 = vst.msk [vmem:[#allocation4 + $0xa0] sm:$0xff] %vm5456_vm14, %v5444_v20  ;;  %5881 = vrot.lane.b32.xlu0 %v10625_v16, %s8111_s13 }
 0x6f2   : > { %v6275_v23 = vld [vmem:[#allocation6 + $0x61] sm:$0xff]  ;;  %5964 = vst.msk [vmem:[#allocation7 + $0x128] sm:$0xff] %vm5456_vm14, %v5956_v62  ;;  %6876 = vmatmul.mubr.f32.gmra.mrb[6].mxu1 %v6630_v51 }
 0x6f3   : > { %6283 = vst.msk [vmem:[#allocation7 + $0xc8] sm:$0xff] %vm5456_vm14, %v6275_v23  ;;  %v6595_v46 = vld [vmem:[#allocation6 + $0x64] sm:$0xff] }
 0x6f4   : > { %v10643_v48 = vld [vmem:[#allocation6 + $0x62] sm:$0xff]  ;;  %6603 = vst.msk [vmem:[#allocation7 + $0xa0] sm:$0xff] %vm5456_vm14, %v6595_v46 }
 0x6f5   : > { %5720 = vrot.lane.b32.xlu1 %v10643_v48, %s8111_s13  ;;  %v10651_v21 = vld [vmem:[#allocation6 + $0x63] sm:$0xff]  ;;  %5929 = vrot.lane.b32.xlu0 %v10643_v48, %s8112_s8 }
 0x6f7   : > { %v5500_v42 = vld [vmem:[#allocation4 + $0xa8] sm:$0xff] }
 0x6f8   : > { %v5499_v30 = vld [vmem:[#allocation4 + $0xa0] sm:$0xff] }
 0x6f9   : > { %5769 = vrot.lane.b32.xlu1 %v10651_v21, %s8112_s8 }
 0x70b   : > { %v7787_v47 = vpop.f32.mrb[22].mxu0 }
 0x70c   : > { %v5381_v52 = vadd.f32 %v10474_v27, %v7787_v47  ;;  %v5375_v59 = vpop.f32.mrb[23].mxu0 }
 0x70d   : > { %v5376_v53 = vadd.f32 %v10474_v27, %v5375_v59 }
 0x70e   : > { %v5447_v60 = vmax.f32 %v5381_v52, 0.0  ;;  %v6637_v52 = vld [vmem:[#allocation7 + $0xe0] sm:$0xff] }
 0x70f   : > { %v5446_v6 = vmax.f32 %v5376_v53, 0.0 }
 0x710   : > { %5480 = vst.msk [vmem:[#allocation4 + $0xb8] sm:$0xff] %vm5456_vm14, %v5447_v60 }
 0x711   : > { %5479 = vst.msk [vmem:[#allocation4 + $0xb0] sm:$0xff] %vm5456_vm14, %v5446_v6 }
 0x717   : > { %v5517_v3 = vld [vmem:[#allocation4 + $0xb8] sm:$0xff] }
 0x718   : > { %v5533_v33 = vmax.f32 %v5500_v42, %v5517_v3  ;;  %v5516_v38 = vld [vmem:[#allocation4 + $0xb0] sm:$0xff] }
 0x719   : > { %v5532_v32 = vmax.f32 %v5499_v30, %v5516_v38 }
 0x71a   : > { %5549 = vst.msk [vmem:[#allocation5 + $0x58] sm:$0xff] %vm5456_vm14, %v5533_v33 }
 0x71b   : > { %5548 = vst.msk [vmem:[#allocation5 + $0x50] sm:$0xff] %vm5456_vm14, %v5532_v32 }
 0x71f   : > { %v5832_v5 = vpop.permute.xlu0 %5831 }
 0x720   : > { %v5670_v24 = vpop.permute.xlu1 %5669  ;;  %5851 = vst.msk [vmem:[#allocation7 + $0xe8] sm:$0xff] %vm5683_vm0, %v5832_v5 }
 0x721   : > { %5689 = vst.msk [vmem:[#allocation7 + $0x118] sm:$0xff] %vm5683_vm0, %v5670_v24 }
 0x722   : > { %v5564_v31 = vld [vmem:[#allocation5 + $0x50] ss:$2 sm:$0xff]  ;;  %v5580_v54 = vld [vmem:[#allocation5 + $0x51] ss:$2 sm:$0xff] }
 0x723   : > { %v5880_v55 = vpop.permute.xlu0 %5879  ;;  %v5590_v61 = vmax.f32 %v5564_v31, %v5580_v54  ;;  %v6714_v31 = vld [vmem:[%s11435_s3 + $0x188] sm:$0xff] }
 0x724   : > { %5899 = vst.msk [vmem:[#allocation7 + $0xe8] sm:$0xff] %vm5732_vm1, %v5880_v55  ;;  %v6697_v55 = vld [vmem:[%s11435_s3 + $0x100] sm:$0xff] }
 0x725   : > { %5624 = vst.msk [vmem:[#allocation6 + $0x72] sm:$0xff] %vm5456_vm14, %v5590_v61  ;;  %v6715_v61 = vld [vmem:[%s11435_s3 + $0x190] sm:$0xff] }
 0x727   : > { %v5719_v58 = vpop.permute.xlu1 %5718  ;;  %v5928_v49 = vpop.permute.xlu0 %5927 }
 0x728   : > { %5738 = vst.msk [vmem:[#allocation7 + $0x118] sm:$0xff] %vm5732_vm1, %v5719_v58 }
 0x729   : > { %5947 = vst.msk [vmem:[#allocation7 + $0xe8] sm:$0xff] %vm5781_vm2, %v5928_v49  ;;  %v6716_v49 = vld [vmem:[%s11435_s3 + $0x198] sm:$0xff] }
 0x72b   : > { %v5768_v1 = vpop.permute.xlu1 %5767 }
 0x72c   : > { %5787 = vst.msk [vmem:[#allocation7 + $0x118] sm:$0xff] %vm5781_vm2, %v5768_v1  ;;  %v10670_v2 = vld [vmem:[#allocation6 + $0x70] sm:$0xff]  ;;  %v7878_v1 = vpack.c.bf16 %v6716_v49, %v6715_v61 }
 0x72d   : > { %v7790_v43 = vpop.f32.mrb[24].mxu0  ;;  %v10672_v7 = vld [vmem:[#allocation6 + $0x71] sm:$0xff]  ;;  %5835 = vrot.lane.b32.xlu0 %v10670_v2, %s8110_s26  ;;  %5642 = vst.msk [vmem:[#allocation7 + $0x188] sm:$0xff] %vm5456_vm14, %v10670_v2 }
 0x72e   : > { %v5391_v41 = vadd.f32 %v10474_v27, %v7790_v43  ;;  %v5385_v36 = vpop.f32.mrb[25].mxu0  ;;  %5673 = vrot.lane.b32.xlu1 %v10672_v7, %s8110_s26  ;;  %v10680_v17 = vld [vmem:[#allocation6 + $0x74] sm:$0xff] }
 0x72f   : > { %v6436_v39 = vld [vmem:[#allocation6 + $0x70] sm:$0xff]  ;;  %v5386_v19 = vadd.f32 %v10474_v27, %v5385_v36  ;;  %5805 = vst.msk [vmem:[#allocation7 + $0x190] sm:$0xff] %vm5456_vm14, %v10680_v17  ;;  %v6700_v43 = vld [vmem:[%s11435_s3 + $0x118] sm:$0xff] }
 0x730   : > { %6444 = vst.msk [vmem:[#allocation7 + $0xd0] sm:$0xff] %vm5456_vm14, %v6436_v39  ;;  %v6116_v22 = vld [vmem:[#allocation6 + $0x72] sm:$0xff]  ;;  %v5449_v20 = vmax.f32 %v5391_v41, 0.0  ;;  %v6638_v28 = vld [vmem:[#allocation7 + $0xe8] sm:$0xff]  ;;  %v7880_v36 = vpack.c.bf16 %v6700_v43, %v6699_v34 }
 0x731   : > { %v5957_v62 = vld [vmem:[#allocation6 + $0x73] sm:$0xff]  ;;  %6124 = vst.msk [vmem:[#allocation7 + $0x130] sm:$0xff] %vm5456_vm14, %v6116_v22  ;;  %v5448_v51 = vmax.f32 %v5386_v19, 0.0  ;;  %6880 = vmatprep.mubr.f32.mxu1 %v6638_v28  ;;  %5883 = vrot.lane.b32.xlu0 %v10672_v7, %s8111_s13  ;;  %v6717_v19 = vld [vmem:[%s11435_s3 + $0x1a0] sm:$0xff]  ;;  %v6718_v22 = vld [vmem:[%s11435_s3 + $0x1a8] sm:$0xff] }
 0x732   : > { %v6276_v23 = vld [vmem:[#allocation6 + $0x71] sm:$0xff]  ;;  %5965 = vst.msk [vmem:[#allocation7 + $0x160] sm:$0xff] %vm5456_vm14, %v5957_v62  ;;  %5482 = vst.msk [vmem:[#allocation4 + $0xc8] sm:$0xff] %vm5456_vm14, %v5449_v20  ;;  %6881 = vmatmul.mubr.f32.gmra.mrb[8].mxu1 %v6637_v52  ;;  %v7882_v62 = vpack.c.bf16 %v6718_v22, %v6717_v19  ;;  %v6702_v20 = vld [vmem:[%s11435_s3 + $0x128] sm:$0xff] }
 0x733   : > { %6284 = vst.msk [vmem:[#allocation7 + $0x100] sm:$0xff] %vm5456_vm14, %v6276_v23  ;;  %v6596_v46 = vld [vmem:[#allocation6 + $0x74] sm:$0xff]  ;;  %5481 = vst.msk [vmem:[#allocation4 + $0xc0] sm:$0xff] %vm5456_vm14, %v5448_v51  ;;  %v6701_v23 = vld [vmem:[%s11435_s3 + $0x120] sm:$0xff] }
 0x734   : > { %v10691_v47 = vld [vmem:[#allocation6 + $0x72] sm:$0xff]  ;;  %6604 = vst.msk [vmem:[#allocation7 + $0xd8] sm:$0xff] %vm5456_vm14, %v6596_v46  ;;  %v7884_v28 = vpack.c.bf16 %v6702_v20, %v6701_v23  ;;  %v6710_v23 = vld [vmem:[%s11435_s3 + $0x168] sm:$0xff] }
 0x735   : > { %5722 = vrot.lane.b32.xlu1 %v10691_v47, %s8111_s13  ;;  %v10700_v59 = vld [vmem:[#allocation6 + $0x73] sm:$0xff]  ;;  %5931 = vrot.lane.b32.xlu0 %v10691_v47, %s8112_s8 }
 0x736   : > { %v6719_v46 = vld [vmem:[%s11435_s3 + $0x1b0] sm:$0xff]  ;;  %v6720_v51 = vld [vmem:[%s11435_s3 + $0x1b8] sm:$0xff] }
 0x737   : > { %v7886_v52 = vpack.c.bf16 %v6720_v51, %v6719_v46  ;;  %v6708_v34 = vld [vmem:[%s11435_s3 + $0x158] sm:$0xff]  ;;  %v8018_v51 = vld [vmem:[#allocation6 + $0x23] sm:$0xff] }
 0x738   : > { %v7793_v53 = vpop.f32.mrb[26].mxu0  ;;  %v6728_v46 = vld [vmem:[%s11435_s3 + $0x1f8] sm:$0xff] }
 0x739   : > { %5771 = vrot.lane.b32.xlu1 %v10700_v59, %s8112_s8  ;;  %v5401_v60 = vadd.f32 %v10474_v27, %v7793_v53  ;;  %v5395_v6 = vpop.f32.mrb[27].mxu0  ;;  %v5502_v33 = vld [vmem:[#allocation4 + $0xc8] sm:$0xff]  ;;  %v6703_v53 = vld [vmem:[%s11435_s3 + $0x130] sm:$0xff] }
 0x73a   : > { %v5396_v42 = vadd.f32 %v10474_v27, %v5395_v6 }
 0x73b   : > { %v5451_v3 = vmax.f32 %v5401_v60, 0.0  ;;  %v6704_v60 = vld [vmem:[%s11435_s3 + $0x138] sm:$0xff] }
 0x73c   : > { %v5450_v30 = vmax.f32 %v5396_v42, 0.0  ;;  %v7888_v6 = vpack.c.bf16 %v6704_v60, %v6703_v53 }
 0x73d   : > { %5983 = vrot.lane.b32.xlu1 %v10332_v37, %s8110_s26  ;;  %5484 = vst.msk [vmem:[#allocation4 + $0xd8] sm:$0xff] %vm5456_vm14, %v5451_v3  ;;  %v5501_v37 = vld [vmem:[#allocation4 + $0xc0] sm:$0xff] }
 0x73e   : > { %5483 = vst.msk [vmem:[#allocation4 + $0xd0] sm:$0xff] %vm5456_vm14, %v5450_v30  ;;  %v6721_v30 = vld [vmem:[%s11435_s3 + $0x1c0] sm:$0xff] }
 0x741   : > { %6031 = vrot.lane.b32.xlu1 %v10190_v14, %s8111_s13  ;;  %v10722_v14 = vld [vmem:[#allocation6 + $0xa0] sm:$0xff] }
 0x742   : > { %6447 = vst.msk [vmem:[#allocation7 + $0x178] sm:$0xff] %vm5456_vm14, %v10722_v14 }
 0x744   : > { %v5519_v38 = vld [vmem:[#allocation4 + $0xd8] sm:$0xff] }
 0x745   : > { %6079 = vrot.lane.b32.xlu1 %v10414_v25, %s8112_s8  ;;  %v5535_v32 = vmax.f32 %v5502_v33, %v5519_v38  ;;  %v5518_v5 = vld [vmem:[#allocation4 + $0xd0] sm:$0xff]  ;;  %v6713_v25 = vld [vmem:[%s11435_s3 + $0x180] sm:$0xff]  ;;  %v6722_v38 = vld [vmem:[%s11435_s3 + $0x1c8] sm:$0xff] }
 0x746   : > { %v5534_v24 = vmax.f32 %v5501_v37, %v5518_v5  ;;  %v7874_v54 = vpack.c.bf16 %v6714_v31, %v6713_v25  ;;  %v6705_v37 = vld [vmem:[%s11435_s3 + $0x140] sm:$0xff]  ;;  %v7890_v5 = vpack.c.bf16 %v6722_v38, %v6721_v30 }
 0x747   : > { %5551 = vst.msk [vmem:[#allocation5 + $0x68] sm:$0xff] %vm5456_vm14, %v5535_v32  ;;  %v6706_v32 = vld [vmem:[%s11435_s3 + $0x148] sm:$0xff] }
 0x748   : > { %5550 = vst.msk [vmem:[#allocation5 + $0x60] sm:$0xff] %vm5456_vm14, %v5534_v24  ;;  %7875 = vmatprep.subr.bf16.mxu1 %v7874_v54  ;;  %v7892_v24 = vpack.c.bf16 %v6706_v32, %v6705_v37 }
 0x749   : > { %5985 = vrot.lane.b32.xlu1 %v10198_v15, %s8110_s26 }
 0x74d   : > { %6033 = vrot.lane.b32.xlu1 %v10336_v44, %s8111_s13  ;;  %v6698_v44 = vld [vmem:[%s11435_s3 + $0x108] sm:$0xff] }
 0x74e   : > { %v7876_v58 = vpack.c.bf16 %v6698_v44, %v6697_v55  ;;  %v6723_v55 = vld [vmem:[%s11435_s3 + $0x1d0] sm:$0xff]  ;;  %v6724_v44 = vld [vmem:[%s11435_s3 + $0x1d8] sm:$0xff] }
 0x74f   : > { %v5566_v41 = vld [vmem:[#allocation5 + $0x60] ss:$2 sm:$0xff]  ;;  %v7894_v49 = vpack.c.bf16 %v6724_v44, %v6723_v55 }
 0x750   : > { %7877 = vmatpush3.bf16.msra.mxu1 %v7876_v58  ;;  %v6745_v44 = vld [vmem:[%s11435_s3 + $0x280] sm:$0xff] }
 0x751   : > { %6081 = vrot.lane.b32.xlu1 %v10431_v4, %s8112_s8  ;;  %v5582_v4 = vld [vmem:[#allocation5 + $0x61] ss:$2 sm:$0xff]  ;;  %7879 = vmatprep.subr.bf16.mxu1 %v7878_v1  ;;  %v6707_v1 = vld [vmem:[%s11435_s3 + $0x150] sm:$0xff] }
 0x752   : > { %v5591_v39 = vmax.f32 %v5566_v41, %v5582_v4  ;;  %v7896_v43 = vpack.c.bf16 %v6708_v34, %v6707_v1  ;;  %v6725_v4 = vld [vmem:[%s11435_s3 + $0x1e0] sm:$0xff] }
 0x754   : > { %7881 = vmatpush3.bf16.msra.mxu1 %v7880_v36  ;;  %5625 = vst.msk [vmem:[#allocation6 + $0x82] sm:$0xff] %vm5456_vm14, %v5591_v39  ;;  %v6726_v36 = vld [vmem:[%s11435_s3 + $0x1e8] sm:$0xff] }
 0x755   : > { %5987 = vrot.lane.b32.xlu1 %v10359_v9, %s8110_s26  ;;  %7883 = vmatprep.subr.bf16.mxu1 %v7882_v62  ;;  %v7898_v22 = vpack.c.bf16 %v6726_v36, %v6725_v4  ;;  %v6709_v62 = vld [vmem:[%s11435_s3 + $0x160] sm:$0xff]  ;;  %v6748_v36 = vld [vmem:[%s11435_s3 + $0x298] sm:$0xff] }
 0x756   : > { %v7900_v20 = vpack.c.bf16 %v6710_v23, %v6709_v62  ;;  %v6732_v62 = vld [vmem:[%s11435_s3 + $0x218] sm:$0xff] }
 0x758   : > { %7885 = vmatpush3.bf16.msra.mxu1 %v7884_v28  ;;  %v6727_v28 = vld [vmem:[%s11435_s3 + $0x1f0] sm:$0xff] }
 0x759   : > { %6035 = vrot.lane.b32.xlu1 %v10477_v45, %s8111_s13  ;;  %7887 = vmatprep.subr.bf16.mxu1 %v7886_v52  ;;  %v7902_v60 = vpack.c.bf16 %v6728_v46, %v6727_v28 }
 0x75b   : > { %v10783_v42 = vld [vmem:[#allocation6 + $0x80] sm:$0xff] }
 0x75c   : > { %7889 = vmatpush3.bf16.msra.mxu1 %v7888_v6  ;;  %5837 = vrot.lane.b32.xlu0 %v10783_v42, %s8110_s26  ;;  %v10787_v3 = vld [vmem:[#allocation6 + $0x83] sm:$0xff]  ;;  %v6711_v6 = vld [vmem:[%s11435_s3 + $0x170] sm:$0xff] }
 0x75d   : > { %6083 = vrot.lane.b32.xlu1 %v10479_v12, %s8112_s8  ;;  %v10792_v33 = vld [vmem:[#allocation6 + $0x81] sm:$0xff]  ;;  %5966 = vst.msk [vmem:[#allocation7 + $0x198] sm:$0xff] %vm5456_vm14, %v10787_v3  ;;  %7891 = vmatprep.subr.bf16.mxu1 %v7890_v5  ;;  %v6224_v5 = vld [vmem:[#allocation6 + $0x30] sm:$0xff] }
 0x75e   : > { %v6437_v25 = vld [vmem:[#allocation6 + $0x80] sm:$0xff] }
 0x75f   : > { %v6117_v31 = vld [vmem:[#allocation6 + $0x82] sm:$0xff]  ;;  %6445 = vst.msk [vmem:[#allocation7 + $0x108] sm:$0xff] %vm5456_vm14, %v6437_v25  ;;  %v5834_v58 = vpop.permute.xlu0 %5833 }
 0x760   : > { %v6277_v54 = vld [vmem:[#allocation6 + $0x81] sm:$0xff]  ;;  %6125 = vst.msk [vmem:[#allocation7 + $0x168] sm:$0xff] %vm5456_vm14, %v6117_v31  ;;  %5885 = vrot.lane.b32.xlu0 %v10792_v33, %s8111_s13  ;;  %v5672_v61 = vpop.permute.xlu1 %5671  ;;  %7893 = vmatpush3.bf16.msra.mxu1 %v7892_v24 }
 0x761   : > { %6465 = vrot.lane.b32.xlu1 %v10479_v12, %s8110_s26  ;;  %6285 = vst.msk [vmem:[#allocation7 + $0x138] sm:$0xff] %vm5456_vm14, %v6277_v54  ;;  %v6597_v12 = vld [vmem:[#allocation6 + $0x84] sm:$0xff]  ;;  %7895 = vmatprep.subr.bf16.mxu1 %v7894_v49  ;;  %v6644_v54 = vld [vmem:[#allocation7 + $0x118] sm:$0xff] }
 0x762   : > { %6605 = vst.msk [vmem:[#allocation7 + $0x110] sm:$0xff] %vm5456_vm14, %v6597_v12  ;;  %v10829_v41 = vld [vmem:[#allocation6 + $0x82] sm:$0xff] }
 0x763   : > { %5852 = vst.msk [vmem:[#allocation7 + $0x120] sm:$0xff] %vm5683_vm0, %v5834_v58  ;;  %5690 = vst.msk [vmem:[#allocation7 + $0x150] sm:$0xff] %vm5683_vm0, %v5672_v61  ;;  %v5882_v39 = vpop.permute.xlu0 %5881  ;;  %v6746_v12 = vld [vmem:[%s11435_s3 + $0x288] sm:$0xff]  ;;  %v6729_v61 = vld [vmem:[%s11435_s3 + $0x200] sm:$0xff] }
 0x764   : > { %5933 = vrot.lane.b32.xlu0 %v10829_v41, %s8112_s8  ;;  %5900 = vst.msk [vmem:[#allocation7 + $0x120] sm:$0xff] %vm5732_vm1, %v5882_v39  ;;  %7897 = vmatpush3.bf16.msra.mxu1 %v7896_v43  ;;  %v7906_v58 = vpack.c.bf16 %v6746_v12, %v6745_v44  ;;  %v6730_v49 = vld [vmem:[%s11435_s3 + $0x208] sm:$0xff] }
 0x765   : > { %6197 = vrot.lane.b32.xlu1 %v10573_v10, %s8111_s13  ;;  %7899 = vmatprep.subr.bf16.mxu1 %v7898_v22  ;;  %v7908_v1 = vpack.c.bf16 %v6730_v49, %v6729_v61  ;;  %v6731_v22 = vld [vmem:[%s11435_s3 + $0x210] sm:$0xff]  ;;  %v6754_v44 = vld [vmem:[%s11435_s3 + $0x2c8] sm:$0xff]  ;;  %v6737_v61 = vld [vmem:[%s11435_s3 + $0x240] sm:$0xff] }
 0x766   : > { %7907 = vmatprep.subr.bf16.mxu0 %v7906_v58  ;;  %v6738_v49 = vld [vmem:[%s11435_s3 + $0x248] sm:$0xff] }
 0x767   : > { %v5721_v19 = vpop.permute.xlu1 %5720  ;;  %v5930_v52 = vpop.permute.xlu0 %5929  ;;  %7909 = vmatpush3.bf16.msra.mxu0 %v7908_v1  ;;  %v7924_v1 = vpack.c.bf16 %v6738_v49, %v6737_v61 }
 0x768   : > { %5739 = vst.msk [vmem:[#allocation7 + $0x150] sm:$0xff] %vm5732_vm1, %v5721_v19  ;;  %6143 = vrot.lane.b32.xlu0 %v8018_v51, %s8110_s26  ;;  %7901 = vmatpush3.bf16.msra.mxu1 %v7900_v20  ;;  %v7912_v20 = vpack.c.bf16 %v6732_v62, %v6731_v22  ;;  %v6733_v51 = vld [vmem:[%s11435_s3 + $0x220] sm:$0xff]  ;;  %v6758_v22 = vld [vmem:[%s11435_s3 + $0x2e8] sm:$0xff] }
 0x769   : > { %6513 = vrot.lane.b32.xlu1 %v10505_v13, %s8111_s13  ;;  %v6712_v13 = vld [vmem:[%s11435_s3 + $0x178] sm:$0xff]  ;;  %5948 = vst.msk [vmem:[#allocation7 + $0x120] sm:$0xff] %vm5781_vm2, %v5930_v52  ;;  %7903 = vmatprep.subr.bf16.mxu1 %v7902_v60  ;;  %v6734_v52 = vld [vmem:[%s11435_s3 + $0x228] sm:$0xff] }
 0x76a   : > { %v7904_v30 = vpack.c.bf16 %v6712_v13, %v6711_v6  ;;  %v6752_v60 = vld [vmem:[%s11435_s3 + $0x2b8] sm:$0xff]  ;;  %v10992_v62 = vld [vmem:[#allocation6 + $0xa1] sm:$0xff] }
 0x76b   : > { %v5770_v53 = vpop.permute.xlu1 %5769  ;;  %6287 = vst.msk [vmem:[#allocation7 + $0x1a8] sm:$0xff] %vm5456_vm14, %v10992_v62 }
 0x76c   : > { %5788 = vst.msk [vmem:[#allocation7 + $0x150] sm:$0xff] %vm5781_vm2, %v5770_v53  ;;  %6191 = vrot.lane.b32.xlu0 %v10198_v15, %s8111_s13  ;;  %7905 = vmatpush3.bf16.msra.mxu1 %v7904_v30  ;;  %v8019_v15 = vld [vmem:[#allocation6 + $0x33] sm:$0xff] }
 0x76d   : > { %6246 = vrot.lane.b32.xlu1 %v10623_v8, %s8112_s8  ;;  %v7796_v38 = vpop.f32.mrb[28].mxu0  ;;  %v6751_v53 = vld [vmem:[%s11435_s3 + $0x2b0] sm:$0xff] }
 0x76e   : > { %v5411_v37 = vadd.f32 %v10474_v27, %v7796_v38  ;;  %v5405_v32 = vpop.f32.mrb[29].mxu0  ;;  %v7918_v13 = vpack.c.bf16 %v6752_v60, %v6751_v53  ;;  %v6735_v30 = vld [vmem:[%s11435_s3 + $0x230] sm:$0xff]  ;;  %v6736_v38 = vld [vmem:[%s11435_s3 + $0x238] sm:$0xff] }
 0x76f   : > { %v5406_v24 = vadd.f32 %v10474_v27, %v5405_v32  ;;  %v7920_v32 = vpack.c.bf16 %v6736_v38, %v6735_v30  ;;  %v6760_v53 = vld [vmem:[%s11435_s3 + $0x2f8] sm:$0xff] }
 0x770   : > { %6240 = vrot.lane.b32.xlu0 %v6224_v5, %s8112_s8  ;;  %v6645_v25 = vld [vmem:[#allocation7 + $0x120] sm:$0xff]  ;;  %v5453_v31 = vmax.f32 %v5411_v37, 0.0  ;;  %v6744_v30 = vld [vmem:[%s11435_s3 + $0x278] sm:$0xff] }
 0x771   : > { %6561 = vrot.lane.b32.xlu1 %v10515_v57, %s8112_s8  ;;  %6885 = vmatprep.mubr.f32.mxu1 %v6645_v25  ;;  %v5452_v55 = vmax.f32 %v5406_v24, 0.0 }
 0x772   : > { %6886 = vmatmul.mubr.f32.gmra.mrb[10].mxu1 %v6644_v54  ;;  %5486 = vst.msk [vmem:[#allocation4 + $0xe8] sm:$0xff] %vm5456_vm14, %v5453_v31 }
 0x773   : > { %5485 = vst.msk [vmem:[#allocation4 + $0xe0] sm:$0xff] %vm5456_vm14, %v5452_v55 }
 0x774   : > { %6145 = vrot.lane.b32.xlu0 %v8019_v15, %s8110_s26  ;;  %v6753_v15 = vld [vmem:[%s11435_s3 + $0x2c0] sm:$0xff] }
 0x775   : > { %6400 = vrot.lane.b32.xlu1 %v10359_v9, %s8112_s8  ;;  %v7922_v58 = vpack.c.bf16 %v6754_v44, %v6753_v15  ;;  %v11051_v15 = vld [vmem:[#allocation6 + $0xa4] sm:$0xff] }
 0x776   : > { %6607 = vst.msk [vmem:[#allocation7 + $0x180] sm:$0xff] %vm5456_vm14, %v11051_v15 }
 0x778   : > { %6193 = vrot.lane.b32.xlu0 %v10359_v9, %s8111_s13  ;;  %v7799_v34 = vpop.f32.mrb[30].mxu0  ;;  %v6747_v9 = vld [vmem:[%s11435_s3 + $0x290] sm:$0xff] }
 0x779   : > { %6467 = vrot.lane.b32.xlu1 %v10563_v56, %s8110_s26  ;;  %v5421_v43 = vadd.f32 %v10474_v27, %v7799_v34  ;;  %v5415_v4 = vpop.f32.mrb[31].mxu0  ;;  %v7910_v19 = vpack.c.bf16 %v6748_v36, %v6747_v9  ;;  %v5504_v6 = vld [vmem:[#allocation4 + $0xe8] sm:$0xff]  ;;  %v6755_v34 = vld [vmem:[%s11435_s3 + $0x2d0] sm:$0xff]  ;;  %v6740_v36 = vld [vmem:[%s11435_s3 + $0x258] sm:$0xff] }
 0x77a   : > { %v5416_v39 = vadd.f32 %v10474_v27, %v5415_v4  ;;  %v6749_v27 = vld [vmem:[%s11435_s3 + $0x2a0] sm:$0xff]  ;;  %v6739_v9 = vld [vmem:[%s11435_s3 + $0x250] sm:$0xff] }
 0x77b   : > { %v5455_v23 = vmax.f32 %v5421_v43, 0.0  ;;  %7911 = vmatprep.subr.bf16.mxu0 %v7910_v19  ;;  %v5503_v37 = vld [vmem:[#allocation4 + $0xe0] sm:$0xff]  ;;  %v6756_v43 = vld [vmem:[%s11435_s3 + $0x2d8] sm:$0xff] }
 0x77c   : > { %6242 = vrot.lane.b32.xlu0 %v10477_v45, %s8112_s8  ;;  %v5454_v28 = vmax.f32 %v5416_v39, 0.0  ;;  %7913 = vmatpush3.bf16.msra.mxu0 %v7912_v20  ;;  %v6750_v45 = vld [vmem:[%s11435_s3 + $0x2a8] sm:$0xff]  ;;  %v7926_v4 = vpack.c.bf16 %v6756_v43, %v6755_v34  ;;  %v7928_v39 = vpack.c.bf16 %v6740_v36, %v6739_v9  ;;  %v6757_v19 = vld [vmem:[%s11435_s3 + $0x2e0] sm:$0xff]  ;;  %v6651_v34 = vld [vmem:[#allocation7 + $0x150] sm:$0xff] }
 0x77d   : > { %6199 = vrot.lane.b32.xlu1 %v10634_v40, %s8111_s13  ;;  %5488 = vst.msk [vmem:[#allocation4 + $0xf8] sm:$0xff] %vm5456_vm14, %v5455_v23  ;;  %v7914_v46 = vpack.c.bf16 %v6750_v45, %v6749_v27  ;;  %v6741_v27 = vld [vmem:[%s11435_s3 + $0x260] sm:$0xff] }
 0x77e   : > { %5487 = vst.msk [vmem:[#allocation4 + $0xf0] sm:$0xff] %vm5456_vm14, %v5454_v28  ;;  %v7930_v28 = vpack.c.bf16 %v6758_v22, %v6757_v19 }
 0x77f   : > { %7915 = vmatprep.subr.bf16.mxu0 %v7914_v46  ;;  %v6742_v46 = vld [vmem:[%s11435_s3 + $0x268] sm:$0xff] }
 0x780   : > { %6147 = vrot.lane.b32.xlu0 %v10515_v57, %s8110_s26  ;;  %v7916_v57 = vpack.c.bf16 %v6734_v52, %v6733_v51  ;;  %v7932_v52 = vpack.c.bf16 %v6742_v46, %v6741_v27 }
 0x781   : > { %6515 = vrot.lane.b32.xlu1 %v10583_v11, %s8111_s13 }
 0x782   : > { %7917 = vmatpush3.bf16.msra.mxu0 %v7916_v57  ;;  %v6759_v57 = vld [vmem:[%s11435_s3 + $0x2f0] sm:$0xff] }
 0x783   : > { %7919 = vmatprep.subr.bf16.mxu0 %v7918_v13  ;;  %v6743_v13 = vld [vmem:[%s11435_s3 + $0x270] sm:$0xff] }
 0x784   : > { %6195 = vrot.lane.b32.xlu0 %v10489_v26, %s8111_s13  ;;  %v5521_v5 = vld [vmem:[#allocation4 + $0xf8] sm:$0xff]  ;;  %v7584_v31 = vpop.f32.mrb[0].mxu1  ;;  %v7936_v38 = vpack.c.bf16 %v6744_v30, %v6743_v13  ;;  %v11178_v13 = vld [vmem:[#allocation6 + $0xa3] sm:$0xff] }
 0x785   : > { %6248 = vrot.lane.b32.xlu1 %v10670_v2, %s8112_s8  ;;  %v5537_v24 = vmax.f32 %v5504_v6, %v5521_v5  ;;  %v5520_v25 = vld [vmem:[#allocation4 + $0xf0] sm:$0xff]  ;;  %v7585_v55 = vpop.f32.mrb[1].mxu1  ;;  %v7934_v6 = vpack.c.bf16 %v6760_v53, %v6759_v57 }
 0x786   : > { %v5536_v54 = vmax.f32 %v5503_v37, %v5520_v25  ;;  %7921 = vmatpush3.bf16.msra.mxu0 %v7920_v32  ;;  %v10957_v12 = vadd.f32 %v7585_v55, %v7584_v31 }
 0x787   : > { %5553 = vst.msk [vmem:[#allocation5 + $0x78] sm:$0xff] %vm5456_vm14, %v5537_v24  ;;  %7923 = vmatprep.subr.bf16.mxu0 %v7922_v58  ;;  %v11063_v58 = vld [vmem:[#allocation6 + $0x84] sm:$0xff] }
 0x788   : > { %6244 = vrot.lane.b32.xlu0 %v10561_v0, %s8112_s8  ;;  %5552 = vst.msk [vmem:[#allocation5 + $0x70] sm:$0xff] %vm5456_vm14, %v5536_v54 }
 0x789   : > { %6563 = vrot.lane.b32.xlu1 %v10593_v18, %s8112_s8 }
 0x78a   : > { %7925 = vmatpush3.bf16.msra.mxu0 %v7924_v1 }
 0x78b   : > { %7927 = vmatprep.subr.bf16.mxu0 %v7926_v4 }
 0x78c   : > { %6149 = vrot.lane.b32.xlu0 %v10593_v18, %s8110_s26 }
 0x78d   : > { %6402 = vrot.lane.b32.xlu1 %v10489_v26, %s8112_s8 }
 0x78e   : > { %7929 = vmatpush3.bf16.msra.mxu0 %v7928_v39 }
 0x78f   : > { %v5568_v23 = vld [vmem:[#allocation5 + $0x70] ss:$2 sm:$0xff]  ;;  %v5584_v20 = vld [vmem:[#allocation5 + $0x71] ss:$2 sm:$0xff]  ;;  %7931 = vmatprep.subr.bf16.mxu0 %v7930_v28 }
 0x790   : > { %5989 = vrot.lane.b32.xlu0 %v10489_v26, %s8110_s26  ;;  %v5592_v45 = vmax.f32 %v5568_v23, %v5584_v20 }
 0x791   : > { %6469 = vrot.lane.b32.xlu1 %v10625_v16, %s8110_s26 }
 0x792   : > { %v7587_v26 = vpop.f32.mrb[2].mxu1  ;;  %5626 = vst.msk [vmem:[#allocation6 + $0x92] sm:$0xff] %vm5456_vm14, %v5592_v45  ;;  %7933 = vmatpush3.bf16.msra.mxu0 %v7932_v52 }
 0x793   : > { %v7588_v51 = vpop.f32.mrb[3].mxu1  ;;  %7935 = vmatprep.subr.bf16.mxu0 %v7934_v6 }
 0x794   : > { %6304 = vrot.lane.b32.xlu0 %v10363_v35, %s8110_s26  ;;  %v11012_v60 = vadd.f32 %v7588_v51, %v7587_v26 }
 0x795   : > { %6201 = vrot.lane.b32.xlu1 %v10680_v17, %s8111_s13 }
 0x796   : > { %7937 = vmatpush3.bf16.msra.mxu0 %v7936_v38 }
 0x798   : > { %6037 = vrot.lane.b32.xlu0 %v10561_v0, %s8111_s13 }
 0x799   : > { %6517 = vrot.lane.b32.xlu1 %v10643_v48, %s8111_s13  ;;  %v11027_v35 = vld [vmem:[#allocation6 + $0x92] sm:$0xff] }
 0x79a   : > { %v11031_v37 = vld [vmem:[#allocation6 + $0x91] sm:$0xff]  ;;  %6126 = vst.msk [vmem:[#allocation7 + $0x1a0] sm:$0xff] %vm5456_vm14, %v11027_v35 }
 0x79b   : > { %6286 = vst.msk [vmem:[#allocation7 + $0x170] sm:$0xff] %vm5456_vm14, %v11031_v37  ;;  %v6438_v32 = vld [vmem:[#allocation6 + $0x90] sm:$0xff] }
 0x79c   : > { %6352 = vrot.lane.b32.xlu0 %v10368_v63, %s8111_s13  ;;  %v6598_v5 = vld [vmem:[#allocation6 + $0x94] sm:$0xff]  ;;  %v7590_v0 = vpop.f32.mrb[4].mxu1  ;;  %6446 = vst.msk [vmem:[#allocation7 + $0x140] sm:$0xff] %vm5456_vm14, %v6438_v32 }
 0x79d   : > { %6250 = vrot.lane.b32.xlu1 %v10783_v42, %s8112_s8  ;;  %6606 = vst.msk [vmem:[#allocation7 + $0x148] sm:$0xff] %vm5456_vm14, %v6598_v5  ;;  %v7591_v24 = vpop.f32.mrb[5].mxu1  ;;  %v11155_v26 = vld [vmem:[#allocation6 + $0x93] sm:$0xff] }
 0x79e   : > { %v11041_v63 = vadd.f32 %v7591_v24, %v7590_v0  ;;  %v6761_v24 = vld [vmem:[%s11435_s3 + $0x300] sm:$0xff] }
 0x79f   : > { %v5836_v25 = vpop.permute.xlu0 %5835 }
 0x7a0   : > { %6085 = vrot.lane.b32.xlu0 %v10563_v56, %s8112_s8  ;;  %v5674_v31 = vpop.permute.xlu1 %5673  ;;  %5853 = vst.msk [vmem:[#allocation7 + $0x158] sm:$0xff] %vm5683_vm0, %v5836_v25  ;;  %v6762_v25 = vld [vmem:[%s11435_s3 + $0x308] sm:$0xff] }
 0x7a1   : > { %6565 = vrot.lane.b32.xlu1 %v10651_v21, %s8112_s8  ;;  %5691 = vst.msk [vmem:[#allocation7 + $0x188] sm:$0xff] %vm5683_vm0, %v5674_v31  ;;  %v7938_v31 = vpack.c.bf16 %v6762_v25, %v6761_v24 }
 0x7a3   : > { %v5884_v54 = vpop.permute.xlu0 %5883  ;;  %7939 = vmatprep.subr.bf16.mxu1 %v7938_v31 }
 0x7a4   : > { %6151 = vrot.lane.b32.xlu0 %v10651_v21, %s8110_s26  ;;  %5901 = vst.msk [vmem:[#allocation7 + $0x158] sm:$0xff] %vm5732_vm1, %v5884_v54 }
 0x7a5   : > { %6404 = vrot.lane.b32.xlu1 %v10573_v10, %s8112_s8 }
 0x7a7   : > { %v5723_v55 = vpop.permute.xlu1 %5722  ;;  %v5932_v56 = vpop.permute.xlu0 %5931 }
 0x7a8   : > { %5740 = vst.msk [vmem:[#allocation7 + $0x188] sm:$0xff] %vm5732_vm1, %v5723_v55  ;;  %5991 = vrot.lane.b32.xlu0 %v10573_v10, %s8110_s26  ;;  %v11072_v10 = vld [vmem:[#allocation6 + $0x90] sm:$0xff] }
 0x7a9   : > { %6471 = vrot.lane.b32.xlu1 %v10672_v7, %s8110_s26  ;;  %5949 = vst.msk [vmem:[#allocation7 + $0x158] sm:$0xff] %vm5781_vm2, %v5932_v56  ;;  %v6763_v55 = vld [vmem:[%s11435_s3 + $0x310] sm:$0xff] }
 0x7ab   : > { %v5772_v44 = vpop.permute.xlu1 %5771 }
 0x7ac   : > { %5789 = vst.msk [vmem:[#allocation7 + $0x188] sm:$0xff] %vm5781_vm2, %v5772_v44  ;;  %6306 = vrot.lane.b32.xlu0 %v10491_v50, %s8110_s26 }
 0x7ad   : > { %6203 = vrot.lane.b32.xlu1 %v11063_v58, %s8111_s13 }
 0x7af   : > { %v5984_v61 = vpop.permute.xlu1 %5983 }
 0x7b0   : > { %6007 = vst.msk [vmem:[#allocation7 + $0x10] sm:$0xff] %vm5683_vm0, %v5984_v61  ;;  %6039 = vrot.lane.b32.xlu0 %v10623_v8, %s8111_s13  ;;  %v6652_v1 = vld [vmem:[#allocation7 + $0x158] sm:$0xff] }
 0x7b1   : > { %6519 = vrot.lane.b32.xlu1 %v10691_v47, %s8111_s13  ;;  %6890 = vmatprep.mubr.f32.mxu1 %v6652_v1 }
 0x7b2   : > { %6891 = vmatmul.mubr.f32.gmra.mrb[12].mxu1 %v6651_v34 }
 0x7b3   : > { %v6032_v49 = vpop.permute.xlu1 %6031 }
 0x7b4   : > { %6055 = vst.msk [vmem:[#allocation7 + $0x10] sm:$0xff] %vm5732_vm1, %v6032_v49  ;;  %6354 = vrot.lane.b32.xlu0 %v10495_v29, %s8111_s13  ;;  %v11094_v29 = vld [vmem:[#allocation6 + $0x94] sm:$0xff] }
 0x7b5   : > { %6252 = vrot.lane.b32.xlu1 %v11072_v10, %s8112_s8 }
 0x7b7   : > { %v6080_v50 = vpop.permute.xlu1 %6079 }
 0x7b8   : > { %6103 = vst.msk [vmem:[#allocation7 + $0x10] sm:$0xff] %vm5781_vm2, %v6080_v50  ;;  %6087 = vrot.lane.b32.xlu0 %v10625_v16, %s8112_s8 }
 0x7b9   : > { %6567 = vrot.lane.b32.xlu1 %v10700_v59, %s8112_s8 }
 0x7bb   : > { %v5986_v8 = vpop.permute.xlu1 %5985 }
 0x7bc   : > { %6008 = vst.msk [vmem:[#allocation7 + $0x48] sm:$0xff] %vm5683_vm0, %v5986_v8  ;;  %6153 = vrot.lane.b32.xlu0 %v10700_v59, %s8110_s26 }
 0x7bd   : > { %6406 = vrot.lane.b32.xlu1 %v10634_v40, %s8112_s8 }
 0x7bf   : > { %v6034_v43 = vpop.permute.xlu1 %6033  ;;  %v6611_v52 = vld [vmem:[#allocation7 + $0x10] sm:$0xff] }
 0x7c0   : > { %6056 = vst.msk [vmem:[#allocation7 + $0x48] sm:$0xff] %vm5732_vm1, %v6034_v43  ;;  %5993 = vrot.lane.b32.xlu0 %v10634_v40, %s8110_s26 }
 0x7c1   : > { %6473 = vrot.lane.b32.xlu1 %v10792_v33, %s8110_s26 }
 0x7c3   : > { %v6082_v16 = vpop.permute.xlu1 %6081 }
 0x7c4   : > { %6104 = vst.msk [vmem:[#allocation7 + $0x48] sm:$0xff] %vm5781_vm2, %v6082_v16  ;;  %6308 = vrot.lane.b32.xlu0 %v10583_v11, %s8110_s26 }
 0x7c5   : > { %6205 = vrot.lane.b32.xlu1 %v11094_v29, %s8111_s13  ;;  %v7593_v9 = vpop.f32.mrb[6].mxu1 }
 0x7c6   : > { %v7594_v36 = vpop.f32.mrb[7].mxu1 }
 0x7c7   : > { %v5988_v4 = vpop.permute.xlu1 %5987  ;;  %v11106_v39 = vadd.f32 %v7594_v36, %v7593_v9 }
 0x7c8   : > { %6009 = vst.msk [vmem:[#allocation7 + $0x80] sm:$0xff] %vm5683_vm0, %v5988_v4  ;;  %6041 = vrot.lane.b32.xlu0 %v10670_v2, %s8111_s13 }
 0x7c9   : > { %6521 = vrot.lane.b32.xlu1 %v10829_v41, %s8111_s13 }
 0x7cb   : > { %v6036_v40 = vpop.permute.xlu1 %6035  ;;  %v6618_v0 = vld [vmem:[#allocation7 + $0x48] sm:$0xff] }
 0x7cc   : > { %6057 = vst.msk [vmem:[#allocation7 + $0x80] sm:$0xff] %vm5732_vm1, %v6036_v40  ;;  %6356 = vrot.lane.b32.xlu0 %v10593_v18, %s8111_s13 }
 0x7cd   : > { %6254 = vrot.lane.b32.xlu1 %v10722_v14, %s8112_s8 }
 0x7ce   : > { %v5838_v19 = vpop.permute.xlu0 %5837 }
 0x7cf   : > { %v6084_v11 = vpop.permute.xlu1 %6083  ;;  %5854 = vst.msk [vmem:[#allocation7 + $0x190] sm:$0xff] %vm5683_vm0, %v5838_v19 }
 0x7d0   : > { %6105 = vst.msk [vmem:[#allocation7 + $0x80] sm:$0xff] %vm5781_vm2, %v6084_v11  ;;  %6089 = vrot.lane.b32.xlu0 %v10672_v7, %s8112_s8  ;;  %v6600_v11 = vld [vmem:[#allocation6 + $0xb4] sm:$0xff] }
 0x7d1   : > { %6569 = vrot.lane.b32.xlu1 %v10787_v3, %s8112_s8  ;;  %6608 = vst.msk [vmem:[#allocation7 + $0x1b8] sm:$0xff] %vm5456_vm14, %v6600_v11 }
 0x7d2   : > { %v5886_v22 = vpop.permute.xlu0 %5885 }
 0x7d3   : > { %v6466_v2 = vpop.permute.xlu1 %6465  ;;  %5902 = vst.msk [vmem:[#allocation7 + $0x190] sm:$0xff] %vm5732_vm1, %v5886_v22 }
 0x7d4   : > { %6489 = vst.msk [vmem:[#allocation7 + $0x28] sm:$0xff] %vm5683_vm0, %v6466_v2  ;;  %6155 = vrot.lane.b32.xlu0 %v10787_v3, %s8110_s26 }
 0x7d5   : > { %6408 = vrot.lane.b32.xlu1 %v10680_v17, %s8112_s8 }
 0x7d6   : > { %v5934_v14 = vpop.permute.xlu0 %5933 }
 0x7d7   : > { %v11127_v18 = vpop.permute.xlu1 %6197  ;;  %5950 = vst.msk [vmem:[#allocation7 + $0x190] sm:$0xff] %vm5781_vm2, %v5934_v14  ;;  %v6625_v49 = vld [vmem:[#allocation7 + $0x80] sm:$0xff]  ;;  %v6456_v14 = vld [vmem:[#allocation6 + $0xb1] sm:$0xff] }
 0x7d8   : > { %5995 = vrot.lane.b32.xlu0 %v10680_v17, %s8110_s26  ;;  %v6658_v17 = vld [vmem:[#allocation7 + $0x188] sm:$0xff] }
 0x7d9   : > { %6314 = vrot.lane.b32.xlu1 %v10829_v41, %s8110_s26 }
 0x7da   : > { %v6144_v23 = vpop.permute.xlu0 %6143 }
 0x7db   : > { %v6514_v7 = vpop.permute.xlu1 %6513  ;;  %6167 = vst.msk [vmem:[#allocation7 + $0x18] sm:$0xff] %vm5683_vm0, %v6144_v23 }
 0x7dc   : > { %6537 = vst.msk [vmem:[#allocation7 + $0x28] sm:$0xff] %vm5732_vm1, %v6514_v7  ;;  %6310 = vrot.lane.b32.xlu0 %v10643_v48, %s8110_s26 }
 0x7dd   : > { %6362 = vrot.lane.b32.xlu1 %v10787_v3, %s8111_s13 }
 0x7de   : > { %v6192_v41 = vpop.permute.xlu0 %6191  ;;  %v6659_v28 = vld [vmem:[#allocation7 + $0x190] sm:$0xff] }
 0x7df   : > { %v11140_v20 = vpop.permute.xlu1 %6246  ;;  %6215 = vst.msk [vmem:[#allocation7 + $0x18] sm:$0xff] %vm5732_vm1, %v6192_v41  ;;  %6895 = vmatprep.mubr.f32.mxu1 %v6659_v28  ;;  %v6504_v41 = vld [vmem:[#allocation6 + $0xb2] sm:$0xff] }
 0x7e0   : > { %6043 = vrot.lane.b32.xlu0 %v10783_v42, %s8111_s13  ;;  %6896 = vmatmul.mubr.f32.gmra.mrb[14].mxu1 %v6658_v17 }
 0x7e1   : > { %6410 = vrot.lane.b32.xlu1 %v11063_v58, %s8112_s8 }
 0x7e2   : > { %v6241_v27 = vpop.permute.xlu0 %6240 }
 0x7e3   : > { %v6562_v3 = vpop.permute.xlu1 %6561  ;;  %6264 = vst.msk [vmem:[#allocation7 + $0x18] sm:$0xff] %vm5781_vm2, %v6241_v27  ;;  %v6552_v27 = vld [vmem:[#allocation6 + $0xb3] sm:$0xff] }
 0x7e4   : > { %6585 = vst.msk [vmem:[#allocation7 + $0x28] sm:$0xff] %vm5781_vm2, %v6562_v3  ;;  %6358 = vrot.lane.b32.xlu0 %v10651_v21, %s8111_s13 }
 0x7e5   : > { %6316 = vrot.lane.b32.xlu1 %v11027_v35, %s8110_s26 }
 0x7e6   : > { %v6146_v45 = vpop.permute.xlu0 %6145 }
 0x7e7   : > { %v11153_v48 = vpop.permute.xlu1 %6400  ;;  %6168 = vst.msk [vmem:[#allocation7 + $0x50] sm:$0xff] %vm5683_vm0, %v6146_v45 }
 0x7e8   : > { %6091 = vrot.lane.b32.xlu0 %v10792_v33, %s8112_s8  ;;  %v11170_v33 = vld [vmem:[#allocation6 + $0xa2] sm:$0xff] }
 0x7e9   : > { %6364 = vrot.lane.b32.xlu1 %v11155_v26, %s8111_s13 }
 0x7ea   : > { %v6194_v51 = vpop.permute.xlu0 %6193  ;;  %v6612_v21 = vld [vmem:[#allocation7 + $0x18] sm:$0xff] }
 0x7eb   : > { %v6468_v42 = vpop.permute.xlu1 %6467  ;;  %v6614_v46 = vld [vmem:[#allocation7 + $0x28] sm:$0xff]  ;;  %6216 = vst.msk [vmem:[#allocation7 + $0x50] sm:$0xff] %vm5732_vm1, %v6194_v51  ;;  %6965 = vmatprep.mubr.f32.mxu1 %v6612_v21 }
 0x7ec   : > { %6490 = vst.msk [vmem:[#allocation7 + $0x60] sm:$0xff] %vm5683_vm0, %v6468_v42  ;;  %7070 = vmatprep.mubr.f32.mxu0 %v6614_v46  ;;  %6157 = vrot.lane.b32.xlu0 %v11155_v26, %s8110_s26 }
 0x7ed   : > { %6412 = vrot.lane.b32.xlu1 %v11094_v29, %s8112_s8  ;;  %6966 = vmatmul.mubr.f32.vlgmr.msra.gmra.mrb[16].mxu1 %v6611_v52 }
 0x7ee   : > { %v6243_v53 = vpop.permute.xlu0 %6242  ;;  %7941 = vmatpush3.bf16.msra.mxu1 %v7938_v31 }
 0x7ef   : > { %v11168_v57 = vpop.permute.xlu1 %6199  ;;  %6265 = vst.msk [vmem:[#allocation7 + $0x50] sm:$0xff] %vm5781_vm2, %v6243_v53 }
 0x7f0   : > { %5997 = vrot.lane.b32.xlu0 %v11063_v58, %s8110_s26 }
 0x7f1   : > { %6318 = vrot.lane.b32.xlu1 %v11170_v33, %s8110_s26 }
 0x7f2   : > { %v6148_v30 = vpop.permute.xlu0 %6147 }
 0x7f3   : > { %v6516_v6 = vpop.permute.xlu1 %6515  ;;  %6169 = vst.msk [vmem:[#allocation7 + $0x88] sm:$0xff] %vm5683_vm0, %v6148_v30 }
 0x7f4   : > { %6538 = vst.msk [vmem:[#allocation7 + $0x60] sm:$0xff] %vm5732_vm1, %v6516_v6  ;;  %6312 = vrot.lane.b32.xlu0 %v10691_v47, %s8110_s26 }
 0x7f5   : > { %6366 = vrot.lane.b32.xlu1 %v11178_v13, %s8111_s13 }
 0x7f6   : > { %v6196_v32 = vpop.permute.xlu0 %6195  ;;  %v6619_v5 = vld [vmem:[#allocation7 + $0x50] sm:$0xff] }
 0x7f7   : > { %v11185_v38 = vpop.permute.xlu1 %6248  ;;  %6217 = vst.msk [vmem:[#allocation7 + $0x88] sm:$0xff] %vm5732_vm1, %v6196_v32  ;;  %6970 = vmatprep.mubr.f32.mxu1 %v6619_v5 }
 0x7f8   : > { %6045 = vrot.lane.b32.xlu0 %v11072_v10, %s8111_s13  ;;  %6971 = vmatmul.mubr.f32.gmra.mrb[18].mxu1 %v6618_v0 }
 0x7f9   : > { %6414 = vrot.lane.b32.xlu1 %v11051_v15, %s8112_s8  ;;  %v6764_v15 = vld [vmem:[%s11435_s3 + $0x318] sm:$0xff] }
 0x7fa   : > { %v6245_v54 = vpop.permute.xlu0 %6244  ;;  %v7942_v44 = vpack.c.bf16 %v6764_v15, %v6763_v55 }
 0x7fb   : > { %v6564_v47 = vpop.permute.xlu1 %6563  ;;  %6266 = vst.msk [vmem:[#allocation7 + $0x88] sm:$0xff] %vm5781_vm2, %v6245_v54 }
 0x7fc   : > { %6586 = vst.msk [vmem:[#allocation7 + $0x60] sm:$0xff] %vm5781_vm2, %v6564_v47  ;;  %6360 = vrot.lane.b32.xlu0 %v10700_v59, %s8111_s13  ;;  %7943 = vmatprep.subr.bf16.mxu1 %v7942_v44 }
 0x7fd   : > { %7945 = vmatpush3.bf16.msra.mxu1 %v7942_v44 }
 0x7fe   : > { %v6150_v58 = vpop.permute.xlu0 %6149 }
 0x7ff   : > { %v11208_v56 = vpop.permute.xlu1 %6402  ;;  %6170 = vst.msk [vmem:[#allocation7 + $0xc0] sm:$0xff] %vm5683_vm0, %v6150_v58 }
 0x800   : > { %6218 = vst.msk [vmem:[#allocation7 + $0xc0] sm:$0xff] %vm5732_vm1, %v11127_v18  ;;  %6093 = vrot.lane.b32.xlu0 %v11031_v37, %s8112_s8 }
 0x801   : > { %6267 = vst.msk [vmem:[#allocation7 + $0xc0] sm:$0xff] %vm5781_vm2, %v11140_v20 }
 0x802   : > { %v5990_v59 = vpop.permute.xlu0 %5989  ;;  %v6626_v10 = vld [vmem:[#allocation7 + $0x88] sm:$0xff] }
 0x803   : > { %v6470_v61 = vpop.permute.xlu1 %6469  ;;  %6010 = vst.msk [vmem:[#allocation7 + $0xb8] sm:$0xff] %vm5683_vm0, %v5990_v59  ;;  %6975 = vmatprep.mubr.f32.mxu1 %v6626_v10 }
 0x804   : > { %6491 = vst.msk [vmem:[#allocation7 + $0x98] sm:$0xff] %vm5683_vm0, %v6470_v61  ;;  %6475 = vrot.lane.b32.xlu0 %v11031_v37, %s8110_s26  ;;  %6976 = vmatmul.mubr.f32.gmra.mrb[20].mxu1 %v6625_v49  ;;  %v6440_v37 = vld [vmem:[#allocation6 + $0xb0] sm:$0xff] }
 0x805   : > { %v7596_v50 = vpop.f32.mrb[8].mxu1  ;;  %6448 = vst.msk [vmem:[#allocation7 + $0x1b0] sm:$0xff] %vm5456_vm14, %v6440_v37 }
 0x806   : > { %v6305_v34 = vpop.permute.xlu0 %6304  ;;  %v7597_v8 = vpop.f32.mrb[9].mxu1 }
 0x807   : > { %v11221_v1 = vpop.permute.xlu1 %6201  ;;  %6328 = vst.msk [vmem:[#allocation7 + $0x20] sm:$0xff] %vm5683_vm0, %v6305_v34  ;;  %v11224_v43 = vadd.f32 %v7597_v8, %v7596_v50 }
 0x808   : > { %6523 = vrot.lane.b32.xlu0 %v11027_v35, %s8111_s13  ;;  %v6633_v16 = vld [vmem:[#allocation7 + $0xc0] sm:$0xff] }
 0x809   : > { %6980 = vmatprep.mubr.f32.mxu1 %v6633_v16 }
 0x80a   : > { %v6038_v4 = vpop.permute.xlu0 %6037 }
 0x80b   : > { %v6518_v29 = vpop.permute.xlu1 %6517  ;;  %6058 = vst.msk [vmem:[#allocation7 + $0xb8] sm:$0xff] %vm5732_vm1, %v6038_v4 }
 0x80c   : > { %6539 = vst.msk [vmem:[#allocation7 + $0x98] sm:$0xff] %vm5732_vm1, %v6518_v29  ;;  %6571 = vrot.lane.b32.xlu0 %v11155_v26, %s8112_s8 }
 0x80e   : > { %v6353_v36 = vpop.permute.xlu0 %6352 }
 0x80f   : > { %v6251_v9 = vpop.permute.xlu1 %6250  ;;  %6376 = vst.msk [vmem:[#allocation7 + $0x20] sm:$0xff] %vm5732_vm1, %v6353_v36 }
 0x810   : > { %6424 = vst.msk [vmem:[#allocation7 + $0x20] sm:$0xff] %vm5781_vm2, %v11153_v48  ;;  %6477 = vrot.lane.b32.xlu0 %v10992_v62, %s8110_s26  ;;  %v6621_v62 = vld [vmem:[#allocation7 + $0x60] sm:$0xff] }
 0x812   : > { %v6086_v40 = vpop.permute.xlu0 %6085 }
 0x813   : > { %v6566_v35 = vpop.permute.xlu1 %6565  ;;  %6106 = vst.msk [vmem:[#allocation7 + $0xb8] sm:$0xff] %vm5781_vm2, %v6086_v40 }
 0x814   : > { %6587 = vst.msk [vmem:[#allocation7 + $0x98] sm:$0xff] %vm5781_vm2, %v6566_v35  ;;  %6525 = vrot.lane.b32.xlu0 %v11170_v33, %s8111_s13 }
 0x816   : > { %v6152_v2 = vpop.permute.xlu0 %6151 }
 0x817   : > { %v11242_v19 = vpop.permute.xlu1 %6404  ;;  %6171 = vst.msk [vmem:[#allocation7 + $0xf8] sm:$0xff] %vm5683_vm0, %v6152_v2  ;;  %v6613_v22 = vld [vmem:[#allocation7 + $0x20] sm:$0xff] }
 0x818   : > { %6219 = vst.msk [vmem:[#allocation7 + $0xf8] sm:$0xff] %vm5732_vm1, %v11168_v57  ;;  %6573 = vrot.lane.b32.xlu0 %v11178_v13, %s8112_s8  ;;  %7071 = vmatmul.mubr.f32.vlgmr.msra.gmra.mrb[32].mxu0 %v6613_v22 }
 0x819   : > { %6268 = vst.msk [vmem:[#allocation7 + $0xf8] sm:$0xff] %vm5781_vm2, %v11185_v38  ;;  %7075 = vmatprep.mubr.f32.mxu0 %v6621_v62 }
 0x81a   : > { %v5992_v7 = vpop.permute.xlu0 %5991  ;;  %v6632_v23 = vld [vmem:[#allocation7 + $0xb8] sm:$0xff] }
 0x81b   : > { %v6472_v18 = vpop.permute.xlu1 %6471  ;;  %6011 = vst.msk [vmem:[#allocation7 + $0xf0] sm:$0xff] %vm5683_vm0, %v5992_v7  ;;  %6981 = vmatmul.mubr.f32.gmra.mrb[22].mxu1 %v6632_v23  ;;  %v6628_v57 = vld [vmem:[#allocation7 + $0x98] sm:$0xff] }
 0x81c   : > { %6492 = vst.msk [vmem:[#allocation7 + $0xd0] sm:$0xff] %vm5683_vm0, %v6472_v18  ;;  %6479 = vrot.lane.b32.xlu0 %v6456_v14, %s8110_s26 }
 0x81e   : > { %v6307_v28 = vpop.permute.xlu0 %6306 }
 0x81f   : > { %v6204_v20 = vpop.permute.xlu1 %6203  ;;  %6329 = vst.msk [vmem:[#allocation7 + $0x58] sm:$0xff] %vm5683_vm0, %v6307_v28 }
 0x820   : > { %6527 = vrot.lane.b32.xlu0 %v6504_v41, %s8111_s13  ;;  %v6640_v3 = vld [vmem:[#allocation7 + $0xf8] sm:$0xff] }
 0x821   : > { %6985 = vmatprep.mubr.f32.mxu1 %v6640_v3 }
 0x822   : > { %v6040_v48 = vpop.permute.xlu0 %6039 }
 0x823   : > { %v6520_v17 = vpop.permute.xlu1 %6519  ;;  %6059 = vst.msk [vmem:[#allocation7 + $0xf0] sm:$0xff] %vm5732_vm1, %v6040_v48 }
 0x824   : > { %6540 = vst.msk [vmem:[#allocation7 + $0xd0] sm:$0xff] %vm5732_vm1, %v6520_v17  ;;  %6575 = vrot.lane.b32.xlu0 %v6552_v27, %s8112_s8  ;;  %v6615_v27 = vld [vmem:[#allocation7 + $0x30] sm:$0xff] }
 0x826   : > { %v6355_v45 = vpop.permute.xlu0 %6354 }
 0x827   : > { %v6253_v26 = vpop.permute.xlu1 %6252  ;;  %6377 = vst.msk [vmem:[#allocation7 + $0x58] sm:$0xff] %vm5732_vm1, %v6355_v45  ;;  %v6629_v45 = vld [vmem:[#allocation7 + $0xa0] sm:$0xff] }
 0x828   : > { %6425 = vst.msk [vmem:[#allocation7 + $0x58] sm:$0xff] %vm5781_vm2, %v11208_v56 }
 0x82a   : > { %v6088_v46 = vpop.permute.xlu0 %6087 }
 0x82b   : > { %v6568_v42 = vpop.permute.xlu1 %6567  ;;  %6107 = vst.msk [vmem:[#allocation7 + $0xf0] sm:$0xff] %vm5781_vm2, %v6088_v46  ;;  %v6636_v46 = vld [vmem:[#allocation7 + $0xd8] sm:$0xff] }
 0x82c   : > { %6588 = vst.msk [vmem:[#allocation7 + $0xd0] sm:$0xff] %vm5781_vm2, %v6568_v42 }
 0x82e   : > { %v6154_v21 = vpop.permute.xlu0 %6153 }
 0x82f   : > { %v11265_v51 = vpop.permute.xlu1 %6406  ;;  %6172 = vst.msk [vmem:[#allocation7 + $0x130] sm:$0xff] %vm5683_vm0, %v6154_v21  ;;  %v6620_v52 = vld [vmem:[#allocation7 + $0x58] sm:$0xff] }
 0x830   : > { %6220 = vst.msk [vmem:[#allocation7 + $0x130] sm:$0xff] %vm5732_vm1, %v11221_v1  ;;  %7076 = vmatmul.mubr.f32.gmra.mrb[34].mxu0 %v6620_v52  ;;  %v6657_v52 = vld [vmem:[#allocation7 + $0x180] sm:$0xff] }
 0x831   : > { %6269 = vst.msk [vmem:[#allocation7 + $0x130] sm:$0xff] %vm5781_vm2, %v6251_v9  ;;  %7080 = vmatprep.mubr.f32.mxu0 %v6628_v57 }
 0x832   : > { %v5994_v53 = vpop.permute.xlu0 %5993  ;;  %v6639_v6 = vld [vmem:[#allocation7 + $0xf0] sm:$0xff] }
 0x833   : > { %v6474_v33 = vpop.permute.xlu1 %6473  ;;  %6012 = vst.msk [vmem:[#allocation7 + $0x128] sm:$0xff] %vm5683_vm0, %v5994_v53  ;;  %6986 = vmatmul.mubr.f32.gmra.mrb[24].mxu1 %v6639_v6  ;;  %v6635_v58 = vld [vmem:[#allocation7 + $0xd0] sm:$0xff]  ;;  %v6650_v6 = vld [vmem:[#allocation7 + $0x148] sm:$0xff] }
 0x834   : > { %6493 = vst.msk [vmem:[#allocation7 + $0x108] sm:$0xff] %vm5683_vm0, %v6474_v33 }
 0x836   : > { %v6309_v30 = vpop.permute.xlu0 %6308 }
 0x837   : > { %v6206_v13 = vpop.permute.xlu1 %6205  ;;  %6330 = vst.msk [vmem:[#allocation7 + $0x90] sm:$0xff] %vm5683_vm0, %v6309_v30 }
 0x838   : > { %v6647_v32 = vld [vmem:[#allocation7 + $0x130] sm:$0xff] }
 0x839   : > { %6990 = vmatprep.mubr.f32.mxu1 %v6647_v32 }
 0x83a   : > { %v6042_v5 = vpop.permute.xlu0 %6041 }
 0x83b   : > { %v6522_v38 = vpop.permute.xlu1 %6521  ;;  %6060 = vst.msk [vmem:[#allocation7 + $0x128] sm:$0xff] %vm5732_vm1, %v6042_v5 }
 0x83c   : > { %6541 = vst.msk [vmem:[#allocation7 + $0x108] sm:$0xff] %vm5732_vm1, %v6522_v38  ;;  %v6664_v38 = vld [vmem:[#allocation7 + $0x1b8] sm:$0xff] }
 0x83e   : > { %v6357_v24 = vpop.permute.xlu0 %6356 }
 0x83f   : > { %v6255_v0 = vpop.permute.xlu1 %6254  ;;  %6378 = vst.msk [vmem:[#allocation7 + $0x90] sm:$0xff] %vm5732_vm1, %v6357_v24 }
 0x840   : > { %6426 = vst.msk [vmem:[#allocation7 + $0x90] sm:$0xff] %vm5781_vm2, %v11242_v19 }
 0x842   : > { %v6090_v47 = vpop.permute.xlu0 %6089 }
 0x843   : > { %v6570_v25 = vpop.permute.xlu1 %6569  ;;  %6108 = vst.msk [vmem:[#allocation7 + $0x128] sm:$0xff] %vm5781_vm2, %v6090_v47 }
 0x844   : > { %6589 = vst.msk [vmem:[#allocation7 + $0x108] sm:$0xff] %vm5781_vm2, %v6570_v25 }
 0x845   : > { %v7599_v54 = vpop.f32.mrb[10].mxu1 }
 0x846   : > { %v6156_v55 = vpop.permute.xlu0 %6155  ;;  %v7600_v15 = vpop.f32.mrb[11].mxu1 }
 0x847   : > { %v11281_v31 = vpop.permute.xlu1 %6408  ;;  %6173 = vst.msk [vmem:[#allocation7 + $0x168] sm:$0xff] %vm5683_vm0, %v6156_v55  ;;  %v11284_v56 = vadd.f32 %v7600_v15, %v7599_v54  ;;  %v6627_v44 = vld [vmem:[#allocation7 + $0x90] sm:$0xff] }
 0x848   : > { %6221 = vst.msk [vmem:[#allocation7 + $0x168] sm:$0xff] %vm5732_vm1, %v6204_v20  ;;  %7081 = vmatmul.mubr.f32.gmra.mrb[36].mxu0 %v6627_v44 }
 0x849   : > { %6270 = vst.msk [vmem:[#allocation7 + $0x168] sm:$0xff] %vm5781_vm2, %v6253_v26  ;;  %7085 = vmatprep.mubr.f32.mxu0 %v6635_v58  ;;  %v6622_v26 = vld [vmem:[#allocation7 + $0x68] sm:$0xff] }
 0x84a   : > { %v5996_v59 = vpop.permute.xlu0 %5995  ;;  %v6646_v10 = vld [vmem:[#allocation7 + $0x128] sm:$0xff] }
 0x84b   : > { %v6315_v61 = vpop.permute.xlu1 %6314  ;;  %6013 = vst.msk [vmem:[#allocation7 + $0x160] sm:$0xff] %vm5683_vm0, %v5996_v59  ;;  %6991 = vmatmul.mubr.f32.gmra.mrb[26].mxu1 %v6646_v10  ;;  %v6642_v40 = vld [vmem:[#allocation7 + $0x108] sm:$0xff] }
 0x84c   : > { %6333 = vst.msk [vmem:[#allocation7 + $0x138] sm:$0xff] %vm5683_vm0, %v6315_v61  ;;  %v7494_v61 = vld [vmem:[%s11436_s4] ss:$0 sm:$0xff] }
 0x84d   : > { %v6863_v10 = vadd.f32 %v10957_v12, %v7494_v61 }
 0x84e   : > { %v6311_v1 = vpop.permute.xlu0 %6310 }
 0x84f   : > { %v6363_v49 = vpop.permute.xlu1 %6362  ;;  %6331 = vst.msk [vmem:[#allocation7 + $0xc8] sm:$0xff] %vm5683_vm0, %v6311_v1 }
 0x850   : > { %6381 = vst.msk [vmem:[#allocation7 + $0x138] sm:$0xff] %vm5732_vm1, %v6363_v49  ;;  %v6654_v50 = vld [vmem:[#allocation7 + $0x168] sm:$0xff] }
 0x851   : > { %6995 = vmatprep.mubr.f32.mxu1 %v6654_v50 }
 0x852   : > { %v6044_v8 = vpop.permute.xlu0 %6043 }
 0x853   : > { %v6411_v34 = vpop.permute.xlu1 %6410  ;;  %6061 = vst.msk [vmem:[#allocation7 + $0x160] sm:$0xff] %vm5732_vm1, %v6044_v8  ;;  %v6868_v8 = vadd.f32 %v11012_v60, %v7494_v61 }
 0x854   : > { %6429 = vst.msk [vmem:[#allocation7 + $0x138] sm:$0xff] %vm5781_vm2, %v6411_v34 }
 0x856   : > { %v6359_v16 = vpop.permute.xlu0 %6358 }
 0x857   : > { %v6317_v29 = vpop.permute.xlu1 %6316  ;;  %6379 = vst.msk [vmem:[#allocation7 + $0xc8] sm:$0xff] %vm5732_vm1, %v6359_v16 }
 0x858   : > { %6334 = vst.msk [vmem:[#allocation7 + $0x170] sm:$0xff] %vm5683_vm0, %v6317_v29 }
 0x859   : > { %6427 = vst.msk [vmem:[#allocation7 + $0xc8] sm:$0xff] %vm5781_vm2, %v11265_v51  ;;  %v6643_v51 = vld [vmem:[#allocation7 + $0x110] sm:$0xff] }
 0x85a   : > { %v6092_v37 = vpop.permute.xlu0 %6091 }
 0x85b   : > { %v6365_v4 = vpop.permute.xlu1 %6364  ;;  %6109 = vst.msk [vmem:[#allocation7 + $0x160] sm:$0xff] %vm5781_vm2, %v6092_v37  ;;  %v6648_v30 = vld [vmem:[#allocation7 + $0x138] sm:$0xff] }
 0x85c   : > { %6382 = vst.msk [vmem:[#allocation7 + $0x170] sm:$0xff] %vm5732_vm1, %v6365_v4 }
 0x85e   : > { %v6158_v36 = vpop.permute.xlu0 %6157 }
 0x85f   : > { %v6413_v9 = vpop.permute.xlu1 %6412  ;;  %6174 = vst.msk [vmem:[#allocation7 + $0x1a0] sm:$0xff] %vm5683_vm0, %v6158_v36 }
 0x860   : > { %6430 = vst.msk [vmem:[#allocation7 + $0x170] sm:$0xff] %vm5781_vm2, %v6413_v9  ;;  %v6634_v35 = vld [vmem:[#allocation7 + $0xc8] sm:$0xff]  ;;  %v6873_v9 = vadd.f32 %v11041_v63, %v7494_v61  ;;  %v6883_v63 = vadd.f32 %v11224_v43, %v7494_v61 }
 0x861   : > { %6222 = vst.msk [vmem:[#allocation7 + $0x1a0] sm:$0xff] %vm5732_vm1, %v6206_v13  ;;  %7086 = vmatmul.mubr.f32.gmra.mrb[38].mxu0 %v6634_v35 }
 0x862   : > { %6271 = vst.msk [vmem:[#allocation7 + $0x1a0] sm:$0xff] %vm5781_vm2, %v6255_v0  ;;  %7090 = vmatprep.mubr.f32.mxu0 %v6642_v40  ;;  %v5998_v19 = vpop.permute.xlu0 %5997  ;;  %v6653_v2 = vld [vmem:[#allocation7 + $0x160] sm:$0xff] }
 0x863   : > { %v6319_v11 = vpop.permute.xlu1 %6318  ;;  %6014 = vst.msk [vmem:[#allocation7 + $0x198] sm:$0xff] %vm5683_vm0, %v5998_v19  ;;  %6996 = vmatmul.mubr.f32.gmra.mrb[28].mxu1 %v6653_v2 }
 0x864   : > { %6335 = vst.msk [vmem:[#allocation7 + $0x1a8] sm:$0xff] %vm5683_vm0, %v6319_v11 }
 0x866   : > { %v6313_v62 = vpop.permute.xlu0 %6312 }
 0x867   : > { %v6367_v22 = vpop.permute.xlu1 %6366  ;;  %6332 = vst.msk [vmem:[#allocation7 + $0x100] sm:$0xff] %vm5683_vm0, %v6313_v62  ;;  %v6655_v25 = vld [vmem:[#allocation7 + $0x170] sm:$0xff]  ;;  %v6878_v62 = vadd.f32 %v11106_v39, %v7494_v61  ;;  %v6888_v39 = vadd.f32 %v11284_v56, %v7494_v61 }
 0x868   : > { %6383 = vst.msk [vmem:[#allocation7 + $0x1a8] sm:$0xff] %vm5732_vm1, %v6367_v22 }
 0x869   : > { %v6661_v18 = vld [vmem:[#allocation7 + $0x1a0] sm:$0xff] }
 0x86a   : > { %7000 = vmatprep.mubr.f32.mxu1 %v6661_v18  ;;  %v6046_v7 = vpop.permute.xlu0 %6045 }
 0x86b   : > { %v6415_v14 = vpop.permute.xlu1 %6414  ;;  %6062 = vst.msk [vmem:[#allocation7 + $0x198] sm:$0xff] %vm5732_vm1, %v6046_v7 }
 0x86c   : > { %6431 = vst.msk [vmem:[#allocation7 + $0x1a8] sm:$0xff] %vm5781_vm2, %v6415_v14 }
 0x86e   : > { %v6361_v23 = vpop.permute.xlu0 %6360 }
 0x86f   : > { %6380 = vst.msk [vmem:[#allocation7 + $0x100] sm:$0xff] %vm5732_vm1, %v6361_v23 }
 0x870   : > { %6428 = vst.msk [vmem:[#allocation7 + $0x100] sm:$0xff] %vm5781_vm2, %v11281_v31 }
 0x872   : > { %v6094_v20 = vpop.permute.xlu0 %6093 }
 0x873   : > { %6110 = vst.msk [vmem:[#allocation7 + $0x198] sm:$0xff] %vm5781_vm2, %v6094_v20  ;;  %v6662_v31 = vld [vmem:[#allocation7 + $0x1a8] sm:$0xff] }
 0x876   : > { %v6476_v41 = vpop.permute.xlu0 %6475 }
 0x877   : > { %6494 = vst.msk [vmem:[#allocation7 + $0x140] sm:$0xff] %vm5683_vm0, %v6476_v41  ;;  %v6641_v28 = vld [vmem:[#allocation7 + $0x100] sm:$0xff] }
 0x878   : > { %7091 = vmatmul.mubr.f32.gmra.mrb[40].mxu0 %v6641_v28 }
 0x87a   : > { %v6524_v17 = vpop.permute.xlu0 %6523  ;;  %v6660_v3 = vld [vmem:[#allocation7 + $0x198] sm:$0xff] }
 0x87b   : > { %6542 = vst.msk [vmem:[#allocation7 + $0x140] sm:$0xff] %vm5732_vm1, %v6524_v17  ;;  %7001 = vmatmul.mubr.f32.gmra.mrb[30].mxu1 %v6660_v3 }
 0x87c   : > { %7808 = vmatprep.mubr.msk.f32.mxu1 %vm5456_vm14, %v6615_v27 }
 0x87e   : > { %v6572_v48 = vpop.permute.xlu0 %6571 }
 0x87f   : > { %6590 = vst.msk [vmem:[#allocation7 + $0x140] sm:$0xff] %vm5781_vm2, %v6572_v48  ;;  %7809 = vmatmul.mubr.msk.f32.vlgmr.msra.gmra.mrb[32].mxu1 %vm5456_vm14, %v6622_v26 }
 0x880   : > { %7811 = vmatprep.mubr.msk.f32.mxu1 %vm5456_vm14, %v6629_v45 }
 0x882   : > { %v6478_v42 = vpop.permute.xlu0 %6477 }
 0x883   : > { %6495 = vst.msk [vmem:[#allocation7 + $0x178] sm:$0xff] %vm5683_vm0, %v6478_v42  ;;  %7812 = vmatmul.mubr.msk.f32.gmra.mrb[34].mxu1 %vm5456_vm14, %v6636_v46 }
 0x884   : > { %7814 = vmatprep.mubr.msk.f32.mxu1 %vm5456_vm14, %v6643_v51 }
 0x885   : > { %v7602_v21 = vpop.f32.mrb[12].mxu1 }
 0x886   : > { %v6526_v57 = vpop.permute.xlu0 %6525  ;;  %v7603_v33 = vpop.f32.mrb[13].mxu1  ;;  %v6649_v53 = vld [vmem:[#allocation7 + $0x140] sm:$0xff] }
 0x887   : > { %6543 = vst.msk [vmem:[#allocation7 + $0x178] sm:$0xff] %vm5732_vm1, %v6526_v57  ;;  %v11324_v13 = vadd.f32 %v7603_v33, %v7602_v21  ;;  %7095 = vmatprep.mubr.f32.mxu0 %v6649_v53  ;;  %7815 = vmatmul.mubr.msk.f32.gmra.mrb[36].mxu1 %vm5456_vm14, %v6650_v6 }
 0x888   : > { %7096 = vmatmul.mubr.f32.gmra.mrb[42].mxu0 %v6648_v30  ;;  %7817 = vmatprep.mubr.msk.f32.mxu1 %vm5456_vm14, %v6657_v52 }
 0x889   : > { %v6893_v43 = vadd.f32 %v11324_v13, %v7494_v61 }
 0x88a   : > { %v6574_v32 = vpop.permute.xlu0 %6573 }
 0x88b   : > { %6591 = vst.msk [vmem:[#allocation7 + $0x178] sm:$0xff] %vm5781_vm2, %v6574_v32  ;;  %7818 = vmatmul.mubr.msk.f32.gmra.mrb[38].mxu1 %vm5456_vm14, %v6664_v38  ;;  %vm7342_vm14 = vcmask 785408  }
 0x88e   : > { %v6480_v5 = vpop.permute.xlu0 %6479 }
 0x88f   : > { %6496 = vst.msk [vmem:[#allocation7 + $0x1b0] sm:$0xff] %vm5683_vm0, %v6480_v5  ;;  %vm7377_vm0 = vcmask 519296  }
 0x892   : > { %v6528_v0 = vpop.permute.xlu0 %6527  ;;  %v6656_v24 = vld [vmem:[#allocation7 + $0x178] sm:$0xff] }
 0x893   : > { %6544 = vst.msk [vmem:[#allocation7 + $0x1b0] sm:$0xff] %vm5732_vm1, %v6528_v0  ;;  %7100 = vmatprep.mubr.f32.mxu0 %v6656_v24 }
 0x894   : > { %7101 = vmatmul.mubr.f32.gmra.mrb[44].mxu0 %v6655_v25 }
 0x896   : > { %v6576_v47 = vpop.permute.xlu0 %6575 }
 0x897   : > { %6592 = vst.msk [vmem:[#allocation7 + $0x1b0] sm:$0xff] %vm5781_vm2, %v6576_v47 }
 0x89e   : > { %v6663_v54 = vld [vmem:[#allocation7 + $0x1b0] sm:$0xff] }
 0x89f   : > { %7105 = vmatprep.mubr.f32.mxu0 %v6663_v54 }
 0x8a0   : > { %7106 = vmatmul.mubr.f32.gmra.mrb[46].mxu0 %v6662_v31 }
 0x8b3   : > { %v7605_v55 = vpop.f32.mrb[14].mxu1 }
 0x8b4   : > { %v7606_v15 = vpop.f32.mrb[15].mxu1 }
 0x8b5   : > { %v7607_v44 = vadd.f32 %v7606_v15, %v7605_v55 }
 0x8b7   : > { %v6898_v54 = vadd.f32 %v7607_v44, %v7494_v61 }
 0x8c0   : > { %v7640_v58 = vpop.f32.mrb[16].mxu1 }
 0x8c1   : > { %v7641_v59 = vpop.f32.mrb[17].mxu1 }
 0x8c2   : > { %v7642_v49 = vadd.f32 %v7641_v59, %v7640_v58 }
 0x8c4   : > { %v6968_v1 = vadd.f32 %v7642_v49, %v6863_v10 }
 0x8cb   : > { %v7643_v34 = vpop.f32.mrb[18].mxu1 }
 0x8cc   : > { %v7644_v50 = vpop.f32.mrb[19].mxu1 }
 0x8cd   : > { %v7645_v29 = vadd.f32 %v7644_v50, %v7643_v34 }
 0x8cf   : > { %v6973_v16 = vadd.f32 %v7645_v29, %v6868_v8 }
 0x8d7   : > { %v7646_v4 = vpop.f32.mrb[20].mxu1 }
 0x8d8   : > { %v7647_v37 = vpop.f32.mrb[21].mxu1 }
 0x8d9   : > { %v7648_v36 = vadd.f32 %v7647_v37, %v7646_v4 }
 0x8db   : > { %v6978_v35 = vadd.f32 %v7648_v36, %v6873_v9 }
 0x8eb   : > { %v7696_v40 = vpop.f32.mrb[32].mxu0 }
 0x8ec   : > { %v7697_v11 = vpop.f32.mrb[33].mxu0 }
 0x8ed   : > { %v7698_v19 = vadd.f32 %v7697_v11, %v7696_v40 }
 0x8ee   : > { %v7649_v2 = vpop.f32.mrb[22].mxu1 }
 0x8ef   : > { %v7650_v22 = vpop.f32.mrb[23].mxu1  ;;  %v7073_v12 = vadd.f32 %v7698_v19, %v6968_v1 }
 0x8f0   : > { %v7651_v18 = vadd.f32 %v7650_v22, %v7649_v2 }
 0x8f2   : > { %v6983_v14 = vadd.f32 %v7651_v18, %v6878_v62 }
 0x903   : > { %v7699_v7 = vpop.f32.mrb[34].mxu0 }
 0x904   : > { %v7700_v60 = vpop.f32.mrb[35].mxu0 }
 0x905   : > { %v7701_v23 = vadd.f32 %v7700_v60, %v7699_v7 }
 0x906   : > { %v7652_v20 = vpop.f32.mrb[24].mxu1 }
 0x907   : > { %v7653_v41 = vpop.f32.mrb[25].mxu1  ;;  %v7078_v28 = vadd.f32 %v7701_v23, %v6973_v16 }
 0x908   : > { %v7654_v17 = vadd.f32 %v7653_v41, %v7652_v20 }
 0x90a   : > { %v6988_v3 = vadd.f32 %v7654_v17, %v6883_v63 }
 0x91b   : > { %v7702_v27 = vpop.f32.mrb[36].mxu0 }
 0x91c   : > { %v7703_v48 = vpop.f32.mrb[37].mxu0 }
 0x91d   : > { %v7704_v26 = vadd.f32 %v7703_v48, %v7702_v27 }
 0x91e   : > { %v7655_v45 = vpop.f32.mrb[26].mxu1 }
 0x91f   : > { %v7656_v42 = vpop.f32.mrb[27].mxu1  ;;  %v7083_v46 = vadd.f32 %v7704_v26, %v6978_v35 }
 0x920   : > { %v7657_v51 = vadd.f32 %v7656_v42, %v7655_v45 }
 0x922   : > { %v6993_v21 = vadd.f32 %v7657_v51, %v6888_v39 }
 0x934   : > { %v7705_v52 = vpop.f32.mrb[38].mxu0 }
 0x935   : > { %v7706_v57 = vpop.f32.mrb[39].mxu0 }
 0x936   : > { %v7707_v33 = vadd.f32 %v7706_v57, %v7705_v52  ;;  %v7658_v53 = vpop.f32.mrb[28].mxu1 }
 0x937   : > { %v7659_v6 = vpop.f32.mrb[29].mxu1 }
 0x938   : > { %v7088_v30 = vadd.f32 %v7707_v33, %v6983_v14  ;;  %v7660_v38 = vadd.f32 %v7659_v6, %v7658_v53 }
 0x93a   : > { %v6998_v32 = vadd.f32 %v7660_v38, %v6893_v43 }
 0x94b   : > { %v7708_v5 = vpop.f32.mrb[40].mxu0 }
 0x94c   : > { %v7709_v0 = vpop.f32.mrb[41].mxu0 }
 0x94d   : > { %v7710_v24 = vadd.f32 %v7709_v0, %v7708_v5 }
 0x94e   : > { %v7661_v25 = vpop.f32.mrb[30].mxu1 }
 0x94f   : > { %v7662_v47 = vpop.f32.mrb[31].mxu1  ;;  %v7093_v31 = vadd.f32 %v7710_v24, %v6988_v3 }
 0x950   : > { %v7663_v56 = vadd.f32 %v7662_v47, %v7661_v25 }
 0x952   : > { %v7003_v55 = vadd.f32 %v7663_v56, %v6898_v54  ;;  %v7810_v15 = vpop.f32.mrb[32].mxu1 }
 0x953   : > { %v7183_v58 = vadd.f32 %v7810_v15, %v7078_v28  ;;  %v7177_v59 = vpop.f32.mrb[33].mxu1 }
 0x954   : > { %v7178_v10 = vadd.f32 %v7177_v59, %v7073_v12 }
 0x955   : > { %v7217_v49 = vmax.f32 %v7183_v58, 0.0 }
 0x956   : > { %v7216_v1 = vmax.f32 %v7178_v10, 0.0  ;;  %v7813_v34 = vpop.f32.mrb[34].mxu1 }
 0x957   : > { %7226 = vst.msk [vmem:[#allocation8 + $0x8] sm:$0xff] %vm7224_vm3, %v7217_v49  ;;  %v7193_v13 = vadd.f32 %v7813_v34, %v7088_v30  ;;  %v7187_v50 = vpop.f32.mrb[35].mxu1 }
 0x958   : > { %7225 = vst.msk [vmem:[#allocation8] sm:$0xff] %vm7224_vm3, %v7216_v1  ;;  %v7188_v8 = vadd.f32 %v7187_v50, %v7083_v46 }
 0x959   : > { %v7219_v29 = vmax.f32 %v7193_v13, 0.0 }
 0x95a   : > { %v7218_v16 = vmax.f32 %v7188_v8, 0.0  ;;  %v7816_v44 = vpop.f32.mrb[36].mxu1 }
 0x95b   : > { %7228 = vst.msk [vmem:[#allocation8 + $0x18] sm:$0xff] %vm7224_vm3, %v7219_v29  ;;  %v7711_v61 = vpop.f32.mrb[42].mxu0  ;;  %v7197_v4 = vpop.f32.mrb[37].mxu1 }
 0x95c   : > { %7227 = vst.msk [vmem:[#allocation8 + $0x10] sm:$0xff] %vm7224_vm3, %v7218_v16  ;;  %v7198_v37 = vadd.f32 %v7197_v4, %v7093_v31  ;;  %v7712_v9 = vpop.f32.mrb[43].mxu0 }
 0x95d   : > { %v7713_v36 = vadd.f32 %v7712_v9, %v7711_v61 }
 0x95e   : > { %v7238_v35 = vld [vmem:[#allocation8 + $0x8] sm:$0xff]  ;;  %v7220_v40 = vmax.f32 %v7198_v37, 0.0  ;;  %v7819_v11 = vpop.f32.mrb[38].mxu1 }
 0x95f   : > { %v7233_v19 = vld [vmem:[#allocation8] sm:$0xff]  ;;  %v7098_v2 = vadd.f32 %v7713_v36, %v6993_v21  ;;  %v7207_v22 = vpop.f32.mrb[39].mxu1 }
 0x960   : > { %v7242_v12 = vmax.f32 %v7233_v19, %v7238_v35  ;;  %7229 = vst.msk [vmem:[#allocation8 + $0x20] sm:$0xff] %vm7224_vm3, %v7220_v40 }
 0x961   : > { %v7203_v62 = vadd.f32 %v7816_v44, %v7098_v2 }
 0x962   : > { %7246 = vst.msk [vmem:[#allocation9] sm:$0xff] %vm7224_vm3, %v7242_v12  ;;  %v7239_v18 = vld [vmem:[#allocation8 + $0x18] sm:$0xff] }
 0x963   : > { %v7234_v14 = vld [vmem:[#allocation8 + $0x10] sm:$0xff]  ;;  %v7221_v7 = vmax.f32 %v7203_v62, 0.0 }
 0x964   : > { %v7243_v60 = vmax.f32 %v7234_v14, %v7239_v18 }
 0x965   : > { %7230 = vst.msk [vmem:[#allocation8 + $0x28] sm:$0xff] %vm7224_vm3, %v7221_v7 }
 0x966   : > { %7247 = vst.msk [vmem:[#allocation9 + $0x8] sm:$0xff] %vm7224_vm3, %v7243_v60 }
 0x967   : > { %v7714_v23 = vpop.f32.mrb[44].mxu0  ;;  %v7235_v63 = vld [vmem:[#allocation8 + $0x20] sm:$0xff] }
 0x968   : > { %v7715_v20 = vpop.f32.mrb[45].mxu0 }
 0x969   : > { %v7716_v41 = vadd.f32 %v7715_v20, %v7714_v23  ;;  %v7314_v24 = vld [vmem:[#allocation9 + $0x4] sm:$0x1]  ;;  %v7318_v25 = vld [vmem:[#allocation9 + $0x5] sm:$0x1]  ;;  %v7288_v58 = vld [vmem:[#allocation9 + $0x3] sm:$0x1] }
 0x96a   : > { %v7349_v29 = vld [vmem:[#allocation9 + $0x6] sm:$0x1]  ;;  %v7353_v16 = vld [vmem:[#allocation9 + $0x7] sm:$0x1]  ;;  %v7250_v37 = vld [vmem:[#allocation9] sm:$0x1]  ;;  %v7322_v36 = vmax.f32 %v7314_v24, %v7318_v25 }
 0x96b   : > { %v7103_v28 = vadd.f32 %v7716_v41, %v6998_v32  ;;  %v7254_v9 = vld [vmem:[#allocation9 + $0x1] sm:$0x1]  ;;  %v7357_v2 = vmax.f32 %v7349_v29, %v7353_v16 }
 0x96c   : > { %v7240_v17 = vld [vmem:[#allocation8 + $0x28] sm:$0xff]  ;;  %v7258_v62 = vmax.f32 %v7250_v37, %v7254_v9 }
 0x96d   : > { %v7244_v3 = vmax.f32 %v7235_v63, %v7240_v17  ;;  %v7208_v27 = vadd.f32 %v7207_v22, %v7103_v28  ;;  %v7315_v21 = vld [vmem:[#allocation9 + $0xc] sm:$0x1]  ;;  %v7319_v52 = vld [vmem:[#allocation9 + $0xd] sm:$0x1]  ;;  %v7285_v57 = vld [vmem:[#allocation9 + $0xa] sm:$0x1] }
 0x96e   : > { %v7289_v33 = vld [vmem:[#allocation9 + $0xb] sm:$0x1]  ;;  %v7350_v53 = vld [vmem:[#allocation9 + $0xe] sm:$0x1]  ;;  %v7354_v6 = vld [vmem:[#allocation9 + $0xf] sm:$0x1]  ;;  %v7323_v32 = vmax.f32 %v7315_v21, %v7319_v52 }
 0x96f   : > { %7248 = vst.msk [vmem:[#allocation9 + $0x10] sm:$0xff] %vm7224_vm3, %v7244_v3  ;;  %v7222_v48 = vmax.f32 %v7208_v27, 0.0  ;;  %v7251_v30 = vld [vmem:[#allocation9 + $0x8] sm:$0x1]  ;;  %v7255_v43 = vld [vmem:[#allocation9 + $0x9] sm:$0x1]  ;;  %v7293_v31 = vmax.f32 %v7285_v57, %v7289_v33  ;;  %v7358_v54 = vmax.f32 %v7350_v53, %v7354_v6 }
 0x970   : > { %v7259_v49 = vmax.f32 %v7251_v30, %v7255_v43  ;;  %v7330_v8 = vrot.slane %v7323_v32, 7 }
 0x971   : > { %7231 = vst.msk [vmem:[#allocation8 + $0x30] sm:$0xff] %vm7224_vm3, %v7222_v48  ;;  %v7300_v61 = vrot.slane %v7293_v31, 7  ;;  %v7365_v4 = vrot.slane %v7358_v54, 7 }
 0x972   : > { %v7331_v22 = vsel %vm7267_vm4, %v7330_v8, %v7322_v36 }
 0x973   : > { %v7717_v26 = vpop.f32.mrb[46].mxu0  ;;  %v7366_v7 = vsel %vm7267_vm4, %v7365_v4, %v7357_v2  ;;  %v7332_v63 = vsel %vm7269_vm5, %v7330_v8, %v7331_v22 }
 0x974   : > { %v7718_v45 = vpop.f32.mrb[47].mxu0 }
 0x975   : > { %v7719_v42 = vadd.f32 %v7718_v45, %v7717_v26 }
 0x976   : > { %v7316_v38 = vld [vmem:[#allocation9 + $0x14] sm:$0x1]  ;;  %v7320_v47 = vld [vmem:[#allocation9 + $0x15] sm:$0x1]  ;;  %v7286_v15 = vld [vmem:[#allocation9 + $0x12] sm:$0x1] }
 0x977   : > { %v7108_v46 = vadd.f32 %v7719_v42, %v7003_v55  ;;  %v7284_v55 = vld [vmem:[#allocation9 + $0x2] sm:$0x1]  ;;  %v7290_v59 = vld [vmem:[#allocation9 + $0x13] sm:$0x1]  ;;  %v7351_v10 = vld [vmem:[#allocation9 + $0x16] sm:$0x1]  ;;  %v7324_v50 = vmax.f32 %v7316_v38, %v7320_v47 }
 0x978   : > { %v7236_v5 = vld [vmem:[#allocation8 + $0x30] sm:$0xff]  ;;  %v7294_v44 = vmax.f32 %v7286_v15, %v7290_v59  ;;  %v7292_v19 = vmax.f32 %v7284_v55, %v7288_v58 }
 0x979   : > { %v7213_v39 = vadd.f32 %v7819_v11, %v7108_v46  ;;  %v7355_v1 = vld [vmem:[#allocation9 + $0x17] sm:$0x1]  ;;  %v7252_v34 = vld [vmem:[#allocation9 + $0x10] sm:$0x1]  ;;  %v7256_v13 = vld [vmem:[#allocation9 + $0x11] sm:$0x1]  ;;  %v7367_v46 = vsel %vm7269_vm5, %v7365_v4, %v7366_v7 }
 0x97a   : > { %v7359_v35 = vmax.f32 %v7351_v10, %v7355_v1  ;;  %v7260_v40 = vmax.f32 %v7252_v34, %v7256_v13  ;;  %v7266_v11 = vrot.slane %v7259_v49, 7  ;;  %v7333_v12 = vrot.slane %v7324_v50, 6 }
 0x97b   : > { %v7223_v51 = vmax.f32 %v7213_v39, 0.0  ;;  %v7301_v18 = vsel %vm7267_vm4, %v7300_v61, %v7292_v19  ;;  %v7303_v14 = vrot.slane %v7294_v44, 6 }
 0x97c   : > { %v7368_v60 = vrot.slane %v7359_v35, 6  ;;  %v7271_v23 = vrot.slane %v7260_v40, 6  ;;  %v7268_v20 = vsel %vm7267_vm4, %v7266_v11, %v7258_v62  ;;  %v7334_v27 = vsel %vm7272_vm6, %v7333_v12, %v7332_v63 }
 0x97d   : > { %7232 = vst.msk [vmem:[#allocation8 + $0x38] sm:$0xff] %vm7224_vm3, %v7223_v51  ;;  %v7302_v26 = vsel %vm7269_vm5, %v7300_v61, %v7301_v18  ;;  %v7270_v33 = vsel %vm7269_vm5, %v7266_v11, %v7268_v20  ;;  %v7335_v38 = vsel %vm7274_vm7, %v7333_v12, %v7334_v27 }
 0x97e   : > { %v7304_v51 = vsel %vm7272_vm6, %v7303_v14, %v7302_v26  ;;  %v7369_v6 = vsel %vm7272_vm6, %v7368_v60, %v7367_v46  ;;  %v7273_v43 = vsel %vm7272_vm6, %v7271_v23, %v7270_v33 }
 0x97f   : > { %v7305_v24 = vsel %vm7274_vm7, %v7303_v14, %v7304_v51  ;;  %v7370_v54 = vsel %vm7274_vm7, %v7368_v60, %v7369_v6 }
 0x984   : > { %v7241_v0 = vld [vmem:[#allocation8 + $0x38] sm:$0xff] }
 0x985   : > { %v7245_v56 = vmax.f32 %v7236_v5, %v7241_v0 }
 0x987   : > { %7249 = vst.msk [vmem:[#allocation9 + $0x18] sm:$0xff] %vm7224_vm3, %v7245_v56  ;;  %v7275_v56 = vsel %vm7274_vm7, %v7271_v23, %v7273_v43 }
 0x98e   : > { %v7317_v41 = vld [vmem:[#allocation9 + $0x1c] sm:$0x1]  ;;  %v7321_v28 = vld [vmem:[#allocation9 + $0x1d] sm:$0x1]  ;;  %v7287_v17 = vld [vmem:[#allocation9 + $0x1a] sm:$0x1] }
 0x98f   : > { %v7325_v3 = vmax.f32 %v7317_v41, %v7321_v28  ;;  %v7291_v48 = vld [vmem:[#allocation9 + $0x1b] sm:$0x1]  ;;  %v7352_v45 = vld [vmem:[#allocation9 + $0x1e] sm:$0x1]  ;;  %v7356_v42 = vld [vmem:[#allocation9 + $0x1f] sm:$0x1] }
 0x990   : > { %v7295_v39 = vmax.f32 %v7287_v17, %v7291_v48  ;;  %v7360_v21 = vmax.f32 %v7352_v45, %v7356_v42  ;;  %v7253_v52 = vld [vmem:[#allocation9 + $0x18] sm:$0x1]  ;;  %v7257_v57 = vld [vmem:[#allocation9 + $0x19] sm:$0x1] }
 0x991   : > { %v7336_v53 = vrot.slane %v7325_v3, 5  ;;  %v7261_v30 = vmax.f32 %v7253_v52, %v7257_v57 }
 0x992   : > { %v7306_v32 = vrot.slane %v7295_v39, 5  ;;  %v7371_v5 = vrot.slane %v7360_v21, 5 }
 0x993   : > { %v7337_v0 = vsel %vm7277_vm8, %v7336_v53, %v7335_v38  ;;  %v7276_v25 = vrot.slane %v7261_v30, 5 }
 0x994   : > { %v7338_v47 = vsel %vm7279_vm9, %v7336_v53, %v7337_v0  ;;  %v7307_v31 = vsel %vm7277_vm8, %v7306_v32, %v7305_v24  ;;  %v7372_v15 = vsel %vm7277_vm8, %v7371_v5, %v7370_v54 }
 0x995   : > { %7339 = vrot.lane.b32.xlu0 %v7338_v47, %s8112_s8  ;;  %v7308_v55 = vsel %vm7279_vm9, %v7306_v32, %v7307_v31  ;;  %v7278_v58 = vsel %vm7277_vm8, %v7276_v25, %v7275_v56  ;;  %v7373_v10 = vsel %vm7279_vm9, %v7371_v5, %v7372_v15  ;;  %s7509_s8 = sshll.u32 %s8166_s22, 7  ;;  %s7380_s22 = scalar_lea.sflag [#allocation11], %s215_s16 }
 0x996   : > { %7309 = vrot.lane.b32.xlu1 %v7308_v55, %s8100_s9  ;;  %v7280_v59 = vsel %vm7279_vm9, %v7276_v25, %v7278_v58  ;;  %s11388_s11 = scalar_lea.hbm %s11437_s5, %s7509_s8 }
 0x997   : > { %7283 = vst.msk [vmem:[%s217_s30] sm:$0xf] %vm7282_vm10, %v7280_v59 }
 0x999   : > { %7374 = vrot.lane.b32.xlu0 %v7373_v10, %s8113_s25 }
 0xa07   : > { %v7340_v49 = vpop.permute.xlu0 %7339 }
 0xa08   : > { %v7341_v1 = vrot.slane %v7340_v49, 4  ;;  %v7310_v34 = vpop.permute.xlu1 %7309 }
 0xa09   : > { %7313 = vst.msk [vmem:[%s217_s30] sm:$0xf] %vm7312_vm13, %v7310_v34 }
 0xa0a   : > { %v7343_v13 = vsel %vm7342_vm14, %v7341_v1, %v7340_v49 }
 0xa0b   : > { %v7375_v50 = vpop.permute.xlu0 %7374  ;;  %7348 = vst.msk [vmem:[%s217_s30] sm:$0xff] %vm7347_vm15, %v7343_v13 }
 0xa0c   : > { %7378 = vst.msk [vmem:[%s217_s30 + $0x4] sm:$0xf] %vm7377_vm0, %v7375_v50 }
 0xa0d   : > { %8033 = shalt.err (!%p8030_p3)
}
 0xa0e   : > { %s8034_s23 = scalar_lea.hbm %s11388_s11, 128  ;;  %s8038_s16 = scalar_lea.hbm %s11437_s5, 256 }
 0xa0f   : > { %p8035_p4 = scmp.ne.s32.totalorder %s11388_s11, %s8034_s23  ;;  %p8039_p9 = scmp.lt.u32.totalorder %s11388_s11, %s11437_s5 }
 0xa10   : > { %p8040_p10 = scmp.lt.u32.totalorder %s8038_s16, %s8034_s23  ;;  %p8042_p12 = scmp.lt.u32.totalorder %s8034_s23, %s11388_s11 }
 0xa11   : > { %p8036_p7 = pnand %p8035_p4, %p8183_p5 }
 0xa12   : > { %p8041_p11 = por %p8040_p10, %p8039_p9 }
 0xa13   : > { %p8037_p8 = pneg %p8036_p7 }
 0xa14   : > { %p8043_p13 = por %p8042_p12, %p8041_p11 }
 0xa16   : > { %p8044_p0 = pnand %p8043_p13, %p8037_p8 }
 0xa18   : > { %8047 = shalt.err (!%p8044_p0)
}
 0xa19   : > { %7946 = dma.vmem_to_hbm [thread:$0]  (%p8183_p5), %s11390_s6, 128, %s11388_s11, %s7380_s22  }
 0xa1a PF: > { %p7952_p1 = scmp.ge.s32.totalorder %s8082_s21, 2  ;;  %s7406_s25 = sand.u32 1, %s8070_s18  }
 0xa1b   : > { %s7407_s8 = scalar_lea.sflag [#allocation11], %s7406_s25 }
 0xa1c   : > { %p7949_p2 = pnand %p7952_p1, %p8187_p6 }
 0xa1e   : > { %8065 = dma.done.wait (!%p7949_p2), %s7407_s8, 128  }
 0xa1f   : > { %8067 = vsyncadd (!%p7949_p2), %s7407_s8, 4294967168  ;;  %p15_p3 = scmp.ge.s32.totalorder %s8170_s24, 4   ;;  %s11440_s18 = smov %s8074_s19 }
 0xa20   : > { %s11441_s19 = smov %s8078_s20  ;;  %s11442_s20 = smov %s8181_s27 }
 0xa21   : > { %s11443_s21 = smov %s8170_s24  ;;  %17 = sbr.rel (!%p15_p3) target bundleno = 3 (0x3), region = 100 }
 0xa28   :  { %7412 = vsyncpa [#allocation11], 1 }
 0xa29   :  { %7414 = vsyncpa [#allocation11 + $0x1], 1 }

</bundles_post_ra>
